<compile_context>
chip_gen: v7x
topology: tpu7x:2x2x1
jax: 0.10.0
libtpu: 0.0.40
codegen_flags: <defaults>
</compile_context>

<pallas_src>
import math
import jax
import jax.numpy as jnp
from jax import lax
from jax.experimental import pallas as pl
from jax.experimental.pallas import tpu as pltpu


def _round_up(x, m):
    return (x + m - 1) // m * m


def _pick_tm(m):
    for t in (512, 256, 128):
        if m >= t:
            return t
    return _round_up(max(m, 1), 16)


# ---------------------------------------------------------------------------
# Kernel 1: fused matmul + per-channel affine (folded BN / bias) + PReLU.
# Full-K tile (single grid step along K for every matmul in this model), bf16
# operands on the MXU, f32 accumulate, bf16 output (halved writeback bytes).
# ---------------------------------------------------------------------------
def _mm_affine_prelu_kernel(x_ref, w_ref, aff_ref, o_ref):
    acc = jnp.dot(x_ref[...], w_ref[...], preferred_element_type=jnp.float32)
    y = acc * aff_ref[0:1, :] + aff_ref[1:2, :]
    o_ref[...] = jnp.where(y >= 0, y, aff_ref[2:3, :] * y).astype(o_ref.dtype)


def matmul_affine_prelu(x, w_p, aff_p, out_dtype=jnp.bfloat16):
    """prelu((x @ w) * scale + shift, alpha) with padded lane-dense output.

    w_p: pre-padded bf16 (Kp, Np); aff_p: packed f32 (3, Np) = [scale, shift,
    alpha].  Returns (Mp, Np) in out_dtype; caller slices rows only (padded
    output channels are exactly 0 because scale/shift pad to 0)."""
    M, K = x.shape
    Kp, Np = w_p.shape
    assert Kp >= K and Kp % 128 == 0 and Np % 128 == 0

    tm = _pick_tm(M)
    Mp = _round_up(M, tm)
    tn = Np                                   # Np <= 512 for every call here
    # full-K live set (double-buffered) stays well under the default scoped
    # VMEM on all of v5e/v6e/v7x for this model's shapes (~2.2 MiB).
    xp = x if x.dtype == jnp.bfloat16 else x.astype(jnp.bfloat16)
    if Mp != M or Kp != K:
        xp = jnp.pad(xp, ((0, Mp - M), (0, Kp - K)))

    grid = (Mp // tm, Np // tn)
    return pl.pallas_call(
        _mm_affine_prelu_kernel,
        out_shape=jax.ShapeDtypeStruct((Mp, Np), out_dtype),
        grid_spec=pltpu.PrefetchScalarGridSpec(
            num_scalar_prefetch=0,
            grid=grid,
            in_specs=[
                pl.BlockSpec((tm, Kp), lambda i, j: (i, 0)),
                pl.BlockSpec((Kp, tn), lambda i, j: (0, j)),
                pl.BlockSpec((3, tn), lambda i, j: (0, j)),
            ],
            out_specs=pl.BlockSpec((tm, tn), lambda i, j: (i, j)),
        ),
        compiler_params=pltpu.CompilerParams(
            dimension_semantics=("parallel", "parallel")),
    )(xp, w_p, aff_p)


# ---------------------------------------------------------------------------
# Kernel 2: fused MaxPool3d((3,3,1), stride (2,2,1), pad (1,1,0)) + global
# average pool.  Even/odd row/col splits (plain-JAX glue) let the kernel do
# the 9-tap max with unit-stride slices; Cf (=128 padded) stays on the lane
# axis and the pooled map is never written back to HBM.
# ---------------------------------------------------------------------------
def _maxpool_gap_kernel(ee_ref, eo_ref, oe_ref, oo_ref, o_ref):
    To, Ho2, Wo2, _ = oo_ref.shape
    m = oo_ref[...]
    m = jnp.maximum(m, ee_ref[:, 0:Ho2, 0:Wo2, :])
    m = jnp.maximum(m, ee_ref[:, 0:Ho2, 1:Wo2 + 1, :])
    m = jnp.maximum(m, ee_ref[:, 1:Ho2 + 1, 0:Wo2, :])
    m = jnp.maximum(m, ee_ref[:, 1:Ho2 + 1, 1:Wo2 + 1, :])
    m = jnp.maximum(m, eo_ref[:, 0:Ho2, :, :])
    m = jnp.maximum(m, eo_ref[:, 1:Ho2 + 1, :, :])
    m = jnp.maximum(m, oe_ref[:, :, 0:Wo2, :])
    m = jnp.maximum(m, oe_ref[:, :, 1:Wo2 + 1, :])
    s = jnp.sum(m.astype(jnp.float32), axis=(1, 2))       # (To, Cf)
    o_ref[...] = (s * (1.0 / float(Ho2 * Wo2))).astype(o_ref.dtype)


def maxpool_gap(feat, B, To, Ho, Wo, Cf):
    """feat: (B, To, Ho, Wo, Cf) bf16 -> spatial max-pool + mean-pool (B*To, Cf) bf16."""
    Ho2 = (Ho + 2 - 3) // 2 + 1
    Wo2 = (Wo + 2 - 3) // 2 + 1
    Hp, Wp = 2 * Ho2 + 1, 2 * Wo2 + 1
    xpad = jnp.pad(feat, ((0, 0), (0, 0), (1, 1), (1, 1), (0, 0)),
                   constant_values=-jnp.inf)[:, :, :Hp, :Wp, :]
    ee = xpad[:, :, 0::2, 0::2, :].reshape(B * To, Ho2 + 1, Wo2 + 1, Cf)
    eo = xpad[:, :, 0::2, 1::2, :].reshape(B * To, Ho2 + 1, Wo2, Cf)
    oe = xpad[:, :, 1::2, 0::2, :].reshape(B * To, Ho2, Wo2 + 1, Cf)
    oo = xpad[:, :, 1::2, 1::2, :].reshape(B * To, Ho2, Wo2, Cf)
    return pl.pallas_call(
        _maxpool_gap_kernel,
        out_shape=jax.ShapeDtypeStruct((B * To, Cf), jnp.bfloat16),
        grid_spec=pltpu.PrefetchScalarGridSpec(
            num_scalar_prefetch=0,
            grid=(B,),
            in_specs=[
                pl.BlockSpec((To, Ho2 + 1, Wo2 + 1, Cf), lambda b: (b, 0, 0, 0)),
                pl.BlockSpec((To, Ho2 + 1, Wo2, Cf), lambda b: (b, 0, 0, 0)),
                pl.BlockSpec((To, Ho2, Wo2 + 1, Cf), lambda b: (b, 0, 0, 0)),
                pl.BlockSpec((To, Ho2, Wo2, Cf), lambda b: (b, 0, 0, 0)),
            ],
            out_specs=pl.BlockSpec((To, Cf), lambda b: (b, 0)),
        ),
        compiler_params=pltpu.CompilerParams(
            dimension_semantics=("parallel",)),
    )(ee, eo, oe, oo)


# ---------------------------------------------------------------------------
# Kernel 3: fused tail — trunk projection, 4 TCN levels (k=3/5/7 branches
# pre-fused into one 7-tap weight each), consensus mean over time, and the
# final Linear, all in one pallas_call gridded over batch.  The activation
# stays resident in a VMEM scratch with a zero 3-frame halo; temporal taps
# are static sublane-offset slices (no tcols HBM materialization).
# ---------------------------------------------------------------------------
def _tail_kernel(gap_ref, trunk_w_ref, tw0_ref, tw1_ref, tw2_ref, tw3_ref,
                 tcn_aff_ref, fc_w_ref, fc_b_ref, o_ref, xbuf_ref):
    To = gap_ref.shape[0]
    C3 = tcn_aff_ref.shape[1]                      # padded 3*hidden (=128)
    scale = tcn_aff_ref[0:1, :]
    shift = tcn_aff_ref[1:2, :]
    alpha = tcn_aff_ref[2:3, :]

    # --- video trunk: 128 -> 512 projection on the MXU
    # TODO(synk): ResNet(BasicBlock,[2,2,2,2]) trunk definition not provided in
    # the reference; approximated as global-average-pool + learned projection.
    trunk = jnp.dot(gap_ref[...], trunk_w_ref[...],
                    preferred_element_type=jnp.float32)          # (To, 512)

    xbuf_ref[...] = jnp.zeros_like(xbuf_ref)       # zero time-pad halo (3 each side)
    xbuf_ref[3:3 + To, :] = trunk.astype(xbuf_ref.dtype)

    # --- MultiscaleMultibranchTCN: 4 levels, 3 branches fused per level
    # TODO(synk): MultibranchTemporalConvNet internals (dilation/chomp/BN/
    # dropout/residual) not provided; approximated as same-padded convs + PReLU.
    level_ws = (tw0_ref, tw1_ref, tw2_ref, tw3_ref)
    cin = trunk_w_ref.shape[1]                     # 512 for level 0
    y = None
    for lvl in range(4):
        w_ref = level_ws[lvl]
        acc = jnp.zeros((To, C3), jnp.float32)
        for j in range(7):                         # 7 temporal taps
            acc = acc + jnp.dot(xbuf_ref[j:j + To, 0:cin],
                                w_ref[j * cin:(j + 1) * cin, :],
                                preferred_element_type=jnp.float32)
        yl = acc * scale + shift
        y = jnp.where(yl >= 0, yl, alpha * yl)     # PReLU
        if lvl < 3:
            xbuf_ref[3:3 + To, 0:C3] = y.astype(xbuf_ref.dtype)
            cin = C3

    # --- consensus (mean over time) + final Linear
    m = (jnp.sum(y, axis=0, keepdims=True) * (1.0 / To)).astype(jnp.bfloat16)
    logits = jnp.dot(m, fc_w_ref[...], preferred_element_type=jnp.float32)
    o_ref[...] = (logits + fc_b_ref[...])[None]


def tail_fused(gap, prep, B, To):
    Cfp, bo = prep["trunk_w"].shape                # (128, 512)
    C3 = prep["tcn_aff"].shape[1]
    ncp = prep["fc_w"].shape[1]
    out = pl.pallas_call(
        _tail_kernel,
        out_shape=jax.ShapeDtypeStruct((B, 1, ncp), jnp.float32),
        grid_spec=pltpu.PrefetchScalarGridSpec(
            num_scalar_prefetch=0,
            grid=(B,),
            in_specs=[
                pl.BlockSpec((To, Cfp), lambda b: (b, 0)),
                pl.BlockSpec((Cfp, bo), lambda b: (0, 0)),
                pl.BlockSpec(prep["tcn_w_0"].shape, lambda b: (0, 0)),
                pl.BlockSpec(prep["tcn_w_1"].shape, lambda b: (0, 0)),
                pl.BlockSpec(prep["tcn_w_2"].shape, lambda b: (0, 0)),
                pl.BlockSpec(prep["tcn_w_3"].shape, lambda b: (0, 0)),
                pl.BlockSpec((3, C3), lambda b: (0, 0)),
                pl.BlockSpec(prep["fc_w"].shape, lambda b: (0, 0)),
                pl.BlockSpec((1, ncp), lambda b: (0, 0)),
            ],
            out_specs=pl.BlockSpec((1, 1, ncp), lambda b: (b, 0, 0)),
            scratch_shapes=[pltpu.VMEM((To + 6, bo), jnp.bfloat16)],
        ),
        compiler_params=pltpu.CompilerParams(
            dimension_semantics=("parallel",)),
    )(gap, prep["trunk_w"], prep["tcn_w_0"], prep["tcn_w_1"],
      prep["tcn_w_2"], prep["tcn_w_3"], prep["tcn_aff"],
      prep["fc_w"], prep["fc_b"])
    return out.reshape(B, ncp)


# ---------------------------------------------------------------------------
# Parameters (deterministic synthetic init, mirrors _initialize_weights_randomly)
# ---------------------------------------------------------------------------
def init_params(key, hidden_dim=32, num_classes=16,
                frontend_nout=64, backend_out=512):
    ks = iter(jax.random.split(key, 24))
    f = lambda n: math.sqrt(2.0 / float(n))
    p = {}
    kconv = 7 * 7 * 5
    p["conv3d_w"] = jax.random.normal(next(ks), (3 * kconv, frontend_nout),
                                      jnp.float32) * f(kconv * frontend_nout)
    eps = 1e-5   # BatchNorm3d eval mode, default running stats
    p["bn_scale"] = jnp.full((frontend_nout,), 1.0 / math.sqrt(1.0 + eps),
                             jnp.float32)
    p["bn_shift"] = jnp.zeros((frontend_nout,), jnp.float32)
    p["prelu_frontend"] = jnp.full((frontend_nout,), 0.25, jnp.float32)
    p["trunk_w"] = jax.random.normal(next(ks), (frontend_nout, backend_out),
                                     jnp.float32) * f(frontend_nout)
    in_ch = backend_out
    for lvl in range(4):
        for k in (3, 5, 7):
            p[f"tcn_w_{lvl}_{k}"] = (
                jax.random.normal(next(ks), (k * in_ch, hidden_dim),
                                  jnp.float32) * f(k * hidden_dim))
        in_ch = 3 * hidden_dim
    p["tcn_prelu"] = jnp.full((hidden_dim,), 0.25, jnp.float32)
    p["fc_w"] = jax.random.normal(next(ks), (3 * hidden_dim, num_classes),
                                  jnp.float32) * f(3 * hidden_dim)
    p["fc_b"] = jnp.zeros((num_classes,), jnp.float32)
    return p


# ---------------------------------------------------------------------------
# One-time weight prep: pad everything to 128-aligned K/N, cast to bf16, pack
# per-channel (scale, shift, alpha) f32 triples, fuse the k=3/5/7 TCN branches
# into a single tap-major 7-tap weight per level (with rows for the 128-lane
# channel padding zeroed so padded activations are absorbed for free).
# ---------------------------------------------------------------------------
def prepare_params(params, hidden_dim=32):
    f32, bf16 = jnp.float32, jnp.bfloat16

    def pad_w(w, Kp=None, Np=None):
        K, N = w.shape
        Kp = _round_up(K, 128) if Kp is None else Kp
        Np = _round_up(N, 128) if Np is None else Np
        return jnp.pad(w.astype(f32), ((0, Kp - K), (0, Np - N))).astype(bf16)

    def pack_aff(scale, shift, alpha):
        N = scale.shape[0]
        Np = _round_up(N, 128)
        return jnp.stack([
            jnp.pad(scale.astype(f32), (0, Np - N)),           # scale pad -> 0
            jnp.pad(shift.astype(f32), (0, Np - N)),           # shift pad -> 0
            jnp.pad(alpha.astype(f32), (0, Np - N), constant_values=1.0)],
            axis=0)                                            # (3, Np)

    prep = {}
    Cf = params["conv3d_w"].shape[1]                 # 64
    backend_out = params["trunk_w"].shape[1]         # 512
    h3 = 3 * hidden_dim                              # 96
    C3 = _round_up(h3, 128)                          # 128

    prep["conv_w"] = pad_w(params["conv3d_w"])       # (768, 128)
    prep["conv_aff"] = pack_aff(params["bn_scale"], params["bn_shift"],
                                params["prelu_frontend"])

    prep["trunk_w"] = pad_w(params["trunk_w"])       # (128, 512); dead rows = 0

    # Fuse the k=3/5/7 branches of each TCN level into one tap-major weight:
    # tap t of branch k occupies rows [(off+t)*Cin_pad, (off+t)*Cin_pad+Cin),
    # off = (7-k)//2; branches concatenated along the output axis.
    in_real, in_pad = backend_out, backend_out
    for lvl in range(4):
        blocks = []
        for k in (3, 5, 7):
            w = params[f"tcn_w_{lvl}_{k}"]           # (k*in_real, hidden)
            off = (7 - k) // 2
            wf = jnp.zeros((7 * in_pad, hidden_dim), f32)
            for t in range(k):
                wf = wf.at[(off + t) * in_pad:(off + t) * in_pad + in_real, :].set(
                    w[t * in_real:(t + 1) * in_real, :])
            blocks.append(wf)
        prep[f"tcn_w_{lvl}"] = pad_w(jnp.concatenate(blocks, axis=1))
        in_real, in_pad = h3, C3
    prep["tcn_aff"] = pack_aff(jnp.ones((h3,), f32), jnp.zeros((h3,), f32),
                               jnp.tile(params["tcn_prelu"], 3))

    nc = params["fc_w"].shape[1]
    prep["fc_w"] = pad_w(params["fc_w"], Kp=C3)      # (128, 128)
    prep["fc_b"] = jnp.pad(params["fc_b"].astype(f32),
                           (0, _round_up(nc, 128) - nc)).reshape(1, -1)

    meta = dict(conv_n=Cf, cf_pad=prep["conv_w"].shape[1],
                backend_out=backend_out, hidden=hidden_dim, num_classes=nc)
    return prep, meta


# ---------------------------------------------------------------------------
# Forward (mode='video'): v is (B, 3, H, W, T), time as the LAST spatial dim
# (as implied by the (7,7,5) frontend kernel + threeD_to_2D_tensor).
# ---------------------------------------------------------------------------
def lsntcn_forward(prep, v, meta):
    B, Cin, H, W, T = v.shape
    Cfp = meta["cf_pad"]
    nc = meta["num_classes"]

    # --- frontend3D: Conv3d + BN3d + PReLU fused into one full-K matmul.
    # TODO(synk): at production video sizes, form im2col patches per output
    # tile inside the kernel (halo DMA) instead of materializing them in HBM;
    # patch-feature ordering must match conv3d_w rows if real weights are loaded.
    patches = lax.conv_general_dilated_patches(
        v.astype(jnp.bfloat16), filter_shape=(7, 7, 5),
        window_strides=(2, 2, 1), padding=((3, 3), (3, 3), (2, 2)))
    Kc, Ho, Wo, To = patches.shape[1:]
    M = B * To * Ho * Wo
    cols = jnp.transpose(patches, (0, 4, 2, 3, 1)).reshape(M, Kc)
    feat = matmul_affine_prelu(cols, prep["conv_w"], prep["conv_aff"])[:M]
    feat = feat.reshape(B, To, Ho, Wo, Cfp)          # keep 128-lane padded channels

    # --- MaxPool3d((3,3,1),(2,2,1),(1,1,0)) + global average pool, one kernel
    gap = maxpool_gap(feat, B, To, Ho, Wo, Cfp)      # (B*To, 128) bf16

    # --- trunk + TCN + consensus + FC fused into one B-gridded kernel
    logits = tail_fused(gap, prep, B, To)            # (B, 128) f32
    return logits[:, :nc]


# ---------------------------------------------------------------------------
if __name__ == "__main__":
    key = jax.random.PRNGKey(0)
    kp, kv, ka = jax.random.split(key, 3)

    hidden_dim, num_classes = 32, 16
    params = init_params(kp, hidden_dim=hidden_dim, num_classes=num_classes)

    B, H, W, T = 2, 16, 16, 8
    v = jax.random.normal(kv, (B, 3, H, W, T), jnp.float32)   # video input
    a = jax.random.normal(ka, (B, 1, 64), jnp.float32)        # unused ('video' mode)

    prep, meta = prepare_params(params, hidden_dim=hidden_dim)
    fwd = jax.jit(lambda pr, vv: lsntcn_forward(pr, vv, meta))

    out = jax.block_until_ready(fwd(prep, v))
    assert out.shape == (B, num_classes)
    assert bool(jnp.all(jnp.isfinite(out)))
    print("KERNEL_OK")
</pallas_src>

<mosaic_0001>
module attributes {stable_mosaic.version = 11 : i64} {
  func.func @_mm_affine_prelu_kernel(%arg0: i32, %arg1: i32, %arg2: memref<512x768xbf16, #tpu.memory_space<vmem>>, %arg3: memref<768x128xbf16, #tpu.memory_space<vmem>>, %arg4: memref<3x128xf32, #tpu.memory_space<vmem>>, %arg5: memref<512x128xbf16, #tpu.memory_space<vmem>>) attributes {dimension_semantics = [#tpu.dimension_semantics<parallel>, #tpu.dimension_semantics<parallel>], iteration_bounds = array<i64: 2, 1>, scalar_prefetch = 0 : i64, scratch_operands = 0 : i64, tpu.core_type = #tpu.core_type<tc>, window_params = [{transform_indices = @transform_0, window_bounds = array<i64: 512, 768>}, {transform_indices = @transform_1, window_bounds = array<i64: 768, 128>}, {transform_indices = @transform_2, window_bounds = array<i64: 3, 128>}, {transform_indices = @transform_3, window_bounds = array<i64: 512, 128>}]} {
    %c0 = arith.constant 0 : index
    %c0_0 = arith.constant 0 : index
    %0 = vector.load %arg2[%c0, %c0_0] : memref<512x768xbf16, #tpu.memory_space<vmem>>, vector<512x768xbf16>
    %c0_1 = arith.constant 0 : index
    %c0_2 = arith.constant 0 : index
    %1 = vector.load %arg3[%c0_1, %c0_2] : memref<768x128xbf16, #tpu.memory_space<vmem>>, vector<768x128xbf16>
    %cst = arith.constant dense<0.000000e+00> : vector<512x128xf32>
    %2 = tpu.matmul %0, %1, %cst {dimension_numbers = #tpu.dot_dimension_numbers<[1], [0], [0], [1], [0, 0, 1, 1], [], []>} : vector<512x768xbf16>, vector<768x128xbf16>, vector<512x128xf32> -> vector<512x128xf32>
    %c0_3 = arith.constant 0 : index
    %c0_4 = arith.constant 0 : index
    %3 = vector.load %arg4[%c0_3, %c0_4] : memref<3x128xf32, #tpu.memory_space<vmem>>, vector<1x128xf32>
    %4 = vector.broadcast %3 : vector<1x128xf32> to vector<512x128xf32>
    %5 = arith.mulf %2, %4 : vector<512x128xf32>
    %c1 = arith.constant 1 : index
    %c0_5 = arith.constant 0 : index
    %6 = vector.load %arg4[%c1, %c0_5] : memref<3x128xf32, #tpu.memory_space<vmem>>, vector<1x128xf32>
    %7 = vector.broadcast %6 : vector<1x128xf32> to vector<512x128xf32>
    %8 = arith.addf %5, %7 : vector<512x128xf32>
    %cst_6 = arith.constant 0.000000e+00 : f32
    %9 = vector.broadcast %cst_6 : f32 to vector<512x128xf32>
    %10 = arith.cmpf oge, %8, %9 : vector<512x128xf32>
    %c2 = arith.constant 2 : index
    %c0_7 = arith.constant 0 : index
    %11 = vector.load %arg4[%c2, %c0_7] : memref<3x128xf32, #tpu.memory_space<vmem>>, vector<1x128xf32>
    %12 = vector.broadcast %11 : vector<1x128xf32> to vector<512x128xf32>
    %13 = arith.mulf %12, %8 : vector<512x128xf32>
    %14 = arith.select %10, %8, %13 : vector<512x128xi1>, vector<512x128xf32>
    %15 = arith.truncf %14 : vector<512x128xf32> to vector<512x128xbf16>
    %c0_8 = arith.constant 0 : index
    %c0_9 = arith.constant 0 : index
    %16 = vector.load %arg5[%c0_8, %c0_9] : memref<512x128xbf16, #tpu.memory_space<vmem>>, vector<512x128xbf16>
    tpu.vector_store %arg5[%c0_8, %c0_9], %15 {strides = array<i32>} : memref<512x128xbf16, #tpu.memory_space<vmem>>, vector<512x128xbf16>,
    return
  }
  func.func @transform_0(%arg0: i32, %arg1: i32) -> (i32, i32) {
    %c0_i32 = arith.constant 0 : i32
    %c0_i32_0 = arith.constant 0 : i32
    return %arg0, %c0_i32 : i32, i32
  }
  func.func @transform_1(%arg0: i32, %arg1: i32) -> (i32, i32) {
    %c0_i32 = arith.constant 0 : i32
    %c0_i32_0 = arith.constant 0 : i32
    return %c0_i32, %arg1 : i32, i32
  }
  func.func @transform_2(%arg0: i32, %arg1: i32) -> (i32, i32) {
    %c0_i32 = arith.constant 0 : i32
    %c0_i32_0 = arith.constant 0 : i32
    return %c0_i32, %arg1 : i32, i32
  }
  func.func @transform_3(%arg0: i32, %arg1: i32) -> (i32, i32) {
    %c0_i32 = arith.constant 0 : i32
    return %arg0, %arg1 : i32, i32
  }
}

module attributes {stable_mosaic.version = 11 : i64} {
  func.func @_maxpool_gap_kernel(%arg0: i32, %arg1: memref<8x5x5x128xbf16, #tpu.memory_space<vmem>>, %arg2: memref<8x5x4x128xbf16, #tpu.memory_space<vmem>>, %arg3: memref<8x4x5x128xbf16, #tpu.memory_space<vmem>>, %arg4: memref<8x4x4x128xbf16, #tpu.memory_space<vmem>>, %arg5: memref<8x128xbf16, #tpu.memory_space<vmem>>) attributes {dimension_semantics = [#tpu.dimension_semantics<parallel>], iteration_bounds = array<i64: 2>, scalar_prefetch = 0 : i64, scratch_operands = 0 : i64, tpu.core_type = #tpu.core_type<tc>, window_params = [{transform_indices = @transform_0, window_bounds = array<i64: 8, 5, 5, 128>}, {transform_indices = @transform_1, window_bounds = array<i64: 8, 5, 4, 128>}, {transform_indices = @transform_2, window_bounds = array<i64: 8, 4, 5, 128>}, {transform_indices = @transform_3, window_bounds = array<i64: 8, 4, 4, 128>}, {transform_indices = @transform_4, window_bounds = array<i64: 8, 128>}]} {
    %c0 = arith.constant 0 : index
    %c0_0 = arith.constant 0 : index
    %c0_1 = arith.constant 0 : index
    %c0_2 = arith.constant 0 : index
    %0 = vector.load %arg4[%c0, %c0_0, %c0_1, %c0_2] : memref<8x4x4x128xbf16, #tpu.memory_space<vmem>>, vector<8x4x4x128xbf16>
    %c0_3 = arith.constant 0 : index
    %c0_4 = arith.constant 0 : index
    %c0_5 = arith.constant 0 : index
    %c0_6 = arith.constant 0 : index
    %1 = vector.load %arg1[%c0_3, %c0_4, %c0_5, %c0_6] : memref<8x5x5x128xbf16, #tpu.memory_space<vmem>>, vector<8x4x4x128xbf16>
    %2 = arith.maximumf %0, %1 : vector<8x4x4x128xbf16>
    %c0_7 = arith.constant 0 : index
    %c0_8 = arith.constant 0 : index
    %c1 = arith.constant 1 : index
    %c0_9 = arith.constant 0 : index
    %3 = vector.load %arg1[%c0_7, %c0_8, %c1, %c0_9] : memref<8x5x5x128xbf16, #tpu.memory_space<vmem>>, vector<8x4x4x128xbf16>
    %4 = arith.maximumf %2, %3 : vector<8x4x4x128xbf16>
    %c0_10 = arith.constant 0 : index
    %c1_11 = arith.constant 1 : index
    %c0_12 = arith.constant 0 : index
    %c0_13 = arith.constant 0 : index
    %5 = vector.load %arg1[%c0_10, %c1_11, %c0_12, %c0_13] : memref<8x5x5x128xbf16, #tpu.memory_space<vmem>>, vector<8x4x4x128xbf16>
    %6 = arith.maximumf %4, %5 : vector<8x4x4x128xbf16>
    %c0_14 = arith.constant 0 : index
    %c1_15 = arith.constant 1 : index
    %c1_16 = arith.constant 1 : index
    %c0_17 = arith.constant 0 : index
    %7 = vector.load %arg1[%c0_14, %c1_15, %c1_16, %c0_17] : memref<8x5x5x128xbf16, #tpu.memory_space<vmem>>, vector<8x4x4x128xbf16>
    %8 = arith.maximumf %6, %7 : vector<8x4x4x128xbf16>
    %c0_18 = arith.constant 0 : index
    %c0_19 = arith.constant 0 : index
    %c0_20 = arith.constant 0 : index
    %c0_21 = arith.constant 0 : index
    %9 = vector.load %arg2[%c0_18, %c0_19, %c0_20, %c0_21] : memref<8x5x4x128xbf16, #tpu.memory_space<vmem>>, vector<8x4x4x128xbf16>
    %10 = arith.maximumf %8, %9 : vector<8x4x4x128xbf16>
    %c0_22 = arith.constant 0 : index
    %c1_23 = arith.constant 1 : index
    %c0_24 = arith.constant 0 : index
    %c0_25 = arith.constant 0 : index
    %11 = vector.load %arg2[%c0_22, %c1_23, %c0_24, %c0_25] : memref<8x5x4x128xbf16, #tpu.memory_space<vmem>>, vector<8x4x4x128xbf16>
    %12 = arith.maximumf %10, %11 : vector<8x4x4x128xbf16>
    %c0_26 = arith.constant 0 : index
    %c0_27 = arith.constant 0 : index
    %c0_28 = arith.constant 0 : index
    %c0_29 = arith.constant 0 : index
    %13 = vector.load %arg3[%c0_26, %c0_27, %c0_28, %c0_29] : memref<8x4x5x128xbf16, #tpu.memory_space<vmem>>, vector<8x4x4x128xbf16>
    %14 = arith.maximumf %12, %13 : vector<8x4x4x128xbf16>
    %c0_30 = arith.constant 0 : index
    %c0_31 = arith.constant 0 : index
    %c1_32 = arith.constant 1 : index
    %c0_33 = arith.constant 0 : index
    %15 = vector.load %arg3[%c0_30, %c0_31, %c1_32, %c0_33] : memref<8x4x5x128xbf16, #tpu.memory_space<vmem>>, vector<8x4x4x128xbf16>
    %16 = arith.maximumf %14, %15 : vector<8x4x4x128xbf16>
    %17 = arith.extf %16 : vector<8x4x4x128xbf16> to vector<8x4x4x128xf32>
    %cst = arith.constant dense<0.000000e+00> : vector<8x128xf32>
    %18 = vector.multi_reduction <add>, %17, %cst [1, 2] : vector<8x4x4x128xf32> to vector<8x128xf32>
    %cst_34 = arith.constant 6.250000e-02 : f32
    %19 = vector.broadcast %cst_34 : f32 to vector<8x128xf32>
    %20 = arith.mulf %18, %19 : vector<8x128xf32>
    %21 = arith.truncf %20 : vector<8x128xf32> to vector<8x128xbf16>
    %c0_35 = arith.constant 0 : index
    %c0_36 = arith.constant 0 : index
    %22 = vector.load %arg5[%c0_35, %c0_36] : memref<8x128xbf16, #tpu.memory_space<vmem>>, vector<8x128xbf16>
    tpu.vector_store %arg5[%c0_35, %c0_36], %21 {strides = array<i32>} : memref<8x128xbf16, #tpu.memory_space<vmem>>, vector<8x128xbf16>,
    return
  }
  func.func @transform_0(%arg0: i32) -> (i32, i32, i32, i32) {
    %c0_i32 = arith.constant 0 : i32
    %c0_i32_0 = arith.constant 0 : i32
    %c0_i32_1 = arith.constant 0 : i32
    %c0_i32_2 = arith.constant 0 : i32
    return %arg0, %c0_i32, %c0_i32_0, %c0_i32_1 : i32, i32, i32, i32
  }
  func.func @transform_1(%arg0: i32) -> (i32, i32, i32, i32) {
    %c0_i32 = arith.constant 0 : i32
    %c0_i32_0 = arith.constant 0 : i32
    %c0_i32_1 = arith.constant 0 : i32
    %c0_i32_2 = arith.constant 0 : i32
    return %arg0, %c0_i32, %c0_i32_0, %c0_i32_1 : i32, i32, i32, i32
  }
  func.func @transform_2(%arg0: i32) -> (i32, i32, i32, i32) {
    %c0_i32 = arith.constant 0 : i32
    %c0_i32_0 = arith.constant 0 : i32
    %c0_i32_1 = arith.constant 0 : i32
    %c0_i32_2 = arith.constant 0 : i32
    return %arg0, %c0_i32, %c0_i32_0, %c0_i32_1 : i32, i32, i32, i32
  }
  func.func @transform_3(%arg0: i32) -> (i32, i32, i32, i32) {
    %c0_i32 = arith.constant 0 : i32
    %c0_i32_0 = arith.constant 0 : i32
    %c0_i32_1 = arith.constant 0 : i32
    %c0_i32_2 = arith.constant 0 : i32
    return %arg0, %c0_i32, %c0_i32_0, %c0_i32_1 : i32, i32, i32, i32
  }
  func.func @transform_4(%arg0: i32) -> (i32, i32) {
    %c0_i32 = arith.constant 0 : i32
    %c0_i32_0 = arith.constant 0 : i32
    return %arg0, %c0_i32 : i32, i32
  }
}

module attributes {stable_mosaic.version = 11 : i64} {
  func.func @_tail_kernel(%arg0: i32, %arg1: memref<8x128xbf16, #tpu.memory_space<vmem>>, %arg2: memref<128x512xbf16, #tpu.memory_space<vmem>>, %arg3: memref<3584x128xbf16, #tpu.memory_space<vmem>>, %arg4: memref<896x128xbf16, #tpu.memory_space<vmem>>, %arg5: memref<896x128xbf16, #tpu.memory_space<vmem>>, %arg6: memref<896x128xbf16, #tpu.memory_space<vmem>>, %arg7: memref<3x128xf32, #tpu.memory_space<vmem>>, %arg8: memref<128x128xbf16, #tpu.memory_space<vmem>>, %arg9: memref<1x128xf32, #tpu.memory_space<vmem>>, %arg10: memref<1x1x128xf32, #tpu.memory_space<vmem>>, %arg11: memref<14x512xbf16, #tpu.memory_space<vmem>>) attributes {dimension_semantics = [#tpu.dimension_semantics<parallel>], iteration_bounds = array<i64: 2>, scalar_prefetch = 0 : i64, scratch_operands = 1 : i64, tpu.core_type = #tpu.core_type<tc>, window_params = [{transform_indices = @transform_0, window_bounds = array<i64: 8, 128>}, {pipeline_mode = #tpu.pipeline_mode<synchronous>, transform_indices = @transform_1, window_bounds = array<i64: 128, 512>}, {pipeline_mode = #tpu.pipeline_mode<synchronous>, transform_indices = @transform_2, window_bounds = array<i64: 3584, 128>}, {pipeline_mode = #tpu.pipeline_mode<synchronous>, transform_indices = @transform_3, window_bounds = array<i64: 896, 128>}, {pipeline_mode = #tpu.pipeline_mode<synchronous>, transform_indices = @transform_4, window_bounds = array<i64: 896, 128>}, {pipeline_mode = #tpu.pipeline_mode<synchronous>, transform_indices = @transform_5, window_bounds = array<i64: 896, 128>}, {pipeline_mode = #tpu.pipeline_mode<synchronous>, transform_indices = @transform_6, window_bounds = array<i64: 3, 128>}, {pipeline_mode = #tpu.pipeline_mode<synchronous>, transform_indices = @transform_7, window_bounds = array<i64: 128, 128>}, {pipeline_mode = #tpu.pipeline_mode<synchronous>, transform_indices = @transform_8, window_bounds = array<i64: 1, 128>}, {transform_indices = @transform_9, window_bounds = array<i64: 1, 1, 128>}]} {
    %c0 = arith.constant 0 : index
    %c0_0 = arith.constant 0 : index
    %0 = vector.load %arg7[%c0, %c0_0] : memref<3x128xf32, #tpu.memory_space<vmem>>, vector<1x128xf32>
    %c1 = arith.constant 1 : index
    %c0_1 = arith.constant 0 : index
    %1 = vector.load %arg7[%c1, %c0_1] : memref<3x128xf32, #tpu.memory_space<vmem>>, vector<1x128xf32>
    %c2 = arith.constant 2 : index
    %c0_2 = arith.constant 0 : index
    %2 = vector.load %arg7[%c2, %c0_2] : memref<3x128xf32, #tpu.memory_space<vmem>>, vector<1x128xf32>
    %c0_3 = arith.constant 0 : index
    %c0_4 = arith.constant 0 : index
    %3 = vector.load %arg1[%c0_3, %c0_4] : memref<8x128xbf16, #tpu.memory_space<vmem>>, vector<8x128xbf16>
    %c0_5 = arith.constant 0 : index
    %c0_6 = arith.constant 0 : index
    %4 = vector.load %arg2[%c0_5, %c0_6] : memref<128x512xbf16, #tpu.memory_space<vmem>>, vector<128x512xbf16>
    %cst = arith.constant dense<0.000000e+00> : vector<8x512xf32>
    %5 = tpu.matmul %3, %4, %cst {dimension_numbers = #tpu.dot_dimension_numbers<[1], [0], [0], [1], [0, 0, 1, 1], [], []>} : vector<8x128xbf16>, vector<128x512xbf16>, vector<8x512xf32> -> vector<8x512xf32>
    %cst_7 = arith.constant 0.000000e+00 : bf16
    %6 = vector.broadcast %cst_7 : bf16 to vector<14x512xbf16>
    %c0_8 = arith.constant 0 : index
    %c0_9 = arith.constant 0 : index
    %7 = vector.load %arg11[%c0_8, %c0_9] : memref<14x512xbf16, #tpu.memory_space<vmem>>, vector<14x512xbf16>
    tpu.vector_store %arg11[%c0_8, %c0_9], %6 {strides = array<i32>} : memref<14x512xbf16, #tpu.memory_space<vmem>>, vector<14x512xbf16>,
    %8 = arith.truncf %5 : vector<8x512xf32> to vector<8x512xbf16>
    %c3 = arith.constant 3 : index
    %c0_10 = arith.constant 0 : index
    %9 = vector.load %arg11[%c3, %c0_10] : memref<14x512xbf16, #tpu.memory_space<vmem>>, vector<8x512xbf16>
    tpu.vector_store %arg11[%c3, %c0_10], %8 {strides = array<i32>} : memref<14x512xbf16, #tpu.memory_space<vmem>>, vector<8x512xbf16>,
    %cst_11 = arith.constant 0.000000e+00 : f32
    %10 = vector.broadcast %cst_11 : f32 to vector<8x128xf32>
    %c0_12 = arith.constant 0 : index
    %c0_13 = arith.constant 0 : index
    %11 = vector.load %arg11[%c0_12, %c0_13] : memref<14x512xbf16, #tpu.memory_space<vmem>>, vector<8x512xbf16>
    %c0_14 = arith.constant 0 : index
    %c0_15 = arith.constant 0 : index
    %12 = vector.load %arg3[%c0_14, %c0_15] : memref<3584x128xbf16, #tpu.memory_space<vmem>>, vector<512x128xbf16>
    %cst_16 = arith.constant dense<0.000000e+00> : vector<8x128xf32>
    %13 = tpu.matmul %11, %12, %cst_16 {dimension_numbers = #tpu.dot_dimension_numbers<[1], [0], [0], [1], [0, 0, 1, 1], [], []>} : vector<8x512xbf16>, vector<512x128xbf16>, vector<8x128xf32> -> vector<8x128xf32>
    %14 = arith.addf %10, %13 : vector<8x128xf32>
    %c1_17 = arith.constant 1 : index
    %c0_18 = arith.constant 0 : index
    %15 = vector.load %arg11[%c1_17, %c0_18] : memref<14x512xbf16, #tpu.memory_space<vmem>>, vector<8x512xbf16>
    %c512 = arith.constant 512 : index
    %c0_19 = arith.constant 0 : index
    %16 = vector.load %arg3[%c512, %c0_19] : memref<3584x128xbf16, #tpu.memory_space<vmem>>, vector<512x128xbf16>
    %cst_20 = arith.constant dense<0.000000e+00> : vector<8x128xf32>
    %17 = tpu.matmul %15, %16, %cst_20 {dimension_numbers = #tpu.dot_dimension_numbers<[1], [0], [0], [1], [0, 0, 1, 1], [], []>} : vector<8x512xbf16>, vector<512x128xbf16>, vector<8x128xf32> -> vector<8x128xf32>
    %18 = arith.addf %14, %17 : vector<8x128xf32>
    %c2_21 = arith.constant 2 : index
    %c0_22 = arith.constant 0 : index
    %19 = vector.load %arg11[%c2_21, %c0_22] : memref<14x512xbf16, #tpu.memory_space<vmem>>, vector<8x512xbf16>
    %c1024 = arith.constant 1024 : index
    %c0_23 = arith.constant 0 : index
    %20 = vector.load %arg3[%c1024, %c0_23] : memref<3584x128xbf16, #tpu.memory_space<vmem>>, vector<512x128xbf16>
    %cst_24 = arith.constant dense<0.000000e+00> : vector<8x128xf32>
    %21 = tpu.matmul %19, %20, %cst_24 {dimension_numbers = #tpu.dot_dimension_numbers<[1], [0], [0], [1], [0, 0, 1, 1], [], []>} : vector<8x512xbf16>, vector<512x128xbf16>, vector<8x128xf32> -> vector<8x128xf32>
    %22 = arith.addf %18, %21 : vector<8x128xf32>
    %c3_25 = arith.constant 3 : index
    %c0_26 = arith.constant 0 : index
    %23 = vector.load %arg11[%c3_25, %c0_26] : memref<14x512xbf16, #tpu.memory_space<vmem>>, vector<8x512xbf16>
    %c1536 = arith.constant 1536 : index
    %c0_27 = arith.constant 0 : index
    %24 = vector.load %arg3[%c1536, %c0_27] : memref<3584x128xbf16, #tpu.memory_space<vmem>>, vector<512x128xbf16>
    %cst_28 = arith.constant dense<0.000000e+00> : vector<8x128xf32>
    %25 = tpu.matmul %23, %24, %cst_28 {dimension_numbers = #tpu.dot_dimension_numbers<[1], [0], [0], [1], [0, 0, 1, 1], [], []>} : vector<8x512xbf16>, vector<512x128xbf16>, vector<8x128xf32> -> vector<8x128xf32>
    %26 = arith.addf %22, %25 : vector<8x128xf32>
    %c4 = arith.constant 4 : index
    %c0_29 = arith.constant 0 : index
    %27 = vector.load %arg11[%c4, %c0_29] : memref<14x512xbf16, #tpu.memory_space<vmem>>, vector<8x512xbf16>
    %c2048 = arith.constant 2048 : index
    %c0_30 = arith.constant 0 : index
    %28 = vector.load %arg3[%c2048, %c0_30] : memref<3584x128xbf16, #tpu.memory_space<vmem>>, vector<512x128xbf16>
    %cst_31 = arith.constant dense<0.000000e+00> : vector<8x128xf32>
    %29 = tpu.matmul %27, %28, %cst_31 {dimension_numbers = #tpu.dot_dimension_numbers<[1], [0], [0], [1], [0, 0, 1, 1], [], []>} : vector<8x512xbf16>, vector<512x128xbf16>, vector<8x128xf32> -> vector<8x128xf32>
    %30 = arith.addf %26, %29 : vector<8x128xf32>
    %c5 = arith.constant 5 : index
    %c0_32 = arith.constant 0 : index
    %31 = vector.load %arg11[%c5, %c0_32] : memref<14x512xbf16, #tpu.memory_space<vmem>>, vector<8x512xbf16>
    %c2560 = arith.constant 2560 : index
    %c0_33 = arith.constant 0 : index
    %32 = vector.load %arg3[%c2560, %c0_33] : memref<3584x128xbf16, #tpu.memory_space<vmem>>, vector<512x128xbf16>
    %cst_34 = arith.constant dense<0.000000e+00> : vector<8x128xf32>
    %33 = tpu.matmul %31, %32, %cst_34 {dimension_numbers = #tpu.dot_dimension_numbers<[1], [0], [0], [1], [0, 0, 1, 1], [], []>} : vector<8x512xbf16>, vector<512x128xbf16>, vector<8x128xf32> -> vector<8x128xf32>
    %34 = arith.addf %30, %33 : vector<8x128xf32>
    %c6 = arith.constant 6 : index
    %c0_35 = arith.constant 0 : index
    %35 = vector.load %arg11[%c6, %c0_35] : memref<14x512xbf16, #tpu.memory_space<vmem>>, vector<8x512xbf16>
    %c3072 = arith.constant 3072 : index
    %c0_36 = arith.constant 0 : index
    %36 = vector.load %arg3[%c3072, %c0_36] : memref<3584x128xbf16, #tpu.memory_space<vmem>>, vector<512x128xbf16>
    %cst_37 = arith.constant dense<0.000000e+00> : vector<8x128xf32>
    %37 = tpu.matmul %35, %36, %cst_37 {dimension_numbers = #tpu.dot_dimension_numbers<[1], [0], [0], [1], [0, 0, 1, 1], [], []>} : vector<8x512xbf16>, vector<512x128xbf16>, vector<8x128xf32> -> vector<8x128xf32>
    %38 = arith.addf %34, %37 : vector<8x128xf32>
    %39 = vector.broadcast %0 : vector<1x128xf32> to vector<8x128xf32>
    %40 = arith.mulf %38, %39 : vector<8x128xf32>
    %41 = vector.broadcast %1 : vector<1x128xf32> to vector<8x128xf32>
    %42 = arith.addf %40, %41 : vector<8x128xf32>
    %cst_38 = arith.constant 0.000000e+00 : f32
    %43 = vector.broadcast %cst_38 : f32 to vector<8x128xf32>
    %44 = arith.cmpf oge, %42, %43 : vector<8x128xf32>
    %45 = vector.broadcast %2 : vector<1x128xf32> to vector<8x128xf32>
    %46 = arith.mulf %45, %42 : vector<8x128xf32>
    %47 = arith.select %44, %42, %46 : vector<8x128xi1>, vector<8x128xf32>
    %48 = arith.truncf %47 : vector<8x128xf32> to vector<8x128xbf16>
    %c3_39 = arith.constant 3 : index
    %c0_40 = arith.constant 0 : index
    %49 = vector.load %arg11[%c3_39, %c0_40] : memref<14x512xbf16, #tpu.memory_space<vmem>>, vector<8x128xbf16>
    tpu.vector_store %arg11[%c3_39, %c0_40], %48 {strides = array<i32>} : memref<14x512xbf16, #tpu.memory_space<vmem>>, vector<8x128xbf16>,
    %cst_41 = arith.constant 0.000000e+00 : f32
    %50 = vector.broadcast %cst_41 : f32 to vector<8x128xf32>
    %c0_42 = arith.constant 0 : index
    %c0_43 = arith.constant 0 : index
    %51 = vector.load %arg11[%c0_42, %c0_43] : memref<14x512xbf16, #tpu.memory_space<vmem>>, vector<8x128xbf16>
    %c0_44 = arith.constant 0 : index
    %c0_45 = arith.constant 0 : index
    %52 = vector.load %arg4[%c0_44, %c0_45] : memref<896x128xbf16, #tpu.memory_space<vmem>>, vector<128x128xbf16>
    %cst_46 = arith.constant dense<0.000000e+00> : vector<8x128xf32>
    %53 = tpu.matmul %51, %52, %cst_46 {dimension_numbers = #tpu.dot_dimension_numbers<[1], [0], [0], [1], [0, 0, 1, 1], [], []>} : vector<8x128xbf16>, vector<128x128xbf16>, vector<8x128xf32> -> vector<8x128xf32>
    %54 = arith.addf %50, %53 : vector<8x128xf32>
    %c1_47 = arith.constant 1 : index
    %c0_48 = arith.constant 0 : index
    %55 = vector.load %arg11[%c1_47, %c0_48] : memref<14x512xbf16, #tpu.memory_space<vmem>>, vector<8x128xbf16>
    %c128 = arith.constant 128 : index
    %c0_49 = arith.constant 0 : index
    %56 = vector.load %arg4[%c128, %c0_49] : memref<896x128xbf16, #tpu.memory_space<vmem>>, vector<128x128xbf16>
    %cst_50 = arith.constant dense<0.000000e+00> : vector<8x128xf32>
    %57 = tpu.matmul %55, %56, %cst_50 {dimension_numbers = #tpu.dot_dimension_numbers<[1], [0], [0], [1], [0, 0, 1, 1], [], []>} : vector<8x128xbf16>, vector<128x128xbf16>, vector<8x128xf32> -> vector<8x128xf32>
    %58 = arith.addf %54, %57 : vector<8x128xf32>
    %c2_51 = arith.constant 2 : index
    %c0_52 = arith.constant 0 : index
    %59 = vector.load %arg11[%c2_51, %c0_52] : memref<14x512xbf16, #tpu.memory_space<vmem>>, vector<8x128xbf16>
    %c256 = arith.constant 256 : index
    %c0_53 = arith.constant 0 : index
    %60 = vector.load %arg4[%c256, %c0_53] : memref<896x128xbf16, #tpu.memory_space<vmem>>, vector<128x128xbf16>
    %cst_54 = arith.constant dense<0.000000e+00> : vector<8x128xf32>
    %61 = tpu.matmul %59, %60, %cst_54 {dimension_numbers = #tpu.dot_dimension_numbers<[1], [0], [0], [1], [0, 0, 1, 1], [], []>} : vector<8x128xbf16>, vector<128x128xbf16>, vector<8x128xf32> -> vector<8x128xf32>
    %62 = arith.addf %58, %61 : vector<8x128xf32>
    %c3_55 = arith.constant 3 : index
    %c0_56 = arith.constant 0 : index
    %63 = vector.load %arg11[%c3_55, %c0_56] : memref<14x512xbf16, #tpu.memory_space<vmem>>, vector<8x128xbf16>
    %c384 = arith.constant 384 : index
    %c0_57 = arith.constant 0 : index
    %64 = vector.load %arg4[%c384, %c0_57] : memref<896x128xbf16, #tpu.memory_space<vmem>>, vector<128x128xbf16>
    %cst_58 = arith.constant dense<0.000000e+00> : vector<8x128xf32>
    %65 = tpu.matmul %63, %64, %cst_58 {dimension_numbers = #tpu.dot_dimension_numbers<[1], [0], [0], [1], [0, 0, 1, 1], [], []>} : vector<8x128xbf16>, vector<128x128xbf16>, vector<8x128xf32> -> vector<8x128xf32>
    %66 = arith.addf %62, %65 : vector<8x128xf32>
    %c4_59 = arith.constant 4 : index
    %c0_60 = arith.constant 0 : index
    %67 = vector.load %arg11[%c4_59, %c0_60] : memref<14x512xbf16, #tpu.memory_space<vmem>>, vector<8x128xbf16>
    %c512_61 = arith.constant 512 : index
    %c0_62 = arith.constant 0 : index
    %68 = vector.load %arg4[%c512_61, %c0_62] : memref<896x128xbf16, #tpu.memory_space<vmem>>, vector<128x128xbf16>
    %cst_63 = arith.constant dense<0.000000e+00> : vector<8x128xf32>
    %69 = tpu.matmul %67, %68, %cst_63 {dimension_numbers = #tpu.dot_dimension_numbers<[1], [0], [0], [1], [0, 0, 1, 1], [], []>} : vector<8x128xbf16>, vector<128x128xbf16>, vector<8x128xf32> -> vector<8x128xf32>
    %70 = arith.addf %66, %69 : vector<8x128xf32>
    %c5_64 = arith.constant 5 : index
    %c0_65 = arith.constant 0 : index
    %71 = vector.load %arg11[%c5_64, %c0_65] : memref<14x512xbf16, #tpu.memory_space<vmem>>, vector<8x128xbf16>
    %c640 = arith.constant 640 : index
    %c0_66 = arith.constant 0 : index
    %72 = vector.load %arg4[%c640, %c0_66] : memref<896x128xbf16, #tpu.memory_space<vmem>>, vector<128x128xbf16>
    %cst_67 = arith.constant dense<0.000000e+00> : vector<8x128xf32>
    %73 = tpu.matmul %71, %72, %cst_67 {dimension_numbers = #tpu.dot_dimension_numbers<[1], [0], [0], [1], [0, 0, 1, 1], [], []>} : vector<8x128xbf16>, vector<128x128xbf16>, vector<8x128xf32> -> vector<8x128xf32>
    %74 = arith.addf %70, %73 : vector<8x128xf32>
    %c6_68 = arith.constant 6 : index
    %c0_69 = arith.constant 0 : index
    %75 = vector.load %arg11[%c6_68, %c0_69] : memref<14x512xbf16, #tpu.memory_space<vmem>>, vector<8x128xbf16>
    %c768 = arith.constant 768 : index
    %c0_70 = arith.constant 0 : index
    %76 = vector.load %arg4[%c768, %c0_70] : memref<896x128xbf16, #tpu.memory_space<vmem>>, vector<128x128xbf16>
    %cst_71 = arith.constant dense<0.000000e+00> : vector<8x128xf32>
    %77 = tpu.matmul %75, %76, %cst_71 {dimension_numbers = #tpu.dot_dimension_numbers<[1], [0], [0], [1], [0, 0, 1, 1], [], []>} : vector<8x128xbf16>, vector<128x128xbf16>, vector<8x128xf32> -> vector<8x128xf32>
    %78 = arith.addf %74, %77 : vector<8x128xf32>
    %79 = vector.broadcast %0 : vector<1x128xf32> to vector<8x128xf32>
    %80 = arith.mulf %78, %79 : vector<8x128xf32>
    %81 = vector.broadcast %1 : vector<1x128xf32> to vector<8x128xf32>
    %82 = arith.addf %80, %81 : vector<8x128xf32>
    %cst_72 = arith.constant 0.000000e+00 : f32
    %83 = vector.broadcast %cst_72 : f32 to vector<8x128xf32>
    %84 = arith.cmpf oge, %82, %83 : vector<8x128xf32>
    %85 = vector.broadcast %2 : vector<1x128xf32> to vector<8x128xf32>
    %86 = arith.mulf %85, %82 : vector<8x128xf32>
    %87 = arith.select %84, %82, %86 : vector<8x128xi1>, vector<8x128xf32>
    %88 = arith.truncf %87 : vector<8x128xf32> to vector<8x128xbf16>
    %c3_73 = arith.constant 3 : index
    %c0_74 = arith.constant 0 : index
    %89 = vector.load %arg11[%c3_73, %c0_74] : memref<14x512xbf16, #tpu.memory_space<vmem>>, vector<8x128xbf16>
    tpu.vector_store %arg11[%c3_73, %c0_74], %88 {strides = array<i32>} : memref<14x512xbf16, #tpu.memory_space<vmem>>, vector<8x128xbf16>,
    %cst_75 = arith.constant 0.000000e+00 : f32
    %90 = vector.broadcast %cst_75 : f32 to vector<8x128xf32>
    %c0_76 = arith.constant 0 : index
    %c0_77 = arith.constant 0 : index
    %91 = vector.load %arg11[%c0_76, %c0_77] : memref<14x512xbf16, #tpu.memory_space<vmem>>, vector<8x128xbf16>
    %c0_78 = arith.constant 0 : index
    %c0_79 = arith.constant 0 : index
    %92 = vector.load %arg5[%c0_78, %c0_79] : memref<896x128xbf16, #tpu.memory_space<vmem>>, vector<128x128xbf16>
    %cst_80 = arith.constant dense<0.000000e+00> : vector<8x128xf32>
    %93 = tpu.matmul %91, %92, %cst_80 {dimension_numbers = #tpu.dot_dimension_numbers<[1], [0], [0], [1], [0, 0, 1, 1], [], []>} : vector<8x128xbf16>, vector<128x128xbf16>, vector<8x128xf32> -> vector<8x128xf32>
    %94 = arith.addf %90, %93 : vector<8x128xf32>
    %c1_81 = arith.constant 1 : index
    %c0_82 = arith.constant 0 : index
    %95 = vector.load %arg11[%c1_81, %c0_82] : memref<14x512xbf16, #tpu.memory_space<vmem>>, vector<8x128xbf16>
    %c128_83 = arith.constant 128 : index
    %c0_84 = arith.constant 0 : index
    %96 = vector.load %arg5[%c128_83, %c0_84] : memref<896x128xbf16, #tpu.memory_space<vmem>>, vector<128x128xbf16>
    %cst_85 = arith.constant dense<0.000000e+00> : vector<8x128xf32>
    %97 = tpu.matmul %95, %96, %cst_85 {dimension_numbers = #tpu.dot_dimension_numbers<[1], [0], [0], [1], [0, 0, 1, 1], [], []>} : vector<8x128xbf16>, vector<128x128xbf16>, vector<8x128xf32> -> vector<8x128xf32>
    %98 = arith.addf %94, %97 : vector<8x128xf32>
    %c2_86 = arith.constant 2 : index
    %c0_87 = arith.constant 0 : index
    %99 = vector.load %arg11[%c2_86, %c0_87] : memref<14x512xbf16, #tpu.memory_space<vmem>>, vector<8x128xbf16>
    %c256_88 = arith.constant 256 : index
    %c0_89 = arith.constant 0 : index
    %100 = vector.load %arg5[%c256_88, %c0_89] : memref<896x128xbf16, #tpu.memory_space<vmem>>, vector<128x128xbf16>
    %cst_90 = arith.constant dense<0.000000e+00> : vector<8x128xf32>
    %101 = tpu.matmul %99, %100, %cst_90 {dimension_numbers = #tpu.dot_dimension_numbers<[1], [0], [0], [1], [0, 0, 1, 1], [], []>} : vector<8x128xbf16>, vector<128x128xbf16>, vector<8x128xf32> -> vector<8x128xf32>
    %102 = arith.addf %98, %101 : vector<8x128xf32>
    %c3_91 = arith.constant 3 : index
    %c0_92 = arith.constant 0 : index
    %103 = vector.load %arg11[%c3_91, %c0_92] : memref<14x512xbf16, #tpu.memory_space<vmem>>, vector<8x128xbf16>
    %c384_93 = arith.constant 384 : index
    %c0_94 = arith.constant 0 : index
    %104 = vector.load %arg5[%c384_93, %c0_94] : memref<896x128xbf16, #tpu.memory_space<vmem>>, vector<128x128xbf16>
    %cst_95 = arith.constant dense<0.000000e+00> : vector<8x128xf32>
    %105 = tpu.matmul %103, %104, %cst_95 {dimension_numbers = #tpu.dot_dimension_numbers<[1], [0], [0], [1], [0, 0, 1, 1], [], []>} : vector<8x128xbf16>, vector<128x128xbf16>, vector<8x128xf32> -> vector<8x128xf32>
    %106 = arith.addf %102, %105 : vector<8x128xf32>
    %c4_96 = arith.constant 4 : index
    %c0_97 = arith.constant 0 : index
    %107 = vector.load %arg11[%c4_96, %c0_97] : memref<14x512xbf16, #tpu.memory_space<vmem>>, vector<8x128xbf16>
    %c512_98 = arith.constant 512 : index
    %c0_99 = arith.constant 0 : index
    %108 = vector.load %arg5[%c512_98, %c0_99] : memref<896x128xbf16, #tpu.memory_space<vmem>>, vector<128x128xbf16>
    %cst_100 = arith.constant dense<0.000000e+00> : vector<8x128xf32>
    %109 = tpu.matmul %107, %108, %cst_100 {dimension_numbers = #tpu.dot_dimension_numbers<[1], [0], [0], [1], [0, 0, 1, 1], [], []>} : vector<8x128xbf16>, vector<128x128xbf16>, vector<8x128xf32> -> vector<8x128xf32>
    %110 = arith.addf %106, %109 : vector<8x128xf32>
    %c5_101 = arith.constant 5 : index
    %c0_102 = arith.constant 0 : index
    %111 = vector.load %arg11[%c5_101, %c0_102] : memref<14x512xbf16, #tpu.memory_space<vmem>>, vector<8x128xbf16>
    %c640_103 = arith.constant 640 : index
    %c0_104 = arith.constant 0 : index
    %112 = vector.load %arg5[%c640_103, %c0_104] : memref<896x128xbf16, #tpu.memory_space<vmem>>, vector<128x128xbf16>
    %cst_105 = arith.constant dense<0.000000e+00> : vector<8x128xf32>
    %113 = tpu.matmul %111, %112, %cst_105 {dimension_numbers = #tpu.dot_dimension_numbers<[1], [0], [0], [1], [0, 0, 1, 1], [], []>} : vector<8x128xbf16>, vector<128x128xbf16>, vector<8x128xf32> -> vector<8x128xf32>
    %114 = arith.addf %110, %113 : vector<8x128xf32>
    %c6_106 = arith.constant 6 : index
    %c0_107 = arith.constant 0 : index
    %115 = vector.load %arg11[%c6_106, %c0_107] : memref<14x512xbf16, #tpu.memory_space<vmem>>, vector<8x128xbf16>
    %c768_108 = arith.constant 768 : index
    %c0_109 = arith.constant 0 : index
    %116 = vector.load %arg5[%c768_108, %c0_109] : memref<896x128xbf16, #tpu.memory_space<vmem>>, vector<128x128xbf16>
    %cst_110 = arith.constant dense<0.000000e+00> : vector<8x128xf32>
    %117 = tpu.matmul %115, %116, %cst_110 {dimension_numbers = #tpu.dot_dimension_numbers<[1], [0], [0], [1], [0, 0, 1, 1], [], []>} : vector<8x128xbf16>, vector<128x128xbf16>, vector<8x128xf32> -> vector<8x128xf32>
    %118 = arith.addf %114, %117 : vector<8x128xf32>
    %119 = vector.broadcast %0 : vector<1x128xf32> to vector<8x128xf32>
    %120 = arith.mulf %118, %119 : vector<8x128xf32>
    %121 = vector.broadcast %1 : vector<1x128xf32> to vector<8x128xf32>
    %122 = arith.addf %120, %121 : vector<8x128xf32>
    %cst_111 = arith.constant 0.000000e+00 : f32
    %123 = vector.broadcast %cst_111 : f32 to vector<8x128xf32>
    %124 = arith.cmpf oge, %122, %123 : vector<8x128xf32>
    %125 = vector.broadcast %2 : vector<1x128xf32> to vector<8x128xf32>
    %126 = arith.mulf %125, %122 : vector<8x128xf32>
    %127 = arith.select %124, %122, %126 : vector<8x128xi1>, vector<8x128xf32>
    %128 = arith.truncf %127 : vector<8x128xf32> to vector<8x128xbf16>
    %c3_112 = arith.constant 3 : index
    %c0_113 = arith.constant 0 : index
    %129 = vector.load %arg11[%c3_112, %c0_113] : memref<14x512xbf16, #tpu.memory_space<vmem>>, vector<8x128xbf16>
    tpu.vector_store %arg11[%c3_112, %c0_113], %128 {strides = array<i32>} : memref<14x512xbf16, #tpu.memory_space<vmem>>, vector<8x128xbf16>,
    %cst_114 = arith.constant 0.000000e+00 : f32
    %130 = vector.broadcast %cst_114 : f32 to vector<8x128xf32>
    %c0_115 = arith.constant 0 : index
    %c0_116 = arith.constant 0 : index
    %131 = vector.load %arg11[%c0_115, %c0_116] : memref<14x512xbf16, #tpu.memory_space<vmem>>, vector<8x128xbf16>
    %c0_117 = arith.constant 0 : index
    %c0_118 = arith.constant 0 : index
    %132 = vector.load %arg6[%c0_117, %c0_118] : memref<896x128xbf16, #tpu.memory_space<vmem>>, vector<128x128xbf16>
    %cst_119 = arith.constant dense<0.000000e+00> : vector<8x128xf32>
    %133 = tpu.matmul %131, %132, %cst_119 {dimension_numbers = #tpu.dot_dimension_numbers<[1], [0], [0], [1], [0, 0, 1, 1], [], []>} : vector<8x128xbf16>, vector<128x128xbf16>, vector<8x128xf32> -> vector<8x128xf32>
    %134 = arith.addf %130, %133 : vector<8x128xf32>
    %c1_120 = arith.constant 1 : index
    %c0_121 = arith.constant 0 : index
    %135 = vector.load %arg11[%c1_120, %c0_121] : memref<14x512xbf16, #tpu.memory_space<vmem>>, vector<8x128xbf16>
    %c128_122 = arith.constant 128 : index
    %c0_123 = arith.constant 0 : index
    %136 = vector.load %arg6[%c128_122, %c0_123] : memref<896x128xbf16, #tpu.memory_space<vmem>>, vector<128x128xbf16>
    %cst_124 = arith.constant dense<0.000000e+00> : vector<8x128xf32>
    %137 = tpu.matmul %135, %136, %cst_124 {dimension_numbers = #tpu.dot_dimension_numbers<[1], [0], [0], [1], [0, 0, 1, 1], [], []>} : vector<8x128xbf16>, vector<128x128xbf16>, vector<8x128xf32> -> vector<8x128xf32>
    %138 = arith.addf %134, %137 : vector<8x128xf32>
    %c2_125 = arith.constant 2 : index
    %c0_126 = arith.constant 0 : index
    %139 = vector.load %arg11[%c2_125, %c0_126] : memref<14x512xbf16, #tpu.memory_space<vmem>>, vector<8x128xbf16>
    %c256_127 = arith.constant 256 : index
    %c0_128 = arith.constant 0 : index
    %140 = vector.load %arg6[%c256_127, %c0_128] : memref<896x128xbf16, #tpu.memory_space<vmem>>, vector<128x128xbf16>
    %cst_129 = arith.constant dense<0.000000e+00> : vector<8x128xf32>
    %141 = tpu.matmul %139, %140, %cst_129 {dimension_numbers = #tpu.dot_dimension_numbers<[1], [0], [0], [1], [0, 0, 1, 1], [], []>} : vector<8x128xbf16>, vector<128x128xbf16>, vector<8x128xf32> -> vector<8x128xf32>
    %142 = arith.addf %138, %141 : vector<8x128xf32>
    %c3_130 = arith.constant 3 : index
    %c0_131 = arith.constant 0 : index
    %143 = vector.load %arg11[%c3_130, %c0_131] : memref<14x512xbf16, #tpu.memory_space<vmem>>, vector<8x128xbf16>
    %c384_132 = arith.constant 384 : index
    %c0_133 = arith.constant 0 : index
    %144 = vector.load %arg6[%c384_132, %c0_133] : memref<896x128xbf16, #tpu.memory_space<vmem>>, vector<128x128xbf16>
    %cst_134 = arith.constant dense<0.000000e+00> : vector<8x128xf32>
    %145 = tpu.matmul %143, %144, %cst_134 {dimension_numbers = #tpu.dot_dimension_numbers<[1], [0], [0], [1], [0, 0, 1, 1], [], []>} : vector<8x128xbf16>, vector<128x128xbf16>, vector<8x128xf32> -> vector<8x128xf32>
    %146 = arith.addf %142, %145 : vector<8x128xf32>
    %c4_135 = arith.constant 4 : index
    %c0_136 = arith.constant 0 : index
    %147 = vector.load %arg11[%c4_135, %c0_136] : memref<14x512xbf16, #tpu.memory_space<vmem>>, vector<8x128xbf16>
    %c512_137 = arith.constant 512 : index
    %c0_138 = arith.constant 0 : index
    %148 = vector.load %arg6[%c512_137, %c0_138] : memref<896x128xbf16, #tpu.memory_space<vmem>>, vector<128x128xbf16>
    %cst_139 = arith.constant dense<0.000000e+00> : vector<8x128xf32>
    %149 = tpu.matmul %147, %148, %cst_139 {dimension_numbers = #tpu.dot_dimension_numbers<[1], [0], [0], [1], [0, 0, 1, 1], [], []>} : vector<8x128xbf16>, vector<128x128xbf16>, vector<8x128xf32> -> vector<8x128xf32>
    %150 = arith.addf %146, %149 : vector<8x128xf32>
    %c5_140 = arith.constant 5 : index
    %c0_141 = arith.constant 0 : index
    %151 = vector.load %arg11[%c5_140, %c0_141] : memref<14x512xbf16, #tpu.memory_space<vmem>>, vector<8x128xbf16>
    %c640_142 = arith.constant 640 : index
    %c0_143 = arith.constant 0 : index
    %152 = vector.load %arg6[%c640_142, %c0_143] : memref<896x128xbf16, #tpu.memory_space<vmem>>, vector<128x128xbf16>
    %cst_144 = arith.constant dense<0.000000e+00> : vector<8x128xf32>
    %153 = tpu.matmul %151, %152, %cst_144 {dimension_numbers = #tpu.dot_dimension_numbers<[1], [0], [0], [1], [0, 0, 1, 1], [], []>} : vector<8x128xbf16>, vector<128x128xbf16>, vector<8x128xf32> -> vector<8x128xf32>
    %154 = arith.addf %150, %153 : vector<8x128xf32>
    %c6_145 = arith.constant 6 : index
    %c0_146 = arith.constant 0 : index
    %155 = vector.load %arg11[%c6_145, %c0_146] : memref<14x512xbf16, #tpu.memory_space<vmem>>, vector<8x128xbf16>
    %c768_147 = arith.constant 768 : index
    %c0_148 = arith.constant 0 : index
    %156 = vector.load %arg6[%c768_147, %c0_148] : memref<896x128xbf16, #tpu.memory_space<vmem>>, vector<128x128xbf16>
    %cst_149 = arith.constant dense<0.000000e+00> : vector<8x128xf32>
    %157 = tpu.matmul %155, %156, %cst_149 {dimension_numbers = #tpu.dot_dimension_numbers<[1], [0], [0], [1], [0, 0, 1, 1], [], []>} : vector<8x128xbf16>, vector<128x128xbf16>, vector<8x128xf32> -> vector<8x128xf32>
    %158 = arith.addf %154, %157 : vector<8x128xf32>
    %159 = vector.broadcast %0 : vector<1x128xf32> to vector<8x128xf32>
    %160 = arith.mulf %158, %159 : vector<8x128xf32>
    %161 = vector.broadcast %1 : vector<1x128xf32> to vector<8x128xf32>
    %162 = arith.addf %160, %161 : vector<8x128xf32>
    %cst_150 = arith.constant 0.000000e+00 : f32
    %163 = vector.broadcast %cst_150 : f32 to vector<8x128xf32>
    %164 = arith.cmpf oge, %162, %163 : vector<8x128xf32>
    %165 = vector.broadcast %2 : vector<1x128xf32> to vector<8x128xf32>
    %166 = arith.mulf %165, %162 : vector<8x128xf32>
    %167 = arith.select %164, %162, %166 : vector<8x128xi1>, vector<8x128xf32>
    %cst_151 = arith.constant dense<0.000000e+00> : vector<128xf32>
    %168 = vector.multi_reduction <add>, %167, %cst_151 [0] : vector<8x128xf32> to vector<128xf32>
    %169 = vector.shape_cast %168 : vector<128xf32> to vector<1x128xf32>
    %cst_152 = arith.constant 1.250000e-01 : f32
    %170 = vector.broadcast %cst_152 : f32 to vector<1x128xf32>
    %171 = arith.mulf %169, %170 : vector<1x128xf32>
    %172 = arith.truncf %171 : vector<1x128xf32> to vector<1x128xbf16>
    %c0_153 = arith.constant 0 : index
    %c0_154 = arith.constant 0 : index
    %173 = vector.load %arg8[%c0_153, %c0_154] : memref<128x128xbf16, #tpu.memory_space<vmem>>, vector<128x128xbf16>
    %cst_155 = arith.constant dense<0.000000e+00> : vector<1x128xf32>
    %174 = tpu.matmul %172, %173, %cst_155 {dimension_numbers = #tpu.dot_dimension_numbers<[1], [0], [0], [1], [0, 0, 1, 1], [], []>} : vector<1x128xbf16>, vector<128x128xbf16>, vector<1x128xf32> -> vector<1x128xf32>
    %c0_156 = arith.constant 0 : index
    %c0_157 = arith.constant 0 : index
    %175 = vector.load %arg9[%c0_156, %c0_157] : memref<1x128xf32, #tpu.memory_space<vmem>>, vector<1x128xf32>
    %176 = arith.addf %174, %175 : vector<1x128xf32>
    %177 = vector.shape_cast %176 : vector<1x128xf32> to vector<1x1x128xf32>
    %c0_158 = arith.constant 0 : index
    %c0_159 = arith.constant 0 : index
    %c0_160 = arith.constant 0 : index
    %178 = vector.load %arg10[%c0_158, %c0_159, %c0_160] : memref<1x1x128xf32, #tpu.memory_space<vmem>>, vector<1x1x128xf32>
    tpu.vector_store %arg10[%c0_158, %c0_159, %c0_160], %177 {strides = array<i32>} : memref<1x1x128xf32, #tpu.memory_space<vmem>>, vector<1x1x128xf32>,
    return
  }
  func.func @transform_0(%arg0: i32) -> (i32, i32) {
    %c0_i32 = arith.constant 0 : i32
    %c0_i32_0 = arith.constant 0 : i32
    return %arg0, %c0_i32 : i32, i32
  }
  func.func @transform_1(%arg0: i32) -> (i32, i32) {
    %c0_i32 = arith.constant 0 : i32
    %c0_i32_0 = arith.constant 0 : i32
    %c0_i32_1 = arith.constant 0 : i32
    return %c0_i32, %c0_i32_0 : i32, i32
  }
  func.func @transform_2(%arg0: i32) -> (i32, i32) {
    %c0_i32 = arith.constant 0 : i32
    %c0_i32_0 = arith.constant 0 : i32
    %c0_i32_1 = arith.constant 0 : i32
    return %c0_i32, %c0_i32_0 : i32, i32
  }
  func.func @transform_3(%arg0: i32) -> (i32, i32) {
    %c0_i32 = arith.constant 0 : i32
    %c0_i32_0 = arith.constant 0 : i32
    %c0_i32_1 = arith.constant 0 : i32
    return %c0_i32, %c0_i32_0 : i32, i32
  }
  func.func @transform_4(%arg0: i32) -> (i32, i32) {
    %c0_i32 = arith.constant 0 : i32
    %c0_i32_0 = arith.constant 0 : i32
    %c0_i32_1 = arith.constant 0 : i32
    return %c0_i32, %c0_i32_0 : i32, i32
  }
  func.func @transform_5(%arg0: i32) -> (i32, i32) {
    %c0_i32 = arith.constant 0 : i32
    %c0_i32_0 = arith.constant 0 : i32
    %c0_i32_1 = arith.constant 0 : i32
    return %c0_i32, %c0_i32_0 : i32, i32
  }
  func.func @transform_6(%arg0: i32) -> (i32, i32) {
    %c0_i32 = arith.constant 0 : i32
    %c0_i32_0 = arith.constant 0 : i32
    %c0_i32_1 = arith.constant 0 : i32
    return %c0_i32, %c0_i32_0 : i32, i32
  }
  func.func @transform_7(%arg0: i32) -> (i32, i32) {
    %c0_i32 = arith.constant 0 : i32
    %c0_i32_0 = arith.constant 0 : i32
    %c0_i32_1 = arith.constant 0 : i32
    return %c0_i32, %c0_i32_0 : i32, i32
  }
  func.func @transform_8(%arg0: i32) -> (i32, i32) {
    %c0_i32 = arith.constant 0 : i32
    %c0_i32_0 = arith.constant 0 : i32
    %c0_i32_1 = arith.constant 0 : i32
    return %c0_i32, %c0_i32_0 : i32, i32
  }
  func.func @transform_9(%arg0: i32) -> (i32, i32, i32) {
    %c0_i32 = arith.constant 0 : i32
    %c0_i32_0 = arith.constant 0 : i32
    %c0_i32_1 = arith.constant 0 : i32
    return %arg0, %c0_i32, %c0_i32_0 : i32, i32, i32
  }
}

</mosaic_0001>

<bundles_post_ra>
// kernel: _lambda_.3
= control target key start
LH: loop header
LB: loop body
LE: loop exit
PB: predicated region body
PF: predicated region fallthrough
CT: control target
= control target key end

     0   :  { %s4604_s12 = smov 0   ;;  %s4606_s13 = smov 0   ;;  %s5462_s0 = inlined_call_operand.vmem [shape: bf16[1024,768], index: 0, kind: input, shape index: {}]   ;;  %s5463_s1 = inlined_call_operand.vmem [shape: bf16[768,128], index: 1, kind: input, shape index: {}]   ;;  %s5464_s2 = inlined_call_operand.vmem [shape: f32[3,128], index: 2, kind: input, shape index: {}]   ;;  %s5465_s3 = inlined_call_operand.vmem [shape: bf16[1024,128], index: 3, kind: output, shape index: {}]  }
   0x1   :  { %s4608_s14 = smov 0  }
   0x2 LB: > { %s25_s15 = sadd.s32 1, %s4577_s13  ;;  %p3401_p0 = scmp.ge.s32.totalorder %s4581_s14, 1  ;;  %s4581_s14 = sphi %s4608_s14, %s13_s14   ;;  %s4577_s13 = sphi %s4606_s13, %s5467_s13   ;;  %s4573_s12 = sphi %s4604_s12, %s5466_s12  }
   0x3   : > { %p27_p1 = scmp.ge.s32.totalorder %s25_s15, 2  ;;  %p171_p2 = scmp.lt.s32.totalorder %s4581_s14, 3 }
   0x5   : > { %s5469_s15 = smov (%p27_p1, %s25_s15), 0  ;;  %p172_p3 = pnand %p3401_p0, %p171_p2 }
   0x6   : > { %v4220_v0 = vld [vmem:[%s5463_s1] sm:$0xff] (!%p172_p3)   ;;  %v4583_v1 = vmov (!%p172_p3), 0   ;;  %v4222_v3 = vld [vmem:[%s5463_s1 + $0x8] sm:$0xff] (!%p172_p3)   ;;  %v4224_v5 = vld [vmem:[%s5463_s1 + $0x10] sm:$0xff] (!%p172_p3)   ;;  %s3402_s9 = sshll.u32 (!%p172_p3), %s4573_s12, 6 }
   0x7   : > { %175 = sbr.rel (%p172_p3) target bundleno = 673 (0x2a1), region = 32  ;;  %1768 = vmatprep.subr.bf16.mxu1 (!%p172_p3), %v4583_v1  ;;  %2057 = vmatprep.subr.bf16.mxu0 (!%p172_p3), %v4583_v1  ;;  %v4632_v2 = vld [vmem:[%s5463_s1 + $0x80] sm:$0xff] (!%p172_p3)   ;;  %v4642_v4 = vld [vmem:[%s5463_s1 + $0x88] sm:$0xff] (!%p172_p3)   ;;  %v4653_v6 = vld [vmem:[%s5463_s1 + $0x90] sm:$0xff] (!%p172_p3)   ;;  %p208_p4 = scmp.lt.s32.totalorder (!%p172_p3), %s3402_s9, 127 }
   0x8   : > { %1769 = vmatpush1.bf16.msra.mxu1 (!%p172_p3), %v4220_v0  ;;  %2058 = vmatpush1.bf16.msra.mxu0 (!%p172_p3), %v4632_v2  ;;  %v4226_v7 = vld [vmem:[%s5463_s1 + $0x18] sm:$0xff] (!%p172_p3)   ;;  %v4228_v9 = vld [vmem:[%s5463_s1 + $0x20] sm:$0xff] (!%p172_p3)   ;;  %v4230_v11 = vld [vmem:[%s5463_s1 + $0x28] sm:$0xff] (!%p172_p3)  }
   0x9   : > { %1770 = vmatprep.subr.bf16.mxu1 (!%p172_p3), %v4583_v1  ;;  %2059 = vmatprep.subr.bf16.mxu0 (!%p172_p3), %v4583_v1  ;;  %v4664_v8 = vld [vmem:[%s5463_s1 + $0x98] sm:$0xff] (!%p172_p3)   ;;  %v4675_v10 = vld [vmem:[%s5463_s1 + $0xa0] sm:$0xff] (!%p172_p3)   ;;  %v4687_v12 = vld [vmem:[%s5463_s1 + $0xa8] sm:$0xff] (!%p172_p3)  }
   0xa   : > { %v4232_v13 = vld [vmem:[%s5463_s1 + $0x30] sm:$0xff] (!%p172_p3)   ;;  %v4234_v15 = vld [vmem:[%s5463_s1 + $0x38] sm:$0xff] (!%p172_p3)   ;;  %v4236_v17 = vld [vmem:[%s5463_s1 + $0x40] sm:$0xff] (!%p172_p3)  }
   0xb   : > { %v4700_v14 = vld [vmem:[%s5463_s1 + $0xb0] sm:$0xff] (!%p172_p3)   ;;  %v4712_v16 = vld [vmem:[%s5463_s1 + $0xb8] sm:$0xff] (!%p172_p3)   ;;  %v4728_v18 = vld [vmem:[%s5463_s1 + $0xc0] sm:$0xff] (!%p172_p3)  }
   0xc   : > { %1771 = vmatpush1.bf16.msra.mxu1 (!%p172_p3), %v4222_v3  ;;  %2060 = vmatpush1.bf16.msra.mxu0 (!%p172_p3), %v4642_v4  ;;  %v4238_v20 = vld [vmem:[%s5463_s1 + $0x48] sm:$0xff] (!%p172_p3)   ;;  %v4240_v23 = vld [vmem:[%s5463_s1 + $0x50] sm:$0xff] (!%p172_p3)   ;;  %v4242_v25 = vld [vmem:[%s5463_s1 + $0x58] sm:$0xff] (!%p172_p3)  }
   0xd   : > { %1772 = vmatprep.subr.bf16.mxu1 (!%p172_p3), %v4583_v1  ;;  %2061 = vmatprep.subr.bf16.mxu0 (!%p172_p3), %v4583_v1  ;;  %v4741_v22 = vld [vmem:[%s5463_s1 + $0xc8] sm:$0xff] (!%p172_p3)   ;;  %v4752_v24 = vld [vmem:[%s5463_s1 + $0xd0] sm:$0xff] (!%p172_p3)   ;;  %v4763_v26 = vld [vmem:[%s5463_s1 + $0xd8] sm:$0xff] (!%p172_p3)  }
   0xe   : > { %s5471_s9 = smov (!%p208_p4, %s3402_s9), 127  ;;  %v4244_v27 = vld [vmem:[%s5463_s1 + $0x60] sm:$0xff]   ;;  %v4246_v29 = vld [vmem:[%s5463_s1 + $0x68] sm:$0xff]   ;;  %v4248_v31 = vld [vmem:[%s5463_s1 + $0x70] sm:$0xff]  }
   0xf   : > { %s4194_s23 = smul.u32 24, %s5471_s9  ;;  %v4774_v28 = vld [vmem:[%s5463_s1 + $0xe0] sm:$0xff]   ;;  %v4785_v30 = vld [vmem:[%s5463_s1 + $0xe8] sm:$0xff]   ;;  %v4796_v32 = vld [vmem:[%s5463_s1 + $0xf0] sm:$0xff]   ;;  %s3405_s6 = sshll.u32 %s5471_s9, 2 }
  0x10   : > { %1773 = vmatpush1.bf16.msra.mxu1 %v4224_v5  ;;  %2062 = vmatpush1.bf16.msra.mxu0 %v4653_v6  ;;  %v4250_v33 = vld [vmem:[%s5463_s1 + $0x78] sm:$0xff]   ;;  %v4258_v37 = vld [vmem:[%s5463_s1 + $0x100] sm:$0xff]   ;;  %v4265_v40 = vld [vmem:[%s5463_s1 + $0x108] sm:$0xff]   ;;  %s5179_s10 = scalar_lea.vmem %s5465_s3, %s3405_s6 }
  0x11   : > { %1774 = vmatprep.subr.bf16.mxu1 %v4583_v1  ;;  %2063 = vmatprep.subr.bf16.mxu0 %v4583_v1  ;;  %s4721_s30 = scalar_lea.vmem %s5462_s0, %s4194_s23  ;;  %v4807_v34 = vld [vmem:[%s5463_s1 + $0xf8] sm:$0xff]   ;;  %v4272_v45 = vld [vmem:[%s5463_s1 + $0x110] sm:$0xff]   ;;  %v4286_v51 = vld [vmem:[%s5463_s1 + $0x120] sm:$0xff]  }
  0x12   : > { %v4254_v19 = vld [vmem:[%s4721_s30 + $0x4] ss:$24 sps:$4 sm:$0xff]   ;;  %v4252_v35 = vld [vmem:[%s4721_s30] ss:$24 sps:$4 sm:$0xff]   ;;  %v4259_v38 = vld [vmem:[%s4721_s30 + $0x34] ss:$24 sps:$4 sm:$0xff]  }
  0x13   : > { %v4257_v21 = vld [vmem:[%s4721_s30 + $0xc] ss:$24 sps:$4 sm:$0xff]   ;;  %1800 = vmatprep.mubr.bf16.mxu1 %v4254_v19  ;;  %v4255_v36 = vld [vmem:[%s4721_s30 + $0x8] ss:$24 sps:$4 sm:$0xff]   ;;  %v4261_v39 = vld [vmem:[%s4721_s30 + $0x3c] ss:$24 sps:$4 sm:$0xff]  }
  0x14   : > { %1775 = vmatpush1.bf16.msra.mxu1 %v4226_v7  ;;  %2064 = vmatpush1.bf16.msra.mxu0 %v4664_v8  ;;  %v4263_v41 = vld [vmem:[%s4721_s30 + $0x30] ss:$24 sps:$4 sm:$0xff]   ;;  %v4266_v43 = vld [vmem:[%s4721_s30 + $0x64] ss:$24 sps:$4 sm:$0xff]   ;;  %v4270_v47 = vld [vmem:[%s4721_s30 + $0x60] ss:$24 sps:$4 sm:$0xff]  }
  0x15   : > { %1776 = vmatprep.subr.bf16.mxu1 %v4583_v1  ;;  %2065 = vmatprep.subr.bf16.mxu0 %v4583_v1  ;;  %v4264_v42 = vld [vmem:[%s4721_s30 + $0x38] ss:$24 sps:$4 sm:$0xff]   ;;  %v4268_v44 = vld [vmem:[%s4721_s30 + $0x6c] ss:$24 sps:$4 sm:$0xff]   ;;  %v4271_v48 = vld [vmem:[%s4721_s30 + $0x68] ss:$24 sps:$4 sm:$0xff]  }
  0x16   : > { %2089 = vmatprep.mubr.bf16.mxu0 %v4257_v21  ;;  %v4279_v46 = vld [vmem:[%s5463_s1 + $0x118] sm:$0xff]   ;;  %v4273_v49 = vld [vmem:[%s4721_s30 + $0x94] ss:$24 sps:$4 sm:$0xff]   ;;  %v4277_v53 = vld [vmem:[%s4721_s30 + $0x90] ss:$24 sps:$4 sm:$0xff]  }
  0x17   : > { %v4275_v50 = vld [vmem:[%s4721_s30 + $0x9c] ss:$24 sps:$4 sm:$0xff]   ;;  %v4293_v52 = vld [vmem:[%s5463_s1 + $0x128] sm:$0xff]   ;;  %v4278_v54 = vld [vmem:[%s4721_s30 + $0x98] ss:$24 sps:$4 sm:$0xff]  }
  0x18   : > { %1777 = vmatpush1.bf16.msra.mxu1 %v4228_v9  ;;  %2066 = vmatpush1.bf16.msra.mxu0 %v4675_v10  ;;  %v4280_v55 = vld [vmem:[%s4721_s30 + $0xc4] ss:$24 sps:$4 sm:$0xff]   ;;  %v4300_v57 = vld [vmem:[%s5463_s1 + $0x130] sm:$0xff]   ;;  %v4284_v59 = vld [vmem:[%s4721_s30 + $0xc0] ss:$24 sps:$4 sm:$0xff]  }
  0x19   : > { %1778 = vmatprep.subr.bf16.mxu1 %v4583_v1  ;;  %2067 = vmatprep.subr.bf16.mxu0 %v4583_v1  ;;  %v4282_v56 = vld [vmem:[%s4721_s30 + $0xcc] ss:$24 sps:$4 sm:$0xff]   ;;  %v4307_v58 = vld [vmem:[%s5463_s1 + $0x138] sm:$0xff]   ;;  %v4285_v60 = vld [vmem:[%s4721_s30 + $0xc8] ss:$24 sps:$4 sm:$0xff]  }
  0x1a   : > { %v4287_v61 = vld [vmem:[%s4721_s30 + $0xf4] ss:$24 sps:$4 sm:$0xff]   ;;  %v4314_v63 = vld [vmem:[%s5463_s1 + $0x140] sm:$0xff]   ;;  %v4292_v3 = vld [vmem:[%s4721_s30 + $0xf8] ss:$24 sps:$4 sm:$0xff]  }
  0x1b   : > { %v4289_v62 = vld [vmem:[%s4721_s30 + $0xfc] ss:$24 sps:$4 sm:$0xff]   ;;  %v4321_v0 = vld [vmem:[%s5463_s1 + $0x148] sm:$0xff]   ;;  %v4298_v7 = vld [vmem:[%s4721_s30 + $0x120] ss:$24 sps:$4 sm:$0xff]  }
  0x1c   : > { %1779 = vmatpush1.bf16.msra.mxu1 %v4230_v11  ;;  %2068 = vmatpush1.bf16.msra.mxu0 %v4687_v12  ;;  %v4296_v5 = vld [vmem:[%s4721_s30 + $0x12c] ss:$24 sps:$4 sm:$0xff]   ;;  %v4299_v9 = vld [vmem:[%s4721_s30 + $0x128] ss:$24 sps:$4 sm:$0xff]   ;;  %v4303_v11 = vld [vmem:[%s4721_s30 + $0x15c] ss:$24 sps:$4 sm:$0xff]  }
  0x1d   : > { %1780 = vmatprep.subr.bf16.mxu1 %v4583_v1  ;;  %2069 = vmatprep.subr.bf16.mxu0 %v4583_v1  ;;  %v4312_v19 = vld [vmem:[%s4721_s30 + $0x180] ss:$24 sps:$4 sm:$0xff]  }
  0x1e   : > { %v4313_v21 = vld [vmem:[%s4721_s30 + $0x188] ss:$24 sps:$4 sm:$0xff]  }
  0x20   : > { %1781 = vmatpush1.bf16.msra.mxu1 %v4232_v13  ;;  %2070 = vmatpush1.bf16.msra.mxu0 %v4700_v14  ;;  %v4305_v13 = vld [vmem:[%s4721_s30 + $0x150] ss:$24 sps:$4 sm:$0xff]  }
  0x21   : > { %1782 = vmatprep.subr.bf16.mxu1 %v4583_v1  ;;  %2071 = vmatprep.subr.bf16.mxu0 %v4583_v1 }
  0x24   : > { %1783 = vmatpush1.bf16.msra.mxu1 %v4234_v15  ;;  %2072 = vmatpush1.bf16.msra.mxu0 %v4712_v16  ;;  %v4306_v15 = vld [vmem:[%s4721_s30 + $0x158] ss:$24 sps:$4 sm:$0xff]  }
  0x25   : > { %1784 = vmatprep.subr.bf16.mxu1 %v4583_v1  ;;  %2073 = vmatprep.subr.bf16.mxu0 %v4583_v1 }
  0x28   : > { %1785 = vmatpush1.bf16.msra.mxu1 %v4236_v17  ;;  %2074 = vmatpush1.bf16.msra.mxu0 %v4728_v18  ;;  %v4310_v17 = vld [vmem:[%s4721_s30 + $0x18c] ss:$24 sps:$4 sm:$0xff]  }
  0x29   : > { %1786 = vmatprep.subr.bf16.mxu1 %v4583_v1  ;;  %2075 = vmatprep.subr.bf16.mxu0 %v4583_v1 }
  0x2c   : > { %1787 = vmatpush1.bf16.msra.mxu1 %v4238_v20  ;;  %2076 = vmatpush1.bf16.msra.mxu0 %v4741_v22  ;;  %v4363_v20 = vld [vmem:[%s5463_s1 + $0x178] sm:$0xff]  }
  0x2d   : > { %1788 = vmatprep.subr.bf16.mxu1 %v4583_v1  ;;  %2077 = vmatprep.subr.bf16.mxu0 %v4583_v1 }
  0x30   : > { %1789 = vmatpush1.bf16.msra.mxu1 %v4240_v23  ;;  %2078 = vmatpush1.bf16.msra.mxu0 %v4752_v24  ;;  %v4317_v23 = vld [vmem:[%s4721_s30 + $0x1bc] ss:$24 sps:$4 sm:$0xff]  }
  0x31   : > { %1790 = vmatprep.subr.bf16.mxu1 %v4583_v1  ;;  %2079 = vmatprep.subr.bf16.mxu0 %v4583_v1 }
  0x34   : > { %1791 = vmatpush1.bf16.msra.mxu1 %v4242_v25  ;;  %2080 = vmatpush1.bf16.msra.mxu0 %v4763_v26  ;;  %v4320_v25 = vld [vmem:[%s4721_s30 + $0x1b8] ss:$24 sps:$4 sm:$0xff]  }
  0x35   : > { %1792 = vmatprep.subr.bf16.mxu1 %v4583_v1  ;;  %2081 = vmatprep.subr.bf16.mxu0 %v4583_v1 }
  0x38   : > { %1793 = vmatpush1.bf16.msra.mxu1 %v4244_v27  ;;  %2082 = vmatpush1.bf16.msra.mxu0 %v4774_v28  ;;  %v4324_v27 = vld [vmem:[%s4721_s30 + $0x1ec] ss:$24 sps:$4 sm:$0xff]  }
  0x39   : > { %1794 = vmatprep.subr.bf16.mxu1 %v4583_v1  ;;  %2083 = vmatprep.subr.bf16.mxu0 %v4583_v1 }
  0x3c   : > { %1795 = vmatpush1.bf16.msra.mxu1 %v4246_v29  ;;  %2084 = vmatpush1.bf16.msra.mxu0 %v4785_v30  ;;  %v4329_v29 = vld [vmem:[%s4721_s30 + $0x214] ss:$24 sps:$4 sm:$0xff]  }
  0x3d   : > { %1796 = vmatprep.subr.bf16.mxu1 %v4583_v1  ;;  %2085 = vmatprep.subr.bf16.mxu0 %v4583_v1 }
  0x40   : > { %1797 = vmatpush1.bf16.msra.mxu1 %v4248_v31  ;;  %2086 = vmatpush1.bf16.msra.mxu0 %v4796_v32  ;;  %v4333_v31 = vld [vmem:[%s4721_s30 + $0x210] ss:$24 sps:$4 sm:$0xff]  }
  0x41   : > { %1798 = vmatprep.subr.bf16.mxu1 %v4583_v1  ;;  %2087 = vmatprep.subr.bf16.mxu0 %v4583_v1 }
  0x44   : > { %1799 = vmatpush1.bf16.msra.mxu1 %v4250_v33  ;;  %2088 = vmatpush1.bf16.msra.mxu0 %v4807_v34  ;;  %v4336_v33 = vld [vmem:[%s4721_s30 + $0x244] ss:$24 sps:$4 sm:$0xff]  }
  0x45   : > { %3970 = vmatprep.subr.bf16.mxu1 %v4583_v1  ;;  %2346 = vmatprep.subr.bf16.mxu0 %v4583_v1 }
  0x47   : > { %1801 = vmatmul.mubr.bf16.vlgmr.msra.gmra.mrb[0].mxu1 %v4252_v35  ;;  %2090 = vmatmul.mubr.bf16.vlgmr.msra.gmra.mrb[0].mxu0 %v4255_v36  ;;  %v4340_v35 = vld [vmem:[%s4721_s30 + $0x240] ss:$24 sps:$4 sm:$0xff]  }
  0x48   : > { %3986 = vmatpush1.bf16.msra.mxu1 %v4632_v2  ;;  %2347 = vmatpush1.bf16.msra.mxu0 %v4258_v37  ;;  %v4291_v2 = vld [vmem:[%s4721_s30 + $0xf0] ss:$24 sps:$4 sm:$0xff]   ;;  %v4343_v37 = vld [vmem:[%s4721_s30 + $0x274] ss:$24 sps:$4 sm:$0xff]  }
  0x49   : > { %1808 = vmatprep.mubr.bf16.mxu1 %v4259_v38  ;;  %2097 = vmatprep.mubr.bf16.mxu0 %v4261_v39  ;;  %v4341_v36 = vld [vmem:[%s4721_s30 + $0x248] ss:$24 sps:$4 sm:$0xff]   ;;  %v4345_v38 = vld [vmem:[%s4721_s30 + $0x27c] ss:$24 sps:$4 sm:$0xff]  }
  0x4a   : > { %2348 = vmatprep.subr.bf16.mxu0 %v4583_v1  ;;  %3971 = vmatprep.subr.bf16.mxu1 %v4583_v1  ;;  %v4347_v39 = vld [vmem:[%s4721_s30 + $0x270] ss:$24 sps:$4 sm:$0xff]  }
  0x4c   : > { %3987 = vmatpush1.bf16.msra.mxu1 %v4642_v4  ;;  %2349 = vmatpush1.bf16.msra.mxu0 %v4265_v40  ;;  %v4294_v4 = vld [vmem:[%s4721_s30 + $0x124] ss:$24 sps:$4 sm:$0xff]   ;;  %v4348_v40 = vld [vmem:[%s4721_s30 + $0x278] ss:$24 sps:$4 sm:$0xff]  }
  0x4d   : > { %3972 = vmatprep.subr.bf16.mxu1 %v4583_v1  ;;  %2350 = vmatprep.subr.bf16.mxu0 %v4583_v1 }
  0x4f   : > { %1809 = vmatmul.mubr.bf16.gmra.mrb[4].mxu1 %v4263_v41  ;;  %2098 = vmatmul.mubr.bf16.gmra.mrb[4].mxu0 %v4264_v42  ;;  %v4350_v41 = vld [vmem:[%s4721_s30 + $0x2a4] ss:$24 sps:$4 sm:$0xff]  }
  0x50   : > { %1816 = vmatprep.mubr.bf16.mxu1 %v4266_v43  ;;  %2105 = vmatprep.mubr.bf16.mxu0 %v4268_v44  ;;  %v4352_v42 = vld [vmem:[%s4721_s30 + $0x2ac] ss:$24 sps:$4 sm:$0xff]   ;;  %v4354_v43 = vld [vmem:[%s4721_s30 + $0x2a0] ss:$24 sps:$4 sm:$0xff]  }
  0x51   : > { %2351 = vmatpush1.bf16.msra.mxu0 %v4272_v45  ;;  %3988 = vmatpush1.bf16.msra.mxu1 %v4653_v6  ;;  %v4328_v6 = vld [vmem:[%s5463_s1 + $0x150] sm:$0xff]   ;;  %v4355_v44 = vld [vmem:[%s4721_s30 + $0x2a8] ss:$24 sps:$4 sm:$0xff]  }
  0x52   : > { %2352 = vmatprep.subr.bf16.mxu0 %v4583_v1  ;;  %3973 = vmatprep.subr.bf16.mxu1 %v4583_v1  ;;  %v4357_v45 = vld [vmem:[%s4721_s30 + $0x2d4] ss:$24 sps:$4 sm:$0xff]  }
  0x55   : > { %2353 = vmatpush1.bf16.msra.mxu0 %v4279_v46  ;;  %3989 = vmatpush1.bf16.msra.mxu1 %v4664_v8  ;;  %v4335_v8 = vld [vmem:[%s5463_s1 + $0x158] sm:$0xff]  }
  0x56   : > { %2354 = vmatprep.subr.bf16.mxu0 %v4583_v1  ;;  %3974 = vmatprep.subr.bf16.mxu1 %v4583_v1  ;;  %v4359_v46 = vld [vmem:[%s4721_s30 + $0x2dc] ss:$24 sps:$4 sm:$0xff]  }
  0x57   : > { %1817 = vmatmul.mubr.bf16.gmra.mrb[8].mxu1 %v4270_v47  ;;  %2106 = vmatmul.mubr.bf16.gmra.mrb[8].mxu0 %v4271_v48  ;;  %v4361_v47 = vld [vmem:[%s4721_s30 + $0x2d0] ss:$24 sps:$4 sm:$0xff]  }
  0x58   : > { %1824 = vmatprep.mubr.bf16.mxu1 %v4273_v49  ;;  %2113 = vmatprep.mubr.bf16.mxu0 %v4275_v50  ;;  %v4362_v48 = vld [vmem:[%s4721_s30 + $0x2d8] ss:$24 sps:$4 sm:$0xff]   ;;  %v4364_v49 = vld [vmem:[%s4721_s30 + $0x304] ss:$24 sps:$4 sm:$0xff]   ;;  %v4368_v50 = vld [vmem:[%s4721_s30 + $0x14] ss:$24 sps:$4 sm:$0xff]  }
  0x59   : > { %2355 = vmatpush1.bf16.msra.mxu0 %v4286_v51  ;;  %3990 = vmatpush1.bf16.msra.mxu1 %v4675_v10  ;;  %v4301_v10 = vld [vmem:[%s4721_s30 + $0x154] ss:$24 sps:$4 sm:$0xff]   ;;  %v4369_v51 = vld [vmem:[%s4721_s30 + $0x300] ss:$24 sps:$4 sm:$0xff]  }
  0x5a   : > { %2356 = vmatprep.subr.bf16.mxu0 %v4583_v1  ;;  %3975 = vmatprep.subr.bf16.mxu1 %v4583_v1 }
  0x5d   : > { %2357 = vmatpush1.bf16.msra.mxu0 %v4293_v52  ;;  %3991 = vmatpush1.bf16.msra.mxu1 %v4687_v12  ;;  %v4342_v12 = vld [vmem:[%s5463_s1 + $0x160] sm:$0xff]   ;;  %v4366_v52 = vld [vmem:[%s4721_s30 + $0x10] ss:$24 sps:$4 sm:$0xff]  }
  0x5e   : > { %2358 = vmatprep.subr.bf16.mxu0 %v4583_v1  ;;  %3976 = vmatprep.subr.bf16.mxu1 %v4583_v1 }
  0x5f   : > { %1825 = vmatmul.mubr.bf16.gmra.mrb[12].mxu1 %v4277_v53  ;;  %2114 = vmatmul.mubr.bf16.gmra.mrb[12].mxu0 %v4278_v54  ;;  %v4370_v53 = vld [vmem:[%s4721_s30 + $0x334] ss:$24 sps:$4 sm:$0xff]   ;;  %v4372_v54 = vld [vmem:[%s4721_s30 + $0x44] ss:$24 sps:$4 sm:$0xff]  }
  0x60   : > { %1832 = vmatprep.mubr.bf16.mxu1 %v4280_v55  ;;  %2121 = vmatprep.mubr.bf16.mxu0 %v4282_v56  ;;  %v4374_v55 = vld [vmem:[%s4721_s30 + $0x330] ss:$24 sps:$4 sm:$0xff]   ;;  %v4375_v56 = vld [vmem:[%s4721_s30 + $0x40] ss:$24 sps:$4 sm:$0xff]  }
  0x61   : > { %2359 = vmatpush1.bf16.msra.mxu0 %v4300_v57  ;;  %3992 = vmatpush1.bf16.msra.mxu1 %v4700_v14  ;;  %v4349_v14 = vld [vmem:[%s5463_s1 + $0x168] sm:$0xff]   ;;  %v4376_v57 = vld [vmem:[%s4721_s30 + $0x364] ss:$24 sps:$4 sm:$0xff]  }
  0x62   : > { %2360 = vmatprep.subr.bf16.mxu0 %v4583_v1  ;;  %3977 = vmatprep.subr.bf16.mxu1 %v4583_v1 }
  0x65   : > { %2361 = vmatpush1.bf16.msra.mxu0 %v4307_v58  ;;  %3993 = vmatpush1.bf16.msra.mxu1 %v4712_v16  ;;  %v4308_v16 = vld [vmem:[%s4721_s30 + $0x184] ss:$24 sps:$4 sm:$0xff]   ;;  %v4378_v58 = vld [vmem:[%s4721_s30 + $0x74] ss:$24 sps:$4 sm:$0xff]  }
  0x66   : > { %2362 = vmatprep.subr.bf16.mxu0 %v4583_v1  ;;  %3978 = vmatprep.subr.bf16.mxu1 %v4583_v1 }
  0x67   : > { %1833 = vmatmul.mubr.bf16.gmra.mrb[16].mxu1 %v4284_v59  ;;  %2122 = vmatmul.mubr.bf16.gmra.mrb[16].mxu0 %v4285_v60  ;;  %v4380_v59 = vld [vmem:[%s4721_s30 + $0x360] ss:$24 sps:$4 sm:$0xff]   ;;  %v4381_v60 = vld [vmem:[%s4721_s30 + $0x70] ss:$24 sps:$4 sm:$0xff]  }
  0x68   : > { %1840 = vmatprep.mubr.bf16.mxu1 %v4287_v61  ;;  %2129 = vmatprep.mubr.bf16.mxu0 %v4289_v62  ;;  %v4382_v61 = vld [vmem:[%s4721_s30 + $0x394] ss:$24 sps:$4 sm:$0xff]   ;;  %v4384_v62 = vld [vmem:[%s4721_s30 + $0xa4] ss:$24 sps:$4 sm:$0xff]  }
  0x69   : > { %2363 = vmatpush1.bf16.msra.mxu0 %v4314_v63  ;;  %3994 = vmatpush1.bf16.msra.mxu1 %v4728_v18  ;;  %v4356_v18 = vld [vmem:[%s5463_s1 + $0x170] sm:$0xff]  }
  0x6a   : > { %2364 = vmatprep.subr.bf16.mxu0 %v4583_v1  ;;  %3979 = vmatprep.subr.bf16.mxu1 %v4583_v1  ;;  %v4386_v63 = vld [vmem:[%s4721_s30 + $0x390] ss:$24 sps:$4 sm:$0xff]  }
  0x6d   : > { %2365 = vmatpush1.bf16.msra.mxu0 %v4321_v0  ;;  %3995 = vmatpush1.bf16.msra.mxu1 %v4741_v22  ;;  %v4315_v22 = vld [vmem:[%s4721_s30 + $0x1b4] ss:$24 sps:$4 sm:$0xff]   ;;  %v4387_v0 = vld [vmem:[%s4721_s30 + $0xa0] ss:$24 sps:$4 sm:$0xff]  }
  0x6e   : > { %2366 = vmatprep.subr.bf16.mxu0 %v4583_v1  ;;  %3980 = vmatprep.subr.bf16.mxu1 %v4583_v1 }
  0x6f   : > { %1841 = vmatmul.mubr.bf16.gmra.mrb[20].mxu1 %v4291_v2  ;;  %2130 = vmatmul.mubr.bf16.gmra.mrb[20].mxu0 %v4292_v3  ;;  %v4388_v2 = vld [vmem:[%s4721_s30 + $0x3c4] ss:$24 sps:$4 sm:$0xff]   ;;  %v4390_v3 = vld [vmem:[%s4721_s30 + $0xd4] ss:$24 sps:$4 sm:$0xff]  }
  0x70   : > { %1848 = vmatprep.mubr.bf16.mxu1 %v4294_v4  ;;  %2137 = vmatprep.mubr.bf16.mxu0 %v4296_v5  ;;  %v4392_v4 = vld [vmem:[%s4721_s30 + $0x3c0] ss:$24 sps:$4 sm:$0xff]   ;;  %v4393_v5 = vld [vmem:[%s4721_s30 + $0xd0] ss:$24 sps:$4 sm:$0xff]  }
  0x71   : > { %2367 = vmatpush1.bf16.msra.mxu0 %v4328_v6  ;;  %3996 = vmatpush1.bf16.msra.mxu1 %v4752_v24  ;;  %v4319_v24 = vld [vmem:[%s4721_s30 + $0x1b0] ss:$24 sps:$4 sm:$0xff]   ;;  %v4394_v6 = vld [vmem:[%s4721_s30 + $0x3f4] ss:$24 sps:$4 sm:$0xff]  }
  0x72   : > { %2368 = vmatprep.subr.bf16.mxu0 %v4583_v1  ;;  %3981 = vmatprep.subr.bf16.mxu1 %v4583_v1 }
  0x75   : > { %2369 = vmatpush1.bf16.msra.mxu0 %v4335_v8  ;;  %3997 = vmatpush1.bf16.msra.mxu1 %v4763_v26  ;;  %v4322_v26 = vld [vmem:[%s4721_s30 + $0x1e4] ss:$24 sps:$4 sm:$0xff]   ;;  %v4398_v8 = vld [vmem:[%s4721_s30 + $0x3f0] ss:$24 sps:$4 sm:$0xff]  }
  0x76   : > { %2370 = vmatprep.subr.bf16.mxu0 %v4583_v1  ;;  %3982 = vmatprep.subr.bf16.mxu1 %v4583_v1 }
  0x77   : > { %1849 = vmatmul.mubr.bf16.gmra.mrb[24].mxu1 %v4298_v7  ;;  %2138 = vmatmul.mubr.bf16.gmra.mrb[24].mxu0 %v4299_v9  ;;  %v4396_v7 = vld [vmem:[%s4721_s30 + $0x104] ss:$24 sps:$4 sm:$0xff]   ;;  %v4399_v9 = vld [vmem:[%s4721_s30 + $0x100] ss:$24 sps:$4 sm:$0xff]  }
  0x78   : > { %1856 = vmatprep.mubr.bf16.mxu1 %v4301_v10  ;;  %2145 = vmatprep.mubr.bf16.mxu0 %v4303_v11  ;;  %v4400_v10 = vld [vmem:[%s4721_s30 + $0x424] ss:$24 sps:$4 sm:$0xff]   ;;  %v4402_v11 = vld [vmem:[%s4721_s30 + $0x134] ss:$24 sps:$4 sm:$0xff]  }
  0x79   : > { %2371 = vmatpush1.bf16.msra.mxu0 %v4342_v12  ;;  %3998 = vmatpush1.bf16.msra.mxu1 %v4774_v28  ;;  %v4327_v28 = vld [vmem:[%s4721_s30 + $0x1e8] ss:$24 sps:$4 sm:$0xff]  }
  0x7a   : > { %2372 = vmatprep.subr.bf16.mxu0 %v4583_v1  ;;  %3983 = vmatprep.subr.bf16.mxu1 %v4583_v1  ;;  %v4404_v12 = vld [vmem:[%s4721_s30 + $0x420] ss:$24 sps:$4 sm:$0xff]  }
  0x7d   : > { %2373 = vmatpush1.bf16.msra.mxu0 %v4349_v14  ;;  %3999 = vmatpush1.bf16.msra.mxu1 %v4785_v30  ;;  %v4331_v30 = vld [vmem:[%s4721_s30 + $0x21c] ss:$24 sps:$4 sm:$0xff]  }
  0x7e   : > { %2374 = vmatprep.subr.bf16.mxu0 %v4583_v1  ;;  %3984 = vmatprep.subr.bf16.mxu1 %v4583_v1  ;;  %v4406_v14 = vld [vmem:[%s4721_s30 + $0x454] ss:$24 sps:$4 sm:$0xff]  }
  0x7f   : > { %1857 = vmatmul.mubr.bf16.gmra.mrb[28].mxu1 %v4305_v13  ;;  %2146 = vmatmul.mubr.bf16.gmra.mrb[28].mxu0 %v4306_v15  ;;  %v4405_v13 = vld [vmem:[%s4721_s30 + $0x130] ss:$24 sps:$4 sm:$0xff]   ;;  %v4408_v15 = vld [vmem:[%s4721_s30 + $0x164] ss:$24 sps:$4 sm:$0xff]  }
  0x80   : > { %1864 = vmatprep.mubr.bf16.mxu1 %v4308_v16  ;;  %2153 = vmatprep.mubr.bf16.mxu0 %v4310_v17  ;;  %v4410_v16 = vld [vmem:[%s4721_s30 + $0x450] ss:$24 sps:$4 sm:$0xff]   ;;  %v4411_v17 = vld [vmem:[%s4721_s30 + $0x160] ss:$24 sps:$4 sm:$0xff]  }
  0x81   : > { %2375 = vmatpush1.bf16.msra.mxu0 %v4356_v18  ;;  %4000 = vmatpush1.bf16.msra.mxu1 %v4796_v32  ;;  %v4334_v32 = vld [vmem:[%s4721_s30 + $0x218] ss:$24 sps:$4 sm:$0xff]   ;;  %v4412_v18 = vld [vmem:[%s4721_s30 + $0x484] ss:$24 sps:$4 sm:$0xff]  }
  0x82   : > { %2376 = vmatprep.subr.bf16.mxu0 %v4583_v1  ;;  %3985 = vmatprep.subr.bf16.mxu1 %v4583_v1  ;;  %v4326_v1 = vld [vmem:[%s4721_s30 + $0x1e0] ss:$24 sps:$4 sm:$0xff]  }
  0x85   : > { %2377 = vmatpush1.bf16.msra.mxu0 %v4363_v20  ;;  %4001 = vmatpush1.bf16.msra.mxu1 %v4807_v34  ;;  %v4338_v34 = vld [vmem:[%s4721_s30 + $0x24c] ss:$24 sps:$4 sm:$0xff]   ;;  %v4416_v20 = vld [vmem:[%s4721_s30 + $0x480] ss:$24 sps:$4 sm:$0xff]  }
  0x87   : > { %1865 = vmatmul.mubr.bf16.gmra.mrb[32].mxu1 %v4312_v19  ;;  %2154 = vmatmul.mubr.bf16.gmra.mrb[32].mxu0 %v4313_v21  ;;  %v4414_v19 = vld [vmem:[%s4721_s30 + $0x194] ss:$24 sps:$4 sm:$0xff]   ;;  %v4417_v21 = vld [vmem:[%s4721_s30 + $0x190] ss:$24 sps:$4 sm:$0xff]  }
  0x88   : > { %1872 = vmatprep.mubr.bf16.mxu1 %v4315_v22  ;;  %2161 = vmatprep.mubr.bf16.mxu0 %v4317_v23  ;;  %v4418_v22 = vld [vmem:[%s4721_s30 + $0x4b4] ss:$24 sps:$4 sm:$0xff]   ;;  %v4420_v23 = vld [vmem:[%s4721_s30 + $0x1c4] ss:$24 sps:$4 sm:$0xff]  }
  0x8f   : > { %1873 = vmatmul.mubr.bf16.gmra.mrb[36].mxu1 %v4319_v24  ;;  %2162 = vmatmul.mubr.bf16.gmra.mrb[36].mxu0 %v4320_v25  ;;  %v4422_v24 = vld [vmem:[%s4721_s30 + $0x4b0] ss:$24 sps:$4 sm:$0xff]   ;;  %v4423_v25 = vld [vmem:[%s4721_s30 + $0x1c0] ss:$24 sps:$4 sm:$0xff]  }
  0x90   : > { %1880 = vmatprep.mubr.bf16.mxu1 %v4322_v26  ;;  %2169 = vmatprep.mubr.bf16.mxu0 %v4324_v27  ;;  %v4424_v26 = vld [vmem:[%s4721_s30 + $0x4e4] ss:$24 sps:$4 sm:$0xff]   ;;  %v4426_v27 = vld [vmem:[%s4721_s30 + $0x1f4] ss:$24 sps:$4 sm:$0xff]  }
  0x97   : > { %1881 = vmatmul.mubr.bf16.gmra.mrb[40].mxu1 %v4326_v1  ;;  %2170 = vmatmul.mubr.bf16.gmra.mrb[40].mxu0 %v4327_v28  ;;  %v4428_v1 = vld [vmem:[%s4721_s30 + $0x4e0] ss:$24 sps:$4 sm:$0xff]   ;;  %v4429_v28 = vld [vmem:[%s4721_s30 + $0x1f0] ss:$24 sps:$4 sm:$0xff]  }
  0x98   : > { %1888 = vmatprep.mubr.bf16.mxu1 %v4329_v29  ;;  %2177 = vmatprep.mubr.bf16.mxu0 %v4331_v30  ;;  %v4430_v29 = vld [vmem:[%s4721_s30 + $0x514] ss:$24 sps:$4 sm:$0xff]   ;;  %v4432_v30 = vld [vmem:[%s4721_s30 + $0x224] ss:$24 sps:$4 sm:$0xff]  }
  0x9f   : > { %1889 = vmatmul.mubr.bf16.gmra.mrb[44].mxu1 %v4333_v31  ;;  %2178 = vmatmul.mubr.bf16.gmra.mrb[44].mxu0 %v4334_v32 }
  0xa0   : > { %1896 = vmatprep.mubr.bf16.mxu1 %v4336_v33  ;;  %2185 = vmatprep.mubr.bf16.mxu0 %v4338_v34  ;;  %v4434_v33 = vld [vmem:[%s4721_s30 + $0x510] ss:$24 sps:$4 sm:$0xff]  }
  0xa7   : > { %1897 = vmatmul.mubr.bf16.gmra.mrb[48].mxu1 %v4340_v35  ;;  %2186 = vmatmul.mubr.bf16.gmra.mrb[48].mxu0 %v4341_v36  ;;  %v4435_v35 = vld [vmem:[%s4721_s30 + $0x220] ss:$24 sps:$4 sm:$0xff]   ;;  %v4436_v36 = vld [vmem:[%s4721_s30 + $0x544] ss:$24 sps:$4 sm:$0xff]  }
  0xa8   : > { %1904 = vmatprep.mubr.bf16.mxu1 %v4343_v37  ;;  %2193 = vmatprep.mubr.bf16.mxu0 %v4345_v38  ;;  %v4438_v38 = vld [vmem:[%s4721_s30 + $0x254] ss:$24 sps:$4 sm:$0xff]  }
  0xaf   : > { %1905 = vmatmul.mubr.bf16.gmra.mrb[52].mxu1 %v4347_v39  ;;  %2194 = vmatmul.mubr.bf16.gmra.mrb[52].mxu0 %v4348_v40 }
  0xb0   : > { %1912 = vmatprep.mubr.bf16.mxu1 %v4350_v41  ;;  %2201 = vmatprep.mubr.bf16.mxu0 %v4352_v42  ;;  %v4440_v41 = vld [vmem:[%s4721_s30 + $0x540] ss:$24 sps:$4 sm:$0xff]  }
  0xb7   : > { %1913 = vmatmul.mubr.bf16.gmra.mrb[56].mxu1 %v4354_v43  ;;  %2202 = vmatmul.mubr.bf16.gmra.mrb[56].mxu0 %v4355_v44  ;;  %v4441_v43 = vld [vmem:[%s4721_s30 + $0x250] ss:$24 sps:$4 sm:$0xff]   ;;  %v4442_v44 = vld [vmem:[%s4721_s30 + $0x574] ss:$24 sps:$4 sm:$0xff]  }
  0xb8   : > { %1920 = vmatprep.mubr.bf16.mxu1 %v4357_v45  ;;  %2209 = vmatprep.mubr.bf16.mxu0 %v4359_v46  ;;  %v4444_v46 = vld [vmem:[%s4721_s30 + $0x284] ss:$24 sps:$4 sm:$0xff]  }
  0xbf   : > { %1921 = vmatmul.mubr.bf16.gmra.mrb[60].mxu1 %v4361_v47  ;;  %2210 = vmatmul.mubr.bf16.gmra.mrb[60].mxu0 %v4362_v48 }
  0xc0   : > { %1928 = vmatprep.mubr.bf16.mxu1 %v4364_v49  ;;  %2378 = vmatprep.mubr.bf16.mxu0 %v4368_v50  ;;  %v4446_v49 = vld [vmem:[%s4721_s30 + $0x570] ss:$24 sps:$4 sm:$0xff]  }
  0xc7   : > { %1929 = vmatmul.mubr.bf16.gmra.mrb[64].mxu1 %v4369_v51  ;;  %2379 = vmatmul.mubr.bf16.vlgmr.msra.gmra.mrb[0].mxu0 %v4366_v52  ;;  %v4447_v51 = vld [vmem:[%s4721_s30 + $0x280] ss:$24 sps:$4 sm:$0xff]   ;;  %v4448_v52 = vld [vmem:[%s4721_s30 + $0x5a4] ss:$24 sps:$4 sm:$0xff]  }
  0xc8   : > { %1936 = vmatprep.mubr.bf16.mxu1 %v4370_v53  ;;  %2386 = vmatprep.mubr.bf16.mxu0 %v4372_v54  ;;  %v4450_v54 = vld [vmem:[%s4721_s30 + $0x2b4] ss:$24 sps:$4 sm:$0xff]  }
  0xcf   : > { %1937 = vmatmul.mubr.bf16.gmra.mrb[68].mxu1 %v4374_v55  ;;  %2387 = vmatmul.mubr.bf16.gmra.mrb[4].mxu0 %v4375_v56 }
  0xd0   : > { %1944 = vmatprep.mubr.bf16.mxu1 %v4376_v57  ;;  %2394 = vmatprep.mubr.bf16.mxu0 %v4378_v58  ;;  %v4452_v57 = vld [vmem:[%s4721_s30 + $0x5a0] ss:$24 sps:$4 sm:$0xff]  }
  0xd7   : > { %1945 = vmatmul.mubr.bf16.gmra.mrb[72].mxu1 %v4380_v59  ;;  %2395 = vmatmul.mubr.bf16.gmra.mrb[8].mxu0 %v4381_v60  ;;  %v4453_v59 = vld [vmem:[%s4721_s30 + $0x2b0] ss:$24 sps:$4 sm:$0xff]   ;;  %v4454_v60 = vld [vmem:[%s4721_s30 + $0x5d4] ss:$24 sps:$4 sm:$0xff]  }
  0xd8   : > { %1952 = vmatprep.mubr.bf16.mxu1 %v4382_v61  ;;  %2402 = vmatprep.mubr.bf16.mxu0 %v4384_v62  ;;  %v4456_v62 = vld [vmem:[%s4721_s30 + $0x2e4] ss:$24 sps:$4 sm:$0xff]  }
  0xdf   : > { %1953 = vmatmul.mubr.bf16.gmra.mrb[76].mxu1 %v4386_v63  ;;  %2403 = vmatmul.mubr.bf16.gmra.mrb[12].mxu0 %v4387_v0 }
  0xe0   : > { %1960 = vmatprep.mubr.bf16.mxu1 %v4388_v2  ;;  %2410 = vmatprep.mubr.bf16.mxu0 %v4390_v3  ;;  %v4458_v2 = vld [vmem:[%s4721_s30 + $0x5d0] ss:$24 sps:$4 sm:$0xff]  }
  0xe7   : > { %1961 = vmatmul.mubr.bf16.gmra.mrb[80].mxu1 %v4392_v4  ;;  %2411 = vmatmul.mubr.bf16.gmra.mrb[16].mxu0 %v4393_v5  ;;  %v4459_v4 = vld [vmem:[%s4721_s30 + $0x2e0] ss:$24 sps:$4 sm:$0xff]   ;;  %v4462_v5 = vld [vmem:[%s4721_s30 + $0x30c] ss:$24 sps:$4 sm:$0xff]  }
  0xe8   : > { %1968 = vmatprep.mubr.bf16.mxu1 %v4394_v6  ;;  %2418 = vmatprep.mubr.bf16.mxu0 %v4396_v7  ;;  %v4463_v7 = vld [vmem:[%s4721_s30 + $0x314] ss:$24 sps:$4 sm:$0xff]  }
  0xef   : > { %1969 = vmatmul.mubr.bf16.gmra.mrb[84].mxu1 %v4398_v8  ;;  %2419 = vmatmul.mubr.bf16.gmra.mrb[20].mxu0 %v4399_v9 }
  0xf0   : > { %1976 = vmatprep.mubr.bf16.mxu1 %v4400_v10  ;;  %2426 = vmatprep.mubr.bf16.mxu0 %v4402_v11  ;;  %v4460_v10 = vld [vmem:[%s4721_s30 + $0x308] ss:$24 sps:$4 sm:$0xff]  }
  0xf7   : > { %1977 = vmatmul.mubr.bf16.gmra.mrb[88].mxu1 %v4404_v12  ;;  %2427 = vmatmul.mubr.bf16.gmra.mrb[24].mxu0 %v4405_v13  ;;  %v4465_v12 = vld [vmem:[%s4721_s30 + $0x310] ss:$24 sps:$4 sm:$0xff]   ;;  %v4466_v13 = vld [vmem:[%s4721_s30 + $0x33c] ss:$24 sps:$4 sm:$0xff]  }
  0xf8   : > { %1984 = vmatprep.mubr.bf16.mxu1 %v4406_v14  ;;  %2434 = vmatprep.mubr.bf16.mxu0 %v4408_v15  ;;  %v4468_v15 = vld [vmem:[%s4721_s30 + $0x344] ss:$24 sps:$4 sm:$0xff]  }
  0xff   : > { %1985 = vmatmul.mubr.bf16.gmra.mrb[92].mxu1 %v4410_v16  ;;  %2435 = vmatmul.mubr.bf16.gmra.mrb[28].mxu0 %v4411_v17 }
 0x100   : > { %1992 = vmatprep.mubr.bf16.mxu1 %v4412_v18  ;;  %2442 = vmatprep.mubr.bf16.mxu0 %v4414_v19  ;;  %v4470_v18 = vld [vmem:[%s4721_s30 + $0x338] ss:$24 sps:$4 sm:$0xff]  }
 0x107   : > { %1993 = vmatmul.mubr.bf16.gmra.mrb[96].mxu1 %v4416_v20  ;;  %2443 = vmatmul.mubr.bf16.gmra.mrb[32].mxu0 %v4417_v21  ;;  %v4471_v20 = vld [vmem:[%s4721_s30 + $0x340] ss:$24 sps:$4 sm:$0xff]   ;;  %v4472_v21 = vld [vmem:[%s4721_s30 + $0x36c] ss:$24 sps:$4 sm:$0xff]  }
 0x108   : > { %2000 = vmatprep.mubr.bf16.mxu1 %v4418_v22  ;;  %2450 = vmatprep.mubr.bf16.mxu0 %v4420_v23  ;;  %v4474_v23 = vld [vmem:[%s4721_s30 + $0x374] ss:$24 sps:$4 sm:$0xff]  }
 0x10f   : > { %2001 = vmatmul.mubr.bf16.gmra.mrb[100].mxu1 %v4422_v24  ;;  %2451 = vmatmul.mubr.bf16.gmra.mrb[36].mxu0 %v4423_v25 }
 0x110   : > { %2008 = vmatprep.mubr.bf16.mxu1 %v4424_v26  ;;  %2458 = vmatprep.mubr.bf16.mxu0 %v4426_v27  ;;  %v4476_v26 = vld [vmem:[%s4721_s30 + $0x368] ss:$24 sps:$4 sm:$0xff]  }
 0x117   : > { %2009 = vmatmul.mubr.bf16.gmra.mrb[104].mxu1 %v4428_v1  ;;  %2459 = vmatmul.mubr.bf16.gmra.mrb[40].mxu0 %v4429_v28  ;;  %v4477_v1 = vld [vmem:[%s4721_s30 + $0x370] ss:$24 sps:$4 sm:$0xff]   ;;  %v4478_v28 = vld [vmem:[%s4721_s30 + $0x39c] ss:$24 sps:$4 sm:$0xff]  }
 0x118   : > { %2016 = vmatprep.mubr.bf16.mxu1 %v4430_v29  ;;  %2466 = vmatprep.mubr.bf16.mxu0 %v4432_v30  ;;  %v4480_v30 = vld [vmem:[%s4721_s30 + $0x3a4] ss:$24 sps:$4 sm:$0xff]  }
 0x11a   : > { %v5015_v31 = vpop.f32.mrb[0].mxu1 }
 0x11b   : > { %v1804_v32 = vpop.f32.mrb[1].mxu1 }
 0x11c   : > { %v5018_v34 = vpop.f32.mrb[2].mxu1 }
 0x11d   : > { %v1807_v37 = vpop.f32.mrb[3].mxu1 }
 0x11e   : > { %v4483_v37 = vld [vmem:[%s4721_s30 + $0x3a0] ss:$24 sps:$4 sm:$0xff]  }
 0x11f   : > { %2017 = vmatmul.mubr.bf16.gmra.mrb[108].mxu1 %v4434_v33  ;;  %2467 = vmatmul.mubr.bf16.gmra.mrb[44].mxu0 %v4435_v35  ;;  %v4482_v35 = vld [vmem:[%s4721_s30 + $0x398] ss:$24 sps:$4 sm:$0xff]  }
 0x120   : > { %2024 = vmatprep.mubr.bf16.mxu1 %v4436_v36  ;;  %2474 = vmatprep.mubr.bf16.mxu0 %v4438_v38  ;;  %v4484_v38 = vld [vmem:[%s4721_s30 + $0x3cc] ss:$24 sps:$4 sm:$0xff]  }
 0x122   : > { %v5023_v39 = vpop.f32.mrb[4].mxu1 }
 0x123   : > { %v1812_v40 = vpop.f32.mrb[5].mxu1 }
 0x124   : > { %v5026_v42 = vpop.f32.mrb[6].mxu1 }
 0x125   : > { %v1815_v45 = vpop.f32.mrb[7].mxu1 }
 0x126   : > { %v4488_v45 = vld [vmem:[%s4721_s30 + $0x3c8] ss:$24 sps:$4 sm:$0xff]  }
 0x127   : > { %2025 = vmatmul.mubr.bf16.gmra.mrb[112].mxu1 %v4440_v41  ;;  %2475 = vmatmul.mubr.bf16.gmra.mrb[48].mxu0 %v4441_v43  ;;  %v4486_v41 = vld [vmem:[%s4721_s30 + $0x3d4] ss:$24 sps:$4 sm:$0xff]  }
 0x128   : > { %2032 = vmatprep.mubr.bf16.mxu1 %v4442_v44  ;;  %2482 = vmatprep.mubr.bf16.mxu0 %v4444_v46 }
 0x12a   : > { %v5031_v47 = vpop.f32.mrb[8].mxu1 }
 0x12b   : > { %v1820_v48 = vpop.f32.mrb[9].mxu1 }
 0x12c   : > { %v5034_v50 = vpop.f32.mrb[10].mxu1  ;;  %v4489_v48 = vld [vmem:[%s4721_s30 + $0x3d0] ss:$24 sps:$4 sm:$0xff]  }
 0x12d   : > { %v1823_v53 = vpop.f32.mrb[11].mxu1 }
 0x12f   : > { %2033 = vmatmul.mubr.bf16.gmra.mrb[116].mxu1 %v4446_v49  ;;  %2483 = vmatmul.mubr.bf16.gmra.mrb[52].mxu0 %v4447_v51  ;;  %v4490_v49 = vld [vmem:[%s4721_s30 + $0x3fc] ss:$24 sps:$4 sm:$0xff]  }
 0x130   : > { %2040 = vmatprep.mubr.bf16.mxu1 %v4448_v52  ;;  %2490 = vmatprep.mubr.bf16.mxu0 %v4450_v54  ;;  %v4492_v52 = vld [vmem:[%s4721_s30 + $0x404] ss:$24 sps:$4 sm:$0xff]  }
 0x132   : > { %v5039_v55 = vpop.f32.mrb[12].mxu1 }
 0x133   : > { %v1828_v56 = vpop.f32.mrb[13].mxu1 }
 0x134   : > { %v5042_v58 = vpop.f32.mrb[14].mxu1  ;;  %v4494_v56 = vld [vmem:[%s4721_s30 + $0x3f8] ss:$24 sps:$4 sm:$0xff]  }
 0x135   : > { %v1831_v61 = vpop.f32.mrb[15].mxu1 }
 0x137   : > { %2041 = vmatmul.mubr.bf16.gmra.mrb[120].mxu1 %v4452_v57  ;;  %2491 = vmatmul.mubr.bf16.gmra.mrb[56].mxu0 %v4453_v59  ;;  %v4495_v59 = vld [vmem:[%s4721_s30 + $0x400] ss:$24 sps:$4 sm:$0xff]  }
 0x138   : > { %2048 = vmatprep.mubr.bf16.mxu1 %v4454_v60  ;;  %2498 = vmatprep.mubr.bf16.mxu0 %v4456_v62  ;;  %v4496_v60 = vld [vmem:[%s4721_s30 + $0x42c] ss:$24 sps:$4 sm:$0xff]  }
 0x139   : > { %v4498_v62 = vld [vmem:[%s4721_s30 + $0x434] ss:$24 sps:$4 sm:$0xff]  }
 0x13a   : > { %v5047_v63 = vpop.f32.mrb[16].mxu1 }
 0x13b   : > { %v1836_v0 = vpop.f32.mrb[17].mxu1 }
 0x13c   : > { %v5050_v3 = vpop.f32.mrb[18].mxu1 }
 0x13d   : > { %v1839_v6 = vpop.f32.mrb[19].mxu1 }
 0x13e   : > { %v4501_v6 = vld [vmem:[%s4721_s30 + $0x430] ss:$24 sps:$4 sm:$0xff]  }
 0x13f   : > { %2049 = vmatmul.mubr.bf16.gmra.mrb[124].mxu1 %v4458_v2  ;;  %2499 = vmatmul.mubr.bf16.gmra.mrb[60].mxu0 %v4459_v4  ;;  %v4500_v4 = vld [vmem:[%s4721_s30 + $0x428] ss:$24 sps:$4 sm:$0xff]  }
 0x140   : > { %2217 = vmatprep.mubr.bf16.mxu1 %v4462_v5  ;;  %2506 = vmatprep.mubr.bf16.mxu0 %v4463_v7  ;;  %v4502_v7 = vld [vmem:[%s4721_s30 + $0x45c] ss:$24 sps:$4 sm:$0xff]  }
 0x142   : > { %v5055_v8 = vpop.f32.mrb[20].mxu1 }
 0x143   : > { %v1844_v9 = vpop.f32.mrb[21].mxu1 }
 0x144   : > { %v5058_v11 = vpop.f32.mrb[22].mxu1 }
 0x145   : > { %v1847_v14 = vpop.f32.mrb[23].mxu1 }
 0x146   : > { %v4506_v14 = vld [vmem:[%s4721_s30 + $0x458] ss:$24 sps:$4 sm:$0xff]  }
 0x147   : > { %2218 = vmatmul.mubr.bf16.vlgmr.msra.gmra.mrb[64].mxu1 %v4460_v10  ;;  %2507 = vmatmul.mubr.bf16.gmra.mrb[64].mxu0 %v4465_v12  ;;  %v4504_v10 = vld [vmem:[%s4721_s30 + $0x464] ss:$24 sps:$4 sm:$0xff]  }
 0x148   : > { %2225 = vmatprep.mubr.bf16.mxu1 %v4466_v13  ;;  %2514 = vmatprep.mubr.bf16.mxu0 %v4468_v15 }
 0x14a   : > { %v5063_v16 = vpop.f32.mrb[24].mxu1 }
 0x14b   : > { %v1852_v17 = vpop.f32.mrb[25].mxu1 }
 0x14c   : > { %v5066_v19 = vpop.f32.mrb[26].mxu1  ;;  %v4507_v17 = vld [vmem:[%s4721_s30 + $0x460] ss:$24 sps:$4 sm:$0xff]  }
 0x14d   : > { %v1855_v22 = vpop.f32.mrb[27].mxu1 }
 0x14f   : > { %2226 = vmatmul.mubr.bf16.gmra.mrb[68].mxu1 %v4470_v18  ;;  %2515 = vmatmul.mubr.bf16.gmra.mrb[68].mxu0 %v4471_v20  ;;  %v4508_v18 = vld [vmem:[%s4721_s30 + $0x48c] ss:$24 sps:$4 sm:$0xff]  }
 0x150   : > { %2233 = vmatprep.mubr.bf16.mxu1 %v4472_v21  ;;  %2522 = vmatprep.mubr.bf16.mxu0 %v4474_v23  ;;  %v4510_v21 = vld [vmem:[%s4721_s30 + $0x494] ss:$24 sps:$4 sm:$0xff]  }
 0x152   : > { %v5071_v24 = vpop.f32.mrb[28].mxu1 }
 0x153   : > { %v1860_v25 = vpop.f32.mrb[29].mxu1 }
 0x154   : > { %v5074_v27 = vpop.f32.mrb[30].mxu1  ;;  %v4512_v25 = vld [vmem:[%s4721_s30 + $0x488] ss:$24 sps:$4 sm:$0xff]  }
 0x155   : > { %v1863_v29 = vpop.f32.mrb[31].mxu1 }
 0x157   : > { %2234 = vmatmul.mubr.bf16.gmra.mrb[72].mxu1 %v4476_v26  ;;  %2523 = vmatmul.mubr.bf16.gmra.mrb[72].mxu0 %v4477_v1  ;;  %v4513_v1 = vld [vmem:[%s4721_s30 + $0x490] ss:$24 sps:$4 sm:$0xff]  }
 0x158   : > { %2241 = vmatprep.mubr.bf16.mxu1 %v4478_v28  ;;  %2530 = vmatprep.mubr.bf16.mxu0 %v4480_v30  ;;  %v4514_v28 = vld [vmem:[%s4721_s30 + $0x4bc] ss:$24 sps:$4 sm:$0xff]  }
 0x159   : > { %v4516_v30 = vld [vmem:[%s4721_s30 + $0x4c4] ss:$24 sps:$4 sm:$0xff]  }
 0x15a   : > { %v5079_v32 = vpop.f32.mrb[32].mxu1 }
 0x15b   : > { %v1868_v33 = vpop.f32.mrb[33].mxu1 }
 0x15c   : > { %v5082_v36 = vpop.f32.mrb[34].mxu1 }
 0x15d   : > { %v1871_v40 = vpop.f32.mrb[35].mxu1 }
 0x15e   : > { %v4519_v40 = vld [vmem:[%s4721_s30 + $0x4c0] ss:$24 sps:$4 sm:$0xff]  }
 0x15f   : > { %2242 = vmatmul.mubr.bf16.gmra.mrb[76].mxu1 %v4482_v35  ;;  %2531 = vmatmul.mubr.bf16.gmra.mrb[76].mxu0 %v4483_v37  ;;  %v4518_v37 = vld [vmem:[%s4721_s30 + $0x4b8] ss:$24 sps:$4 sm:$0xff]  }
 0x160   : > { %2249 = vmatprep.mubr.bf16.mxu1 %v4484_v38  ;;  %2538 = vmatprep.mubr.bf16.mxu0 %v4486_v41  ;;  %v4520_v41 = vld [vmem:[%s4721_s30 + $0x4ec] ss:$24 sps:$4 sm:$0xff]  }
 0x162   : > { %v5087_v43 = vpop.f32.mrb[36].mxu1 }
 0x163   : > { %v1876_v44 = vpop.f32.mrb[37].mxu1 }
 0x164   : > { %v5090_v46 = vpop.f32.mrb[38].mxu1 }
 0x165   : > { %v1879_v51 = vpop.f32.mrb[39].mxu1 }
 0x166   : > { %v4524_v51 = vld [vmem:[%s4721_s30 + $0x4e8] ss:$24 sps:$4 sm:$0xff]  }
 0x167   : > { %2250 = vmatmul.mubr.bf16.gmra.mrb[80].mxu1 %v4488_v45  ;;  %2539 = vmatmul.mubr.bf16.gmra.mrb[80].mxu0 %v4489_v48  ;;  %v4522_v45 = vld [vmem:[%s4721_s30 + $0x4f4] ss:$24 sps:$4 sm:$0xff]  }
 0x168   : > { %2257 = vmatprep.mubr.bf16.mxu1 %v4490_v49  ;;  %2546 = vmatprep.mubr.bf16.mxu0 %v4492_v52 }
 0x16a   : > { %v5095_v53 = vpop.f32.mrb[40].mxu1 }
 0x16b   : > { %v1884_v54 = vpop.f32.mrb[41].mxu1 }
 0x16c   : > { %v5098_v57 = vpop.f32.mrb[42].mxu1  ;;  %v4525_v54 = vld [vmem:[%s4721_s30 + $0x4f0] ss:$24 sps:$4 sm:$0xff]  }
 0x16d   : > { %v1887_v61 = vpop.f32.mrb[43].mxu1 }
 0x16f   : > { %2258 = vmatmul.mubr.bf16.gmra.mrb[84].mxu1 %v4494_v56  ;;  %2547 = vmatmul.mubr.bf16.gmra.mrb[84].mxu0 %v4495_v59  ;;  %v4526_v56 = vld [vmem:[%s4721_s30 + $0x51c] ss:$24 sps:$4 sm:$0xff]  }
 0x170   : > { %2265 = vmatprep.mubr.bf16.mxu1 %v4496_v60  ;;  %2554 = vmatprep.mubr.bf16.mxu0 %v4498_v62  ;;  %v4528_v60 = vld [vmem:[%s4721_s30 + $0x524] ss:$24 sps:$4 sm:$0xff]   ;;  %v5146_v62 = vld [vmem:[%s5464_s2] ss:$0 sm:$0xff] }
 0x172   : > { %v5103_v0 = vpop.f32.mrb[44].mxu1 }
 0x173   : > { %v1892_v2 = vpop.f32.mrb[45].mxu1 }
 0x174   : > { %v5106_v5 = vpop.f32.mrb[46].mxu1  ;;  %v4530_v2 = vld [vmem:[%s4721_s30 + $0x518] ss:$24 sps:$4 sm:$0xff]  }
 0x175   : > { %v1895_v9 = vpop.f32.mrb[47].mxu1 }
 0x176   : > { %v4532_v9 = vld [vmem:[%s4721_s30 + $0x54c] ss:$24 sps:$4 sm:$0xff]  }
 0x177   : > { %2266 = vmatmul.mubr.bf16.gmra.mrb[88].mxu1 %v4500_v4  ;;  %2555 = vmatmul.mubr.bf16.gmra.mrb[88].mxu0 %v4501_v6 }
 0x178   : > { %2273 = vmatprep.mubr.bf16.mxu1 %v4502_v7  ;;  %2562 = vmatprep.mubr.bf16.mxu0 %v4504_v10  ;;  %v4531_v7 = vld [vmem:[%s4721_s30 + $0x520] ss:$24 sps:$4 sm:$0xff]  }
 0x179   : > { %v5155_v10 = vld [vmem:[%s5464_s2 + $0x1] ss:$0 sm:$0xff] }
 0x17a   : > { %v5111_v12 = vpop.f32.mrb[48].mxu1 }
 0x17b   : > { %v1900_v13 = vpop.f32.mrb[49].mxu1 }
 0x17c   : > { %v5114_v15 = vpop.f32.mrb[50].mxu1 }
 0x17d   : > { %v1903_v20 = vpop.f32.mrb[51].mxu1 }
 0x17f   : > { %2274 = vmatmul.mubr.bf16.gmra.mrb[92].mxu1 %v4506_v14  ;;  %2563 = vmatmul.mubr.bf16.gmra.mrb[92].mxu0 %v4507_v17  ;;  %v4534_v14 = vld [vmem:[%s4721_s30 + $0x554] ss:$24 sps:$4 sm:$0xff]  }
 0x180   : > { %2281 = vmatprep.mubr.bf16.mxu1 %v4508_v18  ;;  %2570 = vmatprep.mubr.bf16.mxu0 %v4510_v21 }
 0x182   : > { %v5119_v22 = vpop.f32.mrb[52].mxu1 }
 0x183   : > { %v1908_v23 = vpop.f32.mrb[53].mxu1 }
 0x184   : > { %v5122_v26 = vpop.f32.mrb[54].mxu1 }
 0x185   : > { %v1911_v29 = vpop.f32.mrb[55].mxu1 }
 0x187   : > { %2282 = vmatmul.mubr.bf16.gmra.mrb[96].mxu1 %v4512_v25  ;;  %2571 = vmatmul.mubr.bf16.gmra.mrb[96].mxu0 %v4513_v1 }
 0x188   : > { %2289 = vmatprep.mubr.bf16.mxu1 %v4514_v28  ;;  %2578 = vmatprep.mubr.bf16.mxu0 %v4516_v30  ;;  %v4536_v28 = vld [vmem:[%s4721_s30 + $0x548] ss:$24 sps:$4 sm:$0xff]  }
 0x18a   : > { %v5127_v33 = vpop.f32.mrb[56].mxu1 }
 0x18b   : > { %v1916_v35 = vpop.f32.mrb[57].mxu1 }
 0x18c   : > { %v5130_v38 = vpop.f32.mrb[58].mxu1 }
 0x18d   : > { %v1919_v44 = vpop.f32.mrb[59].mxu1 }
 0x18e   : > { %v4540_v44 = vld [vmem:[%s4721_s30 + $0x584] ss:$24 sps:$4 sm:$0xff]  }
 0x18f   : > { %2290 = vmatmul.mubr.bf16.gmra.mrb[100].mxu1 %v4518_v37  ;;  %2579 = vmatmul.mubr.bf16.gmra.mrb[100].mxu0 %v4519_v40  ;;  %v4537_v37 = vld [vmem:[%s4721_s30 + $0x550] ss:$24 sps:$4 sm:$0xff]   ;;  %v4538_v40 = vld [vmem:[%s4721_s30 + $0x57c] ss:$24 sps:$4 sm:$0xff]  }
 0x190   : > { %2297 = vmatprep.mubr.bf16.mxu1 %v4520_v41  ;;  %2586 = vmatprep.mubr.bf16.mxu0 %v4522_v45 }
 0x192   : > { %v5135_v48 = vpop.f32.mrb[60].mxu1 }
 0x193   : > { %v1924_v49 = vpop.f32.mrb[61].mxu1 }
 0x194   : > { %v5138_v52 = vpop.f32.mrb[62].mxu1 }
 0x195   : > { %v1927_v59 = vpop.f32.mrb[63].mxu1 }
 0x197   : > { %2298 = vmatmul.mubr.bf16.gmra.mrb[104].mxu1 %v4524_v51  ;;  %2587 = vmatmul.mubr.bf16.gmra.mrb[104].mxu0 %v4525_v54 }
 0x198   : > { %2305 = vmatprep.mubr.bf16.mxu1 %v4526_v56  ;;  %2594 = vmatprep.mubr.bf16.mxu0 %v4528_v60 }
 0x19a   : > { %v2380_v61 = vpop.f32.mrb[0].mxu0 }
 0x19b   : > { %v4002_v4 = vadd.f32 %v2380_v61, %v5015_v31  ;;  %v2382_v6 = vpop.f32.mrb[1].mxu0  ;;  %v5163_v31 = vld [vmem:[%s5464_s2 + $0x2] ss:$0 sm:$0xff] }
 0x19c   : > { %v2383_v13 = vpop.f32.mrb[2].mxu0 }
 0x19d   : > { %v2640_v17 = vmul.f32 %v4002_v4, %v5146_v62  ;;  %v4003_v18 = vadd.f32 %v2383_v13, %v5018_v34  ;;  %v2385_v20 = vpop.f32.mrb[3].mxu0  ;;  %v4542_v4 = vld [vmem:[%s4721_s30 + $0x578] ss:$24 sps:$4 sm:$0xff]  }
 0x19e   : > { %v4543_v13 = vld [vmem:[%s4721_s30 + $0x580] ss:$24 sps:$4 sm:$0xff]  }
 0x19f   : > { %2306 = vmatmul.mubr.bf16.gmra.mrb[108].mxu1 %v4530_v2  ;;  %v2709_v21 = vadd.f32 %v5155_v10, %v2640_v17  ;;  %v2641_v23 = vmul.f32 %v4003_v18, %v5146_v62  ;;  %2595 = vmatmul.mubr.bf16.gmra.mrb[108].mxu0 %v4531_v7  ;;  %v4546_v18 = vld [vmem:[%s4721_s30 + $0x5b4] ss:$24 sps:$4 sm:$0xff]  }
 0x1a0   : > { %2313 = vmatprep.mubr.bf16.mxu1 %v4532_v9  ;;  %2602 = vmatprep.mubr.bf16.mxu0 %v4534_v14  ;;  %v4544_v14 = vld [vmem:[%s4721_s30 + $0x5ac] ss:$24 sps:$4 sm:$0xff]  }
 0x1a1   : > { %v2842_v25 = vmul.f32 %v5163_v31, %v2709_v21  ;;  %v2710_v34 = vadd.f32 %v5155_v10, %v2641_v23  ;;  %vm2773_vm0 = vcmp.ge.f32.partialorder %v2709_v21, 0.0 }
 0x1a2   : > { %v2388_v1 = vpop.f32.mrb[4].mxu0 }
 0x1a3   : > { %vm2774_vm1 = vcmp.ge.f32.partialorder %v2710_v34, 0.0  ;;  %v2843_v29 = vmul.f32 %v5163_v31, %v2710_v34  ;;  %v4004_v30 = vadd.f32 %v2388_v1, %v5023_v39  ;;  %v2390_v35 = vpop.f32.mrb[5].mxu0  ;;  %v2906_v45 = vsel %vm2773_vm0, %v2709_v21, %v2842_v25 }
 0x1a4   : > { %v2391_v41 = vpop.f32.mrb[6].mxu0  ;;  %v4548_v35 = vld [vmem:[%s4721_s30 + $0x5a8] ss:$24 sps:$4 sm:$0xff]  }
 0x1a5   : > { %v2907_v49 = vsel %vm2774_vm1, %v2710_v34, %v2843_v29  ;;  %v2642_v51 = vmul.f32 %v4004_v30, %v5146_v62  ;;  %v4005_v54 = vadd.f32 %v2391_v41, %v5026_v42  ;;  %v2393_v56 = vpop.f32.mrb[7].mxu0 }
 0x1a6   : > { %v3782_v39 = vpack.c.bf16 %v2907_v49, %v2906_v45  ;;  %v4550_v45 = vld [vmem:[%s4721_s30 + $0x5dc] ss:$24 sps:$4 sm:$0xff]  }
 0x1a7   : > { %2314 = vmatmul.mubr.bf16.gmra.mrb[112].mxu1 %v4536_v28  ;;  %v2711_v59 = vadd.f32 %v5155_v10, %v2642_v51  ;;  %v2643_v60 = vmul.f32 %v4005_v54, %v5146_v62  ;;  %2603 = vmatmul.mubr.bf16.gmra.mrb[112].mxu0 %v4537_v37  ;;  %v4552_v51 = vld [vmem:[%s4721_s30 + $0x5e4] ss:$24 sps:$4 sm:$0xff]  }
 0x1a8   : > { %2321 = vmatprep.mubr.bf16.mxu1 %v4538_v40  ;;  %3783 = vst [vmem:[%s5179_s10] sm:$0xff] %v3782_v39   ;;  %2610 = vmatprep.mubr.bf16.mxu0 %v4540_v44  ;;  %v4549_v44 = vld [vmem:[%s4721_s30 + $0x5b0] ss:$24 sps:$4 sm:$0xff]  }
 0x1a9   : > { %v2844_v61 = vmul.f32 %v5163_v31, %v2711_v59  ;;  %v2712_v2 = vadd.f32 %v5155_v10, %v2643_v60  ;;  %vm2775_vm2 = vcmp.ge.f32.partialorder %v2711_v59, 0.0 }
 0x1aa   : > { %v2396_v42 = vpop.f32.mrb[8].mxu0 }
 0x1ab   : > { %vm2776_vm3 = vcmp.ge.f32.partialorder %v2712_v2, 0.0  ;;  %v2845_v6 = vmul.f32 %v5163_v31, %v2712_v2  ;;  %v4006_v7 = vadd.f32 %v2396_v42, %v5031_v47  ;;  %v2398_v9 = vpop.f32.mrb[9].mxu0  ;;  %v2908_v20 = vsel %vm2775_vm2, %v2711_v59, %v2844_v61 }
 0x1ac   : > { %v2399_v17 = vpop.f32.mrb[10].mxu0 }
 0x1ad   : > { %v2909_v21 = vsel %vm2776_vm3, %v2712_v2, %v2845_v6  ;;  %v2644_v23 = vmul.f32 %v4006_v7, %v5146_v62  ;;  %v4007_v25 = vadd.f32 %v2399_v17, %v5034_v50  ;;  %v2401_v34 = vpop.f32.mrb[11].mxu0  ;;  %v4554_v7 = vld [vmem:[%s4721_s30 + $0x5d8] ss:$24 sps:$4 sm:$0xff]  }
 0x1ae   : > { %v3787_v1 = vpack.c.bf16 %v2909_v21, %v2908_v20 }
 0x1af   : > { %2322 = vmatmul.mubr.bf16.gmra.mrb[116].mxu1 %v4542_v4  ;;  %v2713_v28 = vadd.f32 %v5155_v10, %v2644_v23  ;;  %v2645_v47 = vmul.f32 %v4007_v25, %v5146_v62  ;;  %2611 = vmatmul.mubr.bf16.gmra.mrb[116].mxu0 %v4543_v13 }
 0x1b0   : > { %2329 = vmatprep.mubr.bf16.mxu1 %v4544_v14  ;;  %3939 = vst [vmem:[%s5179_s10 + $0x8] sm:$0xff] %v3787_v1   ;;  %2618 = vmatprep.mubr.bf16.mxu0 %v4546_v18  ;;  %v4555_v14 = vld [vmem:[%s4721_s30 + $0x5e0] ss:$24 sps:$4 sm:$0xff]  }
 0x1b1   : > { %v2846_v29 = vmul.f32 %v5163_v31, %v2713_v28  ;;  %v2714_v30 = vadd.f32 %v5155_v10, %v2645_v47  ;;  %vm2777_vm4 = vcmp.ge.f32.partialorder %v2713_v28, 0.0 }
 0x1b2   : > { %v2404_v50 = vpop.f32.mrb[12].mxu0 }
 0x1b3   : > { %vm2778_vm5 = vcmp.ge.f32.partialorder %v2714_v30, 0.0  ;;  %v2847_v37 = vmul.f32 %v5163_v31, %v2714_v30  ;;  %v4008_v40 = vadd.f32 %v2404_v50, %v5039_v55  ;;  %v2406_v41 = vpop.f32.mrb[13].mxu0  ;;  %v2910_v54 = vsel %vm2777_vm4, %v2713_v28, %v2846_v29 }
 0x1b4   : > { %v2407_v49 = vpop.f32.mrb[14].mxu0 }
 0x1b5   : > { %v2911_v56 = vsel %vm2778_vm5, %v2714_v30, %v2847_v37  ;;  %v2646_v39 = vmul.f32 %v4008_v40, %v5146_v62  ;;  %v4009_v59 = vadd.f32 %v2407_v49, %v5042_v58  ;;  %v2409_v60 = vpop.f32.mrb[15].mxu0 }
 0x1b6   : > { %v3792_v61 = vpack.c.bf16 %v2911_v56, %v2910_v54 }
 0x1b7   : > { %2330 = vmatmul.mubr.bf16.gmra.mrb[120].mxu1 %v4548_v35  ;;  %v2715_v2 = vadd.f32 %v5155_v10, %v2646_v39  ;;  %v2647_v55 = vmul.f32 %v4009_v59, %v5146_v62  ;;  %2619 = vmatmul.mubr.bf16.gmra.mrb[120].mxu0 %v4549_v44 }
 0x1b8   : > { %2337 = vmatprep.mubr.bf16.mxu1 %v4550_v45  ;;  %3940 = vst [vmem:[%s5179_s10 + $0x10] sm:$0xff] %v3792_v61   ;;  %2626 = vmatprep.mubr.bf16.mxu0 %v4552_v51 }
 0x1b9   : > { %v2848_v42 = vmul.f32 %v5163_v31, %v2715_v2  ;;  %v2716_v4 = vadd.f32 %v5155_v10, %v2647_v55  ;;  %vm2779_vm6 = vcmp.ge.f32.partialorder %v2715_v2, 0.0 }
 0x1ba   : > { %v2412_v6 = vpop.f32.mrb[16].mxu0 }
 0x1bb   : > { %vm2780_vm7 = vcmp.ge.f32.partialorder %v2716_v4, 0.0  ;;  %v2849_v58 = vmul.f32 %v5163_v31, %v2716_v4  ;;  %v4010_v9 = vadd.f32 %v2412_v6, %v5047_v63  ;;  %v2414_v13 = vpop.f32.mrb[17].mxu0  ;;  %v2912_v18 = vsel %vm2779_vm6, %v2715_v2, %v2848_v42 }
 0x1bc   : > { %v2415_v17 = vpop.f32.mrb[18].mxu0 }
 0x1bd   : > { %v2913_v20 = vsel %vm2780_vm7, %v2716_v4, %v2849_v58  ;;  %v2648_v21 = vmul.f32 %v4010_v9, %v5146_v62  ;;  %v4011_v23 = vadd.f32 %v2415_v17, %v5050_v3  ;;  %v2417_v25 = vpop.f32.mrb[19].mxu0 }
 0x1be   : > { %v3797_v34 = vpack.c.bf16 %v2913_v20, %v2912_v18 }
 0x1bf   : > { %2338 = vmatmul.mubr.bf16.gmra.mrb[124].mxu1 %v4554_v7  ;;  %v2717_v1 = vadd.f32 %v5155_v10, %v2648_v21  ;;  %v2649_v28 = vmul.f32 %v4011_v23, %v5146_v62  ;;  %2627 = vmatmul.mubr.bf16.gmra.mrb[124].mxu0 %v4555_v14 }
 0x1c0   : > { %3941 = vst [vmem:[%s5179_s10 + $0x18] sm:$0xff] %v3797_v34  }
 0x1c1   : > { %v2850_v63 = vmul.f32 %v5163_v31, %v2717_v1  ;;  %v2718_v47 = vadd.f32 %v5155_v10, %v2649_v28  ;;  %vm2781_vm8 = vcmp.ge.f32.partialorder %v2717_v1, 0.0 }
 0x1c2   : > { %v2420_v29 = vpop.f32.mrb[20].mxu0 }
 0x1c3   : > { %vm2782_vm9 = vcmp.ge.f32.partialorder %v2718_v47, 0.0  ;;  %v2851_v30 = vmul.f32 %v5163_v31, %v2718_v47  ;;  %v4012_v3 = vadd.f32 %v2420_v29, %v5055_v8  ;;  %v2422_v50 = vpop.f32.mrb[21].mxu0  ;;  %v2914_v37 = vsel %vm2781_vm8, %v2717_v1, %v2850_v63 }
 0x1c4   : > { %v2423_v35 = vpop.f32.mrb[22].mxu0 }
 0x1c5   : > { %v2915_v40 = vsel %vm2782_vm9, %v2718_v47, %v2851_v30  ;;  %v2650_v41 = vmul.f32 %v4012_v3, %v5146_v62  ;;  %v4013_v44 = vadd.f32 %v2423_v35, %v5058_v11  ;;  %v2425_v45 = vpop.f32.mrb[23].mxu0 }
 0x1c6   : > { %v3802_v49 = vpack.c.bf16 %v2915_v40, %v2914_v37 }
 0x1c7   : > { %v2719_v51 = vadd.f32 %v5155_v10, %v2650_v41  ;;  %v2651_v54 = vmul.f32 %v4013_v44, %v5146_v62 }
 0x1c8   : > { %3942 = vst [vmem:[%s5179_s10 + $0x20] sm:$0xff] %v3802_v49  }
 0x1c9   : > { %v2852_v56 = vmul.f32 %v5163_v31, %v2719_v51  ;;  %v2720_v39 = vadd.f32 %v5155_v10, %v2651_v54  ;;  %vm2783_vm10 = vcmp.ge.f32.partialorder %v2719_v51, 0.0 }
 0x1ca   : > { %v2428_v8 = vpop.f32.mrb[24].mxu0 }
 0x1cb   : > { %vm2784_vm11 = vcmp.ge.f32.partialorder %v2720_v39, 0.0  ;;  %v2853_v59 = vmul.f32 %v5163_v31, %v2720_v39  ;;  %v4014_v60 = vadd.f32 %v2428_v8, %v5063_v16  ;;  %v2430_v11 = vpop.f32.mrb[25].mxu0  ;;  %v2916_v2 = vsel %vm2783_vm10, %v2719_v51, %v2852_v56 }
 0x1cc   : > { %v2431_v61 = vpop.f32.mrb[26].mxu0 }
 0x1cd   : > { %v2917_v55 = vsel %vm2784_vm11, %v2720_v39, %v2853_v59  ;;  %v2652_v42 = vmul.f32 %v4014_v60, %v5146_v62  ;;  %v4015_v4 = vadd.f32 %v2431_v61, %v5066_v19  ;;  %v2433_v6 = vpop.f32.mrb[27].mxu0 }
 0x1ce   : > { %v3807_v7 = vpack.c.bf16 %v2917_v55, %v2916_v2 }
 0x1cf   : > { %v2721_v58 = vadd.f32 %v5155_v10, %v2652_v42  ;;  %v2653_v9 = vmul.f32 %v4015_v4, %v5146_v62 }
 0x1d0   : > { %3943 = vst [vmem:[%s5179_s10 + $0x28] sm:$0xff] %v3807_v7  }
 0x1d1   : > { %v2854_v13 = vmul.f32 %v5163_v31, %v2721_v58  ;;  %v2722_v14 = vadd.f32 %v5155_v10, %v2653_v9  ;;  %vm2785_vm12 = vcmp.ge.f32.partialorder %v2721_v58, 0.0 }
 0x1d2   : > { %v2436_v16 = vpop.f32.mrb[28].mxu0 }
 0x1d3   : > { %vm2786_vm13 = vcmp.ge.f32.partialorder %v2722_v14, 0.0  ;;  %v2855_v17 = vmul.f32 %v5163_v31, %v2722_v14  ;;  %v4016_v18 = vadd.f32 %v2436_v16, %v5071_v24  ;;  %v2438_v19 = vpop.f32.mrb[29].mxu0  ;;  %v2918_v21 = vsel %vm2785_vm12, %v2721_v58, %v2854_v13 }
 0x1d4   : > { %v2439_v20 = vpop.f32.mrb[30].mxu0 }
 0x1d5   : > { %v2919_v23 = vsel %vm2786_vm13, %v2722_v14, %v2855_v17  ;;  %v2654_v25 = vmul.f32 %v4016_v18, %v5146_v62  ;;  %v4017_v34 = vadd.f32 %v2439_v20, %v5074_v27  ;;  %v2441_v1 = vpop.f32.mrb[31].mxu0 }
 0x1d6   : > { %v3812_v28 = vpack.c.bf16 %v2919_v23, %v2918_v21 }
 0x1d7   : > { %v2723_v63 = vadd.f32 %v5155_v10, %v2654_v25  ;;  %v2655_v47 = vmul.f32 %v4017_v34, %v5146_v62 }
 0x1d8   : > { %3944 = vst [vmem:[%s5179_s10 + $0x30] sm:$0xff] %v3812_v28  }
 0x1d9   : > { %v2856_v29 = vmul.f32 %v5163_v31, %v2723_v63  ;;  %v2724_v30 = vadd.f32 %v5155_v10, %v2655_v47  ;;  %vm2787_vm14 = vcmp.ge.f32.partialorder %v2723_v63, 0.0 }
 0x1da   : > { %v2444_v24 = vpop.f32.mrb[32].mxu0 }
 0x1db   : > { %vm2788_vm15 = vcmp.ge.f32.partialorder %v2724_v30, 0.0  ;;  %v2857_v3 = vmul.f32 %v5163_v31, %v2724_v30  ;;  %v4018_v50 = vadd.f32 %v2444_v24, %v5079_v32  ;;  %v2446_v27 = vpop.f32.mrb[33].mxu0  ;;  %v2920_v37 = vsel %vm2787_vm14, %v2723_v63, %v2856_v29 }
 0x1dc   : > { %v2447_v35 = vpop.f32.mrb[34].mxu0 }
 0x1dd   : > { %v2921_v40 = vsel %vm2788_vm15, %v2724_v30, %v2857_v3  ;;  %v2656_v41 = vmul.f32 %v4018_v50, %v5146_v62  ;;  %v4019_v44 = vadd.f32 %v2447_v35, %v5082_v36  ;;  %v2449_v45 = vpop.f32.mrb[35].mxu0 }
 0x1de   : > { %v3817_v49 = vpack.c.bf16 %v2921_v40, %v2920_v37 }
 0x1df   : > { %v2725_v51 = vadd.f32 %v5155_v10, %v2656_v41  ;;  %v2657_v54 = vmul.f32 %v4019_v44, %v5146_v62 }
 0x1e0   : > { %3945 = vst [vmem:[%s5179_s10 + $0x38] sm:$0xff] %v3817_v49  }
 0x1e1   : > { %v2858_v56 = vmul.f32 %v5163_v31, %v2725_v51  ;;  %v2726_v39 = vadd.f32 %v5155_v10, %v2657_v54  ;;  %vm2789_vm0 = vcmp.ge.f32.partialorder %v2725_v51, 0.0 }
 0x1e2   : > { %v2452_v32 = vpop.f32.mrb[36].mxu0 }
 0x1e3   : > { %vm2790_vm1 = vcmp.ge.f32.partialorder %v2726_v39, 0.0  ;;  %v2859_v8 = vmul.f32 %v5163_v31, %v2726_v39  ;;  %v4020_v59 = vadd.f32 %v2452_v32, %v5087_v43  ;;  %v2454_v36 = vpop.f32.mrb[37].mxu0  ;;  %v2922_v11 = vsel %vm2789_vm0, %v2725_v51, %v2858_v56 }
 0x1e4   : > { %v2455_v60 = vpop.f32.mrb[38].mxu0 }
 0x1e5   : > { %v2923_v61 = vsel %vm2790_vm1, %v2726_v39, %v2859_v8  ;;  %v2658_v2 = vmul.f32 %v4020_v59, %v5146_v62  ;;  %v4021_v55 = vadd.f32 %v2455_v60, %v5090_v46  ;;  %v2457_v42 = vpop.f32.mrb[39].mxu0 }
 0x1e6   : > { %v3822_v4 = vpack.c.bf16 %v2923_v61, %v2922_v11 }
 0x1e7   : > { %v2727_v6 = vadd.f32 %v5155_v10, %v2658_v2  ;;  %v2659_v7 = vmul.f32 %v4021_v55, %v5146_v62 }
 0x1e8   : > { %3946 = vst [vmem:[%s5179_s10 + $0x40] sm:$0xff] %v3822_v4  }
 0x1e9   : > { %v2860_v58 = vmul.f32 %v5163_v31, %v2727_v6  ;;  %v2728_v9 = vadd.f32 %v5155_v10, %v2659_v7  ;;  %vm2791_vm2 = vcmp.ge.f32.partialorder %v2727_v6, 0.0 }
 0x1ea   : > { %v2460_v43 = vpop.f32.mrb[40].mxu0 }
 0x1eb   : > { %vm2792_vm3 = vcmp.ge.f32.partialorder %v2728_v9, 0.0  ;;  %v2861_v13 = vmul.f32 %v5163_v31, %v2728_v9  ;;  %v4022_v14 = vadd.f32 %v2460_v43, %v5095_v53  ;;  %v2462_v46 = vpop.f32.mrb[41].mxu0  ;;  %v2924_v17 = vsel %vm2791_vm2, %v2727_v6, %v2860_v58 }
 0x1ec   : > { %v2463_v16 = vpop.f32.mrb[42].mxu0 }
 0x1ed   : > { %v2925_v18 = vsel %vm2792_vm3, %v2728_v9, %v2861_v13  ;;  %v2660_v19 = vmul.f32 %v4022_v14, %v5146_v62  ;;  %v4023_v20 = vadd.f32 %v2463_v16, %v5098_v57  ;;  %v2465_v21 = vpop.f32.mrb[43].mxu0 }
 0x1ee   : > { %v3827_v23 = vpack.c.bf16 %v2925_v18, %v2924_v17 }
 0x1ef   : > { %v2729_v25 = vadd.f32 %v5155_v10, %v2660_v19  ;;  %v2661_v34 = vmul.f32 %v4023_v20, %v5146_v62 }
 0x1f0   : > { %3947 = vst [vmem:[%s5179_s10 + $0x48] sm:$0xff] %v3827_v23  }
 0x1f1   : > { %v2862_v1 = vmul.f32 %v5163_v31, %v2729_v25  ;;  %v2730_v28 = vadd.f32 %v5155_v10, %v2661_v34  ;;  %vm2793_vm4 = vcmp.ge.f32.partialorder %v2729_v25, 0.0 }
 0x1f2   : > { %v2468_v53 = vpop.f32.mrb[44].mxu0 }
 0x1f3   : > { %vm2794_vm5 = vcmp.ge.f32.partialorder %v2730_v28, 0.0  ;;  %v2863_v63 = vmul.f32 %v5163_v31, %v2730_v28  ;;  %v4024_v47 = vadd.f32 %v2468_v53, %v5103_v0  ;;  %v2470_v57 = vpop.f32.mrb[45].mxu0  ;;  %v2926_v30 = vsel %vm2793_vm4, %v2729_v25, %v2862_v1 }
 0x1f4   : > { %v2471_v29 = vpop.f32.mrb[46].mxu0 }
 0x1f5   : > { %v2927_v24 = vsel %vm2794_vm5, %v2730_v28, %v2863_v63  ;;  %v2662_v3 = vmul.f32 %v4024_v47, %v5146_v62  ;;  %v4025_v50 = vadd.f32 %v2471_v29, %v5106_v5  ;;  %v2473_v27 = vpop.f32.mrb[47].mxu0 }
 0x1f6   : > { %v3832_v35 = vpack.c.bf16 %v2927_v24, %v2926_v30 }
 0x1f7   : > { %v2731_v37 = vadd.f32 %v5155_v10, %v2662_v3  ;;  %v2663_v40 = vmul.f32 %v4025_v50, %v5146_v62 }
 0x1f8   : > { %3948 = vst [vmem:[%s5179_s10 + $0x50] sm:$0xff] %v3832_v35  }
 0x1f9   : > { %v2864_v41 = vmul.f32 %v5163_v31, %v2731_v37  ;;  %v2732_v44 = vadd.f32 %v5155_v10, %v2663_v40  ;;  %vm2795_vm6 = vcmp.ge.f32.partialorder %v2731_v37, 0.0 }
 0x1fa   : > { %v2476_v0 = vpop.f32.mrb[48].mxu0 }
 0x1fb   : > { %vm2796_vm7 = vcmp.ge.f32.partialorder %v2732_v44, 0.0  ;;  %v2865_v45 = vmul.f32 %v5163_v31, %v2732_v44  ;;  %v4026_v49 = vadd.f32 %v2476_v0, %v5111_v12  ;;  %v2478_v5 = vpop.f32.mrb[49].mxu0  ;;  %v2928_v54 = vsel %vm2795_vm6, %v2731_v37, %v2864_v41 }
 0x1fc   : > { %v2479_v51 = vpop.f32.mrb[50].mxu0 }
 0x1fd   : > { %v2929_v56 = vsel %vm2796_vm7, %v2732_v44, %v2865_v45  ;;  %v2664_v39 = vmul.f32 %v4026_v49, %v5146_v62  ;;  %v4027_v32 = vadd.f32 %v2479_v51, %v5114_v15  ;;  %v2481_v8 = vpop.f32.mrb[51].mxu0 }
 0x1fe   : > { %v3837_v59 = vpack.c.bf16 %v2929_v56, %v2928_v54 }
 0x1ff   : > { %v2733_v36 = vadd.f32 %v5155_v10, %v2664_v39  ;;  %v2665_v60 = vmul.f32 %v4027_v32, %v5146_v62 }
 0x200   : > { %3949 = vst [vmem:[%s5179_s10 + $0x58] sm:$0xff] %v3837_v59  }
 0x201   : > { %v2866_v11 = vmul.f32 %v5163_v31, %v2733_v36  ;;  %v2734_v61 = vadd.f32 %v5155_v10, %v2665_v60  ;;  %vm2797_vm8 = vcmp.ge.f32.partialorder %v2733_v36, 0.0 }
 0x202   : > { %v2484_v12 = vpop.f32.mrb[52].mxu0 }
 0x203   : > { %vm2798_vm9 = vcmp.ge.f32.partialorder %v2734_v61, 0.0  ;;  %v2867_v2 = vmul.f32 %v5163_v31, %v2734_v61  ;;  %v4028_v55 = vadd.f32 %v2484_v12, %v5119_v22  ;;  %v2486_v15 = vpop.f32.mrb[53].mxu0  ;;  %v2930_v4 = vsel %vm2797_vm8, %v2733_v36, %v2866_v11 }
 0x204   : > { %v2487_v42 = vpop.f32.mrb[54].mxu0 }
 0x205   : > { %v2931_v6 = vsel %vm2798_vm9, %v2734_v61, %v2867_v2  ;;  %v2666_v7 = vmul.f32 %v4028_v55, %v5146_v62  ;;  %v4029_v58 = vadd.f32 %v2487_v42, %v5122_v26  ;;  %v2489_v9 = vpop.f32.mrb[55].mxu0 }
 0x206   : > { %v3842_v43 = vpack.c.bf16 %v2931_v6, %v2930_v4 }
 0x207   : > { %v2735_v13 = vadd.f32 %v5155_v10, %v2666_v7  ;;  %v2667_v14 = vmul.f32 %v4029_v58, %v5146_v62 }
 0x208   : > { %3950 = vst [vmem:[%s5179_s10 + $0x60] sm:$0xff] %v3842_v43  }
 0x209   : > { %v2868_v46 = vmul.f32 %v5163_v31, %v2735_v13  ;;  %v2736_v16 = vadd.f32 %v5155_v10, %v2667_v14  ;;  %vm2799_vm10 = vcmp.ge.f32.partialorder %v2735_v13, 0.0 }
 0x20a   : > { %v2492_v22 = vpop.f32.mrb[56].mxu0 }
 0x20b   : > { %vm2800_vm11 = vcmp.ge.f32.partialorder %v2736_v16, 0.0  ;;  %v2869_v17 = vmul.f32 %v5163_v31, %v2736_v16  ;;  %v4030_v18 = vadd.f32 %v2492_v22, %v5127_v33  ;;  %v2494_v26 = vpop.f32.mrb[57].mxu0  ;;  %v2932_v20 = vsel %vm2799_vm10, %v2735_v13, %v2868_v46 }
 0x20c   : > { %v2495_v19 = vpop.f32.mrb[58].mxu0 }
 0x20d   : > { %v2933_v21 = vsel %vm2800_vm11, %v2736_v16, %v2869_v17  ;;  %v2668_v23 = vmul.f32 %v4030_v18, %v5146_v62  ;;  %v4031_v25 = vadd.f32 %v2495_v19, %v5130_v38  ;;  %v2497_v34 = vpop.f32.mrb[59].mxu0 }
 0x20e   : > { %v3847_v1 = vpack.c.bf16 %v2933_v21, %v2932_v20 }
 0x20f   : > { %v2737_v28 = vadd.f32 %v5155_v10, %v2668_v23  ;;  %v2669_v53 = vmul.f32 %v4031_v25, %v5146_v62 }
 0x210   : > { %3951 = vst [vmem:[%s5179_s10 + $0x68] sm:$0xff] %v3847_v1  }
 0x211   : > { %v2870_v63 = vmul.f32 %v5163_v31, %v2737_v28  ;;  %v2738_v47 = vadd.f32 %v5155_v10, %v2669_v53  ;;  %vm2801_vm12 = vcmp.ge.f32.partialorder %v2737_v28, 0.0 }
 0x212   : > { %v2500_v33 = vpop.f32.mrb[60].mxu0 }
 0x213   : > { %vm2802_vm13 = vcmp.ge.f32.partialorder %v2738_v47, 0.0  ;;  %v2871_v57 = vmul.f32 %v5163_v31, %v2738_v47  ;;  %v4032_v29 = vadd.f32 %v2500_v33, %v5135_v48  ;;  %v2502_v38 = vpop.f32.mrb[61].mxu0  ;;  %v2934_v24 = vsel %vm2801_vm12, %v2737_v28, %v2870_v63 }
 0x214   : > { %v2503_v30 = vpop.f32.mrb[62].mxu0 }
 0x215   : > { %v2935_v3 = vsel %vm2802_vm13, %v2738_v47, %v2871_v57  ;;  %v2670_v50 = vmul.f32 %v4032_v29, %v5146_v62  ;;  %v4033_v27 = vadd.f32 %v2503_v30, %v5138_v52  ;;  %v2505_v35 = vpop.f32.mrb[63].mxu0 }
 0x216   : > { %v3852_v37 = vpack.c.bf16 %v2935_v3, %v2934_v24 }
 0x217   : > { %v2739_v40 = vadd.f32 %v5155_v10, %v2670_v50  ;;  %v2671_v41 = vmul.f32 %v4033_v27, %v5146_v62 }
 0x218   : > { %3952 = vst [vmem:[%s5179_s10 + $0x70] sm:$0xff] %v3852_v37  }
 0x219   : > { %v2872_v44 = vmul.f32 %v5163_v31, %v2739_v40  ;;  %v2740_v0 = vadd.f32 %v5155_v10, %v2671_v41  ;;  %vm2803_vm14 = vcmp.ge.f32.partialorder %v2739_v40, 0.0 }
 0x21a   : > { %v2219_v48 = vpop.f32.mrb[64].mxu1  ;;  %v2508_v45 = vpop.f32.mrb[64].mxu0 }
 0x21b   : > { %v2221_v49 = vpop.f32.mrb[65].mxu1  ;;  %vm2804_vm15 = vcmp.ge.f32.partialorder %v2740_v0, 0.0  ;;  %v2873_v5 = vmul.f32 %v5163_v31, %v2740_v0  ;;  %v4034_v52 = vadd.f32 %v2508_v45, %v2219_v48  ;;  %v2510_v51 = vpop.f32.mrb[65].mxu0  ;;  %v2936_v32 = vsel %vm2803_vm14, %v2739_v40, %v2872_v44 }
 0x21c   : > { %v2222_v54 = vpop.f32.mrb[66].mxu1  ;;  %v2511_v56 = vpop.f32.mrb[66].mxu0 }
 0x21d   : > { %v2224_v39 = vpop.f32.mrb[67].mxu1  ;;  %v2937_v8 = vsel %vm2804_vm15, %v2740_v0, %v2873_v5  ;;  %v2672_v59 = vmul.f32 %v4034_v52, %v5146_v62  ;;  %v4035_v36 = vadd.f32 %v2511_v56, %v2222_v54  ;;  %v2513_v60 = vpop.f32.mrb[67].mxu0 }
 0x21e   : > { %v3857_v11 = vpack.c.bf16 %v2937_v8, %v2936_v32 }
 0x21f   : > { %v2741_v61 = vadd.f32 %v5155_v10, %v2672_v59  ;;  %v2673_v12 = vmul.f32 %v4035_v36, %v5146_v62 }
 0x220   : > { %3953 = vst [vmem:[%s5179_s10 + $0x78] sm:$0xff] %v3857_v11  }
 0x221   : > { %v2874_v2 = vmul.f32 %v5163_v31, %v2741_v61  ;;  %v2742_v55 = vadd.f32 %v5155_v10, %v2673_v12  ;;  %vm2805_vm0 = vcmp.ge.f32.partialorder %v2741_v61, 0.0 }
 0x222   : > { %v2227_v15 = vpop.f32.mrb[68].mxu1  ;;  %v2516_v42 = vpop.f32.mrb[68].mxu0 }
 0x223   : > { %v2229_v4 = vpop.f32.mrb[69].mxu1  ;;  %vm2806_vm1 = vcmp.ge.f32.partialorder %v2742_v55, 0.0  ;;  %v2875_v6 = vmul.f32 %v5163_v31, %v2742_v55  ;;  %v4036_v7 = vadd.f32 %v2516_v42, %v2227_v15  ;;  %v2518_v58 = vpop.f32.mrb[69].mxu0  ;;  %v2938_v14 = vsel %vm2805_vm0, %v2741_v61, %v2874_v2 }
 0x224   : > { %v2230_v9 = vpop.f32.mrb[70].mxu1  ;;  %v2519_v43 = vpop.f32.mrb[70].mxu0 }
 0x225   : > { %v2232_v13 = vpop.f32.mrb[71].mxu1  ;;  %v2939_v46 = vsel %vm2806_vm1, %v2742_v55, %v2875_v6  ;;  %v2674_v16 = vmul.f32 %v4036_v7, %v5146_v62  ;;  %v4037_v22 = vadd.f32 %v2519_v43, %v2230_v9  ;;  %v2521_v17 = vpop.f32.mrb[71].mxu0 }
 0x226   : > { %v3862_v18 = vpack.c.bf16 %v2939_v46, %v2938_v14 }
 0x227   : > { %v2743_v26 = vadd.f32 %v5155_v10, %v2674_v16  ;;  %v2675_v19 = vmul.f32 %v4037_v22, %v5146_v62 }
 0x228   : > { %3954 = vst [vmem:[%s5179_s10 + $0x80] sm:$0xff] %v3862_v18  }
 0x229   : > { %v2876_v20 = vmul.f32 %v5163_v31, %v2743_v26  ;;  %v2744_v21 = vadd.f32 %v5155_v10, %v2675_v19  ;;  %vm2807_vm2 = vcmp.ge.f32.partialorder %v2743_v26, 0.0 }
 0x22a   : > { %v2235_v23 = vpop.f32.mrb[72].mxu1  ;;  %v2524_v25 = vpop.f32.mrb[72].mxu0 }
 0x22b   : > { %v2237_v34 = vpop.f32.mrb[73].mxu1  ;;  %vm2808_vm3 = vcmp.ge.f32.partialorder %v2744_v21, 0.0  ;;  %v2877_v1 = vmul.f32 %v5163_v31, %v2744_v21  ;;  %v4038_v28 = vadd.f32 %v2524_v25, %v2235_v23  ;;  %v2526_v53 = vpop.f32.mrb[73].mxu0  ;;  %v2940_v57 = vsel %vm2807_vm2, %v2743_v26, %v2876_v20 }
 0x22c   : > { %v2238_v63 = vpop.f32.mrb[74].mxu1  ;;  %v2527_v47 = vpop.f32.mrb[74].mxu0 }
 0x22d   : > { %v2240_v33 = vpop.f32.mrb[75].mxu1  ;;  %v2941_v29 = vsel %vm2808_vm3, %v2744_v21, %v2877_v1  ;;  %v2676_v38 = vmul.f32 %v4038_v28, %v5146_v62  ;;  %v4039_v30 = vadd.f32 %v2527_v47, %v2238_v63  ;;  %v2529_v24 = vpop.f32.mrb[75].mxu0 }
 0x22e   : > { %v3867_v3 = vpack.c.bf16 %v2941_v29, %v2940_v57 }
 0x22f   : > { %v2745_v50 = vadd.f32 %v5155_v10, %v2676_v38  ;;  %v2677_v27 = vmul.f32 %v4039_v30, %v5146_v62 }
 0x230   : > { %3955 = vst [vmem:[%s5179_s10 + $0x88] sm:$0xff] %v3867_v3  }
 0x231   : > { %v2878_v35 = vmul.f32 %v5163_v31, %v2745_v50  ;;  %v2746_v37 = vadd.f32 %v5155_v10, %v2677_v27  ;;  %vm2809_vm4 = vcmp.ge.f32.partialorder %v2745_v50, 0.0 }
 0x232   : > { %v2243_v40 = vpop.f32.mrb[76].mxu1  ;;  %v2532_v41 = vpop.f32.mrb[76].mxu0 }
 0x233   : > { %v2245_v44 = vpop.f32.mrb[77].mxu1  ;;  %vm2810_vm5 = vcmp.ge.f32.partialorder %v2746_v37, 0.0  ;;  %v2879_v0 = vmul.f32 %v5163_v31, %v2746_v37  ;;  %v4040_v48 = vadd.f32 %v2532_v41, %v2243_v40  ;;  %v2534_v45 = vpop.f32.mrb[77].mxu0  ;;  %v2942_v51 = vsel %vm2809_vm4, %v2745_v50, %v2878_v35 }
 0x234   : > { %v2246_v49 = vpop.f32.mrb[78].mxu1  ;;  %v2535_v5 = vpop.f32.mrb[78].mxu0 }
 0x235   : > { %v2248_v52 = vpop.f32.mrb[79].mxu1  ;;  %v2943_v54 = vsel %vm2810_vm5, %v2746_v37, %v2879_v0  ;;  %v2678_v56 = vmul.f32 %v4040_v48, %v5146_v62  ;;  %v4041_v39 = vadd.f32 %v2535_v5, %v2246_v49  ;;  %v2537_v32 = vpop.f32.mrb[79].mxu0 }
 0x236   : > { %v3872_v8 = vpack.c.bf16 %v2943_v54, %v2942_v51 }
 0x237   : > { %v2747_v59 = vadd.f32 %v5155_v10, %v2678_v56  ;;  %v2679_v36 = vmul.f32 %v4041_v39, %v5146_v62 }
 0x238   : > { %3956 = vst [vmem:[%s5179_s10 + $0x90] sm:$0xff] %v3872_v8  }
 0x239   : > { %v2880_v60 = vmul.f32 %v5163_v31, %v2747_v59  ;;  %v2748_v11 = vadd.f32 %v5155_v10, %v2679_v36  ;;  %vm2811_vm6 = vcmp.ge.f32.partialorder %v2747_v59, 0.0 }
 0x23a   : > { %v2251_v61 = vpop.f32.mrb[80].mxu1  ;;  %v2540_v12 = vpop.f32.mrb[80].mxu0 }
 0x23b   : > { %v2253_v2 = vpop.f32.mrb[81].mxu1  ;;  %vm2812_vm7 = vcmp.ge.f32.partialorder %v2748_v11, 0.0  ;;  %v2881_v55 = vmul.f32 %v5163_v31, %v2748_v11  ;;  %v4042_v15 = vadd.f32 %v2540_v12, %v2251_v61  ;;  %v2542_v42 = vpop.f32.mrb[81].mxu0  ;;  %v2944_v58 = vsel %vm2811_vm6, %v2747_v59, %v2880_v60 }
 0x23c   : > { %v2254_v4 = vpop.f32.mrb[82].mxu1  ;;  %v2543_v6 = vpop.f32.mrb[82].mxu0 }
 0x23d   : > { %v2256_v7 = vpop.f32.mrb[83].mxu1  ;;  %v2945_v9 = vsel %vm2812_vm7, %v2748_v11, %v2881_v55  ;;  %v2680_v43 = vmul.f32 %v4042_v15, %v5146_v62  ;;  %v4043_v13 = vadd.f32 %v2543_v6, %v2254_v4  ;;  %v2545_v14 = vpop.f32.mrb[83].mxu0 }
 0x23e   : > { %v3877_v46 = vpack.c.bf16 %v2945_v9, %v2944_v58 }
 0x23f   : > { %v2749_v16 = vadd.f32 %v5155_v10, %v2680_v43  ;;  %v2681_v22 = vmul.f32 %v4043_v13, %v5146_v62 }
 0x240   : > { %3957 = vst [vmem:[%s5179_s10 + $0x98] sm:$0xff] %v3877_v46  }
 0x241   : > { %v2882_v17 = vmul.f32 %v5163_v31, %v2749_v16  ;;  %v2750_v18 = vadd.f32 %v5155_v10, %v2681_v22  ;;  %vm2813_vm8 = vcmp.ge.f32.partialorder %v2749_v16, 0.0 }
 0x242   : > { %v2259_v26 = vpop.f32.mrb[84].mxu1  ;;  %v2548_v19 = vpop.f32.mrb[84].mxu0 }
 0x243   : > { %v2261_v20 = vpop.f32.mrb[85].mxu1  ;;  %vm2814_vm9 = vcmp.ge.f32.partialorder %v2750_v18, 0.0  ;;  %v2883_v21 = vmul.f32 %v5163_v31, %v2750_v18  ;;  %v4044_v23 = vadd.f32 %v2548_v19, %v2259_v26  ;;  %v2550_v25 = vpop.f32.mrb[85].mxu0  ;;  %v2946_v53 = vsel %vm2813_vm8, %v2749_v16, %v2882_v17 }
 0x244   : > { %v2262_v34 = vpop.f32.mrb[86].mxu1  ;;  %v2551_v1 = vpop.f32.mrb[86].mxu0 }
 0x245   : > { %v2264_v28 = vpop.f32.mrb[87].mxu1  ;;  %v2947_v63 = vsel %vm2814_vm9, %v2750_v18, %v2883_v21  ;;  %v2682_v47 = vmul.f32 %v4044_v23, %v5146_v62  ;;  %v4045_v33 = vadd.f32 %v2551_v1, %v2262_v34  ;;  %v2553_v57 = vpop.f32.mrb[87].mxu0 }
 0x246   : > { %v3882_v29 = vpack.c.bf16 %v2947_v63, %v2946_v53 }
 0x247   : > { %v2751_v38 = vadd.f32 %v5155_v10, %v2682_v47  ;;  %v2683_v30 = vmul.f32 %v4045_v33, %v5146_v62  ;;  %v5386_v33 = vld [vmem:[%s5464_s2] ss:$0 sm:$0xff] }
 0x248   : > { %3958 = vst [vmem:[%s5179_s10 + $0xa0] sm:$0xff] %v3882_v29  }
 0x249   : > { %v2884_v24 = vmul.f32 %v5163_v31, %v2751_v38  ;;  %v2752_v3 = vadd.f32 %v5155_v10, %v2683_v30  ;;  %vm2815_vm10 = vcmp.ge.f32.partialorder %v2751_v38, 0.0 }
 0x24a   : > { %v2267_v50 = vpop.f32.mrb[88].mxu1  ;;  %v2556_v27 = vpop.f32.mrb[88].mxu0 }
 0x24b   : > { %v2269_v35 = vpop.f32.mrb[89].mxu1  ;;  %vm2816_vm11 = vcmp.ge.f32.partialorder %v2752_v3, 0.0  ;;  %v2885_v37 = vmul.f32 %v5163_v31, %v2752_v3  ;;  %v4046_v40 = vadd.f32 %v2556_v27, %v2267_v50  ;;  %v2558_v41 = vpop.f32.mrb[89].mxu0  ;;  %v2948_v45 = vsel %vm2815_vm10, %v2751_v38, %v2884_v24  ;;  %v5394_v38 = vld [vmem:[%s5464_s2 + $0x1] ss:$0 sm:$0xff] }
 0x24c   : > { %v2270_v44 = vpop.f32.mrb[90].mxu1  ;;  %v2559_v0 = vpop.f32.mrb[90].mxu0 }
 0x24d   : > { %v2272_v48 = vpop.f32.mrb[91].mxu1  ;;  %v2949_v49 = vsel %vm2816_vm11, %v2752_v3, %v2885_v37  ;;  %v2684_v5 = vmul.f32 %v4046_v40, %v5146_v62  ;;  %v4047_v52 = vadd.f32 %v2559_v0, %v2270_v44  ;;  %v2561_v51 = vpop.f32.mrb[91].mxu0  ;;  %v5400_v3 = vld [vmem:[%s5464_s2 + $0x2] ss:$0 sm:$0xff] }
 0x24e   : > { %v3887_v54 = vpack.c.bf16 %v2949_v49, %v2948_v45 }
 0x24f   : > { %v2753_v56 = vadd.f32 %v5155_v10, %v2684_v5  ;;  %v2685_v39 = vmul.f32 %v4047_v52, %v5146_v62 }
 0x250   : > { %3959 = vst [vmem:[%s5179_s10 + $0xa8] sm:$0xff] %v3887_v54  }
 0x251   : > { %v2886_v32 = vmul.f32 %v5163_v31, %v2753_v56  ;;  %v2754_v8 = vadd.f32 %v5155_v10, %v2685_v39  ;;  %vm2817_vm12 = vcmp.ge.f32.partialorder %v2753_v56, 0.0 }
 0x252   : > { %v2275_v59 = vpop.f32.mrb[92].mxu1  ;;  %v2564_v36 = vpop.f32.mrb[92].mxu0 }
 0x253   : > { %v2277_v60 = vpop.f32.mrb[93].mxu1  ;;  %vm2818_vm13 = vcmp.ge.f32.partialorder %v2754_v8, 0.0  ;;  %v2887_v11 = vmul.f32 %v5163_v31, %v2754_v8  ;;  %v4048_v61 = vadd.f32 %v2564_v36, %v2275_v59  ;;  %v2566_v12 = vpop.f32.mrb[93].mxu0  ;;  %v2950_v42 = vsel %vm2817_vm12, %v2753_v56, %v2886_v32 }
 0x254   : > { %v2278_v2 = vpop.f32.mrb[94].mxu1  ;;  %v2567_v55 = vpop.f32.mrb[94].mxu0 }
 0x255   : > { %v2280_v15 = vpop.f32.mrb[95].mxu1  ;;  %v2951_v4 = vsel %vm2818_vm13, %v2754_v8, %v2887_v11  ;;  %v2686_v6 = vmul.f32 %v4048_v61, %v5146_v62  ;;  %v4049_v7 = vadd.f32 %v2567_v55, %v2278_v2  ;;  %v2569_v58 = vpop.f32.mrb[95].mxu0 }
 0x256   : > { %v3892_v9 = vpack.c.bf16 %v2951_v4, %v2950_v42 }
 0x257   : > { %v2755_v43 = vadd.f32 %v5155_v10, %v2686_v6  ;;  %v2687_v13 = vmul.f32 %v4049_v7, %v5146_v62 }
 0x258   : > { %3960 = vst [vmem:[%s5179_s10 + $0xb0] sm:$0xff] %v3892_v9  }
 0x259   : > { %v2888_v14 = vmul.f32 %v5163_v31, %v2755_v43  ;;  %v2756_v46 = vadd.f32 %v5155_v10, %v2687_v13  ;;  %vm2819_vm14 = vcmp.ge.f32.partialorder %v2755_v43, 0.0 }
 0x25a   : > { %v2283_v16 = vpop.f32.mrb[96].mxu1  ;;  %v2572_v22 = vpop.f32.mrb[96].mxu0 }
 0x25b   : > { %v2285_v17 = vpop.f32.mrb[97].mxu1  ;;  %vm2820_vm15 = vcmp.ge.f32.partialorder %v2756_v46, 0.0  ;;  %v2889_v18 = vmul.f32 %v5163_v31, %v2756_v46  ;;  %v4050_v26 = vadd.f32 %v2572_v22, %v2283_v16  ;;  %v2574_v19 = vpop.f32.mrb[97].mxu0  ;;  %v2952_v25 = vsel %vm2819_vm14, %v2755_v43, %v2888_v14 }
 0x25c   : > { %v2286_v20 = vpop.f32.mrb[98].mxu1  ;;  %v2575_v21 = vpop.f32.mrb[98].mxu0 }
 0x25d   : > { %v2288_v23 = vpop.f32.mrb[99].mxu1  ;;  %v2953_v34 = vsel %vm2820_vm15, %v2756_v46, %v2889_v18  ;;  %v2688_v1 = vmul.f32 %v4050_v26, %v5146_v62  ;;  %v4051_v28 = vadd.f32 %v2575_v21, %v2286_v20  ;;  %v2577_v53 = vpop.f32.mrb[99].mxu0 }
 0x25e   : > { %v3897_v63 = vpack.c.bf16 %v2953_v34, %v2952_v25 }
 0x25f   : > { %v2757_v47 = vadd.f32 %v5155_v10, %v2688_v1  ;;  %v2689_v57 = vmul.f32 %v5386_v33, %v4051_v28 }
 0x260   : > { %3961 = vst [vmem:[%s5179_s10 + $0xb8] sm:$0xff] %v3897_v63  }
 0x261   : > { %v2890_v29 = vmul.f32 %v5163_v31, %v2757_v47  ;;  %v2758_v62 = vadd.f32 %v5394_v38, %v2689_v57  ;;  %vm2821_vm0 = vcmp.ge.f32.partialorder %v2757_v47, 0.0 }
 0x262   : > { %v2291_v30 = vpop.f32.mrb[100].mxu1  ;;  %v2580_v10 = vpop.f32.mrb[100].mxu0 }
 0x263   : > { %v2293_v24 = vpop.f32.mrb[101].mxu1  ;;  %vm2822_vm1 = vcmp.ge.f32.partialorder %v2758_v62, 0.0  ;;  %v2891_v31 = vmul.f32 %v5400_v3, %v2758_v62  ;;  %v4052_v50 = vadd.f32 %v2580_v10, %v2291_v30  ;;  %v2582_v27 = vpop.f32.mrb[101].mxu0  ;;  %v2954_v41 = vsel %vm2821_vm0, %v2757_v47, %v2890_v29 }
 0x264   : > { %v2294_v35 = vpop.f32.mrb[102].mxu1  ;;  %v2583_v37 = vpop.f32.mrb[102].mxu0 }
 0x265   : > { %v2296_v40 = vpop.f32.mrb[103].mxu1  ;;  %v2955_v44 = vsel %vm2822_vm1, %v2758_v62, %v2891_v31  ;;  %v2690_v0 = vmul.f32 %v5386_v33, %v4052_v50  ;;  %v4053_v48 = vadd.f32 %v2583_v37, %v2294_v35  ;;  %v2585_v45 = vpop.f32.mrb[103].mxu0 }
 0x266   : > { %v3902_v49 = vpack.c.bf16 %v2955_v44, %v2954_v41 }
 0x267   : > { %v2759_v5 = vadd.f32 %v5394_v38, %v2690_v0  ;;  %v2691_v52 = vmul.f32 %v5386_v33, %v4053_v48 }
 0x268   : > { %3962 = vst [vmem:[%s5179_s10 + $0xc0] sm:$0xff] %v3902_v49  }
 0x269   : > { %v2892_v51 = vmul.f32 %v5400_v3, %v2759_v5  ;;  %v2760_v54 = vadd.f32 %v5394_v38, %v2691_v52  ;;  %vm2823_vm2 = vcmp.ge.f32.partialorder %v2759_v5, 0.0 }
 0x26a   : > { %v2299_v56 = vpop.f32.mrb[104].mxu1  ;;  %v2588_v39 = vpop.f32.mrb[104].mxu0 }
 0x26b   : > { %v2301_v32 = vpop.f32.mrb[105].mxu1  ;;  %vm2824_vm3 = vcmp.ge.f32.partialorder %v2760_v54, 0.0  ;;  %v2893_v8 = vmul.f32 %v5400_v3, %v2760_v54  ;;  %v4054_v59 = vadd.f32 %v2588_v39, %v2299_v56  ;;  %v2590_v36 = vpop.f32.mrb[105].mxu0  ;;  %v2956_v12 = vsel %vm2823_vm2, %v2759_v5, %v2892_v51 }
 0x26c   : > { %v2302_v60 = vpop.f32.mrb[106].mxu1  ;;  %v2591_v11 = vpop.f32.mrb[106].mxu0 }
 0x26d   : > { %v2304_v61 = vpop.f32.mrb[107].mxu1  ;;  %v2957_v2 = vsel %vm2824_vm3, %v2760_v54, %v2893_v8  ;;  %v2692_v55 = vmul.f32 %v5386_v33, %v4054_v59  ;;  %v4055_v15 = vadd.f32 %v2591_v11, %v2302_v60  ;;  %v2593_v42 = vpop.f32.mrb[107].mxu0 }
 0x26e   : > { %v3907_v4 = vpack.c.bf16 %v2957_v2, %v2956_v12 }
 0x26f   : > { %v2761_v6 = vadd.f32 %v5394_v38, %v2692_v55  ;;  %v2693_v7 = vmul.f32 %v5386_v33, %v4055_v15 }
 0x270   : > { %3963 = vst [vmem:[%s5179_s10 + $0xc8] sm:$0xff] %v3907_v4  }
 0x271   : > { %v2894_v58 = vmul.f32 %v5400_v3, %v2761_v6  ;;  %v2762_v9 = vadd.f32 %v5394_v38, %v2693_v7  ;;  %vm2825_vm4 = vcmp.ge.f32.partialorder %v2761_v6, 0.0 }
 0x272   : > { %v2307_v43 = vpop.f32.mrb[108].mxu1  ;;  %v2596_v13 = vpop.f32.mrb[108].mxu0 }
 0x273   : > { %v2309_v14 = vpop.f32.mrb[109].mxu1  ;;  %vm2826_vm5 = vcmp.ge.f32.partialorder %v2762_v9, 0.0  ;;  %v2895_v46 = vmul.f32 %v5400_v3, %v2762_v9  ;;  %v4056_v16 = vadd.f32 %v2596_v13, %v2307_v43  ;;  %v2598_v22 = vpop.f32.mrb[109].mxu0  ;;  %v2958_v19 = vsel %vm2825_vm4, %v2761_v6, %v2894_v58 }
 0x274   : > { %v2310_v17 = vpop.f32.mrb[110].mxu1  ;;  %v2599_v18 = vpop.f32.mrb[110].mxu0 }
 0x275   : > { %v2312_v26 = vpop.f32.mrb[111].mxu1  ;;  %v2959_v20 = vsel %vm2826_vm5, %v2762_v9, %v2895_v46  ;;  %v2694_v21 = vmul.f32 %v5386_v33, %v4056_v16  ;;  %v4057_v23 = vadd.f32 %v2599_v18, %v2310_v17  ;;  %v2601_v25 = vpop.f32.mrb[111].mxu0 }
 0x276   : > { %v3912_v34 = vpack.c.bf16 %v2959_v20, %v2958_v19 }
 0x277   : > { %v2763_v1 = vadd.f32 %v5394_v38, %v2694_v21  ;;  %v2695_v28 = vmul.f32 %v5386_v33, %v4057_v23 }
 0x278   : > { %3964 = vst [vmem:[%s5179_s10 + $0xd0] sm:$0xff] %v3912_v34  }
 0x279   : > { %v2896_v53 = vmul.f32 %v5400_v3, %v2763_v1  ;;  %v2764_v63 = vadd.f32 %v5394_v38, %v2695_v28  ;;  %vm2827_vm6 = vcmp.ge.f32.partialorder %v2763_v1, 0.0 }
 0x27a   : > { %v2315_v47 = vpop.f32.mrb[112].mxu1  ;;  %v2604_v57 = vpop.f32.mrb[112].mxu0 }
 0x27b   : > { %v2317_v29 = vpop.f32.mrb[113].mxu1  ;;  %vm2828_vm7 = vcmp.ge.f32.partialorder %v2764_v63, 0.0  ;;  %v2897_v62 = vmul.f32 %v5400_v3, %v2764_v63  ;;  %v4058_v30 = vadd.f32 %v2604_v57, %v2315_v47  ;;  %v2606_v10 = vpop.f32.mrb[113].mxu0  ;;  %v2960_v27 = vsel %vm2827_vm6, %v2763_v1, %v2896_v53 }
 0x27c   : > { %v2318_v24 = vpop.f32.mrb[114].mxu1  ;;  %v2607_v31 = vpop.f32.mrb[114].mxu0 }
 0x27d   : > { %v2320_v50 = vpop.f32.mrb[115].mxu1  ;;  %v2961_v35 = vsel %vm2828_vm7, %v2764_v63, %v2897_v62  ;;  %v2696_v37 = vmul.f32 %v5386_v33, %v4058_v30  ;;  %v4059_v40 = vadd.f32 %v2607_v31, %v2318_v24  ;;  %v2609_v41 = vpop.f32.mrb[115].mxu0 }
 0x27e   : > { %v3917_v44 = vpack.c.bf16 %v2961_v35, %v2960_v27 }
 0x27f   : > { %v2765_v0 = vadd.f32 %v5394_v38, %v2696_v37  ;;  %v2697_v48 = vmul.f32 %v5386_v33, %v4059_v40 }
 0x280   : > { %3965 = vst [vmem:[%s5179_s10 + $0xd8] sm:$0xff] %v3917_v44  }
 0x281   : > { %v2898_v45 = vmul.f32 %v5400_v3, %v2765_v0  ;;  %v2766_v49 = vadd.f32 %v5394_v38, %v2697_v48  ;;  %vm2829_vm8 = vcmp.ge.f32.partialorder %v2765_v0, 0.0 }
 0x282   : > { %v2323_v5 = vpop.f32.mrb[116].mxu1  ;;  %v2612_v52 = vpop.f32.mrb[116].mxu0 }
 0x283   : > { %v2325_v51 = vpop.f32.mrb[117].mxu1  ;;  %vm2830_vm9 = vcmp.ge.f32.partialorder %v2766_v49, 0.0  ;;  %v2899_v54 = vmul.f32 %v5400_v3, %v2766_v49  ;;  %v4060_v56 = vadd.f32 %v2612_v52, %v2323_v5  ;;  %v2614_v39 = vpop.f32.mrb[117].mxu0  ;;  %v2962_v36 = vsel %vm2829_vm8, %v2765_v0, %v2898_v45 }
 0x284   : > { %v2326_v32 = vpop.f32.mrb[118].mxu1  ;;  %v2615_v8 = vpop.f32.mrb[118].mxu0 }
 0x285   : > { %v2328_v59 = vpop.f32.mrb[119].mxu1  ;;  %v2963_v60 = vsel %vm2830_vm9, %v2766_v49, %v2899_v54  ;;  %v2698_v11 = vmul.f32 %v5386_v33, %v4060_v56  ;;  %v4061_v61 = vadd.f32 %v2615_v8, %v2326_v32  ;;  %v2617_v12 = vpop.f32.mrb[119].mxu0 }
 0x286   : > { %v3922_v2 = vpack.c.bf16 %v2963_v60, %v2962_v36 }
 0x287   : > { %v2767_v55 = vadd.f32 %v5394_v38, %v2698_v11  ;;  %v2699_v15 = vmul.f32 %v5386_v33, %v4061_v61 }
 0x288   : > { %3966 = vst [vmem:[%s5179_s10 + $0xe0] sm:$0xff] %v3922_v2  }
 0x289   : > { %v2900_v42 = vmul.f32 %v5400_v3, %v2767_v55  ;;  %v2768_v4 = vadd.f32 %v5394_v38, %v2699_v15  ;;  %vm2831_vm10 = vcmp.ge.f32.partialorder %v2767_v55, 0.0 }
 0x28a   : > { %v2331_v6 = vpop.f32.mrb[120].mxu1  ;;  %v2620_v7 = vpop.f32.mrb[120].mxu0 }
 0x28b   : > { %v2333_v58 = vpop.f32.mrb[121].mxu1  ;;  %vm2832_vm11 = vcmp.ge.f32.partialorder %v2768_v4, 0.0  ;;  %v2901_v9 = vmul.f32 %v5400_v3, %v2768_v4  ;;  %v4062_v43 = vadd.f32 %v2620_v7, %v2331_v6  ;;  %v2622_v13 = vpop.f32.mrb[121].mxu0  ;;  %v2964_v22 = vsel %vm2831_vm10, %v2767_v55, %v2900_v42 }
 0x28c   : > { %v2334_v14 = vpop.f32.mrb[122].mxu1  ;;  %v2623_v46 = vpop.f32.mrb[122].mxu0 }
 0x28d   : > { %v2336_v16 = vpop.f32.mrb[123].mxu1  ;;  %v2965_v17 = vsel %vm2832_vm11, %v2768_v4, %v2901_v9  ;;  %v2700_v18 = vmul.f32 %v5386_v33, %v4062_v43  ;;  %v4063_v26 = vadd.f32 %v2623_v46, %v2334_v14  ;;  %v2625_v19 = vpop.f32.mrb[123].mxu0 }
 0x28e   : > { %v3927_v20 = vpack.c.bf16 %v2965_v17, %v2964_v22 }
 0x28f   : > { %v2769_v21 = vadd.f32 %v5394_v38, %v2700_v18  ;;  %v2701_v23 = vmul.f32 %v5386_v33, %v4063_v26 }
 0x290   : > { %3967 = vst [vmem:[%s5179_s10 + $0xe8] sm:$0xff] %v3927_v20  }
 0x291   : > { %v2902_v25 = vmul.f32 %v5400_v3, %v2769_v21  ;;  %v2770_v34 = vadd.f32 %v5394_v38, %v2701_v23  ;;  %vm2833_vm12 = vcmp.ge.f32.partialorder %v2769_v21, 0.0 }
 0x292   : > { %v2339_v1 = vpop.f32.mrb[124].mxu1  ;;  %v2628_v28 = vpop.f32.mrb[124].mxu0 }
 0x293   : > { %v2341_v53 = vpop.f32.mrb[125].mxu1  ;;  %vm2834_vm13 = vcmp.ge.f32.partialorder %v2770_v34, 0.0  ;;  %v2903_v63 = vmul.f32 %v5400_v3, %v2770_v34  ;;  %v4064_v47 = vadd.f32 %v2628_v28, %v2339_v1  ;;  %v2630_v57 = vpop.f32.mrb[125].mxu0  ;;  %v2966_v10 = vsel %vm2833_vm12, %v2769_v21, %v2902_v25 }
 0x294   : > { %v2342_v29 = vpop.f32.mrb[126].mxu1  ;;  %v2631_v62 = vpop.f32.mrb[126].mxu0 }
 0x295   : > { %v2344_v30 = vpop.f32.mrb[127].mxu1  ;;  %v2967_v24 = vsel %vm2834_vm13, %v2770_v34, %v2903_v63  ;;  %v2702_v31 = vmul.f32 %v5386_v33, %v4064_v47  ;;  %v4065_v50 = vadd.f32 %v2631_v62, %v2342_v29  ;;  %v2633_v27 = vpop.f32.mrb[127].mxu0 }
 0x296   : > { %v3932_v35 = vpack.c.bf16 %v2967_v24, %v2966_v10 }
 0x297   : > { %v2771_v37 = vadd.f32 %v5394_v38, %v2702_v31  ;;  %v2703_v40 = vmul.f32 %v5386_v33, %v4065_v50 }
 0x298   : > { %3968 = vst [vmem:[%s5179_s10 + $0xf0] sm:$0xff] %v3932_v35  }
 0x299   : > { %v2904_v41 = vmul.f32 %v5400_v3, %v2771_v37  ;;  %v2772_v44 = vadd.f32 %v5394_v38, %v2703_v40  ;;  %vm2835_vm14 = vcmp.ge.f32.partialorder %v2771_v37, 0.0 }
 0x29b   : > { %vm2836_vm15 = vcmp.ge.f32.partialorder %v2772_v44, 0.0  ;;  %v2905_v0 = vmul.f32 %v5400_v3, %v2772_v44  ;;  %v2968_v48 = vsel %vm2835_vm14, %v2771_v37, %v2904_v41 }
 0x29d   : > { %v2969_v45 = vsel %vm2836_vm15, %v2772_v44, %v2905_v0 }
 0x29e   : > { %v3937_v49 = vpack.c.bf16 %v2969_v45, %v2968_v48 }
 0x2a0   : > { %3969 = vst [vmem:[%s5179_s10 + $0xf8] sm:$0xff] %v3937_v49  }
 0x2a1 PF: > { %s13_s14 = sadd.s32 1, %s4581_s14   ;;  %s5466_s12 = smov %s4577_s13 }
 0x2a2   : > { %p10_p5 = scmp.ge.s32.totalorder %s13_s14, 4   ;;  %s5467_s13 = smov %s5469_s15 }
 0x2a4   :  { %12 = sbr.rel (!%p10_p5) target bundleno = 2 (0x2), region = 68 }

// kernel: _lambda_.4
= control target key start
LH: loop header
LB: loop body
LE: loop exit
PB: predicated region body
PF: predicated region fallthrough
CT: control target
= control target key end

     0   :  { %s3695_s15 = smov 0   ;;  %s6180_s0 = inlined_call_operand.vmem [shape: bf16[16,5,5,128], index: 0, kind: input, shape index: {}]   ;;  %s6181_s1 = inlined_call_operand.vmem [shape: bf16[16,5,4,128], index: 1, kind: input, shape index: {}]   ;;  %s6182_s2 = inlined_call_operand.vmem [shape: bf16[16,4,5,128], index: 2, kind: input, shape index: {}]   ;;  %s6183_s3 = inlined_call_operand.vmem [shape: bf16[16,4,4,128], index: 3, kind: input, shape index: {}]   ;;  %s6184_s4 = inlined_call_operand.vmem [shape: bf16[16,128], index: 4, kind: output, shape index: {}]  }
   0x1 LB: > { %s3701_s16 = sadd.s32 4294967295, %s3668_s15   ;;  %p3428_p0 = scmp.ge.s32.totalorder %s3668_s15, 1  ;;  %s3668_s15 = sphi %s3695_s15, %s14_s15  }
   0x2   : > { %p200_p1 = scmp.lt.s32.totalorder %s3668_s15, 3 }
   0x4   : > { %p201_p2 = pnand %p3428_p0, %p200_p1 }
   0x6   : > { %204 = sbr.rel (%p201_p2) target bundleno = 430 (0x1ae), region = 36 }
   0xd   : > { %s3429_s17 = sshll.u32 %s3701_s16, 3  ;;  %vm692_vm0 = vsmask.f32 1280  ;;  %vm693_vm1 = vsmask.f32 3336  ;;  %vm3165_vm7 = vcmask 1043456  }
   0xe   : > { %p245_p3 = scmp.lt.s32.totalorder %s3429_s17, 15  ;;  %vm695_vm2 = vsmask.f32 5392  ;;  %vm697_vm3 = vsmask.f32 7448  ;;  %vm3959_vm4 = vmor %vm692_vm0, %vm693_vm1  ;;  %vm3318_vm8 = vcmask 1041409  }
   0xf   : > { %vm3984_vm5 = vmor %vm3959_vm4, %vm695_vm2  ;;  %vm3320_vm9 = vcmask 1042434   ;;  %vm3322_vm10 = vcmask 1043459   ;;  %vm3324_vm11 = vcmask 1044484   ;;  %p272_p4 = scmp.lt.s32.totalorder %s3701_s16, 1  ;;  %vm3326_vm12 = vcmask 1045509  }
  0x10   : > { %s6965_s17 = smov (!%p245_p3, %s3429_s17), 15  ;;  %vm4006_vm6 = vmor %vm3984_vm5, %vm697_vm3  ;;  %vm3328_vm13 = vcmask 1046534   ;;  %vm3330_vm14 = vcmask 1047559  }
  0x11   : > { %s3643_s18 = sshll.u32 %s6965_s17, 3  ;;  %s3652_s19 = smul.u32 20, %s6965_s17 }
  0x12   : > { %s3713_s22 = scalar_lea.vmem %s6183_s3, %s3643_s18  ;;  %s3653_s26 = smul.u32 10, %s6965_s17 }
  0x13   : > { %s3718_s25 = scalar_lea.vmem %s6180_s0, %s3652_s19  ;;  %v3721_v0 = vld [vmem:[%s3713_s22] sm:$0x3]  ;;  %v3727_v2 = vld [vmem:[%s3713_s22 + $0x2] sm:$0x3]  ;;  %v3730_v3 = vld [vmem:[%s3713_s22 + $0x4] sm:$0x3] }
  0x14   : > { %v3724_v1 = vld [vmem:[%s3718_s25] sm:$0x3]  ;;  %v3733_v4 = vld [vmem:[%s3713_s22 + $0x6] sm:$0x3]  ;;  %v3736_v5 = vld [vmem:[%s3713_s22 + $0x8] sm:$0x3]  ;;  %s4791_s29 = scalar_lea.vmem %s6181_s1, %s3653_s26 }
  0x15   : > { %v3739_v6 = vld [vmem:[%s3718_s25 + $0x4] sm:$0x3]  ;;  %v3742_v7 = vld [vmem:[%s3718_s25 + $0x8] sm:$0x3]  ;;  %v3745_v8 = vld [vmem:[%s3713_s22 + $0xa] sm:$0x3] }
  0x16   : > { %v3748_v9 = vld [vmem:[%s3713_s22 + $0xc] sm:$0x3]  ;;  %v3751_v10 = vld [vmem:[%s3713_s22 + $0xe] sm:$0x3]  ;;  %v3754_v11 = vld [vmem:[%s3713_s22 + $0x10] sm:$0x3] }
  0x17   : > { %v3757_v12 = vld [vmem:[%s3718_s25 + $0xc] sm:$0x3]  ;;  %v3760_v13 = vld [vmem:[%s3718_s25 + $0x14] sm:$0x3]  ;;  %v3763_v14 = vld [vmem:[%s3718_s25 + $0x18] sm:$0x3] }
  0x18   : > { %v3766_v15 = vld [vmem:[%s3713_s22 + $0x12] sm:$0x3]  ;;  %v3769_v16 = vld [vmem:[%s3713_s22 + $0x14] sm:$0x3]  ;;  %v3772_v17 = vld [vmem:[%s3713_s22 + $0x16] sm:$0x3] }
  0x19   : > { %v3775_v18 = vld [vmem:[%s3713_s22 + $0x18] sm:$0x3]  ;;  %v3778_v19 = vld [vmem:[%s3718_s25 + $0x1c] sm:$0x3]  ;;  %v3781_v20 = vld [vmem:[%s3718_s25 + $0x20] sm:$0x3] }
  0x1a   : > { %v3784_v21 = vld [vmem:[%s3718_s25 + $0x28] sm:$0x3]  ;;  %v3787_v22 = vld [vmem:[%s3713_s22 + $0x1a] sm:$0x3]  ;;  %v3790_v23 = vld [vmem:[%s3713_s22 + $0x1c] sm:$0x3] }
  0x1b   : > { %6382 = vst [vmem:[#allocation2_spill] sm:$0xff] %v3787_v22  ;;  %6383 = vst [vmem:[#allocation3_spill] sm:$0xff] %v3790_v23  ;;  %v3793_v24 = vld [vmem:[%s3713_s22 + $0x1e] sm:$0x3]  ;;  %v3796_v25 = vld [vmem:[%s3713_s22 + $0x20] sm:$0x3] }
  0x1c   : > { %6384 = vst [vmem:[#allocation4_spill] sm:$0xff] %v3793_v24  ;;  %6385 = vst [vmem:[#allocation5_spill] sm:$0xff] %v3796_v25  ;;  %v3799_v26 = vld [vmem:[%s3718_s25 + $0x2c] sm:$0x3]  ;;  %v3802_v27 = vld [vmem:[%s3718_s25 + $0x30] sm:$0x3] }
  0x1d   : > { %v3805_v28 = vld [vmem:[%s3718_s25 + $0x34] sm:$0x3]  ;;  %v3808_v29 = vld [vmem:[%s3713_s22 + $0x22] sm:$0x3]  ;;  %v3811_v30 = vld [vmem:[%s3718_s25 + $0x3c] sm:$0x3] }
  0x1e   : > { %6386 = vst [vmem:[#allocation6_spill] sm:$0xff] %v3808_v29  ;;  %v3814_v31 = vld [vmem:[%s3718_s25 + $0x40] sm:$0x3]  ;;  %v3817_v32 = vld [vmem:[%s3718_s25 + $0x44] sm:$0x3]  ;;  %s3642_s30 = sshll.u32 %s6965_s17, 4 }
  0x1f   : > { %6387 = vst [vmem:[#allocation7_spill] sm:$0xff] %v3817_v32  ;;  %v3822_v34 = vld [vmem:[%s3713_s22 + $0x24] sm:$0x3]  ;;  %v3825_v35 = vld [vmem:[%s3713_s22 + $0x26] sm:$0x3]  ;;  %s5181_s7 = scalar_lea.vmem %s6182_s2, %s3642_s30  ;;  %s6967_s16 = smov (!%p272_p4, %s3701_s16), 1 }
  0x20   : > { %6388 = vst [vmem:[#allocation8_spill] sm:$0xff] %v3822_v34  ;;  %6389 = vst [vmem:[#allocation9_spill] sm:$0xff] %v3825_v35  ;;  %v3828_v36 = vld [vmem:[%s3718_s25 + $0x48] sm:$0x3]  ;;  %v3831_v37 = vld [vmem:[%s3718_s25 + $0x50] sm:$0x3] }
  0x21   : > { %6390 = vst [vmem:[#allocation10_spill] sm:$0xff] %v3828_v36  ;;  %6391 = vst [vmem:[#allocation11_spill] sm:$0xff] %v3831_v37  ;;  %v3834_v38 = vld [vmem:[%s3718_s25 + $0x54] sm:$0x3]  ;;  %v3845_v43 = vld [vmem:[%s3713_s22 + $0x28] sm:$0x3] }
  0x22   : > { %6392 = vst [vmem:[#allocation12_spill] sm:$0xff] %v3834_v38  ;;  %6393 = vst [vmem:[#allocation13_spill] sm:$0xff] %v3845_v43  ;;  %v3848_v44 = vld [vmem:[%s3718_s25 + $0x58] sm:$0x3]  ;;  %v3851_v45 = vld [vmem:[%s3718_s25 + $0x5c] sm:$0x3] }
  0x23   : > { %6394 = vst [vmem:[#allocation14_spill] sm:$0xff] %v3848_v44  ;;  %6395 = vst [vmem:[#allocation15_spill] sm:$0xff] %v3851_v45  ;;  %v3854_v46 = vld [vmem:[%s3718_s25 + $0x64] sm:$0x3]  ;;  %v3865_v51 = vld [vmem:[%s3713_s22 + $0x2a] sm:$0x3] }
  0x24   : > { %6396 = vst [vmem:[#allocation16_spill] sm:$0xff] %v3854_v46  ;;  %6397 = vst [vmem:[#allocation17_spill] sm:$0xff] %v3865_v51  ;;  %v3868_v52 = vld [vmem:[%s3713_s22 + $0x2c] sm:$0x3]  ;;  %v3871_v53 = vld [vmem:[%s3713_s22 + $0x2e] sm:$0x3] }
  0x25   : > { %6398 = vst [vmem:[#allocation18_spill] sm:$0xff] %v3868_v52  ;;  %6399 = vst [vmem:[#allocation19_spill] sm:$0xff] %v3871_v53  ;;  %v3874_v54 = vld [vmem:[%s3718_s25 + $0x68] sm:$0x3]  ;;  %v3877_v55 = vld [vmem:[%s3718_s25 + $0x6c] sm:$0x3] }
  0x26   : > { %6400 = vst [vmem:[#allocation20_spill] sm:$0xff] %v3874_v54  ;;  %6401 = vst [vmem:[#allocation21_spill] sm:$0xff] %v3877_v55  ;;  %v3880_v56 = vld [vmem:[%s3718_s25 + $0x70] sm:$0x3]  ;;  %v3894_v62 = vld [vmem:[%s3718_s25 + $0x78] sm:$0x3] }
  0x27   : > { %6402 = vst [vmem:[#allocation22_spill] sm:$0xff] %v3880_v56  ;;  %v3891_v61 = vld [vmem:[%s3713_s22 + $0x30] sm:$0x3]  ;;  %6404 = vst [vmem:[#allocation24_spill] sm:$0xff] %v3894_v62  ;;  %v3906_v50 = vld [vmem:[%s3713_s22 + $0x32] sm:$0x3] }
  0x28   : > { %6403 = vst [vmem:[#allocation23_spill] sm:$0xff] %v3891_v61  ;;  %v3440_v57 = vld.sshfl [vmem:[%s3718_s25] sm:$0x13 pattern:$0x76325410]  ;;  %6405 = vst [vmem:[#allocation25_spill] sm:$0xff] %v3906_v50 }
  0x29   : > { %v3909_v49 = vld [vmem:[%s3713_s22 + $0x34] sm:$0x3]  ;;  %v3912_v48 = vld [vmem:[%s3718_s25 + $0x7c] sm:$0x3]  ;;  %v443_v58 = vcombine.high %v3440_v57, %v3440_v57  ;;  %v700_v42 = vshrl.u32 %v3440_v57, 16  ;;  %v703_v59 = vshll.u32 %v3440_v57, 16 }
  0x2a   : > { %6406 = vst [vmem:[#allocation26_spill] sm:$0xff] %v3909_v49  ;;  %6407 = vst [vmem:[#allocation27_spill] sm:$0xff] %v3912_v48  ;;  %v3441_v47 = vld.sshfl [vmem:[%s3718_s25 + $0x4] sm:$0x13 pattern:$0x76325410] }
  0x2b   : > { %v3918_v41 = vld [vmem:[%s3713_s22 + $0x36] sm:$0x3]  ;;  %v3921_v60 = vld [vmem:[%s3713_s22 + $0x38] sm:$0x3]  ;;  %v3924_v40 = vld [vmem:[%s3718_s25 + $0x80] sm:$0x3]  ;;  %v451_v24 = vcombine.high %v3441_v47, %v3441_v47 }
  0x2c   : > { %6408 = vst [vmem:[#allocation28_spill] sm:$0xff] %v3918_v41  ;;  %6409 = vst [vmem:[#allocation29_spill] sm:$0xff] %v3921_v60  ;;  %v3927_v39 = vld [vmem:[%s3718_s25 + $0x84] sm:$0x3]  ;;  %v714_v29 = vshrl.u32 %v3441_v47, 16  ;;  %v717_v38 = vshll.u32 %v3441_v47, 16 }
  0x2d   : > { %6410 = vst [vmem:[#allocation30_spill] sm:$0xff] %v3924_v40  ;;  %6411 = vst [vmem:[#allocation31_spill] sm:$0xff] %v3927_v39  ;;  %v3934_v57 = vld [vmem:[%s3713_s22 + $0x3a] sm:$0x3]  ;;  %v702_v36 = vrot.slane %v700_v42, 6  ;;  %v705_v23 = vrot.slane %v703_v59, 7 }
  0x2e   : > { %6412 = vst [vmem:[#allocation32_spill] sm:$0xff] %v3934_v57  ;;  %v3442_v37 = vld.sshfl [vmem:[%s3718_s25 + $0x8] sm:$0x13 pattern:$0x76325410]  ;;  %v716_v59 = vrot.slane %v714_v29, 6 }
  0x2f   : > { %v3940_v32 = vld [vmem:[%s3713_s22 + $0x3c] sm:$0x3]  ;;  %v3943_v22 = vld [vmem:[%s3713_s22 + $0x3e] sm:$0x3]  ;;  %v3946_v33 = vld [vmem:[%s3718_s25 + $0x8c] sm:$0x3]  ;;  %v706_v45 = vor.u32 %v705_v23, %v702_v36  ;;  %v459_v29 = vcombine.high %v3442_v37, %v3442_v37 }
  0x30   : > { %6413 = vst [vmem:[#allocation33_spill] sm:$0xff] %v3940_v32  ;;  %6414 = vst [vmem:[#allocation34_spill] sm:$0xff] %v3943_v22  ;;  %v3949_v63 = vld [vmem:[%s3718_s25 + $0x90] sm:$0x3]  ;;  %v3964_v25 = vld [vmem:[%s3718_s25 + $0x94] sm:$0x3] }
  0x31   : > { %6415 = vst [vmem:[#allocation35_spill] sm:$0xff] %v3946_v33  ;;  %6416 = vst [vmem:[#allocation36_spill] sm:$0xff] %v3949_v63  ;;  %v3967_v43 = vld [vmem:[%s3718_s25 + $0x98] sm:$0x3]  ;;  %v709_v52 = vshll.u32 %v443_v58, 16  ;;  %v719_v55 = vrot.slane %v717_v38, 7 }
  0x32   : > { %6419 = vst [vmem:[#allocation37_spill] sm:$0xff] %v3964_v25  ;;  %6420 = vst [vmem:[#allocation38_spill] sm:$0xff] %v3967_v43  ;;  %v3443_v56 = vld.sshfl [vmem:[%s3718_s25 + $0xc] sm:$0x13 pattern:$0x76325410] }
  0x33   : > { %v728_v51 = vshrl.u32 %v3442_v37, 16  ;;  %v3444_v23 = vld.sshfl [vmem:[%s3718_s25 + $0x14] sm:$0x13 pattern:$0x76325410]  ;;  %v720_v38 = vor.u32 %v719_v55, %v716_v59  ;;  %v723_v58 = vshll.u32 %v451_v24, 16  ;;  %v467_v54 = vcombine.high %v3443_v56, %v3443_v56 }
  0x34   : > { %v3991_v47 = vld.sshfl [vmem:[%s3718_s25 + $0x18] sm:$0x13 pattern:$0x76325410]  ;;  %v731_v39 = vshll.u32 %v3442_v37, 16  ;;  %v707_v33 = vrot.slane %v706_v45, 2  ;;  %v475_v59 = vcombine.high %v3444_v23, %v3444_v23 }
  0x35   : > { %v730_v41 = vrot.slane %v728_v51, 6  ;;  %v3998_v60 = vld.sshfl [vmem:[%s3718_s25 + $0x1c] sm:$0x13 pattern:$0x76325410]  ;;  %v711_v55 = vrot.slane %v709_v52, 7  ;;  %v483_v45 = vcombine.high %v3991_v47, %v3991_v47 }
  0x36   : > { %v4001_v24 = vld.sshfl [vmem:[%s3718_s25 + $0x20] sm:$0x13 pattern:$0x76325410]  ;;  %v6423_v37 = vmov 0  ;;  %v733_v51 = vrot.slane %v731_v39, 7 }
  0x37   : > { %v6424_v37 = vsel %vm4006_vm6, 4294967295, %v6423_v37  ;;  %v737_v35 = vshll.u32 %v459_v29, 16  ;;  %v742_v53 = vshrl.u32 %v3443_v56, 16  ;;  %v721_v52 = vrot.slane %v720_v38, 2  ;;  %s3439_s8 = sshll.u32 %s6967_s16, 2 }
  0x38   : > { %6425 = vst [vmem:[#allocation39_spill] sm:$0xff] %v6424_v37  ;;  %v725_v42 = vrot.slane %v723_v58, 7  ;;  %v745_v22 = vshll.u32 %v3443_v56, 16  ;;  %v734_v32 = vor.u32 %v733_v51, %v730_v41  ;;  %v751_v39 = vshll.u32 %v467_v54, 16  ;;  %v5058_v37 = vld [vmem:[%s4791_s29 + $0x42] sm:$0x3]  ;;  %s275_s11 = scalar_lea.vmem %s6184_s4, %s3439_s8 }
  0x39   : > { %v4013_v43 = vld.sshfl [vmem:[%s3718_s25 + $0x28] sm:$0x13 pattern:$0x76325410]  ;;  %v744_v25 = vrot.slane %v742_v53, 6  ;;  %v712_v38 = vsel %vm4006_vm6, %v707_v33, %v711_v55  ;;  %v756_v56 = vshrl.u32 %v3444_v23, 16 }
  0x3a   : > { %v4018_v29 = vld.sshfl [vmem:[%s3718_s25 + $0x2c] sm:$0x13 pattern:$0x76325410]  ;;  %v747_v58 = vrot.slane %v745_v22, 7  ;;  %v735_v54 = vrot.slane %v734_v32, 2  ;;  %v4042_v22 = vsel %vm4006_vm6, %v721_v52, %v725_v42  ;;  %v6427_v32 = vmax.bf16 %v3724_v1, %v3721_v0 }
  0x3b   : > { %v4025_v63 = vld.sshfl [vmem:[%s3718_s25 + $0x30] sm:$0x13 pattern:$0x76325410]  ;;  %v739_v51 = vrot.slane %v737_v35, 7  ;;  %6426 = vst [vmem:[#allocation40_spill] sm:$0xff] %v4042_v22 }
  0x3c   : > { %v4028_v49 = vld.sshfl [vmem:[%s3718_s25 + $0x34] sm:$0x13 pattern:$0x76325410]  ;;  %v748_v55 = vor.u32 %v747_v58, %v744_v25  ;;  %v758_v36 = vrot.slane %v756_v56, 6  ;;  %v759_v40 = vshll.u32 %v3444_v23, 16  ;;  %v4048_v35 = vmax.bf16 %v712_v38, %v6427_v32 }
  0x3d   : > { %v4035_v57 = vld.sshfl [vmem:[%s3718_s25 + $0x3c] sm:$0x13 pattern:$0x76325410]  ;;  %v753_v50 = vrot.slane %v751_v39, 7  ;;  %v765_v41 = vshll.u32 %v475_v59, 16  ;;  %v4069_v39 = vsel %vm4006_vm6, %v735_v54, %v739_v51  ;;  %v6430_v38 = vmax.bf16 %v3739_v6, %v3727_v2 }
  0x3e   : > { %v4038_v33 = vld.sshfl [vmem:[%s3718_s25 + $0x40] sm:$0x13 pattern:$0x76325410]  ;;  %v770_v48 = vshrl.u32 %v3991_v47, 16  ;;  %6428 = vst [vmem:[#allocation41_spill] sm:$0xff] %v4048_v35  ;;  %v6436_v2 = vmax.bf16 %v3757_v12, %v3733_v4  ;;  %v6442_v12 = vmax.bf16 %v3763_v14, %v3745_v8 }
  0x3f   : > { %v4051_v53 = vld.sshfl [vmem:[%s3718_s25 + $0x44] sm:$0x13 pattern:$0x76325410]  ;;  %v749_v42 = vrot.slane %v748_v55, 2  ;;  %v761_v59 = vrot.slane %v759_v40, 7  ;;  %v4075_v58 = vmax.bf16 %v4042_v22, %v6430_v38 }
  0x40   : > { %v4054_v61 = vld.sshfl [vmem:[%s3718_s25 + $0x48] sm:$0x13 pattern:$0x76325410]  ;;  %6429 = vst [vmem:[#allocation42_spill] sm:$0xff] %v4069_v39  ;;  %v767_v55 = vrot.slane %v765_v41, 7 }
  0x41   : > { %v4061_v52 = vld.sshfl [vmem:[%s3718_s25 + $0x50] sm:$0x13 pattern:$0x76325410]  ;;  %6431 = vst [vmem:[#allocation43_spill] sm:$0xff] %v4075_v58  ;;  %v762_v56 = vor.u32 %v761_v59, %v758_v36  ;;  %v772_v32 = vrot.slane %v770_v48, 6  ;;  %v6433_v48 = vmax.bf16 %v3742_v7, %v3730_v3  ;;  %v6435_v3 = vcombine.high %v3998_v60, %v3998_v60 }
  0x42   : > { %v4078_v40 = vld.sshfl [vmem:[%s3718_s25 + $0x54] sm:$0x13 pattern:$0x76325410]  ;;  %v773_v0 = vshll.u32 %v3991_v47, 16  ;;  %v779_v6 = vshll.u32 %v483_v45, 16  ;;  %v4096_v47 = vsel %vm4006_vm6, %v749_v42, %v753_v50 }
  0x43   : > { %v4082_v1 = vld.sshfl [vmem:[%s3718_s25 + $0x58] sm:$0x13 pattern:$0x76325410]  ;;  %v784_v51 = vshrl.u32 %v3998_v60, 16  ;;  %6432 = vst [vmem:[#allocation44_spill] sm:$0xff] %v4096_v47  ;;  %v4112_v50 = vmax.bf16 %v4069_v39, %v6433_v48 }
  0x44   : > { %v4090_v38 = vld.sshfl [vmem:[%s3718_s25 + $0x5c] sm:$0x13 pattern:$0x76325410]  ;;  %v763_v36 = vrot.slane %v762_v56, 2  ;;  %v775_v41 = vrot.slane %v773_v0, 7 }
  0x45   : > { %v4099_v59 = vld.sshfl [vmem:[%s3718_s25 + $0x64] sm:$0x13 pattern:$0x76325410]  ;;  %v781_v23 = vrot.slane %v779_v6, 7  ;;  %6434 = vst [vmem:[#allocation45_spill] sm:$0xff] %v4112_v50 }
  0x46   : > { %v4102_v54 = vld.sshfl [vmem:[%s3718_s25 + $0x68] sm:$0x13 pattern:$0x76325410]  ;;  %v768_v0 = vsel %vm4006_vm6, %v763_v36, %v767_v55  ;;  %v776_v56 = vor.u32 %v775_v41, %v772_v32  ;;  %v786_v25 = vrot.slane %v784_v51, 6  ;;  %v787_v45 = vshll.u32 %v3998_v60, 16 }
  0x47   : > { %v4115_v42 = vld.sshfl [vmem:[%s3718_s25 + $0x6c] sm:$0x13 pattern:$0x76325410]  ;;  %v793_v7 = vshll.u32 %v6435_v3, 16  ;;  %v798_v48 = vshrl.u32 %v4001_v24, 16  ;;  %v4133_v55 = vmax.bf16 %v4096_v47, %v6436_v2  ;;  %v6438_v47 = vmax.bf16 %v3760_v13, %v3736_v5 }
  0x48   : > { %v4121_v22 = vld.sshfl [vmem:[%s3718_s25 + $0x70] sm:$0x13 pattern:$0x76325410]  ;;  %v777_v41 = vrot.slane %v776_v56, 2  ;;  %v789_v3 = vrot.slane %v787_v45, 7  ;;  %v6441_v13 = vcombine.high %v4001_v24, %v4001_v24 }
  0x49   : > { %6437 = vst [vmem:[#allocation46_spill] sm:$0xff] %v4133_v55  ;;  %v4136_v32 = vld.sshfl [vmem:[%s3718_s25 + $0x78] sm:$0x13 pattern:$0x76325410]  ;;  %v795_v2 = vrot.slane %v793_v7, 7  ;;  %v4155_v39 = vmax.bf16 %v768_v0, %v6438_v47 }
  0x4a   : > { %v4139_v51 = vld.sshfl [vmem:[%s3718_s25 + $0x7c] sm:$0x13 pattern:$0x76325410]  ;;  %v4162_v45 = vsel %vm4006_vm6, %v777_v41, %v781_v23  ;;  %v790_v56 = vor.u32 %v789_v3, %v786_v25  ;;  %v800_v60 = vrot.slane %v798_v48, 6  ;;  %v801_v4 = vshll.u32 %v4001_v24, 16 }
  0x4b   : > { %v4146_v6 = vld.sshfl [vmem:[%s3718_s25 + $0x80] sm:$0x13 pattern:$0x76325410]  ;;  %6439 = vst [vmem:[#allocation47_spill] sm:$0xff] %v4155_v39  ;;  %6440 = vst [vmem:[#allocation48_spill] sm:$0xff] %v4162_v45  ;;  %v4194_v39 = vmax.bf16 %v4162_v45, %v6442_v12 }
  0x4c   : > { %v4158_v36 = vld.sshfl [vmem:[%s3718_s25 + $0x84] sm:$0x13 pattern:$0x76325410]  ;;  %v807_v47 = vshll.u32 %v6441_v13, 16  ;;  %v812_v23 = vshrl.u32 %v4013_v43, 16 }
  0x4d   : > { %v4166_v55 = vld.sshfl [vmem:[%s3718_s25 + $0x8c] sm:$0x13 pattern:$0x76325410]  ;;  %v791_v41 = vrot.slane %v790_v56, 2  ;;  %v803_v3 = vrot.slane %v801_v4, 7 }
  0x4e   : > { %v4177_v0 = vld.sshfl [vmem:[%s3718_s25 + $0x90] sm:$0x13 pattern:$0x76325410]  ;;  %v809_v13 = vrot.slane %v807_v47, 7  ;;  %6443 = vst [vmem:[#allocation49_spill] sm:$0xff] %v4194_v39  ;;  %v6445_v47 = vcombine.high %v4013_v43, %v4013_v43 }
  0x4f   : > { %v4184_v7 = vld.sshfl [vmem:[%s3718_s25 + $0x94] sm:$0x13 pattern:$0x76325410]  ;;  %v804_v56 = vor.u32 %v803_v3, %v800_v60  ;;  %v814_v48 = vrot.slane %v812_v23, 6  ;;  %v815_v50 = vshll.u32 %v4013_v43, 16  ;;  %v4204_v5 = vsel %vm4006_vm6, %v791_v41, %v795_v2 }
  0x50   : > { %v4197_v25 = vld.sshfl [vmem:[%s3718_s25 + $0x98] sm:$0x13 pattern:$0x76325410]  ;;  %6444 = vst [vmem:[#allocation50_spill] sm:$0xff] %v4204_v5  ;;  %v821_v8 = vshll.u32 %v6445_v47, 16  ;;  %v6446_v60 = vcombine.high %v4018_v29, %v4018_v29 }
  0x51   : > { %v826_v14 = vshrl.u32 %v4018_v29, 16  ;;  %v829_v12 = vshll.u32 %v4018_v29, 16  ;;  %v817_v4 = vrot.slane %v815_v50, 7  ;;  %v840_v3 = vshrl.u32 %v4025_v63, 16 }
  0x52   : > { %v835_v23 = vshll.u32 %v6446_v60, 16  ;;  %v805_v2 = vrot.slane %v804_v56, 2  ;;  %v843_v43 = vshll.u32 %v4025_v63, 16  ;;  %v823_v39 = vrot.slane %v821_v8, 7 }
  0x53   : > { %v828_v41 = vrot.slane %v826_v14, 6  ;;  %v831_v45 = vrot.slane %v829_v12, 7  ;;  %v818_v47 = vor.u32 %v817_v4, %v814_v48  ;;  %v842_v35 = vrot.slane %v840_v3, 6 }
  0x54   : > { %v837_v58 = vrot.slane %v835_v23, 7  ;;  %v845_v46 = vrot.slane %v843_v43, 7  ;;  %v6447_v50 = vcombine.high %v4025_v63, %v4025_v63  ;;  %v854_v29 = vshrl.u32 %v4028_v49, 16 }
  0x55   : > { %v832_v62 = vor.u32 %v831_v45, %v828_v41  ;;  %v819_v60 = vrot.slane %v818_v47, 2  ;;  %v857_v34 = vshll.u32 %v4028_v49, 16  ;;  %v6448_v56 = vcombine.high %v4028_v49, %v4028_v49 }
  0x56   : > { %v849_v24 = vshll.u32 %v6447_v50, 16  ;;  %v868_v48 = vshrl.u32 %v4035_v57, 16  ;;  %v846_v8 = vor.u32 %v845_v46, %v842_v35  ;;  %v856_v45 = vrot.slane %v854_v29, 6 }
  0x57   : > { %v863_v14 = vshll.u32 %v6448_v56, 16  ;;  %v833_v4 = vrot.slane %v832_v62, 2  ;;  %v4229_v23 = vsel %vm4006_vm6, %v805_v2, %v809_v13  ;;  %v4233_v63 = vsel %vm4006_vm6, %v819_v60, %v823_v39 }
  0x58   : > { %v851_v12 = vrot.slane %v849_v24, 7  ;;  %6449 = vst [vmem:[#allocation51_spill] sm:$0xff] %v4229_v23  ;;  %v859_v3 = vrot.slane %v857_v34, 7  ;;  %v847_v43 = vrot.slane %v846_v8, 2  ;;  %v870_v47 = vrot.slane %v868_v48, 6 }
  0x59   : > { %v865_v41 = vrot.slane %v863_v14, 7  ;;  %v871_v49 = vshll.u32 %v4035_v57, 16  ;;  %v6450_v62 = vcombine.high %v4035_v57, %v4035_v57  ;;  %v882_v24 = vshrl.u32 %v4038_v33, 16 }
  0x5a   : > { %v860_v35 = vor.u32 %v859_v3, %v856_v45  ;;  %v885_v13 = vshll.u32 %v4038_v33, 16  ;;  %v6451_v2 = vcombine.high %v4038_v33, %v4038_v33  ;;  %v4246_v34 = vsel %vm4006_vm6, %v833_v4, %v837_v58 }
  0x5b   : > { %v877_v46 = vshll.u32 %v6450_v62, 16  ;;  %6452 = vst [vmem:[#allocation52_spill] sm:$0xff] %v4246_v34  ;;  %v4250_v50 = vsel %vm4006_vm6, %v847_v43, %v851_v12  ;;  %v873_v29 = vrot.slane %v871_v49, 7  ;;  %v896_v57 = vshrl.u32 %v4051_v53, 16 }
  0x5c   : > { %v891_v39 = vshll.u32 %v6451_v2, 16  ;;  %6453 = vst [vmem:[#allocation53_spill] sm:$0xff] %v4250_v50  ;;  %v861_v60 = vrot.slane %v860_v35, 2  ;;  %v884_v14 = vrot.slane %v882_v24, 6  ;;  %v887_v48 = vrot.slane %v885_v13, 7 }
  0x5d   : > { %v879_v56 = vrot.slane %v877_v46, 7  ;;  %v874_v8 = vor.u32 %v873_v29, %v870_v47  ;;  %v898_v45 = vrot.slane %v896_v57, 6  ;;  %v899_v33 = vshll.u32 %v4051_v53, 16 }
  0x5e   : > { %v6454_v3 = vcombine.high %v4051_v53, %v4051_v53  ;;  %v888_v4 = vor.u32 %v887_v48, %v884_v14  ;;  %v893_v62 = vrot.slane %v891_v39, 7  ;;  %v910_v12 = vshrl.u32 %v4054_v61, 16 }
  0x5f   : > { %v913_v43 = vshll.u32 %v4054_v61, 16  ;;  %v4261_v49 = vsel %vm4006_vm6, %v861_v60, %v865_v41  ;;  %v875_v46 = vrot.slane %v874_v8, 2  ;;  %v901_v35 = vrot.slane %v899_v33, 7 }
  0x60   : > { %v905_v58 = vshll.u32 %v6454_v3, 16  ;;  %6455 = vst [vmem:[#allocation54_spill] sm:$0xff] %v4261_v49  ;;  %v6456_v47 = vcombine.high %v4054_v61, %v4054_v61  ;;  %v889_v13 = vrot.slane %v888_v4, 2  ;;  %v912_v2 = vrot.slane %v910_v12, 6 }
  0x61   : > { %v915_v53 = vrot.slane %v913_v43, 7  ;;  %v924_v29 = vshrl.u32 %v4061_v52, 16  ;;  %v4269_v39 = vsel %vm4006_vm6, %v875_v46, %v879_v56  ;;  %v902_v57 = vor.u32 %v901_v35, %v898_v45 }
  0x62   : > { %v919_v24 = vshll.u32 %v6456_v47, 16  ;;  %v907_v14 = vrot.slane %v905_v58, 7  ;;  %v927_v41 = vshll.u32 %v4061_v52, 16  ;;  %v6457_v61 = vcombine.high %v4061_v52, %v4061_v52 }
  0x63   : > { %v916_v60 = vor.u32 %v915_v53, %v912_v2  ;;  %v926_v8 = vrot.slane %v924_v29, 6  ;;  %v903_v3 = vrot.slane %v902_v57, 2  ;;  %v938_v12 = vshrl.u32 %v4078_v40, 16 }
  0x64   : > { %v921_v48 = vrot.slane %v919_v24, 7  ;;  %v933_v33 = vshll.u32 %v6457_v61, 16  ;;  %v929_v4 = vrot.slane %v927_v41, 7  ;;  %v941_v43 = vshll.u32 %v4078_v40, 16 }
  0x65   : > { %v4279_v56 = vsel %vm4006_vm6, %v889_v13, %v893_v62  ;;  %v917_v45 = vrot.slane %v916_v60, 2  ;;  %v952_v46 = vshrl.u32 %v4082_v1, 16  ;;  %v940_v47 = vrot.slane %v938_v12, 6 }
  0x66   : > { %6458 = vst [vmem:[#allocation55_spill] sm:$0xff] %v4279_v56  ;;  %v935_v58 = vrot.slane %v933_v33, 7  ;;  %v930_v35 = vor.u32 %v929_v4, %v926_v8  ;;  %v943_v24 = vrot.slane %v941_v43, 7  ;;  %v6459_v52 = vcombine.high %v4078_v40, %v4078_v40 }
  0x67   : > { %v4287_v53 = vsel %vm4006_vm6, %v903_v3, %v907_v14  ;;  %v4291_v29 = vsel %vm4006_vm6, %v917_v45, %v921_v48  ;;  %v954_v62 = vrot.slane %v952_v46, 6  ;;  %v955_v13 = vshll.u32 %v4082_v1, 16 }
  0x68   : > { %v947_v2 = vshll.u32 %v6459_v52, 16  ;;  %6460 = vst [vmem:[#allocation56_spill] sm:$0xff] %v4287_v53  ;;  %6461 = vst [vmem:[#allocation57_spill] sm:$0xff] %v4291_v29  ;;  %v931_v57 = vrot.slane %v930_v35, 2  ;;  %v944_v41 = vor.u32 %v943_v24, %v940_v47  ;;  %v6462_v60 = vcombine.high %v4082_v1, %v4082_v1 }
  0x69   : > { %v966_v40 = vshrl.u32 %v4090_v38, 16  ;;  %v957_v61 = vrot.slane %v955_v13, 7  ;;  %v969_v33 = vshll.u32 %v4090_v38, 16  ;;  %v6463_v14 = vcombine.high %v4090_v38, %v4090_v38 }
  0x6a   : > { %v961_v8 = vshll.u32 %v6462_v60, 16  ;;  %v980_v48 = vshrl.u32 %v4099_v59, 16  ;;  %v4305_v4 = vsel %vm4006_vm6, %v931_v57, %v935_v58  ;;  %v945_v12 = vrot.slane %v944_v41, 2 }
  0x6b   : > { %v975_v3 = vshll.u32 %v6463_v14, 16  ;;  %v949_v43 = vrot.slane %v947_v2, 7  ;;  %v968_v45 = vrot.slane %v966_v40, 6  ;;  %v958_v1 = vor.u32 %v957_v61, %v954_v62 }
  0x6c   : > { %v963_v46 = vrot.slane %v961_v8, 7  ;;  %v971_v35 = vrot.slane %v969_v33, 7  ;;  %v982_v24 = vrot.slane %v980_v48, 6  ;;  %v983_v52 = vshll.u32 %v4099_v59, 16 }
  0x6d   : > { %v977_v47 = vrot.slane %v975_v3, 7  ;;  %v6464_v38 = vcombine.high %v4099_v59, %v4099_v59  ;;  %v994_v60 = vshrl.u32 %v4102_v54, 16  ;;  %v959_v14 = vrot.slane %v958_v1, 2 }
  0x6e   : > { %v972_v44 = vor.u32 %v971_v35, %v968_v45  ;;  %v997_v58 = vshll.u32 %v4102_v54, 16  ;;  %v6465_v2 = vcombine.high %v4102_v54, %v4102_v54  ;;  %v4318_v57 = vsel %vm4006_vm6, %v945_v12, %v949_v43 }
  0x6f   : > { %v989_v13 = vshll.u32 %v6464_v38, 16  ;;  %6466 = vst [vmem:[#allocation58_spill] sm:$0xff] %v4318_v57  ;;  %v985_v41 = vrot.slane %v983_v52, 7  ;;  %v996_v8 = vrot.slane %v994_v60, 6  ;;  %v1008_v40 = vshrl.u32 %v4115_v42, 16 }
  0x70   : > { %v1003_v62 = vshll.u32 %v6465_v2, 16  ;;  %v4323_v59 = vsel %vm4006_vm6, %v959_v14, %v963_v46  ;;  %v973_v61 = vrot.slane %v972_v44, 2  ;;  %v999_v3 = vrot.slane %v997_v58, 7 }
  0x71   : > { %6467 = vst [vmem:[#allocation59_spill] sm:$0xff] %v4323_v59  ;;  %v991_v33 = vrot.slane %v989_v13, 7  ;;  %v986_v48 = vor.u32 %v985_v41, %v982_v24  ;;  %v1010_v45 = vrot.slane %v1008_v40, 6  ;;  %v1011_v54 = vshll.u32 %v4115_v42, 16 }
  0x72   : > { %v6468_v1 = vcombine.high %v4115_v42, %v4115_v42  ;;  %v1000_v43 = vor.u32 %v999_v3, %v996_v8  ;;  %v1005_v35 = vrot.slane %v1003_v62, 7  ;;  %v1022_v52 = vshrl.u32 %v4121_v22, 16 }
  0x73   : > { %v1025_v38 = vshll.u32 %v4121_v22, 16  ;;  %v4333_v46 = vsel %vm4006_vm6, %v973_v61, %v977_v47  ;;  %v987_v44 = vrot.slane %v986_v48, 2  ;;  %v1013_v13 = vrot.slane %v1011_v54, 7 }
  0x74   : > { %v1017_v12 = vshll.u32 %v6468_v1, 16  ;;  %6469 = vst [vmem:[#allocation60_spill] sm:$0xff] %v4333_v46  ;;  %v6470_v24 = vcombine.high %v4121_v22, %v4121_v22  ;;  %v1001_v14 = vrot.slane %v1000_v43, 2  ;;  %v1024_v58 = vrot.slane %v1022_v52, 6 }
  0x75   : > { %v1027_v42 = vrot.slane %v1025_v38, 7  ;;  %v1036_v2 = vshrl.u32 %v4136_v32, 16  ;;  %v4341_v62 = vsel %vm4006_vm6, %v987_v44, %v991_v33  ;;  %v1014_v41 = vor.u32 %v1013_v13, %v1010_v45 }
  0x76   : > { %v1031_v60 = vshll.u32 %v6470_v24, 16  ;;  %v1019_v8 = vrot.slane %v1017_v12, 7  ;;  %v1039_v47 = vshll.u32 %v4136_v32, 16  ;;  %v6471_v22 = vcombine.high %v4136_v32, %v4136_v32 }
  0x77   : > { %v1028_v40 = vor.u32 %v1027_v42, %v1024_v58  ;;  %v1038_v3 = vrot.slane %v1036_v2, 6  ;;  %v1015_v54 = vrot.slane %v1014_v41, 2  ;;  %v1050_v43 = vshrl.u32 %v4139_v51, 16 }
  0x78   : > { %v1033_v61 = vrot.slane %v1031_v60, 7  ;;  %v1045_v48 = vshll.u32 %v6471_v22, 16  ;;  %v1041_v1 = vrot.slane %v1039_v47, 7  ;;  %v1053_v52 = vshll.u32 %v4139_v51, 16 }
  0x79   : > { %v4351_v33 = vsel %vm4006_vm6, %v1001_v14, %v1005_v35  ;;  %v1029_v45 = vrot.slane %v1028_v40, 2  ;;  %v1064_v38 = vshrl.u32 %v4146_v6, 16  ;;  %v1052_v13 = vrot.slane %v1050_v43, 6 }
  0x7a   : > { %6472 = vst [vmem:[#allocation61_spill] sm:$0xff] %v4351_v33  ;;  %v1047_v12 = vrot.slane %v1045_v48, 7  ;;  %v1042_v44 = vor.u32 %v1041_v1, %v1038_v3  ;;  %v1055_v24 = vrot.slane %v1053_v52, 7  ;;  %v6473_v32 = vcombine.high %v4139_v51, %v4139_v51 }
  0x7b   : > { %v4359_v58 = vsel %vm4006_vm6, %v1015_v54, %v1019_v8  ;;  %v4363_v42 = vsel %vm4006_vm6, %v1029_v45, %v1033_v61  ;;  %v1066_v35 = vrot.slane %v1064_v38, 6  ;;  %v1067_v14 = vshll.u32 %v4146_v6, 16 }
  0x7c   : > { %v1059_v60 = vshll.u32 %v6473_v32, 16  ;;  %6474 = vst [vmem:[#allocation62_spill] sm:$0xff] %v4359_v58  ;;  %6475 = vst [vmem:[#allocation63_spill] sm:$0xff] %v4363_v42  ;;  %v1043_v2 = vrot.slane %v1042_v44, 2  ;;  %v1056_v41 = vor.u32 %v1055_v24, %v1052_v13  ;;  %v6476_v47 = vcombine.high %v4146_v6, %v4146_v6 }
  0x7d   : > { %v1078_v51 = vshrl.u32 %v4158_v36, 16  ;;  %v1069_v3 = vrot.slane %v1067_v14, 7  ;;  %v1081_v22 = vshll.u32 %v4158_v36, 16  ;;  %v6477_v8 = vcombine.high %v4158_v36, %v4158_v36 }
  0x7e   : > { %v1073_v40 = vshll.u32 %v6476_v47, 16  ;;  %v1092_v61 = vshrl.u32 %v4166_v55, 16  ;;  %v4377_v54 = vsel %vm4006_vm6, %v1043_v2, %v1047_v12  ;;  %v1057_v1 = vrot.slane %v1056_v41, 2 }
  0x7f   : > { %v1087_v48 = vshll.u32 %v6477_v8, 16  ;;  %v1061_v43 = vrot.slane %v1059_v60, 7  ;;  %v1080_v52 = vrot.slane %v1078_v51, 6  ;;  %v1070_v6 = vor.u32 %v1069_v3, %v1066_v35 }
  0x80   : > { %v1075_v45 = vrot.slane %v1073_v40, 7  ;;  %v1083_v38 = vrot.slane %v1081_v22, 7  ;;  %v1094_v13 = vrot.slane %v1092_v61, 6  ;;  %v1095_v24 = vshll.u32 %v4166_v55, 16 }
  0x81   : > { %v1089_v44 = vrot.slane %v1087_v48, 7  ;;  %v6478_v36 = vcombine.high %v4166_v55, %v4166_v55  ;;  %v1106_v14 = vshrl.u32 %v4177_v0, 16  ;;  %v1071_v47 = vrot.slane %v1070_v6, 2 }
  0x82   : > { %v1084_v8 = vor.u32 %v1083_v38, %v1080_v52  ;;  %v1109_v12 = vshll.u32 %v4177_v0, 16  ;;  %v6479_v60 = vcombine.high %v4177_v0, %v4177_v0  ;;  %v4390_v2 = vsel %vm4006_vm6, %v1057_v1, %v1061_v43 }
  0x83   : > { %v1101_v32 = vshll.u32 %v6478_v36, 16  ;;  %6480 = vst [vmem:[#allocation64_spill] sm:$0xff] %v4390_v2  ;;  %v1097_v41 = vrot.slane %v1095_v24, 7  ;;  %v1108_v40 = vrot.slane %v1106_v14, 6  ;;  %v1120_v51 = vshrl.u32 %v4184_v7, 16 }
  0x84   : > { %v1115_v35 = vshll.u32 %v6479_v60, 16  ;;  %v4395_v55 = vsel %vm4006_vm6, %v1071_v47, %v1075_v45  ;;  %v1085_v3 = vrot.slane %v1084_v8, 2  ;;  %v1111_v48 = vrot.slane %v1109_v12, 7 }
  0x85   : > { %6481 = vst [vmem:[#allocation65_spill] sm:$0xff] %v4395_v55  ;;  %v1103_v22 = vrot.slane %v1101_v32, 7  ;;  %v1098_v61 = vor.u32 %v1097_v41, %v1094_v13  ;;  %v1122_v52 = vrot.slane %v1120_v51, 6  ;;  %v1123_v0 = vshll.u32 %v4184_v7, 16 }
  0x86   : > { %v6482_v6 = vcombine.high %v4184_v7, %v4184_v7  ;;  %v1112_v43 = vor.u32 %v1111_v48, %v1108_v40  ;;  %v1117_v38 = vrot.slane %v1115_v35, 7  ;;  %v1134_v24 = vshrl.u32 %v4197_v25, 16 }
  0x87   : > { %v1137_v36 = vshll.u32 %v4197_v25, 16  ;;  %v4405_v45 = vsel %vm4006_vm6, %v1085_v3, %v1089_v44  ;;  %v1099_v32 = vrot.slane %v1098_v61, 2  ;;  %v1125_v14 = vrot.slane %v1123_v0, 7 }
  0x88   : > { %v1129_v1 = vshll.u32 %v6482_v6, 16  ;;  %6483 = vst [vmem:[#allocation66_spill] sm:$0xff] %v4405_v45  ;;  %v6484_v13 = vcombine.high %v4197_v25, %v4197_v25  ;;  %v1113_v8 = vrot.slane %v1112_v43, 2  ;;  %v1136_v7 = vrot.slane %v1134_v24, 6  ;;  %v6496_v6 = vld [vmem:[#allocation2_spill] sm:$0xff]  ;;  %v6499_v43 = vld [vmem:[#allocation3_spill] sm:$0xff] }
  0x89   : > { %v1139_v60 = vrot.slane %v1137_v36, 7  ;;  %v1104_v35 = vsel %vm4006_vm6, %v1099_v32, %v1103_v22  ;;  %v1126_v41 = vor.u32 %v1125_v14, %v1122_v52  ;;  %v6485_v44 = vmax.bf16 %v3778_v19, %v3748_v9  ;;  %v6507_v36 = vld [vmem:[#allocation11_spill] sm:$0xff]  ;;  %v6508_v32 = vld [vmem:[#allocation5_spill] sm:$0xff] }
  0x8a   : > { %v1143_v47 = vshll.u32 %v6484_v13, 16  ;;  %v1131_v12 = vrot.slane %v1129_v1, 7  ;;  %v4420_v25 = vsel %vm4006_vm6, %v1113_v8, %v1117_v38  ;;  %v6487_v48 = vmax.bf16 %v3781_v20, %v3751_v10  ;;  %v4471_v38 = vld [vmem:[%s3718_s25 + $0x4] sm:$0x3] }
  0x8b   : > { %v4416_v51 = vmax.bf16 %v4204_v5, %v6485_v44  ;;  %6486 = vst [vmem:[#allocation67_spill] sm:$0xff] %v4420_v25  ;;  %v1140_v3 = vor.u32 %v1139_v60, %v1136_v7  ;;  %v6488_v61 = vmax.bf16 %v3784_v21, %v3754_v11  ;;  %v1127_v19 = vrot.slane %v1126_v41, 2  ;;  %v6512_v8 = vld [vmem:[#allocation6_spill] sm:$0xff]  ;;  %v4499_v41 = vld [vmem:[%s3718_s25 + $0xc] sm:$0x3] }
  0x8c   : > { %v1145_v40 = vrot.slane %v1143_v47, 7  ;;  %v4426_v22 = vmax.bf16 %v4229_v23, %v6487_v48  ;;  %v6490_v52 = vmax.bf16 %v3799_v26, %v3766_v15  ;;  %v6491_v10 = vmax.bf16 %v3802_v27, %v3769_v16  ;;  %v6498_v27 = vld [vmem:[#allocation7_spill] sm:$0xff]  ;;  %v6511_v47 = vld [vmem:[#allocation12_spill] sm:$0xff]  ;;  %v6516_v48 = vld [vmem:[#allocation14_spill] sm:$0xff] }
  0x8d   : > { %v4432_v9 = vmax.bf16 %v4233_v63, %v6488_v61  ;;  %v6492_v11 = vmax.bf16 %v3805_v28, %v3772_v17  ;;  %v1141_v63 = vrot.slane %v1140_v3, 2  ;;  %v6494_v15 = vmax.bf16 %v3811_v30, %v3775_v18  ;;  %v6503_v30 = vld [vmem:[#allocation10_spill] sm:$0xff]  ;;  %v4502_v44 = vld [vmem:[%s3718_s25 + $0x10] sm:$0x3]  ;;  %v4505_v3 = vld [vmem:[%s3718_s25 + $0x18] sm:$0x3] }
  0x8e   : > { %v4438_v0 = vmax.bf16 %v4246_v34, %v6490_v52  ;;  %v4444_v20 = vmax.bf16 %v4250_v50, %v6491_v10  ;;  %v6497_v1 = vmax.bf16 %v3814_v31, %v6496_v6  ;;  %v6500_v17 = vmax.bf16 %v6498_v27, %v6499_v43  ;;  %v6504_v31 = vld [vmem:[#allocation4_spill] sm:$0xff]  ;;  %v6520_v10 = vld [vmem:[#allocation15_spill] sm:$0xff]  ;;  %v6525_v27 = vld [vmem:[#allocation13_spill] sm:$0xff] }
  0x8f   : > { %6489 = vst [vmem:[#allocation68_spill] sm:$0xff] %v4432_v9  ;;  %v4450_v21 = vmax.bf16 %v4261_v49, %v6492_v11  ;;  %v4456_v26 = vmax.bf16 %v4269_v39, %v6494_v15  ;;  %v4475_v18 = vsel %vm4006_vm6, %v1127_v19, %v1131_v12  ;;  %v6505_v39 = vmax.bf16 %v6503_v30, %v6504_v31  ;;  %v4496_v12 = vld [vmem:[%s3718_s25 + $0x8] sm:$0x3]  ;;  %v6517_v61 = vld [vmem:[#allocation8_spill] sm:$0xff]  ;;  %v6521_v11 = vld [vmem:[#allocation9_spill] sm:$0xff] }
  0x90   : > { %v4462_v16 = vmax.bf16 %v4279_v56, %v6497_v1  ;;  %v4468_v28 = vmax.bf16 %v4287_v53, %v6500_v17  ;;  %6502 = vst [vmem:[#allocation7_spill] sm:$0xff] %v4475_v18  ;;  %v6509_v14 = vmax.bf16 %v6507_v36, %v6508_v32  ;;  %v6513_v7 = vmax.bf16 %v6511_v47, %v6512_v8  ;;  %v6524_v1 = vld [vmem:[#allocation16_spill] sm:$0xff]  ;;  %v4536_v30 = vld [vmem:[%s3718_s25 + $0x24] sm:$0x3]  ;;  %v4539_v31 = vld [vmem:[%s3718_s25 + $0x2c] sm:$0x3] }
  0x91   : > { %6493 = vst [vmem:[#allocation69_spill] sm:$0xff] %v4450_v21  ;;  %6495 = vst [vmem:[#allocation70_spill] sm:$0xff] %v4456_v26  ;;  %v4481_v24 = vmax.bf16 %v4291_v29, %v6505_v39  ;;  %v6518_v19 = vmax.bf16 %v6516_v48, %v6517_v61  ;;  %v6522_v15 = vmax.bf16 %v6520_v10, %v6521_v11  ;;  %v6529_v39 = vld [vmem:[#allocation20_spill] sm:$0xff]  ;;  %v6530_v36 = vld [vmem:[#allocation17_spill] sm:$0xff] }
  0x92   : > { %6501 = vst [vmem:[#allocation2_spill] sm:$0xff] %v4468_v28  ;;  %v4487_v13 = vmax.bf16 %v4305_v4, %v6509_v14  ;;  %v4493_v60 = vmax.bf16 %v4318_v57, %v6513_v7  ;;  %v4509_v4 = vsel %vm4006_vm6, %v1141_v63, %v1145_v40  ;;  %v6526_v43 = vmax.bf16 %v6524_v1, %v6525_v27  ;;  %v4530_v40 = vld [vmem:[%s3718_s25 + $0x1c] sm:$0x3]  ;;  %v4533_v63 = vld [vmem:[%s3718_s25 + $0x20] sm:$0x3]  ;;  %v6538_v61 = vld [vmem:[#allocation19_spill] sm:$0xff] }
  0x93   : > { %6506 = vst [vmem:[#allocation3_spill] sm:$0xff] %v4481_v24  ;;  %6515 = vst [vmem:[#allocation11_spill] sm:$0xff] %v4509_v4  ;;  %v4515_v52 = vmax.bf16 %v4323_v59, %v6518_v19  ;;  %v4521_v6 = vmax.bf16 %v4333_v46, %v6522_v15  ;;  %v6531_v32 = vmax.bf16 %v6529_v39, %v6530_v36  ;;  %v6533_v47 = vld [vmem:[#allocation21_spill] sm:$0xff]  ;;  %v6537_v48 = vld [vmem:[#allocation22_spill] sm:$0xff] }
  0x94   : > { %6510 = vst [vmem:[#allocation10_spill] sm:$0xff] %v4487_v13  ;;  %6514 = vst [vmem:[#allocation4_spill] sm:$0xff] %v4493_v60  ;;  %v4527_v17 = vmax.bf16 %v4341_v62, %v6526_v43  ;;  %v6534_v62 = vld [vmem:[#allocation18_spill] sm:$0xff]  ;;  %v6539_v19 = vmax.bf16 %v6537_v48, %v6538_v61  ;;  %v6541_v11 = vld [vmem:[#allocation24_spill] sm:$0xff] }
  0x95   : > { %6519 = vst [vmem:[#allocation5_spill] sm:$0xff] %v4515_v52  ;;  %6523 = vst [vmem:[#allocation12_spill] sm:$0xff] %v4521_v6  ;;  %v4545_v14 = vmax.bf16 %v4351_v33, %v6531_v32  ;;  %v6535_v8 = vmax.bf16 %v6533_v47, %v6534_v62  ;;  %v6542_v15 = vld [vmem:[#allocation23_spill] sm:$0xff]  ;;  %v4566_v43 = vld [vmem:[%s3718_s25 + $0x30] sm:$0x3] }
  0x96   : > { %6527 = vst [vmem:[#allocation6_spill] sm:$0xff] %v4527_v17  ;;  %6528 = vst [vmem:[#allocation14_spill] sm:$0xff] %v4539_v31  ;;  %v4557_v10 = vmax.bf16 %v4363_v42, %v6539_v19  ;;  %v6543_v1 = vmax.bf16 %v6541_v11, %v6542_v15  ;;  %v4569_v39 = vld [vmem:[%s3718_s25 + $0x34] sm:$0x3]  ;;  %v4572_v36 = vld [vmem:[%s3718_s25 + $0x38] sm:$0x3] }
  0x97   : > { %6532 = vst [vmem:[#allocation8_spill] sm:$0xff] %v4545_v14  ;;  %v4551_v7 = vmax.bf16 %v4359_v58, %v6535_v8  ;;  %v6545_v32 = vld [vmem:[#allocation27_spill] sm:$0xff]  ;;  %v6546_v47 = vld [vmem:[#allocation25_spill] sm:$0xff]  ;;  %v6549_v48 = vld [vmem:[#allocation30_spill] sm:$0xff] }
  0x98   : > { %6540 = vst [vmem:[#allocation9_spill] sm:$0xff] %v4557_v10  ;;  %v4563_v27 = vmax.bf16 %v4377_v54, %v6543_v1  ;;  %v6547_v62 = vmax.bf16 %v6545_v32, %v6546_v47  ;;  %v6550_v61 = vld [vmem:[#allocation26_spill] sm:$0xff]  ;;  %v6553_v11 = vld [vmem:[#allocation31_spill] sm:$0xff]  ;;  %v6554_v15 = vld [vmem:[#allocation28_spill] sm:$0xff] }
  0x99   : > { %6536 = vst [vmem:[#allocation15_spill] sm:$0xff] %v4551_v7  ;;  %v6551_v19 = vmax.bf16 %v6549_v48, %v6550_v61  ;;  %v6555_v1 = vmax.bf16 %v6553_v11, %v6554_v15  ;;  %v6557_v58 = vld [vmem:[#allocation35_spill] sm:$0xff]  ;;  %v6558_v33 = vld [vmem:[#allocation29_spill] sm:$0xff]  ;;  %v6562_v61 = vld [vmem:[#allocation36_spill] sm:$0xff] }
  0x9a   : > { %6544 = vst [vmem:[#allocation16_spill] sm:$0xff] %v4563_v27  ;;  %v4578_v8 = vmax.bf16 %v4390_v2, %v6547_v62  ;;  %v6559_v32 = vmax.bf16 %v6557_v58, %v6558_v33  ;;  %v4598_v62 = vld [vmem:[%s3718_s25 + $0x40] sm:$0x3]  ;;  %v4601_v2 = vld [vmem:[%s3718_s25 + $0x44] sm:$0x3]  ;;  %v6566_v15 = vld [vmem:[#allocation37_spill] sm:$0xff] }
  0x9b   : > { %v4584_v54 = vmax.bf16 %v4395_v55, %v6551_v19  ;;  %v4590_v42 = vmax.bf16 %v4405_v45, %v6555_v1  ;;  %6561 = vst [vmem:[#allocation18_spill] sm:$0xff] %v4598_v62  ;;  %v4604_v48 = vld [vmem:[%s3718_s25 + $0x48] sm:$0x3]  ;;  %v6563_v19 = vld [vmem:[#allocation32_spill] sm:$0xff]  ;;  %v6567_v1 = vld [vmem:[#allocation33_spill] sm:$0xff] }
  0x9c   : > { %6548 = vst [vmem:[#allocation13_spill] sm:$0xff] %v4578_v8  ;;  %v4595_v47 = vmax.bf16 %v1104_v35, %v6559_v32  ;;  %v6564_v55 = vmax.bf16 %v6562_v61, %v6563_v19  ;;  %v6568_v45 = vmax.bf16 %v6566_v15, %v6567_v1  ;;  %v6570_v58 = vld [vmem:[#allocation38_spill] sm:$0xff]  ;;  %v4625_v59 = vld [vmem:[%s3718_s25 + $0x4c] sm:$0x3]  ;;  %v4628_v61 = vld [vmem:[%s3718_s25 + $0x54] sm:$0x3] }
  0x9d   : > { %6552 = vst [vmem:[#allocation20_spill] sm:$0xff] %v4584_v54  ;;  %6556 = vst [vmem:[#allocation17_spill] sm:$0xff] %v4590_v42  ;;  %v6571_v35 = vld [vmem:[#allocation34_spill] sm:$0xff]  ;;  %v4631_v19 = vld [vmem:[%s3718_s25 + $0x58] sm:$0x3] }
  0x9e   : > { %6560 = vst [vmem:[#allocation21_spill] sm:$0xff] %v4595_v47  ;;  %v4610_v11 = vmax.bf16 %v4420_v25, %v6564_v55  ;;  %v4616_v33 = vmax.bf16 %v4475_v18, %v6568_v45  ;;  %v6572_v32 = vmax.bf16 %v6570_v58, %v6571_v35  ;;  %6574 = vst [vmem:[#allocation23_spill] sm:$0xff] %v4628_v61  ;;  %v6576_v55 = vld [vmem:[#allocation41_spill] sm:$0xff]  ;;  %v4639_v45 = vld [vmem:[%s3718_s25 + $0x60] sm:$0x3] }
  0x9f   : > { %6575 = vst [vmem:[#allocation27_spill] sm:$0xff] %v4631_v19  ;;  %v4636_v1 = vld [vmem:[%s3718_s25 + $0x5c] sm:$0x3]  ;;  %6578 = vst [vmem:[#allocation30_spill] sm:$0xff] %v4639_v45  ;;  %v4642_v58 = vld [vmem:[%s3718_s25 + $0x68] sm:$0x3] }
  0xa0   : > { %6565 = vst [vmem:[#allocation22_spill] sm:$0xff] %v4610_v11  ;;  %6569 = vst [vmem:[#allocation19_spill] sm:$0xff] %v4616_v33  ;;  %v4622_v46 = vmax.bf16 %v4509_v4, %v6572_v32  ;;  %v6580_v35 = vld [vmem:[#allocation43_spill] sm:$0xff]  ;;  %v6581_v4 = vld [vmem:[#allocation45_spill] sm:$0xff] }
  0xa1   : > { %6577 = vst [vmem:[#allocation25_spill] sm:$0xff] %v4636_v1  ;;  %6579 = vst [vmem:[#allocation26_spill] sm:$0xff] %v4642_v58  ;;  %v6582_v25 = vld [vmem:[#allocation46_spill] sm:$0xff]  ;;  %v4653_v53 = vld [vmem:[%s3718_s25 + $0x6c] sm:$0x3] }
  0xa2   : > { %6573 = vst [vmem:[#allocation24_spill] sm:$0xff] %v4622_v46  ;;  %6584 = vst [vmem:[#allocation31_spill] sm:$0xff] %v4653_v53  ;;  %v4656_v56 = vld [vmem:[%s3718_s25 + $0x70] sm:$0x3]  ;;  %v4659_v49 = vld [vmem:[%s3718_s25 + $0x74] sm:$0x3] }
  0xa3   : > { %6585 = vst [vmem:[#allocation28_spill] sm:$0xff] %v4656_v56  ;;  %6586 = vst [vmem:[#allocation35_spill] sm:$0xff] %v4659_v49  ;;  %v6587_v50 = vld [vmem:[#allocation49_spill] sm:$0xff]  ;;  %v4673_v23 = vld [vmem:[%s3718_s25 + $0x80] sm:$0x3] }
  0xa4   : > { %v4670_v34 = vld [vmem:[%s3718_s25 + $0x7c] sm:$0x3]  ;;  %6589 = vst [vmem:[#allocation36_spill] sm:$0xff] %v4673_v23  ;;  %v4676_v5 = vld [vmem:[%s3718_s25 + $0x84] sm:$0x3] }
  0xa5   : > { %6588 = vst [vmem:[#allocation29_spill] sm:$0xff] %v4670_v34  ;;  %6590 = vst [vmem:[#allocation32_spill] sm:$0xff] %v4676_v5  ;;  %v4687_v32 = vld [vmem:[%s3718_s25 + $0x88] sm:$0x3]  ;;  %v4690_v9 = vld [vmem:[%s3718_s25 + $0x90] sm:$0x3] }
  0xa6   : > { %6591 = vst [vmem:[#allocation37_spill] sm:$0xff] %v4687_v32  ;;  %6592 = vst [vmem:[#allocation33_spill] sm:$0xff] %v4690_v9  ;;  %v4693_v31 = vld [vmem:[%s3718_s25 + $0x94] sm:$0x3]  ;;  %v4704_v26 = vld [vmem:[%s3718_s25 + $0x98] sm:$0x3] }
  0xa7   : > { %6593 = vst [vmem:[#allocation38_spill] sm:$0xff] %v4693_v31  ;;  %6594 = vst [vmem:[#allocation34_spill] sm:$0xff] %v4704_v26  ;;  %v3539_v28 = vld.sshfl [vmem:[%s3718_s25 + $0x10] sm:$0x13 pattern:$0x76325410] }
  0xa8   : > { %v3543_v57 = vld.sshfl [vmem:[%s3718_s25 + $0x24] sm:$0x13 pattern:$0x76325410]  ;;  %v4717_v24 = vld [vmem:[%s3718_s25 + $0x9c] sm:$0x3]  ;;  %v1371_v34 = vcombine.high %v3539_v28, %v3539_v28 }
  0xa9   : > { %6595 = vst [vmem:[#allocation41_spill] sm:$0xff] %v4717_v24  ;;  %v3547_v6 = vld.sshfl [vmem:[%s3718_s25 + $0x38] sm:$0x13 pattern:$0x76325410]  ;;  %v1403_v10 = vcombine.high %v3543_v57, %v3543_v57  ;;  %v1639_v11 = vshrl.u32 %v3539_v28, 16 }
  0xaa   : > { %v3551_v18 = vld.sshfl [vmem:[%s3718_s25 + $0x4c] sm:$0x13 pattern:$0x76325410]  ;;  %v1435_v54 = vcombine.high %v3547_v6, %v3547_v6  ;;  %v1642_v31 = vshll.u32 %v3539_v28, 16  ;;  %v1648_v29 = vshll.u32 %v1371_v34, 16 }
  0xab   : > { %v3555_v7 = vld.sshfl [vmem:[%s3718_s25 + $0x60] sm:$0x13 pattern:$0x76325410]  ;;  %v1467_v15 = vcombine.high %v3551_v18, %v3551_v18  ;;  %v1695_v33 = vshrl.u32 %v3543_v57, 16  ;;  %v1698_v26 = vshll.u32 %v3543_v57, 16 }
  0xac   : > { %v3559_v27 = vld.sshfl [vmem:[%s3718_s25 + $0x74] sm:$0x13 pattern:$0x76325410]  ;;  %v1499_v42 = vcombine.high %v3555_v7, %v3555_v7  ;;  %v1704_v47 = vshll.u32 %v1403_v10, 16  ;;  %v1641_v9 = vrot.slane %v1639_v11, 6 }
  0xad   : > { %v4746_v58 = vld.sshfl [vmem:[%s3718_s25 + $0x88] sm:$0x13 pattern:$0x76325410]  ;;  %v1531_v62 = vcombine.high %v3559_v27, %v3559_v27  ;;  %v1644_v5 = vrot.slane %v1642_v31, 7  ;;  %v1751_v17 = vshrl.u32 %v3547_v6, 16 }
  0xae   : > { %v4749_v32 = vld.sshfl [vmem:[%s3718_s25 + $0x9c] sm:$0x13 pattern:$0x76325410]  ;;  %v1563_v21 = vcombine.high %v4746_v58, %v4746_v58  ;;  %v1754_v46 = vshll.u32 %v3547_v6, 16  ;;  %v1650_v8 = vrot.slane %v1648_v29, 7 }
  0xaf   : > { %v1595_v24 = vcombine.high %v4749_v32, %v4749_v32  ;;  %v1697_v23 = vrot.slane %v1695_v33, 6  ;;  %v1700_v49 = vrot.slane %v1698_v26, 7  ;;  %v1645_v56 = vor.u32 %v1644_v5, %v1641_v9 }
  0xb0   : > { %v1753_v14 = vrot.slane %v1751_v17, 6  ;;  %v1756_v53 = vrot.slane %v1754_v46, 7  ;;  %v1760_v45 = vshll.u32 %v1435_v54, 16  ;;  %v1807_v28 = vshrl.u32 %v3551_v18, 16 }
  0xb1   : > { %v1701_v52 = vor.u32 %v1700_v49, %v1697_v23  ;;  %v1810_v34 = vshll.u32 %v3551_v18, 16  ;;  %v1816_v1 = vshll.u32 %v1467_v15, 16  ;;  %v1646_v57 = vrot.slane %v1645_v56, 2 }
  0xb2   : > { %v1706_v10 = vrot.slane %v1704_v47, 7  ;;  %v1757_v11 = vor.u32 %v1756_v53, %v1753_v14  ;;  %v1863_v31 = vshrl.u32 %v3555_v7, 16  ;;  %v1762_v6 = vrot.slane %v1760_v45, 7 }
  0xb3   : > { %v1702_v60 = vrot.slane %v1701_v52, 2  ;;  %v1809_v19 = vrot.slane %v1807_v28, 6  ;;  %v1812_v13 = vrot.slane %v1810_v34, 7  ;;  %v1818_v29 = vrot.slane %v1816_v1, 7 }
  0xb4   : > { %v1758_v61 = vrot.slane %v1757_v11, 2  ;;  %v1865_v33 = vrot.slane %v1863_v31, 6  ;;  %v1866_v26 = vshll.u32 %v3555_v7, 16  ;;  %v1651_v5 = vsel %vm4006_vm6, %v1646_v57, %v1650_v8  ;;  %v6596_v31 = vld [vmem:[#allocation40_spill] sm:$0xff] }
  0xb5   : > { %v1813_v46 = vor.u32 %v1812_v13, %v1809_v19  ;;  %v1872_v23 = vshll.u32 %v1499_v42, 16  ;;  %v1919_v49 = vshrl.u32 %v3559_v27, 16  ;;  %v1707_v56 = vsel %vm4006_vm6, %v1702_v60, %v1706_v10 }
  0xb6   : > { %v1868_v53 = vrot.slane %v1866_v26, 7  ;;  %v1922_v9 = vshll.u32 %v3559_v27, 16  ;;  %v1928_v18 = vshll.u32 %v1531_v62, 16  ;;  %v1763_v52 = vsel %vm4006_vm6, %v1758_v61, %v1762_v6 }
  0xb7   : > { %v1814_v17 = vrot.slane %v1813_v46, 2  ;;  %v1921_v14 = vrot.slane %v1919_v49, 6  ;;  %v1975_v7 = vshrl.u32 %v4746_v58, 16  ;;  %v1874_v47 = vrot.slane %v1872_v23, 7 }
  0xb8   : > { %v1869_v54 = vor.u32 %v1868_v53, %v1865_v33  ;;  %v1924_v8 = vrot.slane %v1922_v9, 7  ;;  %v1978_v42 = vshll.u32 %v4746_v58, 16  ;;  %v1930_v13 = vrot.slane %v1928_v18, 7  ;;  %v6605_v9 = vld [vmem:[#allocation48_spill] sm:$0xff] }
  0xb9   : > { %v1977_v19 = vrot.slane %v1975_v7, 6  ;;  %v1984_v15 = vshll.u32 %v1563_v21, 16  ;;  %v2031_v60 = vshrl.u32 %v4749_v32, 16  ;;  %v2034_v61 = vshll.u32 %v4749_v32, 16  ;;  %v6599_v32 = vld [vmem:[#allocation42_spill] sm:$0xff] }
  0xba   : > { %v1870_v27 = vrot.slane %v1869_v54, 2  ;;  %v1925_v62 = vor.u32 %v1924_v8, %v1921_v14  ;;  %v1980_v1 = vrot.slane %v1978_v42, 7  ;;  %v1819_v45 = vsel %vm4006_vm6, %v1814_v17, %v1818_v29  ;;  %v6609_v17 = vld [vmem:[#allocation50_spill] sm:$0xff]  ;;  %v6611_v54 = vld [vmem:[#allocation51_spill] sm:$0xff]  ;;  %v6616_v42 = vld [vmem:[#allocation68_spill] sm:$0xff] }
  0xbb   : > { %v1986_v28 = vrot.slane %v1984_v15, 7  ;;  %v2033_v34 = vrot.slane %v2031_v60, 6  ;;  %v2040_v57 = vshll.u32 %v1595_v24, 16  ;;  %v2036_v58 = vrot.slane %v2034_v61, 7  ;;  %v6601_v24 = vld [vmem:[#allocation44_spill] sm:$0xff]  ;;  %v6624_v60 = vld [vmem:[#allocation69_spill] sm:$0xff] }
  0xbc   : > { %v1926_v10 = vrot.slane %v1925_v62, 2  ;;  %v1981_v11 = vor.u32 %v1980_v1, %v1977_v19  ;;  %v6597_v21 = vmax.bf16 %v4471_v38, %v6576_v55  ;;  %v1875_v33 = vsel %vm4006_vm6, %v1870_v27, %v1874_v47  ;;  %v6627_v1 = vld [vmem:[#allocation55_spill] sm:$0xff]  ;;  %v6628_v61 = vld [vmem:[#allocation18_spill] sm:$0xff] }
  0xbd   : > { %v2042_v26 = vrot.slane %v2040_v57, 7  ;;  %v6600_v29 = vmax.bf16 %v4496_v12, %v6580_v35  ;;  %v6602_v23 = vmax.bf16 %v4499_v41, %v6581_v4  ;;  %v2037_v12 = vor.u32 %v2036_v58, %v2033_v34  ;;  %v6606_v41 = vld [vmem:[#allocation47_spill] sm:$0xff] }
  0xbe   : > { %v4772_v6 = vmax.bf16 %v6597_v21, %v6596_v31  ;;  %v1931_v38 = vsel %vm4006_vm6, %v1926_v10, %v1930_v13  ;;  %v1982_v55 = vrot.slane %v1981_v11, 2  ;;  %v6603_v35 = vmax.bf16 %v4502_v44, %v6582_v25  ;;  %v6635_v10 = vld [vmem:[#allocation2_spill] sm:$0xff]  ;;  %v6637_v31 = vld [vmem:[#allocation3_spill] sm:$0xff] }
  0xbf   : > { %v4780_v46 = vmax.bf16 %v6600_v29, %v6599_v32  ;;  %v4786_v49 = vmax.bf16 %v6602_v23, %v6601_v24  ;;  %v6607_v4 = vmax.bf16 %v4505_v3, %v6606_v41  ;;  %v6610_v14 = vmax.bf16 %v4530_v40, %v6587_v50  ;;  %v6614_v40 = vld [vmem:[#allocation52_spill] sm:$0xff]  ;;  %v6641_v32 = vld [vmem:[#allocation23_spill] sm:$0xff]  ;;  %v6642_v29 = vld [vmem:[#allocation10_spill] sm:$0xff] }
  0xc0   : > { %6598 = vst [vmem:[#allocation43_spill] sm:$0xff] %v4772_v6  ;;  %v4798_v53 = vmax.bf16 %v1651_v5, %v6603_v35  ;;  %v6612_v47 = vmax.bf16 %v4533_v63, %v4416_v51  ;;  %v6613_v25 = vmax.bf16 %v4536_v30, %v4426_v22  ;;  %v1987_v3 = vsel %vm4006_vm6, %v1982_v55, %v1986_v28  ;;  %v6615_v5 = vld [vmem:[#allocation14_spill] sm:$0xff]  ;;  %v6619_v63 = vld [vmem:[#allocation53_spill] sm:$0xff]  ;;  %v6648_v35 = vld [vmem:[#allocation4_spill] sm:$0xff] }
  0xc1   : > { %v4804_v18 = vmax.bf16 %v6607_v4, %v6605_v9  ;;  %v4810_v7 = vmax.bf16 %v6610_v14, %v6609_v17  ;;  %v2038_v50 = vrot.slane %v2037_v12, 2  ;;  %v6617_v13 = vmax.bf16 %v6615_v5, %v6616_v42  ;;  %v6629_v28 = vld [vmem:[#allocation70_spill] sm:$0xff]  ;;  %v4893_v12 = vld [vmem:[%s4791_s29 + $0xa] sm:$0x3]  ;;  %v6650_v4 = vld [vmem:[#allocation60_spill] sm:$0xff]  ;;  %6721 = vst [vmem:[#allocation4_spill] sm:$0xff] %v5058_v37 }
  0xc2   : > { %6604 = vst [vmem:[#allocation45_spill] sm:$0xff] %v4798_v53  ;;  %v4816_v8 = vmax.bf16 %v6612_v47, %v6611_v54  ;;  %v4821_v44 = vmax.bf16 %v1707_v56, %v6613_v25  ;;  %v6620_v22 = vmax.bf16 %v4566_v43, %v4438_v0  ;;  %v6621_v56 = vld [vmem:[#allocation54_spill] sm:$0xff]  ;;  %v6622_v19 = vmax.bf16 %v4569_v39, %v4444_v20  ;;  %v6632_v43 = vld [vmem:[#allocation56_spill] sm:$0xff]  ;;  %v6651_v17 = vld [vmem:[#allocation25_spill] sm:$0xff] }
  0xc3   : > { %6608 = vst [vmem:[#allocation46_spill] sm:$0xff] %v4804_v18  ;;  %v4829_v51 = vmax.bf16 %v6617_v13, %v6614_v40  ;;  %v6625_v27 = vmax.bf16 %v4572_v36, %v6624_v60  ;;  %v6630_v34 = vmax.bf16 %v6628_v61, %v6629_v28  ;;  %v6633_v57 = vmax.bf16 %v4601_v2, %v4462_v16  ;;  %v4862_v39 = vld [vmem:[%s4791_s29] sm:$0x3]  ;;  %v4884_v55 = vld [vmem:[%s4791_s29 + $0x2] sm:$0x3]  ;;  %v6652_v14 = vld [vmem:[#allocation5_spill] sm:$0xff] }
  0xc4   : > { %v4835_v30 = vmax.bf16 %v6620_v22, %v6619_v63  ;;  %v4842_v15 = vmax.bf16 %v6622_v19, %v6621_v56  ;;  %v2043_v36 = vsel %vm4006_vm6, %v2038_v50, %v2042_v26  ;;  %v6636_v11 = vmax.bf16 %v4604_v48, %v6635_v10  ;;  %v6640_v16 = vld [vmem:[#allocation58_spill] sm:$0xff]  ;;  %6645 = vst [vmem:[#allocation50_spill] sm:$0xff] %v4893_v12  ;;  %v6655_v50 = vld [vmem:[#allocation12_spill] sm:$0xff]  ;;  %v6658_v42 = vld [vmem:[#allocation61_spill] sm:$0xff] }
  0xc5   : > { %6618 = vst [vmem:[#allocation49_spill] sm:$0xff] %v4829_v51  ;;  %v4847_v62 = vmax.bf16 %v1763_v52, %v6625_v27  ;;  %v4853_v0 = vmax.bf16 %v6630_v34, %v6627_v1  ;;  %v4859_v20 = vmax.bf16 %v6633_v57, %v6632_v43  ;;  %v6634_v52 = vld [vmem:[#allocation57_spill] sm:$0xff]  ;;  %v6638_v21 = vmax.bf16 %v4625_v59, %v6637_v31  ;;  %v4887_v26 = vld [vmem:[%s4791_s29 + $0x4] sm:$0x3]  ;;  %v4890_v48 = vld [vmem:[%s4791_s29 + $0x6] sm:$0x3] }
  0xc6   : > { %6623 = vst [vmem:[#allocation40_spill] sm:$0xff] %v4842_v15  ;;  %v4870_v58 = vmax.bf16 %v6636_v11, %v6634_v52  ;;  %v6643_v24 = vmax.bf16 %v6641_v32, %v6642_v29  ;;  %v6646_v59 = vld [vmem:[#allocation59_spill] sm:$0xff]  ;;  %v6653_v54 = vmax.bf16 %v6651_v17, %v6652_v14  ;;  %v6654_v25 = vld [vmem:[#allocation30_spill] sm:$0xff]  ;;  %v4925_v27 = vld [vmem:[%s4791_s29 + $0x10] sm:$0x3] }
  0xc7   : > { %6626 = vst [vmem:[#allocation42_spill] sm:$0xff] %v4847_v62  ;;  %6631 = vst [vmem:[#allocation44_spill] sm:$0xff] %v4853_v0  ;;  %v4875_v2 = vmax.bf16 %v1819_v45, %v6638_v21  ;;  %v6647_v45 = vld [vmem:[#allocation27_spill] sm:$0xff]  ;;  %v6656_v40 = vmax.bf16 %v6654_v25, %v6655_v50  ;;  %v6659_v13 = vld [vmem:[#allocation26_spill] sm:$0xff] }
  0xc8   : > { %v4881_v23 = vmax.bf16 %v6643_v24, %v6640_v16  ;;  %v6649_v9 = vmax.bf16 %v6647_v45, %v6648_v35  ;;  %v4905_v47 = vmax.bf16 %v6653_v54, %v6650_v4  ;;  %v6660_v63 = vld [vmem:[#allocation6_spill] sm:$0xff]  ;;  %v4919_v19 = vld [vmem:[%s4791_s29 + $0xc] sm:$0x3]  ;;  %v4922_v60 = vld [vmem:[%s4791_s29 + $0xe] sm:$0x3] }
  0xc9   : > { %6639 = vst [vmem:[#allocation48_spill] sm:$0xff] %v4875_v2  ;;  %v4910_v5 = vmax.bf16 %v1875_v33, %v6656_v40  ;;  %v6661_v22 = vmax.bf16 %v6659_v13, %v6660_v63  ;;  %v4928_v1 = vld [vmem:[%s4791_s29 + $0x14] sm:$0x3]  ;;  %v6664_v61 = vld [vmem:[#allocation62_spill] sm:$0xff]  ;;  %v6665_v33 = vld [vmem:[#allocation31_spill] sm:$0xff] }
  0xca   : > { %6644 = vst [vmem:[#allocation47_spill] sm:$0xff] %v4881_v23  ;;  %v4899_v41 = vmax.bf16 %v6649_v9, %v6646_v59  ;;  %6663 = vst [vmem:[#allocation14_spill] sm:$0xff] %v4928_v1  ;;  %v6666_v28 = vld [vmem:[#allocation8_spill] sm:$0xff]  ;;  %v6668_v57 = vld [vmem:[#allocation63_spill] sm:$0xff] }
  0xcb   : > { %6657 = vst [vmem:[#allocation51_spill] sm:$0xff] %v4910_v5  ;;  %v4916_v56 = vmax.bf16 %v6661_v22, %v6658_v42  ;;  %v6667_v34 = vmax.bf16 %v6665_v33, %v6666_v28  ;;  %v6669_v52 = vld [vmem:[#allocation28_spill] sm:$0xff]  ;;  %v6670_v10 = vld [vmem:[#allocation15_spill] sm:$0xff]  ;;  %v6673_v16 = vld [vmem:[#allocation9_spill] sm:$0xff] }
  0xcc   : > { %v6671_v11 = vmax.bf16 %v6669_v52, %v6670_v10  ;;  %v6672_v21 = vld [vmem:[#allocation35_spill] sm:$0xff]  ;;  %v6676_v24 = vld [vmem:[#allocation64_spill] sm:$0xff]  ;;  %v6677_v59 = vld [vmem:[#allocation29_spill] sm:$0xff] }
  0xcd   : > { %6662 = vst [vmem:[#allocation52_spill] sm:$0xff] %v4916_v56  ;;  %v4934_v43 = vmax.bf16 %v6667_v34, %v6664_v61  ;;  %v6674_v32 = vmax.bf16 %v6672_v21, %v6673_v16  ;;  %v6678_v45 = vld [vmem:[#allocation16_spill] sm:$0xff]  ;;  %v4957_v17 = vld [vmem:[%s4791_s29 + $0x18] sm:$0x3]  ;;  %v4960_v14 = vld [vmem:[%s4791_s29 + $0x1a] sm:$0x3] }
  0xce   : > { %v4940_v31 = vmax.bf16 %v6671_v11, %v6668_v57  ;;  %v6679_v35 = vmax.bf16 %v6677_v59, %v6678_v45  ;;  %v4954_v4 = vld [vmem:[%s4791_s29 + $0x16] sm:$0x3]  ;;  %v4963_v54 = vld [vmem:[%s4791_s29 + $0x1e] sm:$0x3]  ;;  %v6686_v13 = vld [vmem:[#allocation66_spill] sm:$0xff] }
  0xcf   : > { %v4945_v29 = vmax.bf16 %v1931_v38, %v6674_v32  ;;  %v6681_v38 = vld [vmem:[#allocation65_spill] sm:$0xff]  ;;  %v6682_v25 = vld [vmem:[#allocation36_spill] sm:$0xff]  ;;  %v6695_v10 = vld [vmem:[#allocation67_spill] sm:$0xff] }
  0xd0   : > { %v4951_v9 = vmax.bf16 %v6679_v35, %v6676_v24  ;;  %v6683_v50 = vld [vmem:[#allocation13_spill] sm:$0xff]  ;;  %v6687_v63 = vld [vmem:[#allocation32_spill] sm:$0xff]  ;;  %v4989_v24 = vld [vmem:[%s4791_s29 + $0x20] sm:$0x3] }
  0xd1   : > { %6675 = vst [vmem:[#allocation68_spill] sm:$0xff] %v4945_v29  ;;  %v6684_v40 = vmax.bf16 %v6682_v25, %v6683_v50  ;;  %v6688_v22 = vld [vmem:[#allocation20_spill] sm:$0xff]  ;;  %v6691_v28 = vld [vmem:[#allocation37_spill] sm:$0xff]  ;;  %v4992_v59 = vld [vmem:[%s4791_s29 + $0x22] sm:$0x3] }
  0xd2   : > { %6680 = vst [vmem:[#allocation53_spill] sm:$0xff] %v4951_v9  ;;  %v6689_v61 = vmax.bf16 %v6687_v63, %v6688_v22  ;;  %v6692_v34 = vld [vmem:[#allocation17_spill] sm:$0xff]  ;;  %v4995_v45 = vld [vmem:[%s4791_s29 + $0x24] sm:$0x3]  ;;  %v4998_v35 = vld [vmem:[%s4791_s29 + $0x28] sm:$0x3] }
  0xd3   : > { %v4969_v42 = vmax.bf16 %v6684_v40, %v6681_v38  ;;  %v6693_v57 = vmax.bf16 %v6691_v28, %v6692_v34  ;;  %v6696_v11 = vld [vmem:[#allocation33_spill] sm:$0xff]  ;;  %6700 = vst [vmem:[#allocation70_spill] sm:$0xff] %v4995_v45  ;;  %6701 = vst [vmem:[#allocation56_spill] sm:$0xff] %v4998_v35  ;;  %v6702_v38 = vld [vmem:[#allocation7_spill] sm:$0xff] }
  0xd4   : > { %v4975_v33 = vmax.bf16 %v6689_v61, %v6686_v13  ;;  %v6697_v21 = vld [vmem:[#allocation21_spill] sm:$0xff]  ;;  %v6703_v25 = vld [vmem:[#allocation38_spill] sm:$0xff]  ;;  %v6707_v13 = vld [vmem:[#allocation11_spill] sm:$0xff] }
  0xd5   : > { %6685 = vst [vmem:[#allocation54_spill] sm:$0xff] %v4969_v42  ;;  %v4980_v52 = vmax.bf16 %v1987_v3, %v6693_v57  ;;  %v6698_v16 = vmax.bf16 %v6696_v11, %v6697_v21  ;;  %v6704_v3 = vld [vmem:[#allocation22_spill] sm:$0xff]  ;;  %v6709_v22 = vld [vmem:[#allocation19_spill] sm:$0xff]  ;;  %v6712_v34 = vld [vmem:[#allocation41_spill] sm:$0xff] }
  0xd6   : > { %6690 = vst [vmem:[#allocation69_spill] sm:$0xff] %v4975_v33  ;;  %v6705_v50 = vmax.bf16 %v6703_v25, %v6704_v3  ;;  %v6708_v63 = vld [vmem:[#allocation34_spill] sm:$0xff]  ;;  %v6713_v57 = vld [vmem:[#allocation24_spill] sm:$0xff]  ;;  %v5018_v21 = vld [vmem:[%s4791_s29 + $0x2a] sm:$0x3] }
  0xd7   : > { %6694 = vst [vmem:[#allocation55_spill] sm:$0xff] %v4980_v52  ;;  %v4986_v32 = vmax.bf16 %v6698_v16, %v6695_v10  ;;  %v6710_v61 = vmax.bf16 %v6708_v63, %v6709_v22  ;;  %v6714_v10 = vmax.bf16 %v6712_v34, %v6713_v57  ;;  %v5021_v16 = vld [vmem:[%s4791_s29 + $0x2c] sm:$0x3]  ;;  %v5027_v25 = vld [vmem:[%s4791_s29 + $0x32] sm:$0x3] }
  0xd8   : > { %v5004_v40 = vmax.bf16 %v6705_v50, %v6702_v38  ;;  %v5024_v38 = vld [vmem:[%s4791_s29 + $0x2e] sm:$0x3]  ;;  %6717 = vst [vmem:[#allocation23_spill] sm:$0xff] %v5027_v25  ;;  %v5032_v50 = vld [vmem:[%s4791_s29 + $0x34] sm:$0x3] }
  0xd9   : > { %6699 = vst [vmem:[#allocation18_spill] sm:$0xff] %v4986_v32  ;;  %v5010_v28 = vmax.bf16 %v6710_v61, %v6707_v13  ;;  %v5015_v11 = vmax.bf16 %v2043_v36, %v6714_v10  ;;  %6716 = vst [vmem:[#allocation58_spill] sm:$0xff] %v5024_v38  ;;  %v5035_v13 = vld [vmem:[%s4791_s29 + $0x36] sm:$0x3]  ;;  %v5038_v36 = vld [vmem:[%s4791_s29 + $0x38] sm:$0x3]  ;;  %v6729_v61 = vmax.bf16 %v4884_v55, %v4780_v46 }
  0xda   : > { %6706 = vst [vmem:[#allocation57_spill] sm:$0xff] %v5004_v40  ;;  %6718 = vst [vmem:[#allocation10_spill] sm:$0xff] %v5038_v36  ;;  %v5041_v63 = vld [vmem:[%s4791_s29 + $0x3c] sm:$0x3]  ;;  %v5052_v10 = vld [vmem:[%s4791_s29 + $0x3e] sm:$0x3]  ;;  %v6737_v55 = vmax.bf16 %v4919_v19, %v4810_v7 }
  0xdb   : > { %6711 = vst [vmem:[#allocation2_spill] sm:$0xff] %v5010_v28  ;;  %6715 = vst [vmem:[#allocation3_spill] sm:$0xff] %v5015_v11  ;;  %v5055_v3 = vld [vmem:[%s4791_s29 + $0x40] sm:$0x3]  ;;  %v5061_v6 = vld [vmem:[%s4791_s29 + $0x46] sm:$0x3] }
  0xdc   : > { %6719 = vst [vmem:[#allocation59_spill] sm:$0xff] %v5041_v63  ;;  %6720 = vst [vmem:[#allocation27_spill] sm:$0xff] %v5055_v3  ;;  %v5072_v18 = vld [vmem:[%s4791_s29 + $0x48] sm:$0x3]  ;;  %v5075_v12 = vld [vmem:[%s4791_s29 + $0x4a] sm:$0x3] }
  0xdd   : > { %6722 = vst [vmem:[#allocation60_spill] sm:$0xff] %v5061_v6  ;;  %6723 = vst [vmem:[#allocation25_spill] sm:$0xff] %v5072_v18  ;;  %v5078_v53 = vld [vmem:[%s4791_s29 + $0x4c] sm:$0x3]  ;;  %v3568_v51 = vld [vmem:[%s4791_s29 + $0x2] sm:$0x3] }
  0xde   : > { %6724 = vst [vmem:[#allocation5_spill] sm:$0xff] %v5075_v12  ;;  %6725 = vst [vmem:[#allocation30_spill] sm:$0xff] %v5078_v53  ;;  %v3569_v57 = vld [vmem:[%s4791_s29 + $0x4] sm:$0x3]  ;;  %v3570_v62 = vld [vmem:[%s4791_s29 + $0x6] sm:$0x3]  ;;  %v6730_v53 = vmax.bf16 %v4887_v26, %v4786_v49 }
  0xdf   : > { %v3571_v34 = vld [vmem:[%s4791_s29 + $0x8] sm:$0x3]  ;;  %v3572_v0 = vld [vmem:[%s4791_s29 + $0xc] sm:$0x3]  ;;  %v3573_v23 = vld [vmem:[%s4791_s29 + $0xe] sm:$0x3]  ;;  %v5159_v11 = vmax.bf16 %v3569_v57, %v6729_v61 }
  0xe0   : > { %v3574_v35 = vld [vmem:[%s4791_s29 + $0x10] sm:$0x3]  ;;  %v3575_v2 = vld [vmem:[%s4791_s29 + $0x12] sm:$0x3]  ;;  %v3576_v45 = vld [vmem:[%s4791_s29 + $0x16] sm:$0x3]  ;;  %v5164_v12 = vmax.bf16 %v3570_v62, %v6730_v53  ;;  %v5190_v26 = vmax.bf16 %v3573_v23, %v6737_v55 }
  0xe1   : > { %v3577_v56 = vld [vmem:[%s4791_s29 + $0x18] sm:$0x3]  ;;  %v3578_v25 = vld [vmem:[%s4791_s29 + $0x1a] sm:$0x3]  ;;  %v3579_v5 = vld [vmem:[%s4791_s29 + $0x1c] sm:$0x3] }
  0xe2   : > { %v3580_v38 = vld [vmem:[%s4791_s29 + $0x20] sm:$0x3]  ;;  %v3581_v9 = vld [vmem:[%s4791_s29 + $0x22] sm:$0x3]  ;;  %v3582_v63 = vld [vmem:[%s4791_s29 + $0x24] sm:$0x3] }
  0xe3   : > { %v3583_v29 = vld [vmem:[%s4791_s29 + $0x26] sm:$0x3]  ;;  %v3584_v36 = vld [vmem:[%s4791_s29 + $0x2a] sm:$0x3]  ;;  %v3585_v52 = vld [vmem:[%s4791_s29 + $0x2c] sm:$0x3] }
  0xe4   : > { %v3586_v15 = vld [vmem:[%s4791_s29 + $0x2e] sm:$0x3]  ;;  %v3587_v32 = vld [vmem:[%s4791_s29 + $0x30] sm:$0x3]  ;;  %v3588_v6 = vld [vmem:[%s4791_s29 + $0x34] sm:$0x3] }
  0xe5   : > { %v6726_v37 = vld [vmem:[#allocation43_spill] sm:$0xff]  ;;  %v3589_v1 = vld [vmem:[%s4791_s29 + $0x36] sm:$0x3]  ;;  %v3590_v40 = vld [vmem:[%s4791_s29 + $0x38] sm:$0x3]  ;;  %6738 = vst [vmem:[#allocation26_spill] sm:$0xff] %v5190_v26 }
  0xe6   : > { %v6727_v33 = vmax.bf16 %v4862_v39, %v6726_v37  ;;  %v3591_v22 = vld [vmem:[%s4791_s29 + $0x3a] sm:$0x3]  ;;  %v3592_v28 = vld [vmem:[%s4791_s29 + $0x3e] sm:$0x3]  ;;  %v3593_v46 = vld [vmem:[%s4791_s29 + $0x40] sm:$0x3] }
  0xe7   : > { %v6731_v37 = vld [vmem:[#allocation45_spill] sm:$0xff]  ;;  %v3594_v49 = vld [vmem:[%s4791_s29 + $0x42] sm:$0x3]  ;;  %v3595_v53 = vld [vmem:[%s4791_s29 + $0x44] sm:$0x3] }
  0xe8   : > { %v5150_v3 = vmax.bf16 %v3568_v51, %v6727_v33  ;;  %v6732_v51 = vmax.bf16 %v4890_v48, %v6731_v37  ;;  %v6733_v33 = vld [vmem:[#allocation50_spill] sm:$0xff]  ;;  %v3596_v62 = vld [vmem:[%s4791_s29 + $0x48] sm:$0x3]  ;;  %v6741_v48 = vmax.bf16 %v4925_v27, %v4821_v44  ;;  %v3597_v7 = vld [vmem:[%s4791_s29 + $0x4a] sm:$0x3] }
  0xe9   : > { %v6743_v61 = vld [vmem:[#allocation14_spill] sm:$0xff]  ;;  %v3598_v23 = vld [vmem:[%s4791_s29 + $0x4c] sm:$0x3]  ;;  %v3599_v19 = vld [vmem:[%s4791_s29 + $0x4e] sm:$0x3] }
  0xea   : > { %6728 = vst [vmem:[#allocation12_spill] sm:$0xff] %v5150_v3  ;;  %v5169_v39 = vmax.bf16 %v3571_v34, %v6732_v51  ;;  %v6734_v3 = vld [vmem:[#allocation46_spill] sm:$0xff]  ;;  %v6744_v34 = vld [vmem:[#allocation49_spill] sm:$0xff]  ;;  %v6749_v44 = vld [vmem:[#allocation40_spill] sm:$0xff] }
  0xeb   : > { %v6735_v18 = vmax.bf16 %v6733_v33, %v6734_v3  ;;  %v5200_v3 = vmax.bf16 %v3575_v2, %v6741_v48  ;;  %v6745_v57 = vmax.bf16 %v6743_v61, %v6744_v34  ;;  %v6750_v27 = vmax.bf16 %v4957_v17, %v6749_v44  ;;  %v6755_v33 = vld [vmem:[#allocation44_spill] sm:$0xff]  ;;  %v6767_v61 = vld [vmem:[#allocation47_spill] sm:$0xff] }
  0xec   : > { %v6756_v55 = vmax.bf16 %v4963_v54, %v6755_v33  ;;  %v6760_v17 = vmax.bf16 %v4992_v59, %v4870_v58  ;;  %v5263_v58 = vld [vmem:[%s5181_s7 + $0x10] sm:$0x3]  ;;  %v6772_v59 = vmax.bf16 %v5021_v16, %v4905_v47  ;;  %v6775_v44 = vld [vmem:[#allocation51_spill] sm:$0xff]  ;;  %v6785_v47 = vmax.bf16 %v5032_v50, %v4934_v43  ;;  %v6789_v16 = vld [vmem:[#allocation10_spill] sm:$0xff] }
  0xed   : > { %v5174_v42 = vmax.bf16 %v3572_v0, %v6735_v18  ;;  %v6739_v18 = vmax.bf16 %v4922_v60, %v4816_v8  ;;  %6742 = vst [vmem:[#allocation62_spill] sm:$0xff] %v5200_v3  ;;  %v5205_v37 = vmax.bf16 %v3576_v45, %v6745_v57  ;;  %v6747_v8 = vmax.bf16 %v4954_v4, %v4835_v30  ;;  %v5231_v30 = vld [vmem:[%s5181_s7] sm:$0x3]  ;;  %v6779_v33 = vld [vmem:[#allocation52_spill] sm:$0xff]  ;;  %v5318_v43 = vld [vmem:[%s5181_s7 + $0x24] sm:$0x3] }
  0xee   : > { %v5218_v2 = vmax.bf16 %v3578_v25, %v6750_v27  ;;  %v6763_v25 = vld [vmem:[#allocation48_spill] sm:$0xff]  ;;  %6797 = vst [vmem:[#allocation21_spill] sm:$0xff] %v5318_v43  ;;  %v6801_v50 = vld [vmem:[#allocation54_spill] sm:$0xff] }
  0xef   : > { %6736 = vst [vmem:[#allocation61_spill] sm:$0xff] %v5174_v42  ;;  %v5195_v0 = vmax.bf16 %v3574_v35, %v6739_v18  ;;  %6746 = vst [vmem:[#allocation31_spill] sm:$0xff] %v5205_v37  ;;  %v5213_v60 = vmax.bf16 %v3577_v56, %v6747_v8  ;;  %v6752_v35 = vld [vmem:[#allocation42_spill] sm:$0xff]  ;;  %v5228_v18 = vmax.bf16 %v3580_v38, %v6756_v55  ;;  %v6766_v38 = vld [vmem:[#allocation56_spill] sm:$0xff] }
  0xf0   : > { %6751 = vst [vmem:[#allocation63_spill] sm:$0xff] %v5218_v2  ;;  %v6753_v51 = vmax.bf16 %v4960_v14, %v6752_v35  ;;  %v6758_v56 = vmax.bf16 %v4989_v24, %v4859_v20  ;;  %v6762_v14 = vld [vmem:[#allocation70_spill] sm:$0xff]  ;;  %v6768_v34 = vmax.bf16 %v6766_v38, %v6767_v61  ;;  %v5257_v20 = vld [vmem:[%s5181_s7 + $0x8] sm:$0x3]  ;;  %v6794_v61 = vld [vmem:[#allocation53_spill] sm:$0xff] }
  0xf1   : > { %6740 = vst [vmem:[#allocation6_spill] sm:$0xff] %v5195_v0  ;;  %6748 = vst [vmem:[#allocation8_spill] sm:$0xff] %v5213_v60  ;;  %v6764_v54 = vmax.bf16 %v6762_v14, %v6763_v25  ;;  %v5254_v8 = vld [vmem:[%s5181_s7 + $0x4] sm:$0x3]  ;;  %v6790_v14 = vld [vmem:[#allocation68_spill] sm:$0xff] }
  0xf2   : > { %v5223_v45 = vmax.bf16 %v3579_v5, %v6753_v51  ;;  %6757 = vst [vmem:[#allocation15_spill] sm:$0xff] %v5228_v18  ;;  %v5236_v4 = vmax.bf16 %v3581_v9, %v6758_v56  ;;  %v5241_v5 = vmax.bf16 %v3582_v63, %v6760_v17  ;;  %v5251_v57 = vmax.bf16 %v3584_v36, %v6768_v34  ;;  %v5260_v9 = vld [vmem:[%s5181_s7 + $0xc] sm:$0x3]  ;;  %v6774_v63 = vld [vmem:[#allocation58_spill] sm:$0xff]  ;;  %v5286_v17 = vld [vmem:[%s5181_s7 + $0x14] sm:$0x3] }
  0xf3   : > { %v5246_v48 = vmax.bf16 %v3583_v29, %v6764_v54  ;;  %v6770_v29 = vmax.bf16 %v5018_v21, %v4899_v41  ;;  %v5273_v36 = vmax.bf16 %v3586_v15, %v6772_v59  ;;  %v6776_v27 = vmax.bf16 %v6774_v63, %v6775_v44  ;;  %v6778_v51 = vld [vmem:[#allocation23_spill] sm:$0xff]  ;;  %v5289_v41 = vld [vmem:[%s5181_s7 + $0x18] sm:$0x3]  ;;  %v5295_v15 = vld [vmem:[%s5181_s7 + $0x20] sm:$0x3] }
  0xf4   : > { %6754 = vst [vmem:[#allocation28_spill] sm:$0xff] %v5223_v45  ;;  %6759 = vst [vmem:[#allocation35_spill] sm:$0xff] %v5236_v4  ;;  %v6780_v55 = vmax.bf16 %v6778_v51, %v6779_v33  ;;  %v6791_v25 = vmax.bf16 %v6789_v16, %v6790_v14  ;;  %v6793_v38 = vld [vmem:[#allocation59_spill] sm:$0xff]  ;;  %v5439_v37 = vld [vmem:[%s5181_s7 + $0x74] sm:$0x3] }
  0xf5   : > { %6761 = vst [vmem:[#allocation9_spill] sm:$0xff] %v5241_v5  ;;  %6765 = vst [vmem:[#allocation64_spill] sm:$0xff] %v5246_v48  ;;  %v5268_v24 = vmax.bf16 %v3585_v52, %v6770_v29  ;;  %v5278_v35 = vmax.bf16 %v3587_v32, %v6776_v27  ;;  %v5292_v52 = vld [vmem:[%s5181_s7 + $0x1c] sm:$0x3]  ;;  %v5300_v32 = vmax.bf16 %v3589_v1, %v6785_v47  ;;  %v5321_v1 = vld [vmem:[%s5181_s7 + $0x28] sm:$0x3] }
  0xf6   : > { %6769 = vst [vmem:[#allocation29_spill] sm:$0xff] %v5251_v57  ;;  %6773 = vst [vmem:[#allocation65_spill] sm:$0xff] %v5273_v36  ;;  %v5283_v56 = vmax.bf16 %v3588_v6, %v6780_v55  ;;  %v6787_v6 = vmax.bf16 %v5035_v13, %v4940_v31  ;;  %v5310_v54 = vmax.bf16 %v3591_v22, %v6791_v25  ;;  %v5324_v31 = vld [vmem:[%s5181_s7 + $0x2c] sm:$0x3]  ;;  %v6808_v27 = vld [vmem:[#allocation4_spill] sm:$0xff] }
  0xf7   : > { %6771 = vst [vmem:[#allocation16_spill] sm:$0xff] %v5268_v24  ;;  %6777 = vst [vmem:[#allocation36_spill] sm:$0xff] %v5278_v35  ;;  %v6795_v34 = vmax.bf16 %v6793_v38, %v6794_v61  ;;  %v6802_v13 = vmax.bf16 %v5052_v10, %v6801_v50  ;;  %v6804_v59 = vld [vmem:[#allocation27_spill] sm:$0xff]  ;;  %v6812_v47 = vld [vmem:[#allocation60_spill] sm:$0xff] }
  0xf8   : > { %6781 = vst [vmem:[#allocation13_spill] sm:$0xff] %v5283_v56  ;;  %6782 = vst [vmem:[#allocation66_spill] sm:$0xff] %v5289_v41  ;;  %v5305_v21 = vmax.bf16 %v3590_v40, %v6787_v6  ;;  %v5327_v40 = vld [vmem:[%s5181_s7 + $0x30] sm:$0x3]  ;;  %v6809_v51 = vld [vmem:[#allocation55_spill] sm:$0xff] }
  0xf9   : > { %6783 = vst [vmem:[#allocation32_spill] sm:$0xff] %v5292_v52  ;;  %6784 = vst [vmem:[#allocation20_spill] sm:$0xff] %v5295_v15  ;;  %v5315_v29 = vmax.bf16 %v3592_v28, %v6795_v34  ;;  %v5332_v22 = vmax.bf16 %v3593_v46, %v6802_v13  ;;  %v6805_v28 = vld [vmem:[#allocation69_spill] sm:$0xff]  ;;  %v6810_v33 = vmax.bf16 %v6808_v27, %v6809_v51  ;;  %v6813_v6 = vld [vmem:[#allocation18_spill] sm:$0xff] }
  0xfa   : > { %6786 = vst [vmem:[#allocation37_spill] sm:$0xff] %v5300_v32  ;;  %6788 = vst [vmem:[#allocation17_spill] sm:$0xff] %v5305_v21  ;;  %v6806_v63 = vmax.bf16 %v6804_v59, %v6805_v28  ;;  %v6814_v16 = vmax.bf16 %v6812_v47, %v6813_v6  ;;  %v5350_v10 = vld [vmem:[%s5181_s7 + $0x34] sm:$0x3]  ;;  %v5353_v46 = vld [vmem:[%s5181_s7 + $0x38] sm:$0x3] }
  0xfb   : > { %6792 = vst [vmem:[#allocation67_spill] sm:$0xff] %v5310_v54  ;;  %6796 = vst [vmem:[#allocation33_spill] sm:$0xff] %v5315_v29  ;;  %v5342_v55 = vmax.bf16 %v3595_v53, %v6810_v33  ;;  %v5356_v25 = vld [vmem:[%s5181_s7 + $0x3c] sm:$0x3]  ;;  %v6824_v50 = vld [vmem:[#allocation2_spill] sm:$0xff] }
  0xfc   : > { %6798 = vst [vmem:[#allocation7_spill] sm:$0xff] %v5321_v1  ;;  %6799 = vst [vmem:[#allocation38_spill] sm:$0xff] %v5324_v31  ;;  %v5337_v44 = vmax.bf16 %v3594_v49, %v6806_v63  ;;  %v5347_v14 = vmax.bf16 %v3596_v62, %v6814_v16  ;;  %v6819_v38 = vld [vmem:[#allocation25_spill] sm:$0xff]  ;;  %v6827_v62 = vld [vmem:[#allocation30_spill] sm:$0xff] }
  0xfd   : > { %6800 = vst [vmem:[#allocation22_spill] sm:$0xff] %v5327_v40  ;;  %6803 = vst [vmem:[#allocation11_spill] sm:$0xff] %v5332_v22  ;;  %v6820_v49 = vld [vmem:[#allocation57_spill] sm:$0xff]  ;;  %v6828_v28 = vld [vmem:[#allocation3_spill] sm:$0xff] }
  0xfe   : > { %6807 = vst [vmem:[#allocation34_spill] sm:$0xff] %v5337_v44  ;;  %6811 = vst [vmem:[#allocation19_spill] sm:$0xff] %v5342_v55  ;;  %v6821_v61 = vmax.bf16 %v6819_v38, %v6820_v49  ;;  %v6823_v53 = vld [vmem:[#allocation5_spill] sm:$0xff]  ;;  %v6829_v63 = vmax.bf16 %v6827_v62, %v6828_v28  ;;  %v5374_v51 = vld [vmem:[%s5181_s7 + $0x40] sm:$0x3] }
  0xff   : > { %6815 = vst [vmem:[#allocation41_spill] sm:$0xff] %v5347_v14  ;;  %6816 = vst [vmem:[#allocation24_spill] sm:$0xff] %v5350_v10  ;;  %v6825_v13 = vmax.bf16 %v6823_v53, %v6824_v50  ;;  %v5377_v33 = vld [vmem:[%s5181_s7 + $0x44] sm:$0x3]  ;;  %v5380_v47 = vld [vmem:[%s5181_s7 + $0x48] sm:$0x3] }
 0x100   : > { %6817 = vst [vmem:[#allocation43_spill] sm:$0xff] %v5353_v46  ;;  %6818 = vst [vmem:[#allocation45_spill] sm:$0xff] %v5356_v25  ;;  %v5361_v34 = vmax.bf16 %v3597_v7, %v6821_v61  ;;  %v5371_v27 = vmax.bf16 %v3599_v19, %v6829_v63  ;;  %v6834_v6 = vld [vmem:[#allocation12_spill] sm:$0xff]  ;;  %v5385_v16 = vld [vmem:[%s5181_s7 + $0x4c] sm:$0x3] }
 0x101   : > { %v5366_v59 = vmax.bf16 %v3598_v23, %v6825_v13  ;;  %6831 = vst [vmem:[#allocation49_spill] sm:$0xff] %v5374_v51  ;;  %6832 = vst [vmem:[#allocation40_spill] sm:$0xff] %v5377_v33  ;;  %v5388_v23 = vld [vmem:[%s5181_s7 + $0x50] sm:$0x3]  ;;  %v5391_v38 = vld [vmem:[%s5181_s7 + $0x54] sm:$0x3] }
 0x102   : > { %6822 = vst [vmem:[#allocation50_spill] sm:$0xff] %v5361_v34  ;;  %6830 = vst [vmem:[#allocation14_spill] sm:$0xff] %v5371_v27  ;;  %v5402_v50 = vld [vmem:[%s5181_s7 + $0x58] sm:$0x3]  ;;  %v5405_v13 = vld [vmem:[%s5181_s7 + $0x5c] sm:$0x3] }
 0x103   : > { %6826 = vst [vmem:[#allocation46_spill] sm:$0xff] %v5366_v59  ;;  %6833 = vst [vmem:[#allocation42_spill] sm:$0xff] %v5380_v47  ;;  %v5408_v62 = vld [vmem:[%s5181_s7 + $0x60] sm:$0x3]  ;;  %v5419_v49 = vld [vmem:[%s5181_s7 + $0x64] sm:$0x3] }
 0x104   : > { %6835 = vst [vmem:[#allocation44_spill] sm:$0xff] %v5385_v16  ;;  %6836 = vst [vmem:[#allocation70_spill] sm:$0xff] %v5388_v23  ;;  %v5422_v19 = vld [vmem:[%s5181_s7 + $0x68] sm:$0x3]  ;;  %v5425_v7 = vld [vmem:[%s5181_s7 + $0x6c] sm:$0x3] }
 0x105   : > { %6837 = vst [vmem:[#allocation48_spill] sm:$0xff] %v5391_v38  ;;  %6838 = vst [vmem:[#allocation56_spill] sm:$0xff] %v5402_v50  ;;  %v5436_v53 = vld [vmem:[%s5181_s7 + $0x70] sm:$0x3]  ;;  %v5442_v15 = vld [vmem:[%s5181_s7 + $0x78] sm:$0x3] }
 0x106   : > { %6839 = vst [vmem:[#allocation47_spill] sm:$0xff] %v5405_v13  ;;  %6840 = vst [vmem:[#allocation58_spill] sm:$0xff] %v5408_v62  ;;  %v5453_v18 = vld [vmem:[%s5181_s7 + $0x7c] sm:$0x3] }
 0x107   : > { %6841 = vst [vmem:[#allocation51_spill] sm:$0xff] %v5419_v49  ;;  %6842 = vst [vmem:[#allocation23_spill] sm:$0xff] %v5422_v19  ;;  %v5464_v61 = vld.sshfl [vmem:[%s5181_s7] sm:$0x13 pattern:$0x76325410] }
 0x108   : > { %6843 = vst [vmem:[#allocation52_spill] sm:$0xff] %v5425_v7  ;;  %6844 = vst [vmem:[#allocation10_spill] sm:$0xff] %v5436_v53  ;;  %v5475_v35 = vld.sshfl [vmem:[%s5181_s7 + $0x4] sm:$0x13 pattern:$0x76325410]  ;;  %v2372_v45 = vcombine.high %v5464_v61, %v5464_v61 }
 0x109   : > { %6845 = vst [vmem:[#allocation68_spill] sm:$0xff] %v5439_v37  ;;  %6846 = vst [vmem:[#allocation59_spill] sm:$0xff] %v5442_v15  ;;  %v5478_v63 = vld.sshfl [vmem:[%s5181_s7 + $0x8] sm:$0x13 pattern:$0x76325410] }
 0x10a   : > { %6847 = vst [vmem:[#allocation53_spill] sm:$0xff] %v5453_v18  ;;  %v5481_v56 = vld.sshfl [vmem:[%s5181_s7 + $0xc] sm:$0x13 pattern:$0x76325410]  ;;  %v2380_v18 = vcombine.high %v5475_v35, %v5475_v35  ;;  %v2388_v59 = vcombine.high %v5478_v63, %v5478_v63  ;;  %v2622_v46 = vshrl.u32 %v5464_v61, 16 }
 0x10b   : > { %v5484_v28 = vld.sshfl [vmem:[%s5181_s7 + $0x10] sm:$0x13 pattern:$0x76325410]  ;;  %v2625_v21 = vshll.u32 %v5464_v61, 16  ;;  %v2631_v4 = vshll.u32 %v2372_v45, 16 }
 0x10c   : > { %v5495_v62 = vld.sshfl [vmem:[%s5181_s7 + $0x14] sm:$0x13 pattern:$0x76325410]  ;;  %v2636_v33 = vshrl.u32 %v5475_v35, 16  ;;  %v2639_v37 = vshll.u32 %v5475_v35, 16 }
 0x10d   : > { %v5498_v54 = vld.sshfl [vmem:[%s5181_s7 + $0x18] sm:$0x13 pattern:$0x76325410]  ;;  %v2645_v10 = vshll.u32 %v2380_v18, 16  ;;  %v2624_v31 = vrot.slane %v2622_v46, 6 }
 0x10e   : > { %v5501_v13 = vld.sshfl [vmem:[%s5181_s7 + $0x1c] sm:$0x13 pattern:$0x76325410]  ;;  %v2627_v15 = vrot.slane %v2625_v21, 7  ;;  %v2650_v2 = vshrl.u32 %v5478_v63, 16  ;;  %v6848_v21 = vcombine.high %v5481_v56, %v5481_v56 }
 0x10f   : > { %v5504_v40 = vld.sshfl [vmem:[%s5181_s7 + $0x20] sm:$0x13 pattern:$0x76325410]  ;;  %v2653_v1 = vshll.u32 %v5478_v63, 16  ;;  %v2633_v51 = vrot.slane %v2631_v4, 7 }
 0x110   : > { %v5513_v14 = vld.sshfl [vmem:[%s5181_s7 + $0x24] sm:$0x13 pattern:$0x76325410]  ;;  %v2638_v60 = vrot.slane %v2636_v33, 6  ;;  %v2641_v43 = vrot.slane %v2639_v37, 7  ;;  %v2628_v3 = vor.u32 %v2627_v15, %v2624_v31 }
 0x111   : > { %v5516_v53 = vld.sshfl [vmem:[%s5181_s7 + $0x28] sm:$0x13 pattern:$0x76325410]  ;;  %v2652_v61 = vrot.slane %v2650_v2, 6  ;;  %v2655_v45 = vrot.slane %v2653_v1, 7 }
 0x112   : > { %v5519_v55 = vld.sshfl [vmem:[%s5181_s7 + $0x2c] sm:$0x13 pattern:$0x76325410]  ;;  %v2659_v52 = vshll.u32 %v2388_v59, 16  ;;  %v2642_v0 = vor.u32 %v2641_v43, %v2638_v60  ;;  %v2664_v35 = vshrl.u32 %v5481_v56, 16 }
 0x113   : > { %v5522_v7 = vld.sshfl [vmem:[%s5181_s7 + $0x30] sm:$0x13 pattern:$0x76325410]  ;;  %v2667_v18 = vshll.u32 %v5481_v56, 16  ;;  %v2673_v46 = vshll.u32 %v6848_v21, 16  ;;  %v2656_v26 = vor.u32 %v2655_v45, %v2652_v61  ;;  %v6851_v45 = vcombine.high %v5495_v62, %v5495_v62 }
 0x114   : > { %v5527_v34 = vld.sshfl [vmem:[%s5181_s7 + $0x34] sm:$0x13 pattern:$0x76325410]  ;;  %v2629_v63 = vrot.slane %v2628_v3, 2  ;;  %v2647_v41 = vrot.slane %v2645_v10, 7  ;;  %v6850_v3 = vcombine.high %v5484_v28, %v5484_v28 }
 0x115   : > { %v5530_v42 = vld.sshfl [vmem:[%s5181_s7 + $0x38] sm:$0x13 pattern:$0x76325410]  ;;  %v2678_v4 = vshrl.u32 %v5484_v28, 16  ;;  %v2643_v33 = vrot.slane %v2642_v0, 2 }
 0x116   : > { %v5533_v29 = vld.sshfl [vmem:[%s5181_s7 + $0x3c] sm:$0x13 pattern:$0x76325410]  ;;  %v2661_v37 = vrot.slane %v2659_v52, 7  ;;  %v2666_v15 = vrot.slane %v2664_v35, 6  ;;  %v5660_v57 = vsel %vm4006_vm6, %v2629_v63, %v2633_v51 }
 0x117   : > { %v5536_v27 = vld.sshfl [vmem:[%s5181_s7 + $0x40] sm:$0x13 pattern:$0x76325410]  ;;  %v2669_v2 = vrot.slane %v2667_v18, 7  ;;  %v2657_v1 = vrot.slane %v2656_v26, 2  ;;  %v5668_v0 = vsel %vm4006_vm6, %v2643_v33, %v2647_v41 }
 0x118   : > { %v5547_v44 = vld.sshfl [vmem:[%s5181_s7 + $0x44] sm:$0x13 pattern:$0x76325410]  ;;  %v2675_v31 = vrot.slane %v2673_v46, 7  ;;  %v2680_v60 = vrot.slane %v2678_v4, 6 }
 0x119   : > { %v5550_v19 = vld.sshfl [vmem:[%s5181_s7 + $0x48] sm:$0x13 pattern:$0x76325410]  ;;  %v2681_v43 = vshll.u32 %v5484_v28, 16  ;;  %v2670_v56 = vor.u32 %v2669_v2, %v2666_v15  ;;  %v2687_v10 = vshll.u32 %v6850_v3, 16  ;;  %v5676_v51 = vsel %vm4006_vm6, %v2657_v1, %v2661_v37 }
 0x11a   : > { %v5553_v22 = vld.sshfl [vmem:[%s5181_s7 + $0x4c] sm:$0x13 pattern:$0x76325410]  ;;  %v2692_v61 = vshrl.u32 %v5495_v62, 16  ;;  %v2695_v52 = vshll.u32 %v5495_v62, 16  ;;  %v6852_v2 = vcombine.high %v5498_v54, %v5498_v54 }
 0x11b   : > { %v5556_v49 = vld.sshfl [vmem:[%s5181_s7 + $0x50] sm:$0x13 pattern:$0x76325410]  ;;  %v2683_v26 = vrot.slane %v2681_v43, 7  ;;  %v2701_v35 = vshll.u32 %v6851_v45, 16 }
 0x11c   : > { %v5567_v32 = vld.sshfl [vmem:[%s5181_s7 + $0x54] sm:$0x13 pattern:$0x76325410]  ;;  %v2671_v18 = vrot.slane %v2670_v56, 2  ;;  %v2694_v28 = vrot.slane %v2692_v61, 6  ;;  %v6853_v61 = vcombine.high %v5501_v13, %v5501_v13 }
 0x11d   : > { %v5570_v38 = vld.sshfl [vmem:[%s5181_s7 + $0x58] sm:$0x13 pattern:$0x76325410]  ;;  %v2706_v21 = vshrl.u32 %v5498_v54, 16  ;;  %v2684_v46 = vor.u32 %v2683_v26, %v2680_v60  ;;  %v2689_v63 = vrot.slane %v2687_v10, 7 }
 0x11e   : > { %v5573_v23 = vld.sshfl [vmem:[%s5181_s7 + $0x5c] sm:$0x13 pattern:$0x76325410]  ;;  %v2697_v4 = vrot.slane %v2695_v52, 7  ;;  %v2709_v41 = vshll.u32 %v5498_v54, 16  ;;  %v5687_v60 = vsel %vm4006_vm6, %v2671_v18, %v2675_v31  ;;  %v6854_v31 = vcombine.high %v5504_v40, %v5504_v40 }
 0x11f   : > { %v5576_v16 = vld.sshfl [vmem:[%s5181_s7 + $0x60] sm:$0x13 pattern:$0x76325410]  ;;  %v2703_v33 = vrot.slane %v2701_v35, 7  ;;  %v2708_v15 = vrot.slane %v2706_v21, 6 }
 0x120   : > { %v5587_v36 = vld.sshfl [vmem:[%s5181_s7 + $0x64] sm:$0x13 pattern:$0x76325410]  ;;  %v2715_v62 = vshll.u32 %v6852_v2, 16  ;;  %v2720_v43 = vshrl.u32 %v5501_v13, 16  ;;  %v2698_v37 = vor.u32 %v2697_v4, %v2694_v28 }
 0x121   : > { %v5590_v47 = vld.sshfl [vmem:[%s5181_s7 + $0x68] sm:$0x13 pattern:$0x76325410]  ;;  %v2685_v3 = vrot.slane %v2684_v46, 2  ;;  %v2711_v1 = vrot.slane %v2709_v41, 7 }
 0x122   : > { %v5593_v24 = vld.sshfl [vmem:[%s5181_s7 + $0x6c] sm:$0x13 pattern:$0x76325410]  ;;  %v2723_v56 = vshll.u32 %v5501_v13, 16  ;;  %v2722_v10 = vrot.slane %v2720_v43, 6 }
 0x123   : > { %v5604_v50 = vld.sshfl [vmem:[%s5181_s7 + $0x70] sm:$0x13 pattern:$0x76325410]  ;;  %v2729_v26 = vshll.u32 %v6853_v61, 16  ;;  %v2734_v52 = vshrl.u32 %v5504_v40, 16  ;;  %v2712_v45 = vor.u32 %v2711_v1, %v2708_v15  ;;  %v5695_v28 = vsel %vm4006_vm6, %v2685_v3, %v2689_v63 }
 0x124   : > { %v5615_v48 = vld.sshfl [vmem:[%s5181_s7 + $0x74] sm:$0x13 pattern:$0x76325410]  ;;  %v2699_v54 = vrot.slane %v2698_v37, 2  ;;  %v2717_v35 = vrot.slane %v2715_v62, 7  ;;  %v6855_v3 = vcombine.high %v5513_v14, %v5513_v14 }
 0x125   : > { %v5626_v25 = vld.sshfl [vmem:[%s5181_s7 + $0x78] sm:$0x13 pattern:$0x76325410]  ;;  %v2725_v21 = vrot.slane %v2723_v56, 7  ;;  %v2736_v46 = vrot.slane %v2734_v52, 6 }
 0x126   : > { %v5637_v5 = vld.sshfl [vmem:[%s5181_s7 + $0x7c] sm:$0x13 pattern:$0x76325410]  ;;  %v2737_v4 = vshll.u32 %v5504_v40, 16  ;;  %v2743_v18 = vshll.u32 %v6854_v31, 16  ;;  %v5704_v15 = vsel %vm4006_vm6, %v2699_v54, %v2703_v33 }
 0x127   : > { %v2713_v41 = vrot.slane %v2712_v45, 2  ;;  %v2726_v13 = vor.u32 %v2725_v21, %v2722_v10  ;;  %v2731_v2 = vrot.slane %v2729_v26, 7  ;;  %v2748_v43 = vshrl.u32 %v5513_v14, 16  ;;  %v6919_v59 = vld [vmem:[#allocation40_spill] sm:$0xff] }
 0x128   : > { %v2739_v62 = vrot.slane %v2737_v4, 7  ;;  %v2751_v63 = vshll.u32 %v5513_v14, 16  ;;  %v2757_v37 = vshll.u32 %v6855_v3, 16  ;;  %v2745_v56 = vrot.slane %v2743_v18, 7 }
 0x129   : > { %v2727_v1 = vrot.slane %v2726_v13, 2  ;;  %v2750_v40 = vrot.slane %v2748_v43, 6  ;;  %v2762_v61 = vshrl.u32 %v5516_v53, 16  ;;  %v5713_v10 = vsel %vm4006_vm6, %v2713_v41, %v2717_v35 }
 0x12a   : > { %v2740_v26 = vor.u32 %v2739_v62, %v2736_v46  ;;  %v2753_v52 = vrot.slane %v2751_v63, 7  ;;  %v2765_v33 = vshll.u32 %v5516_v53, 16  ;;  %v2759_v54 = vrot.slane %v2757_v37, 7 }
 0x12b   : > { %v2764_v45 = vrot.slane %v2762_v61, 6  ;;  %v6856_v21 = vcombine.high %v5516_v53, %v5516_v53  ;;  %v2776_v4 = vshrl.u32 %v5519_v55, 16  ;;  %v2779_v43 = vshll.u32 %v5519_v55, 16 }
 0x12c   : > { %v2741_v31 = vrot.slane %v2740_v26, 2  ;;  %v2754_v18 = vor.u32 %v2753_v52, %v2750_v40  ;;  %v2767_v13 = vrot.slane %v2765_v33, 7  ;;  %v5723_v35 = vsel %vm4006_vm6, %v2727_v1, %v2731_v2 }
 0x12d   : > { %v2771_v14 = vshll.u32 %v6856_v21, 16  ;;  %v2778_v46 = vrot.slane %v2776_v4, 6  ;;  %v6857_v41 = vcombine.high %v5519_v55, %v5519_v55  ;;  %v2790_v63 = vshrl.u32 %v5522_v7, 16 }
 0x12e   : > { %v2755_v53 = vrot.slane %v2754_v18, 2  ;;  %v2768_v3 = vor.u32 %v2767_v13, %v2764_v45  ;;  %v2781_v61 = vrot.slane %v2779_v43, 7  ;;  %v5731_v40 = vsel %vm4006_vm6, %v2741_v31, %v2745_v56 }
 0x12f   : > { %v2785_v62 = vshll.u32 %v6857_v41, 16  ;;  %v2773_v37 = vrot.slane %v2771_v14, 7  ;;  %v2792_v26 = vrot.slane %v2790_v63, 6  ;;  %v2793_v52 = vshll.u32 %v5522_v7, 16 }
 0x130   : > { %v6858_v2 = vcombine.high %v5522_v7, %v5522_v7  ;;  %v2769_v33 = vrot.slane %v2768_v3, 2  ;;  %v2782_v55 = vor.u32 %v2781_v61, %v2778_v46  ;;  %v2804_v4 = vshrl.u32 %v5527_v34, 16 }
 0x131   : > { %v2787_v21 = vrot.slane %v2785_v62, 7  ;;  %v5740_v45 = vsel %vm4006_vm6, %v2755_v53, %v2759_v54  ;;  %v2795_v14 = vrot.slane %v2793_v52, 7  ;;  %v2807_v56 = vshll.u32 %v5527_v34, 16 }
 0x132   : > { %v2799_v1 = vshll.u32 %v6858_v2, 16  ;;  %v6859_v31 = vcombine.high %v5527_v34, %v5527_v34  ;;  %v2783_v13 = vrot.slane %v2782_v55, 2  ;;  %v2806_v7 = vrot.slane %v2804_v4, 6 }
 0x133   : > { %v2818_v41 = vshrl.u32 %v5530_v42, 16  ;;  %v5749_v46 = vsel %vm4006_vm6, %v2769_v33, %v2773_v37  ;;  %v2796_v62 = vor.u32 %v2795_v14, %v2792_v26  ;;  %v2809_v63 = vrot.slane %v2807_v56, 7 }
 0x134   : > { %v2813_v18 = vshll.u32 %v6859_v31, 16  ;;  %v2801_v43 = vrot.slane %v2799_v1, 7  ;;  %v2821_v54 = vshll.u32 %v5530_v42, 16  ;;  %v6860_v61 = vcombine.high %v5530_v42, %v5530_v42 }
 0x135   : > { %v2820_v3 = vrot.slane %v2818_v41, 6  ;;  %v2832_v52 = vshrl.u32 %v5533_v29, 16  ;;  %v2797_v2 = vrot.slane %v2796_v62, 2  ;;  %v2810_v1 = vor.u32 %v2809_v63, %v2806_v7 }
 0x136   : > { %v2815_v53 = vrot.slane %v2813_v18, 7  ;;  %v2827_v34 = vshll.u32 %v6860_v61, 16  ;;  %v2823_v55 = vrot.slane %v2821_v54, 7  ;;  %v2835_v4 = vshll.u32 %v5533_v29, 16 }
 0x137   : > { %v5759_v37 = vsel %vm4006_vm6, %v2783_v13, %v2787_v21  ;;  %v2834_v26 = vrot.slane %v2832_v52, 6  ;;  %v6861_v33 = vcombine.high %v5533_v29, %v5533_v29  ;;  %v2846_v56 = vshrl.u32 %v5536_v27, 16 }
 0x138   : > { %v2811_v42 = vrot.slane %v2810_v1, 2  ;;  %v2824_v31 = vor.u32 %v2823_v55, %v2820_v3  ;;  %v2829_v18 = vrot.slane %v2827_v34, 7  ;;  %v2837_v41 = vrot.slane %v2835_v4, 7 }
 0x139   : > { %v2841_v14 = vshll.u32 %v6861_v33, 16  ;;  %v5767_v7 = vsel %vm4006_vm6, %v2797_v2, %v2801_v43  ;;  %v2848_v62 = vrot.slane %v2846_v56, 6  ;;  %v2849_v63 = vshll.u32 %v5536_v27, 16 }
 0x13a   : > { %v6862_v21 = vcombine.high %v5536_v27, %v5536_v27  ;;  %v2825_v54 = vrot.slane %v2824_v31, 2  ;;  %v2838_v29 = vor.u32 %v2837_v41, %v2834_v26  ;;  %v2860_v52 = vshrl.u32 %v5547_v44, 16 }
 0x13b   : > { %v2843_v61 = vrot.slane %v2841_v14, 7  ;;  %v5776_v3 = vsel %vm4006_vm6, %v2811_v42, %v2815_v53  ;;  %v2851_v34 = vrot.slane %v2849_v63, 7  ;;  %v2863_v43 = vshll.u32 %v5547_v44, 16 }
 0x13c   : > { %v2855_v13 = vshll.u32 %v6862_v21, 16  ;;  %v6863_v2 = vcombine.high %v5547_v44, %v5547_v44  ;;  %v2839_v55 = vrot.slane %v2838_v29, 2  ;;  %v2862_v27 = vrot.slane %v2860_v52, 6 }
 0x13d   : > { %v2874_v33 = vshrl.u32 %v5550_v19, 16  ;;  %v5785_v26 = vsel %vm4006_vm6, %v2825_v54, %v2829_v18  ;;  %v2852_v14 = vor.u32 %v2851_v34, %v2848_v62  ;;  %v2865_v56 = vrot.slane %v2863_v43, 7 }
 0x13e   : > { %v2869_v1 = vshll.u32 %v6863_v2, 16  ;;  %v2857_v4 = vrot.slane %v2855_v13, 7  ;;  %v2877_v53 = vshll.u32 %v5550_v19, 16  ;;  %v6864_v41 = vcombine.high %v5550_v19, %v5550_v19 }
 0x13f   : > { %v2876_v31 = vrot.slane %v2874_v33, 6  ;;  %v2888_v63 = vshrl.u32 %v5553_v22, 16  ;;  %v2853_v21 = vrot.slane %v2852_v14, 2  ;;  %v2866_v13 = vor.u32 %v2865_v56, %v2862_v27 }
 0x140   : > { %v2871_v42 = vrot.slane %v2869_v1, 7  ;;  %v2883_v44 = vshll.u32 %v6864_v41, 16  ;;  %v2879_v29 = vrot.slane %v2877_v53, 7  ;;  %v2891_v52 = vshll.u32 %v5553_v22, 16 }
 0x141   : > { %v5795_v18 = vsel %vm4006_vm6, %v2839_v55, %v2843_v61  ;;  %v2890_v62 = vrot.slane %v2888_v63, 6  ;;  %v6865_v54 = vcombine.high %v5553_v22, %v5553_v22  ;;  %v2902_v43 = vshrl.u32 %v5556_v49, 16 }
 0x142   : > { %v2867_v19 = vrot.slane %v2866_v13, 2  ;;  %v2880_v2 = vor.u32 %v2879_v29, %v2876_v31  ;;  %v2885_v1 = vrot.slane %v2883_v44, 7  ;;  %v2893_v33 = vrot.slane %v2891_v52, 7 }
 0x143   : > { %v2897_v34 = vshll.u32 %v6865_v54, 16  ;;  %v5803_v27 = vsel %vm4006_vm6, %v2853_v21, %v2857_v4  ;;  %v2904_v14 = vrot.slane %v2902_v43, 6  ;;  %v2905_v56 = vshll.u32 %v5556_v49, 16 }
 0x144   : > { %v6866_v61 = vcombine.high %v5556_v49, %v5556_v49  ;;  %v2881_v53 = vrot.slane %v2880_v2, 2  ;;  %v2894_v22 = vor.u32 %v2893_v33, %v2890_v62  ;;  %v2916_v63 = vshrl.u32 %v5567_v32, 16 }
 0x145   : > { %v2899_v41 = vrot.slane %v2897_v34, 7  ;;  %v5812_v31 = vsel %vm4006_vm6, %v2867_v19, %v2871_v42  ;;  %v2907_v44 = vrot.slane %v2905_v56, 7  ;;  %v2919_v4 = vshll.u32 %v5567_v32, 16 }
 0x146   : > { %v2911_v55 = vshll.u32 %v6866_v61, 16  ;;  %v6867_v21 = vcombine.high %v5567_v32, %v5567_v32  ;;  %v2895_v29 = vrot.slane %v2894_v22, 2  ;;  %v2918_v49 = vrot.slane %v2916_v63, 6 }
 0x147   : > { %v2930_v54 = vshrl.u32 %v5570_v38, 16  ;;  %v5821_v62 = vsel %vm4006_vm6, %v2881_v53, %v2885_v1  ;;  %v2908_v34 = vor.u32 %v2907_v44, %v2904_v14  ;;  %v2921_v43 = vrot.slane %v2919_v4, 7 }
 0x148   : > { %v2925_v13 = vshll.u32 %v6867_v21, 16  ;;  %v2913_v52 = vrot.slane %v2911_v55, 7  ;;  %v2933_v42 = vshll.u32 %v5570_v38, 16  ;;  %v6868_v33 = vcombine.high %v5570_v38, %v5570_v38 }
 0x149   : > { %v2932_v2 = vrot.slane %v2930_v54, 6  ;;  %v2944_v56 = vshrl.u32 %v5573_v23, 16  ;;  %v2909_v61 = vrot.slane %v2908_v34, 2  ;;  %v2922_v55 = vor.u32 %v2921_v43, %v2918_v49 }
 0x14a   : > { %v2927_v19 = vrot.slane %v2925_v13, 7  ;;  %v2939_v32 = vshll.u32 %v6868_v33, 16  ;;  %v2935_v22 = vrot.slane %v2933_v42, 7  ;;  %v2947_v63 = vshll.u32 %v5573_v23, 16 }
 0x14b   : > { %v5831_v1 = vsel %vm4006_vm6, %v2895_v29, %v2899_v41  ;;  %v2946_v14 = vrot.slane %v2944_v56, 6  ;;  %v6869_v53 = vcombine.high %v5573_v23, %v5573_v23  ;;  %v2958_v4 = vshrl.u32 %v5576_v16, 16 }
 0x14c   : > { %v2923_v38 = vrot.slane %v2922_v55, 2  ;;  %v2936_v21 = vor.u32 %v2935_v22, %v2932_v2  ;;  %v2941_v13 = vrot.slane %v2939_v32, 7  ;;  %v2949_v54 = vrot.slane %v2947_v63, 7 }
 0x14d   : > { %v2953_v44 = vshll.u32 %v6869_v53, 16  ;;  %v5839_v49 = vsel %vm4006_vm6, %v2909_v61, %v2913_v52  ;;  %v2960_v34 = vrot.slane %v2958_v4, 6  ;;  %v2961_v43 = vshll.u32 %v5576_v16, 16 }
 0x14e   : > { %v6870_v41 = vcombine.high %v5576_v16, %v5576_v16  ;;  %v2937_v42 = vrot.slane %v2936_v21, 2  ;;  %v2950_v23 = vor.u32 %v2949_v54, %v2946_v14  ;;  %v2972_v56 = vshrl.u32 %v5587_v36, 16 }
 0x14f   : > { %v2955_v33 = vrot.slane %v2953_v44, 7  ;;  %v5848_v2 = vsel %vm4006_vm6, %v2923_v38, %v2927_v19  ;;  %v2963_v32 = vrot.slane %v2961_v43, 7  ;;  %v2975_v52 = vshll.u32 %v5587_v36, 16 }
 0x150   : > { %v2967_v29 = vshll.u32 %v6870_v41, 16  ;;  %v6871_v61 = vcombine.high %v5587_v36, %v5587_v36  ;;  %v2951_v22 = vrot.slane %v2950_v23, 2  ;;  %v2974_v16 = vrot.slane %v2972_v56, 6 }
 0x151   : > { %v2986_v53 = vshrl.u32 %v5590_v47, 16  ;;  %v5857_v14 = vsel %vm4006_vm6, %v2937_v42, %v2941_v13  ;;  %v2964_v44 = vor.u32 %v2963_v32, %v2960_v34  ;;  %v2977_v4 = vrot.slane %v2975_v52, 7 }
 0x152   : > { %v2981_v55 = vshll.u32 %v6871_v61, 16  ;;  %v2969_v63 = vrot.slane %v2967_v29, 7  ;;  %v2989_v19 = vshll.u32 %v5590_v47, 16  ;;  %v6872_v54 = vcombine.high %v5590_v47, %v5590_v47 }
 0x153   : > { %v2988_v21 = vrot.slane %v2986_v53, 6  ;;  %v3000_v43 = vshrl.u32 %v5593_v24, 16  ;;  %v2965_v41 = vrot.slane %v2964_v44, 2  ;;  %v2978_v29 = vor.u32 %v2977_v4, %v2974_v16 }
 0x154   : > { %v2983_v38 = vrot.slane %v2981_v55, 7  ;;  %v2995_v36 = vshll.u32 %v6872_v54, 16  ;;  %v2991_v23 = vrot.slane %v2989_v19, 7  ;;  %v3003_v56 = vshll.u32 %v5593_v24, 16 }
 0x155   : > { %v5867_v13 = vsel %vm4006_vm6, %v2951_v22, %v2955_v33  ;;  %v3002_v34 = vrot.slane %v3000_v43, 6  ;;  %v6873_v42 = vcombine.high %v5593_v24, %v5593_v24  ;;  %v3014_v52 = vshrl.u32 %v5604_v50, 16 }
 0x156   : > { %v2979_v47 = vrot.slane %v2978_v29, 2  ;;  %v2992_v61 = vor.u32 %v2991_v23, %v2988_v21  ;;  %v2997_v55 = vrot.slane %v2995_v36, 7  ;;  %v3005_v53 = vrot.slane %v3003_v56, 7 }
 0x157   : > { %v3009_v32 = vshll.u32 %v6873_v42, 16  ;;  %v5875_v16 = vsel %vm4006_vm6, %v2965_v41, %v2969_v63  ;;  %v3016_v44 = vrot.slane %v3014_v52, 6  ;;  %v3017_v4 = vshll.u32 %v5604_v50, 16 }
 0x158   : > { %v6874_v33 = vcombine.high %v5604_v50, %v5604_v50  ;;  %v2993_v19 = vrot.slane %v2992_v61, 2  ;;  %v3006_v24 = vor.u32 %v3005_v53, %v3002_v34  ;;  %v3028_v43 = vshrl.u32 %v5615_v48, 16 }
 0x159   : > { %v3011_v54 = vrot.slane %v3009_v32, 7  ;;  %v2984_v21 = vsel %vm4006_vm6, %v2979_v47, %v2983_v38  ;;  %v3019_v36 = vrot.slane %v3017_v4, 7  ;;  %v3031_v29 = vshll.u32 %v5615_v48, 16 }
 0x15a   : > { %v3023_v22 = vshll.u32 %v6874_v33, 16  ;;  %v6875_v63 = vcombine.high %v5615_v48, %v5615_v48  ;;  %v3007_v23 = vrot.slane %v3006_v24, 2  ;;  %v3030_v42 = vrot.slane %v3028_v43, 6 }
 0x15b   : > { %v3042_v50 = vshrl.u32 %v5626_v25, 16  ;;  %v2998_v34 = vsel %vm4006_vm6, %v2993_v19, %v2997_v55  ;;  %v3020_v32 = vor.u32 %v3019_v36, %v3016_v44  ;;  %v3033_v52 = vrot.slane %v3031_v29, 7 }
 0x15c   : > { %v3037_v41 = vshll.u32 %v6875_v63, 16  ;;  %v3025_v56 = vrot.slane %v3023_v22, 7  ;;  %v3045_v61 = vshll.u32 %v5626_v25, 16  ;;  %v6876_v53 = vcombine.high %v5626_v25, %v5626_v25 }
 0x15d   : > { %v3044_v47 = vrot.slane %v3042_v50, 6  ;;  %v3056_v48 = vshrl.u32 %v5637_v5, 16  ;;  %v3021_v33 = vrot.slane %v3020_v32, 2  ;;  %v3034_v22 = vor.u32 %v3033_v52, %v3030_v42 }
 0x15e   : > { %v3039_v38 = vrot.slane %v3037_v41, 7  ;;  %v3051_v4 = vshll.u32 %v6876_v53, 16  ;;  %v3047_v24 = vrot.slane %v3045_v61, 7  ;;  %v3059_v43 = vshll.u32 %v5637_v5, 16  ;;  %v6887_v53 = vld [vmem:[#allocation6_spill] sm:$0xff] }
 0x15f   : > { %v3012_v55 = vsel %vm4006_vm6, %v3007_v23, %v3011_v54  ;;  %v3058_v19 = vrot.slane %v3056_v48, 6  ;;  %v6877_v36 = vcombine.high %v5637_v5, %v5637_v5  ;;  %v3035_v63 = vrot.slane %v3034_v22, 2  ;;  %v6893_v22 = vld [vmem:[#allocation31_spill] sm:$0xff] }
 0x160   : > { %v3053_v44 = vrot.slane %v3051_v4, 7  ;;  %v3048_v41 = vor.u32 %v3047_v24, %v3044_v47  ;;  %v3061_v25 = vrot.slane %v3059_v43, 7  ;;  %v6878_v50 = vmax.bf16 %v5231_v30, %v6834_v6  ;;  %v6895_v43 = vld [vmem:[#allocation21_spill] sm:$0xff] }
 0x161   : > { %v3065_v29 = vshll.u32 %v6877_v36, 16  ;;  %v3026_v32 = vsel %vm4006_vm6, %v3021_v33, %v3025_v56  ;;  %v6879_v54 = vmax.bf16 %v5254_v8, %v5159_v11  ;;  %v6880_v5 = vmax.bf16 %v5257_v20, %v5164_v12  ;;  %v6882_v11 = vld [vmem:[#allocation61_spill] sm:$0xff]  ;;  %v6884_v12 = vld [vmem:[#allocation26_spill] sm:$0xff] }
 0x162   : > { %v5906_v42 = vmax.bf16 %v5660_v57, %v6878_v50  ;;  %v3040_v30 = vsel %vm4006_vm6, %v3035_v63, %v3039_v38  ;;  %v3049_v57 = vrot.slane %v3048_v41, 2  ;;  %v3062_v6 = vor.u32 %v3061_v25, %v3058_v19  ;;  %v6886_v38 = vld [vmem:[#allocation66_spill] sm:$0xff]  ;;  %v6896_v19 = vld [vmem:[#allocation8_spill] sm:$0xff]  ;;  %v6899_v63 = vld [vmem:[#allocation63_spill] sm:$0xff] }
 0x163   : > { %v3067_v52 = vrot.slane %v3065_v29, 7  ;;  %v5914_v23 = vmax.bf16 %v5668_v0, %v6879_v54  ;;  %v5920_v61 = vmax.bf16 %v5676_v51, %v6880_v5  ;;  %v6881_v56 = vmax.bf16 %v5260_v9, %v5169_v39  ;;  %v6889_v9 = vld [vmem:[#allocation32_spill] sm:$0xff]  ;;  %v6898_v29 = vld [vmem:[#allocation7_spill] sm:$0xff] }
 0x164   : > { %v6883_v8 = vmax.bf16 %v5263_v58, %v6882_v11  ;;  %v6885_v20 = vmax.bf16 %v5286_v17, %v6884_v12  ;;  %v6888_v4 = vmax.bf16 %v6886_v38, %v6887_v53  ;;  %v3063_v33 = vrot.slane %v3062_v6, 2  ;;  %v6892_v17 = vld [vmem:[#allocation20_spill] sm:$0xff]  ;;  %v6905_v5 = vld [vmem:[#allocation15_spill] sm:$0xff]  ;;  %v6913_v53 = vld [vmem:[#allocation45_spill] sm:$0xff] }
 0x165   : > { %v5928_v47 = vmax.bf16 %v5687_v60, %v6881_v56  ;;  %v6890_v60 = vld [vmem:[#allocation62_spill] sm:$0xff]  ;;  %v6902_v25 = vld [vmem:[#allocation28_spill] sm:$0xff]  ;;  %v6908_v56 = vld [vmem:[#allocation35_spill] sm:$0xff] }
 0x166   : > { %v5934_v0 = vmax.bf16 %v5695_v28, %v6883_v8  ;;  %v5940_v51 = vmax.bf16 %v5704_v15, %v6885_v20  ;;  %v5946_v39 = vmax.bf16 %v5713_v10, %v6888_v4  ;;  %v6891_v48 = vmax.bf16 %v6889_v9, %v6890_v60  ;;  %v6910_v12 = vld [vmem:[#allocation43_spill] sm:$0xff]  ;;  %v6911_v20 = vld [vmem:[#allocation9_spill] sm:$0xff]  ;;  %v6914_v4 = vld [vmem:[#allocation64_spill] sm:$0xff] }
 0x167   : > { %v3054_v28 = vsel %vm4006_vm6, %v3049_v57, %v3053_v44  ;;  %v6894_v15 = vmax.bf16 %v6892_v17, %v6893_v22  ;;  %v6897_v10 = vmax.bf16 %v6895_v43, %v6896_v19  ;;  %v6901_v44 = vld [vmem:[#allocation38_spill] sm:$0xff]  ;;  %v6912_v38 = vmax.bf16 %v6910_v12, %v6911_v20  ;;  %v6916_v60 = vld [vmem:[#allocation49_spill] sm:$0xff] }
 0x168   : > { %v5952_v58 = vmax.bf16 %v5723_v35, %v6891_v48  ;;  %v6900_v35 = vmax.bf16 %v6898_v29, %v6899_v63  ;;  %v6903_v50 = vmax.bf16 %v6901_v44, %v6902_v25  ;;  %v6915_v9 = vmax.bf16 %v6913_v53, %v6914_v4  ;;  %v6917_v48 = vld [vmem:[#allocation29_spill] sm:$0xff] }
 0x169   : > { %v5960_v24 = vmax.bf16 %v5731_v40, %v6894_v15  ;;  %v5966_v36 = vmax.bf16 %v5740_v45, %v6897_v10  ;;  %v6904_v40 = vld [vmem:[#allocation22_spill] sm:$0xff]  ;;  %v6907_v45 = vld [vmem:[#allocation24_spill] sm:$0xff]  ;;  %v6918_v17 = vmax.bf16 %v6916_v60, %v6917_v48  ;;  %v6923_v15 = vld [vmem:[#allocation65_spill] sm:$0xff] }
 0x16a   : > { %v5972_v41 = vmax.bf16 %v5749_v46, %v6900_v35  ;;  %v5978_v54 = vmax.bf16 %v5759_v37, %v6903_v50  ;;  %v6906_v57 = vmax.bf16 %v6904_v40, %v6905_v5  ;;  %v6909_v11 = vmax.bf16 %v6907_v45, %v6908_v56  ;;  %v6926_v10 = vld [vmem:[#allocation36_spill] sm:$0xff]  ;;  %v6929_v35 = vld [vmem:[#allocation13_spill] sm:$0xff] }
 0x16b   : > { %v3068_v46 = vsel %vm4006_vm6, %v3063_v33, %v3067_v52  ;;  %v5998_v37 = vmax.bf16 %v5785_v26, %v6912_v38  ;;  %v6920_v52 = vld [vmem:[#allocation16_spill] sm:$0xff]  ;;  %v6922_v26 = vld [vmem:[#allocation42_spill] sm:$0xff]  ;;  %v6932_v50 = vld [vmem:[#allocation37_spill] sm:$0xff] }
 0x16c   : > { %v5984_v6 = vmax.bf16 %v5767_v7, %v6906_v57  ;;  %v5990_v8 = vmax.bf16 %v5776_v3, %v6909_v11  ;;  %v6004_v7 = vmax.bf16 %v5795_v18, %v6915_v9  ;;  %v6010_v3 = vmax.bf16 %v5803_v27, %v6918_v17  ;;  %v6925_v18 = vld [vmem:[#allocation44_spill] sm:$0xff]  ;;  %v6928_v27 = vld [vmem:[#allocation70_spill] sm:$0xff]  ;;  %v6935_v57 = vld [vmem:[#allocation17_spill] sm:$0xff] }
 0x16d   : > { %v6921_v33 = vmax.bf16 %v6919_v59, %v6920_v52  ;;  %v6924_v43 = vmax.bf16 %v6922_v26, %v6923_v15  ;;  %v6927_v29 = vmax.bf16 %v6925_v18, %v6926_v10  ;;  %v6930_v44 = vmax.bf16 %v6928_v27, %v6929_v35  ;;  %v6938_v11 = vld [vmem:[#allocation67_spill] sm:$0xff]  ;;  %v6941_v38 = vld [vmem:[#allocation33_spill] sm:$0xff]  ;;  %v6956_v27 = vld [vmem:[#allocation50_spill] sm:$0xff] }
 0x16e   : > { %v6944_v9 = vld [vmem:[#allocation11_spill] sm:$0xff]  ;;  %v6953_v18 = vld [vmem:[#allocation41_spill] sm:$0xff] }
 0x16f   : > { %v6016_v22 = vmax.bf16 %v5812_v31, %v6921_v33  ;;  %v6022_v19 = vmax.bf16 %v5821_v62, %v6924_v43  ;;  %v6028_v63 = vmax.bf16 %v5831_v1, %v6927_v29  ;;  %v6034_v25 = vmax.bf16 %v5839_v49, %v6930_v44  ;;  %v6931_v31 = vld [vmem:[#allocation48_spill] sm:$0xff]  ;;  %v6937_v1 = vld [vmem:[#allocation47_spill] sm:$0xff]  ;;  %v6940_v49 = vld [vmem:[#allocation58_spill] sm:$0xff] }
 0x170   : > { %v6933_v40 = vmax.bf16 %v6931_v31, %v6932_v50  ;;  %v6934_v62 = vld [vmem:[#allocation56_spill] sm:$0xff]  ;;  %v6939_v12 = vmax.bf16 %v6937_v1, %v6938_v11  ;;  %v6942_v53 = vmax.bf16 %v6940_v49, %v6941_v38  ;;  %v6946_v17 = vld [vmem:[#allocation23_spill] sm:$0xff]  ;;  %v6952_v43 = vld [vmem:[#allocation10_spill] sm:$0xff]  ;;  %v3135_v1 = vunpack.c.l.bf16 %v5920_v61 }
 0x171   : > { %v6936_v45 = vmax.bf16 %v6934_v62, %v6935_v57  ;;  %v6949_v33 = vld [vmem:[#allocation52_spill] sm:$0xff]  ;;  %v6950_v26 = vld [vmem:[#allocation19_spill] sm:$0xff]  ;;  %v6954_v10 = vmax.bf16 %v6952_v43, %v6953_v18  ;;  %v6959_v31 = vld [vmem:[#allocation46_spill] sm:$0xff]  ;;  %v3136_v11 = vunpack.c.l.bf16 %v5928_v47  ;;  %v3140_v49 = vunpack.c.l.bf16 %v5952_v58 }
 0x172   : > { %v6040_v5 = vmax.bf16 %v5848_v2, %v6933_v40  ;;  %v6052_v20 = vmax.bf16 %v5867_v13, %v6939_v12  ;;  %v6058_v4 = vmax.bf16 %v5875_v16, %v6942_v53  ;;  %v6943_v2 = vld [vmem:[#allocation51_spill] sm:$0xff]  ;;  %v6951_v13 = vmax.bf16 %v6949_v33, %v6950_v26  ;;  %v6955_v29 = vld [vmem:[#allocation68_spill] sm:$0xff]  ;;  %v6961_v40 = vld [vmem:[#allocation53_spill] sm:$0xff] }
 0x173   : > { %v6046_v56 = vmax.bf16 %v5857_v14, %v6936_v45  ;;  %v6945_v60 = vmax.bf16 %v6943_v2, %v6944_v9  ;;  %v6947_v14 = vld [vmem:[#allocation34_spill] sm:$0xff]  ;;  %v6078_v16 = vmax.bf16 %v3026_v32, %v6954_v10  ;;  %v6957_v35 = vmax.bf16 %v6955_v29, %v6956_v27  ;;  %v6958_v44 = vld [vmem:[#allocation59_spill] sm:$0xff] }
 0x174   : > { %v6948_v59 = vmax.bf16 %v6946_v17, %v6947_v14  ;;  %v6073_v15 = vmax.bf16 %v3012_v55, %v6951_v13  ;;  %v6960_v50 = vmax.bf16 %v6958_v44, %v6959_v31  ;;  %v6962_v62 = vld [vmem:[#allocation14_spill] sm:$0xff]  ;;  %v3133_v45 = vunpack.c.l.bf16 %v5906_v42 }
 0x175   : > { %v6063_v48 = vmax.bf16 %v2984_v21, %v6945_v60  ;;  %v6083_v21 = vmax.bf16 %v3040_v30, %v6957_v35  ;;  %v6963_v57 = vmax.bf16 %v6961_v40, %v6962_v62  ;;  %v3134_v32 = vunpack.c.l.bf16 %v5914_v23 }
 0x176   : > { %v6068_v52 = vmax.bf16 %v2998_v34, %v6948_v59  ;;  %v6088_v34 = vmax.bf16 %v3054_v28, %v6960_v50  ;;  %v3137_v30 = vunpack.c.l.bf16 %v5934_v0  ;;  %v3138_v12 = vunpack.c.l.bf16 %v5940_v51 }
 0x177   : > { %v6093_v55 = vmax.bf16 %v3068_v46, %v6963_v57  ;;  %v3139_v28 = vunpack.c.l.bf16 %v5946_v39  ;;  %v3141_v38 = vunpack.c.l.bf16 %v5960_v24  ;;  %v3142_v46 = vunpack.c.l.bf16 %v5966_v36 }
 0x178   : > { %v3143_v42 = vunpack.c.l.bf16 %v5972_v41  ;;  %v3144_v23 = vunpack.c.l.bf16 %v5978_v54  ;;  %v3145_v61 = vunpack.c.l.bf16 %v5984_v6  ;;  %v3146_v47 = vunpack.c.l.bf16 %v5990_v8 }
 0x179   : > { %v3147_v0 = vunpack.c.l.bf16 %v5998_v37  ;;  %v3148_v51 = vunpack.c.l.bf16 %v6004_v7  ;;  %v3149_v39 = vunpack.c.l.bf16 %v6010_v3  ;;  %v3150_v58 = vunpack.c.l.bf16 %v6016_v22 }
 0x17a   : > { %v3151_v24 = vunpack.c.l.bf16 %v6022_v19  ;;  %v3152_v36 = vunpack.c.l.bf16 %v6028_v63  ;;  %v3153_v41 = vunpack.c.l.bf16 %v6034_v25  ;;  %v3154_v54 = vunpack.c.l.bf16 %v6040_v5 }
 0x17b   : > { %v3155_v6 = vunpack.c.l.bf16 %v6046_v56  ;;  %v3156_v8 = vunpack.c.l.bf16 %v6052_v20  ;;  %v3157_v37 = vunpack.c.l.bf16 %v6058_v4  ;;  %v3158_v7 = vunpack.c.l.bf16 %v6063_v48 }
 0x17c   : > { %v3159_v3 = vunpack.c.l.bf16 %v6068_v52  ;;  %v3160_v22 = vunpack.c.l.bf16 %v6073_v15  ;;  %v3161_v19 = vunpack.c.l.bf16 %v6078_v16  ;;  %v3162_v63 = vunpack.c.l.bf16 %v6083_v21 }
 0x17d   : > { %v3163_v25 = vunpack.c.l.bf16 %v6088_v34  ;;  %v3164_v5 = vunpack.c.l.bf16 %v6093_v55  ;;  %v3166_v56 = vsel %vm3165_vm7, %v3133_v45, 0.0  ;;  %v3167_v20 = vsel %vm3165_vm7, %v3134_v32, 0.0 }
 0x17e   : > { %v3169_v53 = vsel %vm3165_vm7, %v3135_v1, 0.0  ;;  %v3171_v4 = vsel %vm3165_vm7, %v3136_v11, 0.0  ;;  %v3168_v2 = vadd.f32 %v3167_v20, %v3166_v56  ;;  %v3179_v9 = vsel %vm3165_vm7, %v3137_v30, 0.0 }
 0x17f   : > { %v3180_v60 = vsel %vm3165_vm7, %v3138_v12, 0.0  ;;  %v3182_v48 = vsel %vm3165_vm7, %v3139_v28, 0.0  ;;  %v3184_v14 = vsel %vm3165_vm7, %v3140_v49, 0.0  ;;  %v3192_v59 = vsel %vm3165_vm7, %v3141_v38, 0.0 }
 0x180   : > { %v3181_v17 = vadd.f32 %v3180_v60, %v3179_v9  ;;  %v3193_v33 = vsel %vm3165_vm7, %v3142_v46, 0.0  ;;  %v3170_v26 = vadd.f32 %v3169_v53, %v3168_v2  ;;  %v3195_v43 = vsel %vm3165_vm7, %v3143_v42, 0.0 }
 0x181   : > { %v3194_v13 = vadd.f32 %v3193_v33, %v3192_v59  ;;  %v3197_v18 = vsel %vm3165_vm7, %v3144_v23, 0.0  ;;  %v3205_v29 = vsel %vm3165_vm7, %v3145_v61, 0.0  ;;  %v3206_v27 = vsel %vm3165_vm7, %v3146_v47, 0.0 }
 0x182   : > { %v3183_v10 = vadd.f32 %v3182_v48, %v3181_v17  ;;  %v3208_v35 = vsel %vm3165_vm7, %v3147_v0, 0.0  ;;  %v3172_v44 = vadd.f32 %v3171_v4, %v3170_v26  ;;  %v3207_v50 = vadd.f32 %v3206_v27, %v3205_v29 }
 0x183   : > { %v3196_v31 = vadd.f32 %v3195_v43, %v3194_v13  ;;  %v3210_v40 = vsel %vm3165_vm7, %v3148_v51, 0.0  ;;  %v3218_v57 = vsel %vm3165_vm7, %v3149_v39, 0.0  ;;  %v3219_v45 = vsel %vm3165_vm7, %v3150_v58, 0.0 }
 0x184   : > { %v3185_v62 = vadd.f32 %v3184_v14, %v3183_v10  ;;  %v3221_v32 = vsel %vm3165_vm7, %v3151_v24, 0.0  ;;  %v3173_v1 = vrot.slane %v3172_v44, 4  ;;  %v3209_v30 = vadd.f32 %v3208_v35, %v3207_v50 }
 0x185   : > { %v3198_v11 = vadd.f32 %v3197_v18, %v3196_v31  ;;  %v3220_v12 = vadd.f32 %v3219_v45, %v3218_v57  ;;  %v3223_v49 = vsel %vm3165_vm7, %v3152_v36, 0.0  ;;  %v3231_v38 = vsel %vm3165_vm7, %v3153_v41, 0.0 }
 0x186   : > { %v3186_v28 = vrot.slane %v3185_v62, 4  ;;  %v3232_v46 = vsel %vm3165_vm7, %v3154_v54, 0.0  ;;  %v3174_v42 = vadd.f32 %v3173_v1, %v3172_v44  ;;  %v3211_v61 = vadd.f32 %v3210_v40, %v3209_v30 }
 0x187   : > { %v3199_v23 = vrot.slane %v3198_v11, 4  ;;  %v3222_v47 = vadd.f32 %v3221_v32, %v3220_v12  ;;  %v3233_v51 = vadd.f32 %v3232_v46, %v3231_v38  ;;  %v3234_v39 = vsel %vm3165_vm7, %v3155_v6, 0.0 }
 0x188   : > { %v3187_v0 = vadd.f32 %v3186_v28, %v3185_v62  ;;  %v3236_v58 = vsel %vm3165_vm7, %v3156_v8, 0.0  ;;  %v3175_v24 = vrot.slane %v3174_v42, 2  ;;  %v3212_v20 = vrot.slane %v3211_v61, 4 }
 0x189   : > { %v3200_v56 = vadd.f32 %v3199_v23, %v3198_v11  ;;  %v3224_v53 = vadd.f32 %v3223_v49, %v3222_v47  ;;  %v3235_v36 = vadd.f32 %v3234_v39, %v3233_v51  ;;  %v3244_v41 = vsel %vm3165_vm7, %v3157_v37, 0.0 }
 0x18a   : > { %v3188_v4 = vrot.slane %v3187_v0, 2  ;;  %v3245_v54 = vsel %vm3165_vm7, %v3158_v7, 0.0  ;;  %v3176_v2 = vadd.f32 %v3175_v24, %v3174_v42  ;;  %v3213_v60 = vadd.f32 %v3212_v20, %v3211_v61 }
 0x18b   : > { %v3201_v9 = vrot.slane %v3200_v56, 2  ;;  %v3225_v48 = vrot.slane %v3224_v53, 4  ;;  %v3237_v14 = vadd.f32 %v3236_v58, %v3235_v36  ;;  %v3246_v59 = vadd.f32 %v3245_v54, %v3244_v41 }
 0x18c   : > { %v3189_v17 = vadd.f32 %v3188_v4, %v3187_v0  ;;  %v3247_v6 = vsel %vm3165_vm7, %v3159_v3, 0.0  ;;  %v3177_v8 = vrot.slane %v3176_v2, 1  ;;  %v3214_v26 = vrot.slane %v3213_v60, 2 }
 0x18d   : > { %v3202_v33 = vadd.f32 %v3201_v9, %v3200_v56  ;;  %v3226_v13 = vadd.f32 %v3225_v48, %v3224_v53  ;;  %v3238_v18 = vrot.slane %v3237_v14, 4  ;;  %v3248_v37 = vadd.f32 %v3247_v6, %v3246_v59 }
 0x18e   : > { %v3190_v43 = vrot.slane %v3189_v17, 1  ;;  %v3249_v7 = vsel %vm3165_vm7, %v3160_v22, 0.0  ;;  %v3178_v10 = vadd.f32 %v3177_v8, %v3176_v2  ;;  %v3215_v27 = vadd.f32 %v3214_v26, %v3213_v60 }
 0x18f   : > { %v3203_v29 = vrot.slane %v3202_v33, 1  ;;  %v3227_v35 = vrot.slane %v3226_v13, 2  ;;  %v3239_v52 = vadd.f32 %v3238_v18, %v3237_v14  ;;  %v3250_v31 = vadd.f32 %v3249_v7, %v3248_v37 }
 0x190   : > { %v3191_v44 = vadd.f32 %v3190_v43, %v3189_v17  ;;  %v3257_v3 = vsel %vm3165_vm7, %v3161_v19, 0.0  ;;  %v3216_v40 = vrot.slane %v3215_v27, 1  ;;  %v3258_v15 = vsel %vm3165_vm7, %v3162_v63, 0.0 }
 0x191   : > { %v3204_v50 = vadd.f32 %v3203_v29, %v3202_v33  ;;  %v3228_v62 = vadd.f32 %v3227_v35, %v3226_v13  ;;  %v3240_v22 = vrot.slane %v3239_v52, 2  ;;  %v3251_v57 = vrot.slane %v3250_v31, 4 }
 0x192   : > { %v3259_v45 = vadd.f32 %v3258_v15, %v3257_v3  ;;  %v3260_v32 = vsel %vm3165_vm7, %v3163_v25, 0.0  ;;  %v3217_v1 = vadd.f32 %v3216_v40, %v3215_v27  ;;  %v3262_v16 = vsel %vm3165_vm7, %v3164_v5, 0.0 }
 0x193   : > { %v3229_v11 = vrot.slane %v3228_v62, 1  ;;  %v3270_v19 = vmul.f32 0.0625, %v3178_v10  ;;  %v3241_v30 = vadd.f32 %v3240_v22, %v3239_v52  ;;  %v3252_v12 = vadd.f32 %v3251_v57, %v3250_v31 }
 0x194   : > { %v3261_v28 = vadd.f32 %v3260_v32, %v3259_v45  ;;  %v3271_v21 = vmul.f32 0.0625, %v3191_v44  ;;  %v3272_v63 = vmul.f32 0.0625, %v3204_v50  ;;  %v3273_v38 = vmul.f32 0.0625, %v3217_v1 }
 0x195   : > { %v3230_v49 = vadd.f32 %v3229_v11, %v3228_v62  ;;  %v3644_v46 = vpack.c.bf16 %v3270_v19, %v3270_v19  ;;  %v3242_v42 = vrot.slane %v3241_v30, 1  ;;  %v3253_v23 = vrot.slane %v3252_v12, 2 }
 0x196   : > { %v3263_v34 = vadd.f32 %v3262_v16, %v3261_v28  ;;  %v3645_v61 = vpack.c.bf16 %v3271_v21, %v3271_v21  ;;  %v3646_v47 = vpack.c.bf16 %v3272_v63, %v3272_v63  ;;  %v3647_v0 = vpack.c.bf16 %v3273_v38, %v3273_v38 }
 0x197   : > { %v3274_v25 = vmul.f32 0.0625, %v3230_v49  ;;  %v3310_v51 = vunpack.c.l.b16 %v3644_v46  ;;  %v3243_v55 = vadd.f32 %v3242_v42, %v3241_v30  ;;  %v3254_v39 = vadd.f32 %v3253_v23, %v3252_v12 }
 0x198   : > { %v3264_v5 = vrot.slane %v3263_v34, 4  ;;  %v3311_v58 = vunpack.c.l.b16 %v3645_v61  ;;  %v3312_v56 = vunpack.c.l.b16 %v3646_v47  ;;  %v3313_v20 = vunpack.c.l.b16 %v3647_v0 }
 0x199   : > { %v3648_v24 = vpack.c.bf16 %v3274_v25, %v3274_v25  ;;  %v3255_v53 = vrot.slane %v3254_v39, 1  ;;  %v3275_v36 = vmul.f32 0.0625, %v3243_v55 }
 0x19a   : > { %v3265_v4 = vadd.f32 %v3264_v5, %v3263_v34  ;;  %v3319_v41 = vsel %vm3318_vm8, %v3311_v58, %v3310_v51 }
 0x19b   : > { %v3321_v54 = vsel %vm3320_vm9, %v3312_v56, %v3319_v41  ;;  %v3256_v2 = vadd.f32 %v3255_v53, %v3254_v39  ;;  %v3649_v60 = vpack.c.bf16 %v3275_v36, %v3275_v36  ;;  %v3314_v48 = vunpack.c.l.b16 %v3648_v24 }
 0x19c   : > { %v3266_v9 = vrot.slane %v3265_v4, 2  ;;  %v3323_v59 = vsel %vm3322_vm10, %v3313_v20, %v3321_v54 }
 0x19d   : > { %v3276_v14 = vmul.f32 0.0625, %v3256_v2  ;;  %v3315_v33 = vunpack.c.l.b16 %v3649_v60  ;;  %v3325_v26 = vsel %vm3324_vm11, %v3314_v48, %v3323_v59 }
 0x19e   : > { %v3267_v17 = vadd.f32 %v3266_v9, %v3265_v4 }
 0x19f   : > { %v3650_v8 = vpack.c.bf16 %v3276_v14, %v3276_v14  ;;  %v3327_v37 = vsel %vm3326_vm12, %v3315_v33, %v3325_v26 }
 0x1a0   : > { %v3268_v6 = vrot.slane %v3267_v17, 1 }
 0x1a1   : > { %v3316_v43 = vunpack.c.l.b16 %v3650_v8 }
 0x1a2   : > { %v3269_v13 = vadd.f32 %v3268_v6, %v3267_v17 }
 0x1a3   : > { %v3329_v10 = vsel %vm3328_vm13, %v3316_v43, %v3327_v37 }
 0x1a4   : > { %v3277_v18 = vmul.f32 0.0625, %v3269_v13 }
 0x1a6   : > { %v3651_v7 = vpack.c.bf16 %v3277_v18, %v3277_v18 }
 0x1a8   : > { %v3317_v29 = vunpack.c.l.b16 %v3651_v7 }
 0x1aa   : > { %v3331_v27 = vsel %vm3330_vm14, %v3317_v29, %v3329_v10 }
 0x1ab   : > { %v3332_v35 = vpack.c.b16 %v3331_v27, %v3331_v27 }
 0x1ad   : > { %3334 = vst [vmem:[%s275_s11] sm:$0xf] %v3332_v35 }
 0x1ae PF: > { %s14_s15 = sadd.s32 1, %s3668_s15  }
 0x1af   : > { %p11_p5 = scmp.ge.s32.totalorder %s14_s15, 4  }
 0x1b1   :  { %13 = sbr.rel (!%p11_p5) target bundleno = 1 (0x1), region = 77 }

// kernel: _lambda_.5
= control target key start
LH: loop header
LB: loop body
LE: loop exit
PB: predicated region body
PF: predicated region fallthrough
CT: control target
= control target key end

     0   :  { %14 = vsyncpa [#allocation4], 0  ;;  %s9880_s0 = inlined_call_operand.vmem [shape: bf16[16,128], index: 0, kind: input, shape index: {}]   ;;  %s9881_s1 = inlined_call_operand.vmem [shape: bf16[128,512], index: 1, kind: input, shape index: {}]   ;;  %s9882_s2 = inlined_call_operand.vmem [shape: bf16[3584,128], index: 2, kind: input, shape index: {}]   ;;  %s9883_s3 = inlined_call_operand.vmem [shape: bf16[896,128], index: 3, kind: input, shape index: {}]   ;;  %s9884_s4 = inlined_call_operand.vmem [shape: bf16[896,128], index: 4, kind: input, shape index: {}]   ;;  %s9885_s5 = inlined_call_operand.vmem [shape: bf16[896,128], index: 5, kind: input, shape index: {}]   ;;  %s9886_s6 = inlined_call_operand.vmem [shape: f32[3,128], index: 6, kind: input, shape index: {}]   ;;  %s9887_s7 = inlined_call_operand.vmem [shape: bf16[128,128], index: 7, kind: input, shape index: {}]   ;;  %s9888_s8 = inlined_call_operand.vmem [shape: f32[1,128], index: 8, kind: input, shape index: {}]   ;;  %s9889_s9 = inlined_call_operand.hbm [shape: f32[2,1,128], index: 9, kind: output, shape index: {}]  }
   0x1   :  { %16 = vsyncpa [#allocation4 + $0x1], 0  ;;  %s8070_s30 = smov 0   ;;  %s8072_s10 = smov 0  }
   0x2   :  { %s8074_s11 = smov 0   ;;  %s8076_s12 = smov 0  }
   0x3 LB: > { %s8091_s13 = sadd.s32 4294967295, %s8014_s12   ;;  %s5896_s14 = sadd.s32 4294967294, %s8014_s12   ;;  %s8014_s12 = sphi %s8076_s12, %s9903_s12   ;;  %s8010_s11 = sphi %s8074_s11, %s9902_s11   ;;  %s8006_s10 = sphi %s8072_s10, %s9901_s10   ;;  %s8002_s30 = sphi %s8070_s30, %s9900_s30  }
   0x4   : > { %s8095_s15 = sadd.s32 1, %s8014_s12   ;;  %s223_s16 = sadd.s32 1, %s8010_s11 }
   0x5   : > { %s220_s17 = ssub.s32 %s8014_s12, %s8095_s15  ;;  %p233_p0 = scmp.ne.s32.totalorder %s8010_s11, %s8006_s10 }
   0x6   : > { %p221_p1 = scmp.eq.s32.totalorder %s220_s17, 0  ;;  %p234_p2 = scmp.eq.s32.totalorder %s8091_s13, 1 }
   0x7   : > { %p239_p3 = scmp.ne.s32.totalorder %s8006_s10, %s8002_s30  ;;  %p240_p4 = scmp.eq.s32.totalorder %s5896_s14, 1 }
   0x8   : > { %s8106_s18 = scalar_select %p221_p1, %s8010_s11, %s223_s16  }
   0x9   : > { %p8108_p5 = por %p234_p2, %p233_p0  ;;  %p8112_p6 = por %p240_p4, %p239_p3 }
   0xa   : > { %p5899_p7 = scmp.ge.s32.totalorder %s8014_s12, 1  ;;  %p289_p8 = scmp.lt.s32.totalorder %s8014_s12, 3 }
   0xc   : > { %p290_p9 = pnand %p5899_p7, %p289_p8 }
   0xd   : > { %v7455_v0 = vld [vmem:[%s9881_s1 + $0x4] ss:$16 sps:$4 sm:$0xff] (!%p290_p9)   ;;  %v7457_v1 = vld [vmem:[%s9881_s1] ss:$16 sps:$4 sm:$0xff] (!%p290_p9)   ;;  %v8016_v2 = vmov (!%p290_p9), 0   ;;  %p323_p10 = scmp.lt.s32.totalorder (!%p290_p9), %s8091_s13, 1 }
   0xe   : > { %293 = sbr.rel (%p290_p9) target bundleno = 2327 (0x917), region = 56  ;;  %556 = vmatprep.mubr.bf16.mxu1 (!%p290_p9), %v8016_v2  ;;  %606 = vst [vmem:[#allocation2] sm:$0xff] (!%p290_p9), %v8016_v2  ;;  %608 = vst [vmem:[#allocation2 + $0x10] sm:$0x77] (!%p290_p9), %v8016_v2  ;;  %524 = vmatprep.subr.bf16.mxu1 (!%p290_p9), %v7455_v0  ;;  %v7458_v3 = vld [vmem:[%s9881_s1 + $0x24] ss:$16 sps:$4 sm:$0xff] (!%p290_p9)  }
   0xf   : > { %607 = vst [vmem:[#allocation2 + $0x8] sm:$0xff] (!%p290_p9), %v8016_v2  ;;  %609 = vst [vmem:[#allocation2 + $0x18] sm:$0x77] (!%p290_p9), %v8016_v2  ;;  %525 = vmatpush1.bf16.msra.mxu1 (!%p290_p9), %v7457_v1  ;;  %v7460_v4 = vld [vmem:[%s9881_s1 + $0x20] ss:$16 sps:$4 sm:$0xff] (!%p290_p9)   ;;  %v7506_v19 = vld [vmem:[%s9882_s2 + $0x248] sm:$0xff] (!%p290_p9)  }
  0x10   : > { %526 = vmatprep.subr.bf16.mxu1 (!%p290_p9), %v7458_v3  ;;  %v7461_v5 = vld [vmem:[%s9881_s1 + $0x44] ss:$16 sps:$4 sm:$0xff] (!%p290_p9)   ;;  %v7463_v6 = vld [vmem:[%s9881_s1 + $0x40] ss:$16 sps:$4 sm:$0xff] (!%p290_p9)   ;;  %v7481_v20 = vld [vmem:[%s9881_s1 + $0xc] ss:$16 sps:$4 sm:$0xff] (!%p290_p9)  }
  0x11   : > { %v7464_v7 = vld [vmem:[%s9881_s1 + $0x64] ss:$16 sps:$4 sm:$0xff] (!%p290_p9)   ;;  %v7466_v8 = vld [vmem:[%s9881_s1 + $0x60] ss:$16 sps:$4 sm:$0xff] (!%p290_p9)   ;;  %v7508_v21 = vld [vmem:[%s9882_s2 + $0x208] sm:$0xff] (!%p290_p9)   ;;  %vm646_vm3 = vcmask (!%p290_p9), 1043457  }
  0x12   : > { %v7467_v9 = vld [vmem:[%s9881_s1 + $0x84] ss:$16 sps:$4 sm:$0xff] (!%p290_p9)   ;;  %v7469_v10 = vld [vmem:[%s9881_s1 + $0x80] ss:$16 sps:$4 sm:$0xff] (!%p290_p9)   ;;  %v7479_v23 = vld [vmem:[%s9881_s1 + $0x8] ss:$16 sps:$4 sm:$0xff] (!%p290_p9)  }
  0x13   : > { %527 = vmatpush1.bf16.msra.mxu1 (!%p290_p9), %v7460_v4  ;;  %v7470_v11 = vld [vmem:[%s9881_s1 + $0xa4] ss:$16 sps:$4 sm:$0xff] (!%p290_p9)   ;;  %v7472_v12 = vld [vmem:[%s9881_s1 + $0xa0] ss:$16 sps:$4 sm:$0xff] (!%p290_p9)   ;;  %v7484_v24 = vld [vmem:[%s9881_s1 + $0x2c] ss:$16 sps:$4 sm:$0xff] (!%p290_p9)  }
  0x14   : > { %528 = vmatprep.subr.bf16.mxu1 (!%p290_p9), %v7461_v5  ;;  %v7473_v13 = vld [vmem:[%s9881_s1 + $0xc4] ss:$16 sps:$4 sm:$0xff] (!%p290_p9)   ;;  %v7475_v14 = vld [vmem:[%s9881_s1 + $0xc0] ss:$16 sps:$4 sm:$0xff] (!%p290_p9)   ;;  %v7482_v25 = vld [vmem:[%s9881_s1 + $0x28] ss:$16 sps:$4 sm:$0xff] (!%p290_p9)  }
  0x15   : > { %s324_s21 = scalar_select %p323_p10, %s8091_s13, 1  ;;  %v7503_v15 = vld [vmem:[%s9882_s2 + $0x240] sm:$0xff]   ;;  %v7487_v26 = vld [vmem:[%s9881_s1 + $0x4c] ss:$16 sps:$4 sm:$0xff]   ;;  %v7485_v27 = vld [vmem:[%s9881_s1 + $0x48] ss:$16 sps:$4 sm:$0xff]  }
  0x16   : > { %v7504_v16 = vld [vmem:[%s9882_s2 + $0x200] sm:$0xff]   ;;  %6483 = vmatprep.subr.bf16.mxu0 %v7503_v15  ;;  %v7490_v28 = vld [vmem:[%s9881_s1 + $0x6c] ss:$16 sps:$4 sm:$0xff]   ;;  %v7488_v29 = vld [vmem:[%s9881_s1 + $0x68] ss:$16 sps:$4 sm:$0xff]   ;;  %vm649_vm5 = vcmask 1047557  }
  0x17   : > { %529 = vmatpush1.bf16.msra.mxu1 %v7463_v6  ;;  %s5900_s28 = sshll.u32 %s324_s21, 2  ;;  %v7476_v17 = vld [vmem:[%s9881_s1 + $0xe4] ss:$16 sps:$4 sm:$0xff]   ;;  %v7478_v18 = vld [vmem:[%s9881_s1 + $0xe0] ss:$16 sps:$4 sm:$0xff]   ;;  %6484 = vmatpush3.bf16.msra.mxu0 %v7504_v16  ;;  %v7509_v40 = vld [vmem:[%s9882_s2 + $0x148] sm:$0xff]  }
  0x18   : > { %530 = vmatprep.subr.bf16.mxu1 %v7464_v7  ;;  %s326_s27 = scalar_lea.vmem %s9880_s0, %s5900_s28  ;;  %6485 = vmatprep.subr.bf16.mxu0 %v7506_v19  ;;  %v7493_v30 = vld [vmem:[%s9881_s1 + $0x8c] ss:$16 sps:$4 sm:$0xff]   ;;  %v7491_v31 = vld [vmem:[%s9881_s1 + $0x88] ss:$16 sps:$4 sm:$0xff]   ;;  %v7505_v38 = vld [vmem:[%s9882_s2 + $0x140] sm:$0xff]   ;;  %vm659_vm6 = vcmask 1041408  }
  0x19   : > { %v331_v22 = vld [vmem:[%s326_s27] sm:$0xf]  ;;  %v7496_v32 = vld [vmem:[%s9881_s1 + $0xac] ss:$16 sps:$4 sm:$0xff]   ;;  %v7494_v33 = vld [vmem:[%s9881_s1 + $0xa8] ss:$16 sps:$4 sm:$0xff]  }
  0x1a   : > { %v7499_v34 = vld [vmem:[%s9881_s1 + $0xcc] ss:$16 sps:$4 sm:$0xff]   ;;  %v7497_v35 = vld [vmem:[%s9881_s1 + $0xc8] ss:$16 sps:$4 sm:$0xff]   ;;  %v7507_v39 = vld [vmem:[%s9882_s2 + $0x100] sm:$0xff]   ;;  %vm662_vm8 = vcmask 1045508  }
  0x1b   : > { %531 = vmatpush1.bf16.msra.mxu1 %v7466_v8  ;;  %6486 = vmatpush3.bf16.msra.mxu0 %v7508_v21  ;;  %v7502_v36 = vld [vmem:[%s9881_s1 + $0xec] ss:$16 sps:$4 sm:$0xff]   ;;  %v7500_v37 = vld [vmem:[%s9881_s1 + $0xe8] ss:$16 sps:$4 sm:$0xff]   ;;  %v7510_v41 = vld [vmem:[%s9882_s2 + $0x250] sm:$0xff]   ;;  %vm8018_vm14 = vmmov 0  }
  0x1c   : > { %532 = vmatprep.subr.bf16.mxu1 %v7467_v9  ;;  %v7511_v42 = vld [vmem:[%s9882_s2 + $0x108] sm:$0xff]   ;;  %v7512_v43 = vld [vmem:[%s9882_s2 + $0x210] sm:$0xff]   ;;  %6487 = vmatprep.subr.bf16.mxu0 %v7510_v41  ;;  %v7514_v45 = vld [vmem:[%s9882_s2 + $0x258] sm:$0xff]   ;;  %vm647_vm0 = vsmask.f32 7942  ;;  %s321_s26 = sand.u32 1, %s8006_s10  }
  0x1d   : > { %v7513_v44 = vld [vmem:[%s9882_s2 + $0x150] sm:$0xff]   ;;  %v7516_v47 = vld [vmem:[%s9882_s2 + $0x218] sm:$0xff]   ;;  %v7518_v49 = vld [vmem:[%s9882_s2 + $0x260] sm:$0xff]   ;;  %vm650_vm1 = vsmask.f32 7958  ;;  %s6387_s14 = sshll.u32 %s8091_s13, 4 }
  0x1e   : > { %v7515_v46 = vld [vmem:[%s9882_s2 + $0x110] sm:$0xff]   ;;  %v7517_v48 = vld [vmem:[%s9882_s2 + $0x158] sm:$0xff]   ;;  %v7520_v51 = vld [vmem:[%s9882_s2 + $0x220] sm:$0xff]   ;;  %vm660_vm2 = vsmask.f32 1280  ;;  %s322_s16 = scalar_lea.vmem [#allocation3], %s321_s26  ;;  %s9838_s24 = scalar_lea.hbm %s9889_s9, %s6387_s14 }
  0x1f   : > { %533 = vmatpush1.bf16.msra.mxu1 %v7469_v10  ;;  %6488 = vmatpush3.bf16.msra.mxu0 %v7512_v43  ;;  %v7519_v50 = vld [vmem:[%s9882_s2 + $0x118] sm:$0xff]   ;;  %v7521_v52 = vld [vmem:[%s9882_s2 + $0x160] sm:$0xff]   ;;  %v7522_v53 = vld [vmem:[%s9882_s2 + $0x268] sm:$0xff]   ;;  %vm663_vm4 = vsmask.f32 5376  ;;  %s5841_s17 = sshll.u32 %s322_s16, 4  ;;  %s9840_s17 = int_to_ptr.vmem [resolvable:$true] %s5841_s17 }
  0x20   : > { %534 = vmatprep.subr.bf16.mxu1 %v7470_v11  ;;  %6489 = vmatprep.subr.bf16.mxu0 %v7514_v45  ;;  %v7523_v54 = vld [vmem:[%s9882_s2 + $0x120] sm:$0xff]   ;;  %v7524_v55 = vld [vmem:[%s9882_s2 + $0x228] sm:$0xff]   ;;  %v7526_v57 = vld [vmem:[%s9882_s2 + $0x270] sm:$0xff]   ;;  %s5829_s25 = scalar_lea.sflag [#allocation4], %s321_s26  ;;  %s7952_s13 = scalar_lea.vmem %s9840_s17, 16 }
  0x21   : > { %v7525_v56 = vld [vmem:[%s9882_s2 + $0x168] sm:$0xff]   ;;  %v7528_v59 = vld [vmem:[%s9882_s2 + $0x230] sm:$0xff]   ;;  %v7530_v61 = vld [vmem:[%s9882_s2 + $0x278] sm:$0xff]   ;;  %p7953_p11 = scmp.ne.s32.totalorder %s9840_s17, %s7952_s13  ;;  %s8019_s28 = smov [#allocation3]  }
  0x22   : > { %v7527_v58 = vld [vmem:[%s9882_s2 + $0x128] sm:$0xff]   ;;  %v7529_v60 = vld [vmem:[%s9882_s2 + $0x170] sm:$0xff]   ;;  %v7532_v63 = vld [vmem:[%s9882_s2 + $0x238] sm:$0xff]   ;;  %s7956_s21 = sshll.u32 %s8019_s28, 4  ;;  %s7957_s21 = int_to_ptr.vmem [resolvable:$false] %s7956_s21 }
  0x23   : > { %535 = vmatpush1.bf16.msra.mxu1 %v7472_v12  ;;  %6490 = vmatpush3.bf16.msra.mxu0 %v7516_v47  ;;  %v7531_v62 = vld [vmem:[%s9882_s2 + $0x130] sm:$0xff]   ;;  %v7533_v0 = vld [vmem:[%s9882_s2 + $0x178] sm:$0xff]   ;;  %v7535_v1 = vld [vmem:[%s9882_s2 + $0x340] sm:$0xff]   ;;  %p7954_p12 = pnand %p7953_p11, %p8108_p5  ;;  %s7958_s29 = scalar_lea.vmem %s7957_s21, 32 }
  0x24   : > { %536 = vmatprep.subr.bf16.mxu1 %v7473_v13  ;;  %6491 = vmatprep.subr.bf16.mxu0 %v7518_v49  ;;  %v7540_v3 = vld [vmem:[%s9882_s2 + $0x1c0] sm:$0xff]   ;;  %vm8321_vm7 = vmand %vm646_vm3, %vm647_vm0  ;;  %v666_v19 = vld [vmem:[#allocation2 + $0x10] sm:$0x33]  ;;  %p7959_p0 = scmp.lt.s32.totalorder %s9840_s17, %s7957_s21  ;;  %p7960_p1 = scmp.lt.s32.totalorder %s7958_s29, %s7952_s13 }
  0x25   : > { %vm8326_vm9 = vmand %vm649_vm5, %vm650_vm1  ;;  %v653_v13 = vld [vmem:[#allocation2] sm:$0xee]  ;;  %v7545_v43 = vld [vmem:[%s9882_s2 + $0x308] sm:$0xff]   ;;  %p7955_p13 = pneg %p7954_p12 }
  0x26   : > { %vm8331_vm10 = vmand %vm659_vm6, %vm660_vm2  ;;  %v7546_v49 = vld [vmem:[%s9882_s2 + $0x1c8] sm:$0xff]   ;;  %p7961_p2 = por %p7960_p1, %p7959_p0 }
  0x27   : > { %537 = vmatpush1.bf16.msra.mxu1 %v7475_v14  ;;  %6492 = vmatpush3.bf16.msra.mxu0 %v7520_v51  ;;  %vm8336_vm11 = vmand %vm662_vm8, %vm663_vm4  ;;  %v7889_v8 = vld [vmem:[%s9885_s5 + $0x8] sm:$0xff]   ;;  %v7890_v14 = vld [vmem:[%s9885_s5 + $0x10] sm:$0xff]  }
  0x28   : > { %538 = vmatprep.subr.bf16.mxu1 %v7476_v17  ;;  %6493 = vmatprep.subr.bf16.mxu0 %v7522_v53  ;;  %vm652_vm12 = vmor %vm8326_vm9, %vm8321_vm7  ;;  %v7548_v53 = vld [vmem:[%s9882_s2 + $0x188] sm:$0xff]   ;;  %v7565_v17 = vld [vmem:[%s9882_s2 + $0x330] sm:$0xff]   ;;  %p7962_p3 = pnand %p7961_p2, %p7955_p13 }
  0x29   : > { %vm665_vm13 = vmor %vm8336_vm11, %vm8331_vm10 }
  0x2b   : > { %539 = vmatpush1.bf16.msra.mxu1 %v7478_v18  ;;  %6494 = vmatpush3.bf16.msra.mxu0 %v7524_v55 }
  0x2c   : > { %565 = vmatprep.subr.bf16.mxu1 %v7481_v20  ;;  %6495 = vmatprep.subr.bf16.mxu0 %v7526_v57  ;;  %v7551_v57 = vld [vmem:[%s9882_s2 + $0x358] sm:$0xff]  }
  0x2e   : > { %557 = vmatmul.mubr.bf16.vlgmr.msra.gmra.mrb[0].mxu1 %v331_v22 }
  0x2f   : > { %566 = vmatpush1.bf16.msra.mxu1 %v7479_v23  ;;  %597 = vmatprep.mubr.bf16.mxu1 %v8016_v2  ;;  %v7536_v2 = vld [vmem:[%s9882_s2 + $0x138] sm:$0xff]  }
  0x30   : > { %567 = vmatprep.subr.bf16.mxu1 %v7484_v24  ;;  %6496 = vmatpush3.bf16.msra.mxu0 %v7528_v59 }
  0x31   : > { %6497 = vmatprep.subr.bf16.mxu0 %v7530_v61  ;;  %v7552_v61 = vld [vmem:[%s9882_s2 + $0x190] sm:$0xff]  }
  0x33   : > { %568 = vmatpush1.bf16.msra.mxu1 %v7482_v25 }
  0x34   : > { %569 = vmatprep.subr.bf16.mxu1 %v7487_v26  ;;  %6498 = vmatpush3.bf16.msra.mxu0 %v7532_v63  ;;  %v7553_v63 = vld [vmem:[%s9882_s2 + $0x318] sm:$0xff]  }
  0x35   : > { %6527 = vmatprep.subr.bf16.mxu0 %v7535_v1 }
  0x37   : > { %570 = vmatpush1.bf16.msra.mxu1 %v7485_v27 }
  0x38   : > { %571 = vmatprep.subr.bf16.mxu1 %v7490_v28 }
  0x3b   : > { %572 = vmatpush1.bf16.msra.mxu1 %v7488_v29 }
  0x3c   : > { %573 = vmatprep.subr.bf16.mxu1 %v7493_v30 }
  0x3f   : > { %574 = vmatpush1.bf16.msra.mxu1 %v7491_v31 }
  0x40   : > { %575 = vmatprep.subr.bf16.mxu1 %v7496_v32 }
  0x43   : > { %576 = vmatpush1.bf16.msra.mxu1 %v7494_v33 }
  0x44   : > { %577 = vmatprep.subr.bf16.mxu1 %v7499_v34  ;;  %v7538_v34 = vld [vmem:[%s9882_s2 + $0x300] sm:$0xff]  }
  0x47   : > { %578 = vmatpush1.bf16.msra.mxu1 %v7497_v35 }
  0x48   : > { %579 = vmatprep.subr.bf16.mxu1 %v7502_v36  ;;  %v7541_v36 = vld [vmem:[%s9882_s2 + $0x348] sm:$0xff]  }
  0x4b   : > { %580 = vmatpush1.bf16.msra.mxu1 %v7500_v37 }
  0x4c   : > { %6395 = vmatprep.subr.bf16.mxu1 %v7505_v38 }
  0x4e   : > { %598 = vmatmul.mubr.bf16.vlgmr.msra.gmra.mrb[4].mxu1 %v331_v22 }
  0x4f   : > { %6396 = vmatpush3.bf16.msra.mxu1 %v7507_v39 }
  0x50   : > { %6397 = vmatprep.subr.bf16.mxu1 %v7509_v40 }
  0x53   : > { %6398 = vmatpush3.bf16.msra.mxu1 %v7511_v42  ;;  %v7544_v42 = vld [vmem:[%s9882_s2 + $0x180] sm:$0xff]  }
  0x54   : > { %6399 = vmatprep.subr.bf16.mxu1 %v7513_v44 }
  0x57   : > { %6400 = vmatpush3.bf16.msra.mxu1 %v7515_v46 }
  0x58   : > { %6401 = vmatprep.subr.bf16.mxu1 %v7517_v48 }
  0x5b   : > { %6402 = vmatpush3.bf16.msra.mxu1 %v7519_v50  ;;  %v7547_v50 = vld [vmem:[%s9882_s2 + $0x350] sm:$0xff]  }
  0x5c   : > { %6403 = vmatprep.subr.bf16.mxu1 %v7521_v52 }
  0x5f   : > { %6404 = vmatpush3.bf16.msra.mxu1 %v7523_v54  ;;  %v7549_v54 = vld [vmem:[%s9882_s2 + $0x310] sm:$0xff]  }
  0x60   : > { %6405 = vmatprep.subr.bf16.mxu1 %v7525_v56  ;;  %v7550_v56 = vld [vmem:[%s9882_s2 + $0x1d0] sm:$0xff]  }
  0x63   : > { %6406 = vmatpush3.bf16.msra.mxu1 %v7527_v58 }
  0x64   : > { %6407 = vmatprep.subr.bf16.mxu1 %v7529_v60 }
  0x67   : > { %6408 = vmatpush3.bf16.msra.mxu1 %v7531_v62 }
  0x68   : > { %6409 = vmatprep.subr.bf16.mxu1 %v7533_v0 }
  0x6b   : > { %6410 = vmatpush3.bf16.msra.mxu1 %v7536_v2  ;;  %v7554_v2 = vld [vmem:[%s9882_s2 + $0x1d8] sm:$0xff]  }
  0x6c   : > { %6417 = vmatprep.subr.bf16.mxu1 %v7540_v3  ;;  %v7555_v3 = vld [vmem:[%s9882_s2 + $0x360] sm:$0xff]  }
 0x101   : > { %v558_v4 = vpop.f32.mrb[0].mxu1 }
 0x102   : > { %v560_v5 = vpop.f32.mrb[1].mxu1 }
 0x103   : > { %v6390_v6 = vpack.c.bf16 %v560_v5, %v558_v4  ;;  %v562_v7 = vpop.f32.mrb[2].mxu1  ;;  %v656_v4 = vld [vmem:[#allocation2 + $0x8] sm:$0xee]  ;;  %v7556_v5 = vld [vmem:[%s9882_s2 + $0x198] sm:$0xff]  }
 0x104   : > { %v563_v9 = vpop.f32.mrb[3].mxu1 }
 0x105   : > { %v625_v10 = vshrl.u32 %v6390_v6, 16  ;;  %v628_v11 = vshll.u32 %v6390_v6, 16  ;;  %v7557_v6 = vld [vmem:[%s9882_s2 + $0x320] sm:$0xff]  }
 0x107   : > { %v627_v15 = vrot.slane %v625_v10, 6  ;;  %v630_v16 = vrot.slane %v628_v11, 7  ;;  %v669_v10 = vld [vmem:[#allocation2 + $0x18] sm:$0x33]  ;;  %v7558_v11 = vld [vmem:[%s9882_s2 + $0x1e0] sm:$0xff]  }
 0x109   : > { %v631_v18 = vor.u32 %v630_v16, %v627_v15  ;;  %v7559_v15 = vld [vmem:[%s9882_s2 + $0x368] sm:$0xff]   ;;  %v7560_v16 = vld [vmem:[%s9882_s2 + $0x1a0] sm:$0xff]  }
 0x10b   : > { %v640_v20 = vrot.slane %v631_v18, 4  ;;  %v654_v21 = vsel %vm652_vm12, %v631_v18, %v653_v13 }
 0x10c   : > { %655 = vst [vmem:[#allocation2] sm:$0xee] %v654_v21  ;;  %v7562_v21 = vld [vmem:[%s9882_s2 + $0x1e8] sm:$0xff]  }
 0x10d   : > { %v667_v22 = vsel %vm665_vm13, %v640_v20, %v666_v19  ;;  %v7561_v20 = vld [vmem:[%s9882_s2 + $0x328] sm:$0xff]  }
 0x10e   : > { %668 = vst [vmem:[#allocation2 + $0x10] sm:$0x33] %v667_v22  ;;  %v7563_v22 = vld [vmem:[%s9882_s2 + $0x370] sm:$0xff]  }
 0x113   : > { %v8358_v23 = vld [vmem:[#allocation2] sm:$0xee] }
 0x114   : > { %v8360_v25 = vld [vmem:[#allocation2] sm:$0xff] }
 0x115   : > { %v738_v24 = vld [vmem:[#allocation2 + $0x10] sm:$0x11] }
 0x116   : > { %v8362_v26 = vld [vmem:[#allocation2 + $0x10] sm:$0x33]  ;;  %v6008_v27 = vcombine.high %v8358_v23, %v738_v24  ;;  %v6007_v28 = vcombine.low %v8358_v23, %v738_v24  ;;  %v5936_v29 = vcombine.high %v8360_v25, %v738_v24  ;;  %v5935_v31 = vcombine.low %v8360_v25, %v738_v24 }
 0x117   : > { %v6044_v30 = vcombine.high %v8358_v23, %v8362_v26  ;;  %v6043_v24 = vcombine.low %v8358_v23, %v8362_v26 }
 0x118   : > { %v1481_v32 = vrot.slane %v6008_v27, 1  ;;  %v1480_v33 = vrot.slane %v6007_v28, 1  ;;  %v830_v35 = vshll.u32 %v5936_v29, 16  ;;  %v823_v39 = vshll.u32 %v5935_v31, 16  ;;  %v7564_v27 = vld [vmem:[%s9882_s2 + $0x1a8] sm:$0xff]   ;;  %v7566_v28 = vld [vmem:[%s9882_s2 + $0x1f0] sm:$0xff]  }
 0x119   : > { %v1846_v37 = vshrl.u32 %v6044_v30, 16  ;;  %v1849_v38 = vshll.u32 %v6044_v30, 16  ;;  %v828_v40 = vshrl.u32 %v5936_v29, 16  ;;  %v821_v46 = vshrl.u32 %v5935_v31, 16  ;;  %v7567_v29 = vld [vmem:[%s9882_s2 + $0x378] sm:$0xff]   ;;  %v7568_v31 = vld [vmem:[%s9882_s2 + $0x1b0] sm:$0xff]  }
 0x11a   : > { %1712 = vmatprep.mubr.bf16.mxu0 %v1481_v32  ;;  %v832_v41 = vrot.slane %v830_v35, 1  ;;  %v825_v47 = vrot.slane %v823_v39, 1  ;;  %v1838_v23 = vshrl.u32 %v6043_v24, 16  ;;  %v1841_v30 = vshll.u32 %v6043_v24, 16  ;;  %v7569_v32 = vld [vmem:[%s9882_s2 + $0x338] sm:$0xff]  }
 0x11b   : > { %1713 = vmatmul.mubr.bf16.vlgmr.msra.gmra.mrb[0].mxu0 %v1480_v33  ;;  %v1848_v44 = vrot.slane %v1846_v37, 1  ;;  %v1851_v45 = vrot.slane %v1849_v38, 2  ;;  %v7570_v33 = vld [vmem:[%s9882_s2 + $0x1f8] sm:$0xff]   ;;  %v8476_v39 = vld [vmem:[#allocation2] sm:$0xcc] }
 0x11c   : > { %6528 = vmatpush3.bf16.msra.mxu0 %v7538_v34  ;;  %v833_v48 = vor.u32 %v832_v41, %v828_v40  ;;  %v826_v52 = vor.u32 %v825_v47, %v821_v46  ;;  %v1840_v34 = vrot.slane %v1838_v23, 1  ;;  %v1843_v35 = vrot.slane %v1841_v30, 2  ;;  %v7609_v23 = vld [vmem:[%s9882_s2 + $0x540] sm:$0xff]  }
 0x11d   : > { %6529 = vmatprep.subr.bf16.mxu0 %v7541_v36  ;;  %v1852_v51 = vor.u32 %v1851_v45, %v1848_v44  ;;  %v7572_v36 = vld [vmem:[%s9882_s2 + $0x440] sm:$0xff]   ;;  %v6079_v30 = vcombine.low %v8476_v39, %v8362_v26 }
 0x11e   : > { %1076 = vmatprep.mubr.bf16.mxu1 %v833_v48  ;;  %v7574_v44 = vld [vmem:[%s9882_s2 + $0x400] sm:$0xff]   ;;  %v1844_v47 = vor.u32 %v1843_v35, %v1840_v34 }
 0x11f   : > { %2097 = vmatprep.mubr.bf16.mxu0 %v1852_v51  ;;  %1077 = vmatmul.mubr.bf16.vlgmr.msra.gmra.mrb[8].mxu1 %v826_v52  ;;  %v7577_v48 = vld [vmem:[%s9882_s2 + $0x40] sm:$0xff]  }
 0x120   : > { %6418 = vmatpush3.bf16.msra.mxu1 %v7544_v42  ;;  %6530 = vmatpush3.bf16.msra.mxu0 %v7545_v43  ;;  %v6080_v42 = vcombine.high %v8476_v39, %v8362_v26  ;;  %v7573_v43 = vld [vmem:[%s9882_s2 + $0x1b8] sm:$0xff]   ;;  %v7611_v34 = vld [vmem:[%s9882_s2 + $0x500] sm:$0xff]   ;;  %v7615_v26 = vld [vmem:[%s9882_s2 + $0x548] sm:$0xff]  }
 0x121   : > { %v599_v55 = vpop.f32.mrb[4].mxu1  ;;  %6419 = vmatprep.subr.bf16.mxu1 %v7546_v49  ;;  %6531 = vmatprep.subr.bf16.mxu0 %v7547_v50  ;;  %v7578_v49 = vld [vmem:[%s9882_s2 + $0x448] sm:$0xff]   ;;  %v7614_v35 = vld [vmem:[%s9882_s2 + $0xc0] sm:$0xff]  }
 0x122   : > { %v601_v58 = vpop.f32.mrb[5].mxu1 }
 0x123   : > { %v6391_v59 = vpack.c.bf16 %v601_v58, %v599_v55  ;;  %v603_v60 = vpop.f32.mrb[6].mxu1  ;;  %v2223_v55 = vrot.slane %v6080_v42, 2  ;;  %v7618_v42 = vld [vmem:[%s9882_s2 + $0x508] sm:$0xff]  }
 0x124   : > { %6420 = vmatpush3.bf16.msra.mxu1 %v7548_v53  ;;  %6532 = vmatpush3.bf16.msra.mxu0 %v7549_v54  ;;  %v604_v62 = vpop.f32.mrb[7].mxu1  ;;  %v7580_v54 = vld [vmem:[%s9882_s2] sm:$0xff]   ;;  %v7584_v60 = vld [vmem:[%s9882_s2 + $0x450] sm:$0xff]  }
 0x125   : > { %v633_v0 = vshrl.u32 %v6391_v59, 16  ;;  %v636_v1 = vshll.u32 %v6391_v59, 16  ;;  %6421 = vmatprep.subr.bf16.mxu1 %v7550_v56  ;;  %6533 = vmatprep.subr.bf16.mxu0 %v7551_v57  ;;  %v7581_v56 = vld [vmem:[%s9882_s2 + $0x408] sm:$0xff]  }
 0x126   : > { %v7583_v57 = vld [vmem:[%s9882_s2 + $0x48] sm:$0xff]  }
 0x127   : > { %v635_v7 = vrot.slane %v633_v0, 6  ;;  %v638_v9 = vrot.slane %v636_v1, 7  ;;  %v7585_v62 = vld [vmem:[%s9882_s2 + $0x8] sm:$0xff]   ;;  %v7587_v0 = vld [vmem:[%s9882_s2 + $0x50] sm:$0xff]   ;;  %v7588_v1 = vld [vmem:[%s9882_s2 + $0x458] sm:$0xff]  }
 0x128   : > { %6422 = vmatpush3.bf16.msra.mxu1 %v7552_v61  ;;  %6534 = vmatpush3.bf16.msra.mxu0 %v7553_v63  ;;  %v5972_v61 = vcombine.high %v8360_v25, %v8360_v25  ;;  %v7586_v63 = vld [vmem:[%s9882_s2 + $0x410] sm:$0xff]  }
 0x129   : > { %v639_v13 = vor.u32 %v638_v9, %v635_v7  ;;  %6423 = vmatprep.subr.bf16.mxu1 %v7554_v2  ;;  %6535 = vmatprep.subr.bf16.mxu0 %v7555_v3  ;;  %v7589_v2 = vld [vmem:[%s9882_s2 + $0x10] sm:$0xff]   ;;  %v7590_v3 = vld [vmem:[%s9882_s2 + $0x418] sm:$0xff]   ;;  %v7594_v7 = vld [vmem:[%s9882_s2 + $0x420] sm:$0xff]  }
 0x12a   : > { %v7595_v9 = vld [vmem:[%s9882_s2 + $0x60] sm:$0xff]  }
 0x12b   : > { %v641_v18 = vrot.slane %v639_v13, 4  ;;  %v657_v19 = vsel %vm652_vm12, %v639_v13, %v656_v4  ;;  %v7591_v4 = vld [vmem:[%s9882_s2 + $0x58] sm:$0xff]   ;;  %v7597_v13 = vld [vmem:[%s9882_s2 + $0x20] sm:$0xff]  }
 0x12c   : > { %658 = vst [vmem:[#allocation2 + $0x8] sm:$0xee] %v657_v19  ;;  %6424 = vmatpush3.bf16.msra.mxu1 %v7556_v5  ;;  %6536 = vmatpush3.bf16.msra.mxu0 %v7557_v6  ;;  %v7592_v5 = vld [vmem:[%s9882_s2 + $0x460] sm:$0xff]   ;;  %v7593_v6 = vld [vmem:[%s9882_s2 + $0x18] sm:$0xff]  }
 0x12d   : > { %v670_v12 = vsel %vm665_vm13, %v641_v18, %v669_v10  ;;  %6425 = vmatprep.subr.bf16.mxu1 %v7558_v11  ;;  %6537 = vmatprep.subr.bf16.mxu0 %v7559_v15  ;;  %v7596_v10 = vld [vmem:[%s9882_s2 + $0x468] sm:$0xff]   ;;  %v8546_v11 = vld [vmem:[#allocation2 + $0x10] sm:$0x77] }
 0x12e   : > { %671 = vst [vmem:[#allocation2 + $0x18] sm:$0x33] %v670_v12  ;;  %v7598_v15 = vld [vmem:[%s9882_s2 + $0x428] sm:$0xff]   ;;  %v7600_v18 = vld [vmem:[%s9882_s2 + $0x470] sm:$0xff]   ;;  %v6116_v19 = vcombine.high %v8476_v39, %v8546_v11 }
 0x12f   : > { %v7603_v12 = vld [vmem:[%s9882_s2 + $0x70] sm:$0xff]  }
 0x130   : > { %6426 = vmatpush3.bf16.msra.mxu1 %v7560_v16  ;;  %6538 = vmatpush3.bf16.msra.mxu0 %v7561_v20  ;;  %v7599_v16 = vld [vmem:[%s9882_s2 + $0x68] sm:$0xff]   ;;  %v2588_v24 = vshrl.u32 %v6116_v19, 16 }
 0x131   : > { %6427 = vmatprep.subr.bf16.mxu1 %v7562_v21  ;;  %6539 = vmatprep.subr.bf16.mxu0 %v7563_v22  ;;  %v7601_v20 = vld [vmem:[%s9882_s2 + $0x28] sm:$0xff]   ;;  %v7602_v21 = vld [vmem:[%s9882_s2 + $0x430] sm:$0xff]   ;;  %v7604_v22 = vld [vmem:[%s9882_s2 + $0x478] sm:$0xff]  }
 0x133   : > { %v8472_v37 = vld [vmem:[#allocation2 + $0x8] sm:$0xff] }
 0x134   : > { %6428 = vmatpush3.bf16.msra.mxu1 %v7564_v27  ;;  %6540 = vmatpush3.bf16.msra.mxu0 %v7565_v17  ;;  %v2591_v27 = vshll.u32 %v6116_v19, 16  ;;  %v7605_v17 = vld [vmem:[%s9882_s2 + $0x30] sm:$0xff]   ;;  %v7646_v19 = vld [vmem:[%s9882_s2 + $0xb8] sm:$0xff]  }
 0x135   : > { %6429 = vmatprep.subr.bf16.mxu1 %v7566_v28  ;;  %6541 = vmatprep.subr.bf16.mxu0 %v7567_v29  ;;  %v8474_v38 = vld [vmem:[#allocation2 + $0x18] sm:$0x11] }
 0x136   : > { %v5938_v40 = vcombine.high %v8472_v37, %v8474_v38  ;;  %v5937_v41 = vcombine.low %v8472_v37, %v8474_v38  ;;  %v7606_v28 = vld [vmem:[%s9882_s2 + $0x438] sm:$0xff]  }
 0x137   : > { %v7607_v29 = vld [vmem:[%s9882_s2 + $0x78] sm:$0xff]  }
 0x138   : > { %6430 = vmatpush3.bf16.msra.mxu1 %v7568_v31  ;;  %6542 = vmatpush3.bf16.msra.mxu0 %v7569_v32  ;;  %v844_v45 = vshll.u32 %v5938_v40, 16  ;;  %v837_v46 = vshll.u32 %v5937_v41, 16  ;;  %v842_v50 = vshrl.u32 %v5938_v40, 16  ;;  %v835_v52 = vshrl.u32 %v5937_v41, 16  ;;  %v7616_v40 = vld [vmem:[%s9882_s2 + $0x80] sm:$0xff]  }
 0x139   : > { %6431 = vmatprep.subr.bf16.mxu1 %v7570_v33  ;;  %6571 = vmatprep.subr.bf16.mxu0 %v7572_v36  ;;  %v2590_v31 = vrot.slane %v2588_v24, 2  ;;  %v2593_v32 = vrot.slane %v2591_v27, 3  ;;  %v7610_v33 = vld [vmem:[%s9882_s2 + $0x38] sm:$0xff]   ;;  %v2222_v36 = vrot.slane %v6079_v30, 2  ;;  %v5973_v30 = vcombine.low %v8472_v37, %v8472_v37 }
 0x13a   : > { %v846_v51 = vrot.slane %v844_v45, 1  ;;  %v839_v53 = vrot.slane %v837_v46, 1  ;;  %v5971_v45 = vcombine.low %v8360_v25, %v8360_v25  ;;  %v5974_v46 = vcombine.high %v8472_v37, %v8472_v37  ;;  %v7623_v25 = vld [vmem:[%s9882_s2 + $0xd0] sm:$0xff]   ;;  %v7660_v37 = vld [vmem:[%s9882_s2 + $0x658] sm:$0xff]  }
 0x13b   : > { %2098 = vmatmul.mubr.bf16.vlgmr.msra.gmra.mrb[4].mxu0 %v1844_v47  ;;  %v2594_v41 = vor.u32 %v2593_v32, %v2590_v31  ;;  %v7621_v47 = vld [vmem:[%s9882_s2 + $0x88] sm:$0xff]   ;;  %v7658_v32 = vld [vmem:[%s9882_s2 + $0x610] sm:$0xff]  }
 0x13c   : > { %6432 = vmatpush3.bf16.msra.mxu1 %v7573_v43  ;;  %6572 = vmatpush3.bf16.msra.mxu0 %v7574_v44  ;;  %v847_v58 = vor.u32 %v846_v51, %v842_v50  ;;  %v840_v59 = vor.u32 %v839_v53, %v835_v52  ;;  %v7619_v43 = vld [vmem:[%s9882_s2 + $0xc8] sm:$0xff]   ;;  %v7620_v44 = vld [vmem:[%s9882_s2 + $0x550] sm:$0xff]   ;;  %v7626_v51 = vld [vmem:[%s9882_s2 + $0x518] sm:$0xff]  }
 0x13d   : > { %2454 = vmatprep.mubr.bf16.mxu0 %v2223_v55  ;;  %6439 = vmatprep.subr.bf16.mxu1 %v7577_v48  ;;  %v7622_v48 = vld [vmem:[%s9882_s2 + $0x510] sm:$0xff]   ;;  %v7627_v52 = vld [vmem:[%s9882_s2 + $0xd8] sm:$0xff]   ;;  %v7628_v53 = vld [vmem:[%s9882_s2 + $0x560] sm:$0xff]  }
 0x13e   : > { %1116 = vmatprep.mubr.bf16.mxu1 %v847_v58  ;;  %6573 = vmatprep.subr.bf16.mxu0 %v7578_v49  ;;  %v7624_v49 = vld [vmem:[%s9882_s2 + $0x558] sm:$0xff]   ;;  %v7625_v50 = vld [vmem:[%s9882_s2 + $0x90] sm:$0xff]   ;;  %v7630_v55 = vld [vmem:[%s9882_s2 + $0x520] sm:$0xff]  }
 0x13f   : > { %1117 = vmatmul.mubr.bf16.vlgmr.msra.gmra.mrb[12].mxu1 %v840_v59  ;;  %v7633_v58 = vld [vmem:[%s9882_s2 + $0xa0] sm:$0xff]   ;;  %v7634_v59 = vld [vmem:[%s9882_s2 + $0x528] sm:$0xff]  }
 0x140   : > { %6440 = vmatpush3.bf16.msra.mxu1 %v7580_v54  ;;  %6574 = vmatpush3.bf16.msra.mxu0 %v7581_v56  ;;  %v7629_v54 = vld [vmem:[%s9882_s2 + $0x98] sm:$0xff]   ;;  %v7631_v56 = vld [vmem:[%s9882_s2 + $0xe0] sm:$0xff]   ;;  %v7657_v31 = vld [vmem:[%s9882_s2 + $0x288] sm:$0xff]  }
 0x141   : > { %1356 = vmatprep.mubr.bf16.mxu1 %v5972_v61  ;;  %6441 = vmatprep.subr.bf16.mxu1 %v7583_v57  ;;  %v7632_v57 = vld [vmem:[%s9882_s2 + $0x568] sm:$0xff]   ;;  %v7636_v61 = vld [vmem:[%s9882_s2 + $0x570] sm:$0xff]  }
 0x142   : > { %6575 = vmatprep.subr.bf16.mxu0 %v7584_v60  ;;  %v7635_v60 = vld [vmem:[%s9882_s2 + $0xe8] sm:$0xff]  }
 0x144   : > { %6442 = vmatpush3.bf16.msra.mxu1 %v7585_v62  ;;  %6576 = vmatpush3.bf16.msra.mxu0 %v7586_v63  ;;  %v6115_v62 = vcombine.low %v8476_v39, %v8546_v11  ;;  %v7637_v63 = vld [vmem:[%s9882_s2 + $0xa8] sm:$0xff]   ;;  %v7640_v39 = vld [vmem:[%s9882_s2 + $0x578] sm:$0xff]  }
 0x145   : > { %6443 = vmatprep.subr.bf16.mxu1 %v7587_v0  ;;  %6577 = vmatprep.subr.bf16.mxu0 %v7588_v1  ;;  %v7638_v0 = vld [vmem:[%s9882_s2 + $0x530] sm:$0xff]  }
 0x146   : > { %v7639_v1 = vld [vmem:[%s9882_s2 + $0xf0] sm:$0xff]  }
 0x148   : > { %6444 = vmatpush3.bf16.msra.mxu1 %v7589_v2  ;;  %6578 = vmatpush3.bf16.msra.mxu0 %v7590_v3  ;;  %v2580_v2 = vshrl.u32 %v6115_v62, 16  ;;  %v2583_v3 = vshll.u32 %v6115_v62, 16 }
 0x149   : > { %6445 = vmatprep.subr.bf16.mxu1 %v7591_v4  ;;  %6579 = vmatprep.subr.bf16.mxu0 %v7592_v5  ;;  %v7641_v4 = vld [vmem:[%s9882_s2 + $0xb0] sm:$0xff]   ;;  %v8681_v5 = vld [vmem:[#allocation2] sm:$0x88] }
 0x14c   : > { %6446 = vmatpush3.bf16.msra.mxu1 %v7593_v6  ;;  %6580 = vmatpush3.bf16.msra.mxu0 %v7594_v7  ;;  %v7642_v6 = vld [vmem:[%s9882_s2 + $0x538] sm:$0xff]   ;;  %v8686_v7 = vld [vmem:[#allocation2 + $0x8] sm:$0xee] }
 0x14d   : > { %6447 = vmatprep.subr.bf16.mxu1 %v7595_v9  ;;  %6581 = vmatprep.subr.bf16.mxu0 %v7596_v10  ;;  %v7643_v9 = vld [vmem:[%s9882_s2 + $0xf8] sm:$0xff]   ;;  %v2582_v10 = vrot.slane %v2580_v2, 2  ;;  %v7687_v2 = vld [vmem:[%s9882_s2 + $0x388] sm:$0xff]  }
 0x150   : > { %6448 = vmatpush3.bf16.msra.mxu1 %v7597_v13  ;;  %6582 = vmatpush3.bf16.msra.mxu0 %v7598_v15  ;;  %v2585_v13 = vrot.slane %v2583_v3, 3  ;;  %v7645_v15 = vld [vmem:[%s9882_s2 + $0x640] sm:$0xff]   ;;  %v7688_v3 = vld [vmem:[%s9882_s2 + $0x3d0] sm:$0xff]  }
 0x151   : > { %6449 = vmatprep.subr.bf16.mxu1 %v7599_v16  ;;  %6583 = vmatprep.subr.bf16.mxu0 %v7600_v18  ;;  %v6152_v16 = vcombine.high %v8681_v5, %v8546_v11  ;;  %v6010_v18 = vcombine.high %v8686_v7, %v8474_v38 }
 0x152   : > { %v2586_v27 = vor.u32 %v2585_v13, %v2582_v10  ;;  %v7693_v10 = vld [vmem:[%s9882_s2 + $0x3a0] sm:$0xff]   ;;  %v7694_v13 = vld [vmem:[%s9882_s2 + $0x3e8] sm:$0xff]  }
 0x153   : > { %v1483_v24 = vrot.slane %v6010_v18, 1 }
 0x154   : > { %6450 = vmatpush3.bf16.msra.mxu1 %v7601_v20  ;;  %6584 = vmatpush3.bf16.msra.mxu0 %v7602_v21  ;;  %v7647_v20 = vld [vmem:[%s9882_s2 + $0x600] sm:$0xff]  }
 0x155   : > { %6451 = vmatprep.subr.bf16.mxu1 %v7603_v12  ;;  %6585 = vmatprep.subr.bf16.mxu0 %v7604_v22  ;;  %v7650_v21 = vld [vmem:[%s9882_s2 + $0x2c0] sm:$0xff]   ;;  %v7651_v12 = vld [vmem:[%s9882_s2 + $0x648] sm:$0xff]   ;;  %v2965_v22 = vrot.slane %v6152_v16, 3  ;;  %v7696_v16 = vld [vmem:[%s9882_s2 + $0x3f0] sm:$0xff]  }
 0x158   : > { %6452 = vmatpush3.bf16.msra.mxu1 %v7605_v17  ;;  %6586 = vmatpush3.bf16.msra.mxu0 %v7606_v28  ;;  %v7652_v17 = vld [vmem:[%s9882_s2 + $0x280] sm:$0xff]   ;;  %v7654_v28 = vld [vmem:[%s9882_s2 + $0x608] sm:$0xff]  }
 0x159   : > { %6453 = vmatprep.subr.bf16.mxu1 %v7607_v29  ;;  %6615 = vmatprep.subr.bf16.mxu0 %v7609_v23  ;;  %v7655_v29 = vld [vmem:[%s9882_s2 + $0x2c8] sm:$0xff]   ;;  %v7656_v23 = vld [vmem:[%s9882_s2 + $0x650] sm:$0xff]  }
 0x15b   : > { %2455 = vmatmul.mubr.bf16.vlgmr.msra.gmra.mrb[8].mxu0 %v2222_v36  ;;  %v7663_v36 = vld [vmem:[%s9882_s2 + $0x2d8] sm:$0xff]  }
 0x15c   : > { %6454 = vmatpush3.bf16.msra.mxu1 %v7610_v33  ;;  %6616 = vmatpush3.bf16.msra.mxu0 %v7611_v34  ;;  %v7659_v33 = vld [vmem:[%s9882_s2 + $0x2d0] sm:$0xff]  }
 0x15d   : > { %2839 = vmatprep.mubr.bf16.mxu0 %v2594_v41  ;;  %6461 = vmatprep.subr.bf16.mxu1 %v7614_v35  ;;  %v7661_v34 = vld [vmem:[%s9882_s2 + $0x290] sm:$0xff]   ;;  %v7662_v35 = vld [vmem:[%s9882_s2 + $0x618] sm:$0xff]   ;;  %v7666_v41 = vld [vmem:[%s9882_s2 + $0x620] sm:$0xff]  }
 0x15e   : > { %6617 = vmatprep.subr.bf16.mxu0 %v7615_v26  ;;  %v7664_v26 = vld [vmem:[%s9882_s2 + $0x660] sm:$0xff]  }
 0x15f   : > { %1357 = vmatmul.mubr.bf16.vlgmr.msra.gmra.mrb[16].mxu1 %v5971_v45  ;;  %v7670_v45 = vld [vmem:[%s9882_s2 + $0x628] sm:$0xff]  }
 0x160   : > { %6462 = vmatpush3.bf16.msra.mxu1 %v7616_v40  ;;  %1396 = vmatprep.mubr.bf16.mxu1 %v5974_v46  ;;  %v7665_v40 = vld [vmem:[%s9882_s2 + $0x298] sm:$0xff]   ;;  %v7671_v46 = vld [vmem:[%s9882_s2 + $0x2e8] sm:$0xff]  }
 0x161   : > { %6618 = vmatpush3.bf16.msra.mxu0 %v7618_v42  ;;  %6463 = vmatprep.subr.bf16.mxu1 %v7619_v43  ;;  %v7667_v42 = vld [vmem:[%s9882_s2 + $0x2e0] sm:$0xff]   ;;  %v7668_v43 = vld [vmem:[%s9882_s2 + $0x668] sm:$0xff]  }
 0x162   : > { %6619 = vmatprep.subr.bf16.mxu0 %v7620_v44  ;;  %v7669_v44 = vld [vmem:[%s9882_s2 + $0x2a0] sm:$0xff]  }
 0x164   : > { %6464 = vmatpush3.bf16.msra.mxu1 %v7621_v47  ;;  %v7672_v47 = vld [vmem:[%s9882_s2 + $0x670] sm:$0xff]  }
 0x165   : > { %6620 = vmatpush3.bf16.msra.mxu0 %v7622_v48  ;;  %6465 = vmatprep.subr.bf16.mxu1 %v7623_v25  ;;  %v8772_v48 = vld [vmem:[#allocation2 + $0x18] sm:$0x33]  ;;  %v7673_v25 = vld [vmem:[%s9882_s2 + $0x2a8] sm:$0xff]  }
 0x166   : > { %6621 = vmatprep.subr.bf16.mxu0 %v7624_v49  ;;  %v7674_v49 = vld [vmem:[%s9882_s2 + $0x630] sm:$0xff]   ;;  %v6045_v18 = vcombine.low %v8686_v7, %v8772_v48 }
 0x168   : > { %6466 = vmatpush3.bf16.msra.mxu1 %v7625_v50  ;;  %v7675_v50 = vld [vmem:[%s9882_s2 + $0x2f0] sm:$0xff]  }
 0x169   : > { %6622 = vmatpush3.bf16.msra.mxu0 %v7626_v51  ;;  %6467 = vmatprep.subr.bf16.mxu1 %v7627_v52  ;;  %v7676_v51 = vld [vmem:[%s9882_s2 + $0x678] sm:$0xff]   ;;  %v6046_v52 = vcombine.high %v8686_v7, %v8772_v48 }
 0x16a   : > { %6623 = vmatprep.subr.bf16.mxu0 %v7628_v53  ;;  %v7677_v53 = vld [vmem:[%s9882_s2 + $0x2b0] sm:$0xff]  }
 0x16c   : > { %6468 = vmatpush3.bf16.msra.mxu1 %v7629_v54  ;;  %v7678_v54 = vld [vmem:[%s9882_s2 + $0x638] sm:$0xff]  }
 0x16d   : > { %6624 = vmatpush3.bf16.msra.mxu0 %v7630_v55  ;;  %6469 = vmatprep.subr.bf16.mxu1 %v7631_v56  ;;  %v7679_v55 = vld [vmem:[%s9882_s2 + $0x2f8] sm:$0xff]   ;;  %v6151_v56 = vcombine.low %v8681_v5, %v8546_v11  ;;  %v7684_v11 = vld [vmem:[%s9882_s2 + $0x380] sm:$0xff]  }
 0x16e   : > { %6625 = vmatprep.subr.bf16.mxu0 %v7632_v57  ;;  %v1862_v57 = vshrl.u32 %v6046_v52, 16  ;;  %v7690_v5 = vld [vmem:[%s9882_s2 + $0x3d8] sm:$0xff]  }
 0x16f   : > { %v2964_v62 = vrot.slane %v6151_v56, 3  ;;  %v7722_v56 = vld [vmem:[%s9882_s2 + $0x5c8] sm:$0xff]  }
 0x170   : > { %6470 = vmatpush3.bf16.msra.mxu1 %v7633_v58  ;;  %v1865_v58 = vshll.u32 %v6046_v52, 16 }
 0x171   : > { %6626 = vmatpush3.bf16.msra.mxu0 %v7634_v59  ;;  %6471 = vmatprep.subr.bf16.mxu1 %v7635_v60  ;;  %v7681_v59 = vld [vmem:[%s9882_s2 + $0x2b8] sm:$0xff]   ;;  %v6009_v60 = vcombine.low %v8686_v7, %v8474_v38 }
 0x172   : > { %6627 = vmatprep.subr.bf16.mxu0 %v7636_v61  ;;  %v7683_v61 = vld [vmem:[%s9882_s2 + $0x3c0] sm:$0xff]  }
 0x174   : > { %6472 = vmatpush3.bf16.msra.mxu1 %v7637_v63  ;;  %v1864_v63 = vrot.slane %v1862_v57, 1 }
 0x175   : > { %6628 = vmatpush3.bf16.msra.mxu0 %v7638_v0  ;;  %6473 = vmatprep.subr.bf16.mxu1 %v7639_v1  ;;  %v1867_v0 = vrot.slane %v1865_v58, 2  ;;  %v1482_v1 = vrot.slane %v6009_v60, 1  ;;  %v7724_v58 = vld [vmem:[%s9882_s2 + $0x5d0] sm:$0xff]   ;;  %v7726_v60 = vld [vmem:[%s9882_s2 + $0x5d8] sm:$0xff]  }
 0x176   : > { %6629 = vmatprep.subr.bf16.mxu0 %v7640_v39  ;;  %v7686_v39 = vld [vmem:[%s9882_s2 + $0x3c8] sm:$0xff]  }
 0x177   : > { %v1868_v38 = vor.u32 %v1867_v0, %v1864_v63  ;;  %v7729_v63 = vld [vmem:[%s9882_s2 + $0x5a0] sm:$0xff]   ;;  %v7730_v0 = vld [vmem:[%s9882_s2 + $0x5e8] sm:$0xff]  }
 0x178   : > { %6474 = vmatpush3.bf16.msra.mxu1 %v7641_v4  ;;  %v7689_v4 = vld [vmem:[%s9882_s2 + $0x390] sm:$0xff]  }
 0x179   : > { %6630 = vmatpush3.bf16.msra.mxu0 %v7642_v6  ;;  %6475 = vmatprep.subr.bf16.mxu1 %v7643_v9  ;;  %v7691_v6 = vld [vmem:[%s9882_s2 + $0x398] sm:$0xff]   ;;  %v7692_v9 = vld [vmem:[%s9882_s2 + $0x3e0] sm:$0xff]  }
 0x17a   : > { %6659 = vmatprep.subr.bf16.mxu0 %v7645_v15  ;;  %v7695_v15 = vld [vmem:[%s9882_s2 + $0x3a8] sm:$0xff]  }
 0x17c   : > { %2840 = vmatmul.mubr.bf16.vlgmr.msra.gmra.mrb[12].mxu0 %v2586_v27  ;;  %6476 = vmatpush3.bf16.msra.mxu1 %v7646_v19  ;;  %v7697_v19 = vld [vmem:[%s9882_s2 + $0x3b0] sm:$0xff]   ;;  %v7701_v27 = vld [vmem:[%s9882_s2 + $0x4c0] sm:$0xff]  }
 0x17d   : > { %6660 = vmatpush3.bf16.msra.mxu0 %v7647_v20  ;;  %3196 = vmatprep.mubr.bf16.mxu0 %v2965_v22  ;;  %v7698_v20 = vld [vmem:[%s9882_s2 + $0x3f8] sm:$0xff]  }
 0x17e   : > { %6505 = vmatprep.subr.bf16.mxu1 %v7650_v21  ;;  %6661 = vmatprep.subr.bf16.mxu0 %v7651_v12  ;;  %v1854_v21 = vshrl.u32 %v6045_v18, 16  ;;  %v1857_v12 = vshll.u32 %v6045_v18, 16  ;;  %v7699_v22 = vld [vmem:[%s9882_s2 + $0x3b8] sm:$0xff]  }
 0x17f   : > { %1397 = vmatmul.mubr.bf16.vlgmr.msra.gmra.mrb[20].mxu1 %v5973_v30  ;;  %v7704_v30 = vld [vmem:[%s9882_s2 + $0x4c8] sm:$0xff]   ;;  %v7734_v18 = vld [vmem:[%s9882_s2 + $0x5f8] sm:$0xff]  }
 0x180   : > { %6506 = vmatpush3.bf16.msra.mxu1 %v7652_v17  ;;  %1752 = vmatprep.mubr.bf16.mxu1 %v1483_v24  ;;  %v1856_v24 = vrot.slane %v1854_v21, 1  ;;  %v1859_v7 = vrot.slane %v1857_v12, 2  ;;  %v8857_v17 = vld [vmem:[#allocation2 + $0x8] sm:$0xcc]  ;;  %v7735_v21 = vld [vmem:[%s9882_s2 + $0x5b8] sm:$0xff]  }
 0x181   : > { %6662 = vmatpush3.bf16.msra.mxu0 %v7654_v28  ;;  %6507 = vmatprep.subr.bf16.mxu1 %v7655_v29  ;;  %v6082_v28 = vcombine.high %v8857_v17, %v8772_v48  ;;  %v7702_v29 = vld [vmem:[%s9882_s2 + $0x480] sm:$0xff]  }
 0x182   : > { %6663 = vmatprep.subr.bf16.mxu0 %v7656_v23  ;;  %v1860_v23 = vor.u32 %v1859_v7, %v1856_v24  ;;  %v7737_v24 = vld [vmem:[%s9882_s2 + $0x6c0] sm:$0xff]   ;;  %v2889_v7 = vld [vmem:[#allocation2 + $0x8] sm:$0x88] }
 0x184   : > { %6508 = vmatpush3.bf16.msra.mxu1 %v7657_v31  ;;  %v2225_v31 = vrot.slane %v6082_v28, 2 }
 0x185   : > { %6664 = vmatpush3.bf16.msra.mxu0 %v7658_v32  ;;  %6509 = vmatprep.subr.bf16.mxu1 %v7659_v33  ;;  %v7705_v32 = vld [vmem:[%s9882_s2 + $0x488] sm:$0xff]   ;;  %v7706_v33 = vld [vmem:[%s9882_s2 + $0x4d0] sm:$0xff]  }
 0x186   : > { %6665 = vmatprep.subr.bf16.mxu0 %v7660_v37  ;;  %v7707_v37 = vld [vmem:[%s9882_s2 + $0x490] sm:$0xff]  }
 0x188   : > { %6510 = vmatpush3.bf16.msra.mxu1 %v7661_v34  ;;  %v7708_v34 = vld [vmem:[%s9882_s2 + $0x4d8] sm:$0xff]  }
 0x189   : > { %6666 = vmatpush3.bf16.msra.mxu0 %v7662_v35  ;;  %6511 = vmatprep.subr.bf16.mxu1 %v7663_v36  ;;  %v7709_v35 = vld [vmem:[%s9882_s2 + $0x498] sm:$0xff]   ;;  %v7710_v36 = vld [vmem:[%s9882_s2 + $0x4e0] sm:$0xff]  }
 0x18a   : > { %6667 = vmatprep.subr.bf16.mxu0 %v7664_v26  ;;  %v7711_v26 = vld [vmem:[%s9882_s2 + $0x4a0] sm:$0xff]  }
 0x18c   : > { %6512 = vmatpush3.bf16.msra.mxu1 %v7665_v40  ;;  %v7712_v40 = vld [vmem:[%s9882_s2 + $0x4e8] sm:$0xff]  }
 0x18d   : > { %6668 = vmatpush3.bf16.msra.mxu0 %v7666_v41  ;;  %6513 = vmatprep.subr.bf16.mxu1 %v7667_v42  ;;  %v8891_v41 = vld [vmem:[#allocation2 + $0x18] sm:$0x77]  ;;  %v7713_v42 = vld [vmem:[%s9882_s2 + $0x4a8] sm:$0xff]  }
 0x18e   : > { %6669 = vmatprep.subr.bf16.mxu0 %v7668_v43  ;;  %v7714_v43 = vld [vmem:[%s9882_s2 + $0x4f0] sm:$0xff]  }
 0x190   : > { %6514 = vmatpush3.bf16.msra.mxu1 %v7669_v44  ;;  %v6118_v44 = vcombine.high %v8857_v17, %v8891_v41 }
 0x191   : > { %6670 = vmatpush3.bf16.msra.mxu0 %v7670_v45  ;;  %6515 = vmatprep.subr.bf16.mxu1 %v7671_v46  ;;  %v7715_v45 = vld [vmem:[%s9882_s2 + $0x4b0] sm:$0xff]   ;;  %v7716_v46 = vld [vmem:[%s9882_s2 + $0x4f8] sm:$0xff]  }
 0x192   : > { %6671 = vmatprep.subr.bf16.mxu0 %v7672_v47  ;;  %v2604_v47 = vshrl.u32 %v6118_v44, 16 }
 0x194   : > { %6516 = vmatpush3.bf16.msra.mxu1 %v7673_v25  ;;  %v2607_v25 = vshll.u32 %v6118_v44, 16  ;;  %v2606_v52 = vrot.slane %v2604_v47, 2  ;;  %v7750_v44 = vld [vmem:[%s9882_s2 + $0x6a8] sm:$0xff]  }
 0x195   : > { %6672 = vmatpush3.bf16.msra.mxu0 %v7674_v49  ;;  %6517 = vmatprep.subr.bf16.mxu1 %v7675_v50  ;;  %v7717_v49 = vld [vmem:[%s9882_s2 + $0x4b8] sm:$0xff]   ;;  %v6081_v50 = vcombine.low %v8857_v17, %v8772_v48  ;;  %v7723_v48 = vld [vmem:[%s9882_s2 + $0x588] sm:$0xff]  }
 0x196   : > { %6673 = vmatprep.subr.bf16.mxu0 %v7676_v51  ;;  %v7719_v51 = vld [vmem:[%s9882_s2 + $0x5c0] sm:$0xff]  }
 0x198   : > { %6518 = vmatpush3.bf16.msra.mxu1 %v7677_v53  ;;  %v2609_v53 = vrot.slane %v2607_v25, 3 }
 0x199   : > { %6674 = vmatpush3.bf16.msra.mxu0 %v7678_v54  ;;  %6519 = vmatprep.subr.bf16.mxu1 %v7679_v55  ;;  %v7720_v54 = vld [vmem:[%s9882_s2 + $0x580] sm:$0xff]   ;;  %v2224_v55 = vrot.slane %v6081_v50, 2 }
 0x19a   : > { %v2610_v57 = vor.u32 %v2609_v53, %v2606_v52  ;;  %v7753_v53 = vld [vmem:[%s9882_s2 + $0x6f8] sm:$0xff]  }
 0x19c   : > { %3197 = vmatmul.mubr.bf16.vlgmr.msra.gmra.mrb[16].mxu0 %v2964_v62  ;;  %6520 = vmatpush3.bf16.msra.mxu1 %v7681_v59  ;;  %v7725_v59 = vld [vmem:[%s9882_s2 + $0x590] sm:$0xff]   ;;  %v7728_v62 = vld [vmem:[%s9882_s2 + $0x5e0] sm:$0xff]  }
 0x19d   : > { %6549 = vmatprep.subr.bf16.mxu1 %v7683_v61  ;;  %v7727_v61 = vld [vmem:[%s9882_s2 + $0x598] sm:$0xff]  }
 0x19f   : > { %1753 = vmatmul.mubr.bf16.vlgmr.msra.gmra.mrb[24].mxu1 %v1482_v1 }
 0x1a0   : > { %6550 = vmatpush3.bf16.msra.mxu1 %v7684_v11  ;;  %2137 = vmatprep.mubr.bf16.mxu1 %v1868_v38 }
 0x1a1   : > { %6551 = vmatprep.subr.bf16.mxu1 %v7686_v39 }
 0x1a4   : > { %6552 = vmatpush3.bf16.msra.mxu1 %v7687_v2  ;;  %v7731_v2 = vld [vmem:[%s9882_s2 + $0x5a8] sm:$0xff]  }
 0x1a5   : > { %6553 = vmatprep.subr.bf16.mxu1 %v7688_v3 }
 0x1a8   : > { %6554 = vmatpush3.bf16.msra.mxu1 %v7689_v4  ;;  %v7732_v4 = vld [vmem:[%s9882_s2 + $0x5f0] sm:$0xff]  }
 0x1a9   : > { %6555 = vmatprep.subr.bf16.mxu1 %v7690_v5  ;;  %v6117_v5 = vcombine.low %v8857_v17, %v8891_v41  ;;  %v7738_v17 = vld [vmem:[%s9882_s2 + $0x680] sm:$0xff]  }
 0x1ac   : > { %6556 = vmatpush3.bf16.msra.mxu1 %v7691_v6 }
 0x1ad   : > { %6557 = vmatprep.subr.bf16.mxu1 %v7692_v9 }
 0x1b0   : > { %6558 = vmatpush3.bf16.msra.mxu1 %v7693_v10 }
 0x1b1   : > { %6559 = vmatprep.subr.bf16.mxu1 %v7694_v13 }
 0x1b4   : > { %6560 = vmatpush3.bf16.msra.mxu1 %v7695_v15  ;;  %v7733_v15 = vld [vmem:[%s9882_s2 + $0x5b0] sm:$0xff]  }
 0x1b5   : > { %6561 = vmatprep.subr.bf16.mxu1 %v7696_v16 }
 0x1b8   : > { %6562 = vmatpush3.bf16.msra.mxu1 %v7697_v19  ;;  %v2596_v19 = vshrl.u32 %v6117_v5, 16 }
 0x1b9   : > { %6563 = vmatprep.subr.bf16.mxu1 %v7698_v20  ;;  %v2599_v20 = vshll.u32 %v6117_v5, 16 }
 0x1ba   : > { %v2598_v12 = vrot.slane %v2596_v19, 2 }
 0x1bc   : > { %6564 = vmatpush3.bf16.msra.mxu1 %v7699_v22  ;;  %v2601_v22 = vrot.slane %v2599_v20, 3 }
 0x1bd   : > { %6593 = vmatprep.subr.bf16.mxu1 %v7701_v27  ;;  %v6154_v27 = vcombine.high %v2889_v7, %v8891_v41 }
 0x1be   : > { %v2602_v28 = vor.u32 %v2601_v22, %v2598_v12 }
 0x1bf   : > { %2138 = vmatmul.mubr.bf16.vlgmr.msra.gmra.mrb[28].mxu1 %v1860_v23  ;;  %v2967_v23 = vrot.slane %v6154_v27, 3 }
 0x1c0   : > { %6594 = vmatpush3.bf16.msra.mxu1 %v7702_v29  ;;  %2494 = vmatprep.mubr.bf16.mxu1 %v2225_v31  ;;  %v7741_v29 = vld [vmem:[%s9882_s2 + $0x6c8] sm:$0xff]   ;;  %v7743_v31 = vld [vmem:[%s9882_s2 + $0x6d0] sm:$0xff]  }
 0x1c1   : > { %6595 = vmatprep.subr.bf16.mxu1 %v7704_v30  ;;  %v7742_v30 = vld [vmem:[%s9882_s2 + $0x688] sm:$0xff]  }
 0x1c4   : > { %6596 = vmatpush3.bf16.msra.mxu1 %v7705_v32  ;;  %v7744_v32 = vld [vmem:[%s9882_s2 + $0x690] sm:$0xff]  }
 0x1c5   : > { %6597 = vmatprep.subr.bf16.mxu1 %v7706_v33  ;;  %v7745_v33 = vld [vmem:[%s9882_s2 + $0x6d8] sm:$0xff]  }
 0x1c8   : > { %6598 = vmatpush3.bf16.msra.mxu1 %v7707_v37  ;;  %v7746_v37 = vld [vmem:[%s9882_s2 + $0x698] sm:$0xff]  }
 0x1c9   : > { %6599 = vmatprep.subr.bf16.mxu1 %v7708_v34  ;;  %v7747_v34 = vld [vmem:[%s9882_s2 + $0x6e0] sm:$0xff]  }
 0x1cc   : > { %6600 = vmatpush3.bf16.msra.mxu1 %v7709_v35  ;;  %v7748_v35 = vld [vmem:[%s9882_s2 + $0x6a0] sm:$0xff]  }
 0x1cd   : > { %6601 = vmatprep.subr.bf16.mxu1 %v7710_v36  ;;  %v7749_v36 = vld [vmem:[%s9882_s2 + $0x6e8] sm:$0xff]  }
 0x1d0   : > { %6602 = vmatpush3.bf16.msra.mxu1 %v7711_v26 }
 0x1d1   : > { %6603 = vmatprep.subr.bf16.mxu1 %v7712_v40 }
 0x1d4   : > { %6604 = vmatpush3.bf16.msra.mxu1 %v7713_v42 }
 0x1d5   : > { %6605 = vmatprep.subr.bf16.mxu1 %v7714_v43 }
 0x1d8   : > { %6606 = vmatpush3.bf16.msra.mxu1 %v7715_v45 }
 0x1d9   : > { %6607 = vmatprep.subr.bf16.mxu1 %v7716_v46  ;;  %v7751_v46 = vld [vmem:[%s9882_s2 + $0x6f0] sm:$0xff]  }
 0x1dc   : > { %6608 = vmatpush3.bf16.msra.mxu1 %v7717_v49 }
 0x1dd   : > { %6637 = vmatprep.subr.bf16.mxu1 %v7719_v51  ;;  %v7752_v51 = vld [vmem:[%s9882_s2 + $0x6b0] sm:$0xff]  }
 0x1df   : > { %2495 = vmatmul.mubr.bf16.vlgmr.msra.gmra.mrb[32].mxu1 %v2224_v55  ;;  %v7754_v55 = vld [vmem:[%s9882_s2 + $0x6b8] sm:$0xff]  }
 0x1e0   : > { %6638 = vmatpush3.bf16.msra.mxu1 %v7720_v54  ;;  %2879 = vmatprep.mubr.bf16.mxu1 %v2610_v57 }
 0x1e1   : > { %6639 = vmatprep.subr.bf16.mxu1 %v7722_v56  ;;  %v6153_v56 = vcombine.low %v2889_v7, %v8891_v41 }
 0x1e3   : > { %v2966_v57 = vrot.slane %v6153_v56, 3 }
 0x1e4   : > { %6640 = vmatpush3.bf16.msra.mxu1 %v7723_v48 }
 0x1e5   : > { %6641 = vmatprep.subr.bf16.mxu1 %v7724_v58 }
 0x1e8   : > { %6642 = vmatpush3.bf16.msra.mxu1 %v7725_v59 }
 0x1e9   : > { %6643 = vmatprep.subr.bf16.mxu1 %v7726_v60 }
 0x1ec   : > { %6644 = vmatpush3.bf16.msra.mxu1 %v7727_v61 }
 0x1ed   : > { %6645 = vmatprep.subr.bf16.mxu1 %v7728_v62 }
 0x1ee   : > { %v6499_v11 = vpop.f32.mrb[0].mxu0 }
 0x1ef   : > { %v6500_v1 = vpop.f32.mrb[1].mxu0 }
 0x1f0   : > { %v8945_v39 = vadd.f32 %v6500_v1, %v6499_v11  ;;  %6646 = vmatpush3.bf16.msra.mxu1 %v7729_v63  ;;  %v6502_v38 = vpop.f32.mrb[2].mxu0 }
 0x1f1   : > { %v6503_v3 = vpop.f32.mrb[3].mxu0  ;;  %6647 = vmatprep.subr.bf16.mxu1 %v7730_v0 }
 0x1f2   : > { %v6411_v6 = vpop.f32.mrb[8].mxu1 }
 0x1f3   : > { %v6412_v9 = vpop.f32.mrb[9].mxu1 }
 0x1f4   : > { %v6413_v10 = vadd.f32 %v6412_v9, %v6411_v6  ;;  %6648 = vmatpush3.bf16.msra.mxu1 %v7731_v2  ;;  %v6414_v13 = vpop.f32.mrb[10].mxu1 }
 0x1f5   : > { %v6415_v16 = vpop.f32.mrb[11].mxu1  ;;  %6649 = vmatprep.subr.bf16.mxu1 %v7732_v4 }
 0x1f8   : > { %6650 = vmatpush3.bf16.msra.mxu1 %v7733_v15 }
 0x1f9   : > { %6651 = vmatprep.subr.bf16.mxu1 %v7734_v18 }
 0x1fc   : > { %6652 = vmatpush3.bf16.msra.mxu1 %v7735_v21 }
 0x1fd   : > { %6681 = vmatprep.subr.bf16.mxu1 %v7737_v24 }
 0x1ff   : > { %2880 = vmatmul.mubr.bf16.vlgmr.msra.gmra.mrb[36].mxu1 %v2602_v28 }
 0x200   : > { %6682 = vmatpush3.bf16.msra.mxu1 %v7738_v17  ;;  %3236 = vmatprep.mubr.bf16.mxu1 %v2967_v23  ;;  %v7755_v23 = vld [vmem:[%s9883_s3 + $0x40] sm:$0xff]  }
 0x201   : > { %6683 = vmatprep.subr.bf16.mxu1 %v7741_v29 }
 0x204   : > { %6684 = vmatpush3.bf16.msra.mxu1 %v7742_v30  ;;  %v8017_v30 = vmov 0.0  }
 0x205   : > { %6685 = vmatprep.subr.bf16.mxu1 %v7743_v31  ;;  %6901 = vmatprep.subr.bf16.mxu0 %v8017_v30  ;;  %v7756_v31 = vld [vmem:[%s9883_s3 + $0x48] sm:$0xff]  }
 0x206   : > { %6902 = vmatpush3.bf16.msra.mxu0 %v7755_v23  ;;  %6917 = vmatprep.mubr.msk.bf16.mxu0 %vm8018_vm14, %v8017_v30 }
 0x207   : > { %6903 = vmatprep.subr.bf16.mxu0 %v8017_v30 }
 0x208   : > { %6686 = vmatpush3.bf16.msra.mxu1 %v7744_v32  ;;  %v7758_v32 = vld [vmem:[%s9883_s3 + $0x58] sm:$0xff]  }
 0x209   : > { %6687 = vmatprep.subr.bf16.mxu1 %v7745_v33  ;;  %v7759_v33 = vld [vmem:[%s9883_s3 + $0x60] sm:$0xff]  }
 0x20a   : > { %6904 = vmatpush3.bf16.msra.mxu0 %v7756_v31  ;;  %v7765_v31 = vld [vmem:[%s9883_s3 + $0x8] sm:$0xff]  }
 0x20b   : > { %6905 = vmatprep.subr.bf16.mxu0 %v8017_v30 }
 0x20c   : > { %6688 = vmatpush3.bf16.msra.mxu1 %v7746_v37 }
 0x20d   : > { %6689 = vmatprep.subr.bf16.mxu1 %v7747_v34 }
 0x20e   : > { %v6543_v26 = vpop.f32.mrb[4].mxu0 }
 0x20f   : > { %v6544_v40 = vpop.f32.mrb[5].mxu0 }
 0x210   : > { %v8998_v42 = vadd.f32 %v6544_v40, %v6543_v26  ;;  %v6546_v43 = vpop.f32.mrb[6].mxu0  ;;  %6690 = vmatpush3.bf16.msra.mxu1 %v7748_v35  ;;  %v7760_v35 = vld [vmem:[%s9883_s3 + $0x68] sm:$0xff]  }
 0x211   : > { %v6547_v45 = vpop.f32.mrb[7].mxu0  ;;  %6691 = vmatprep.subr.bf16.mxu1 %v7749_v36 }
 0x212   : > { %v6433_v47 = vpop.f32.mrb[12].mxu1 }
 0x213   : > { %v6434_v25 = vpop.f32.mrb[13].mxu1 }
 0x214   : > { %v6435_v49 = vadd.f32 %v6434_v25, %v6433_v47  ;;  %6692 = vmatpush3.bf16.msra.mxu1 %v7750_v44  ;;  %v6436_v50 = vpop.f32.mrb[14].mxu1  ;;  %v7761_v44 = vld [vmem:[%s9883_s3 + $0x70] sm:$0xff]  }
 0x215   : > { %v6437_v52 = vpop.f32.mrb[15].mxu1  ;;  %6693 = vmatprep.subr.bf16.mxu1 %v7751_v46  ;;  %v7762_v46 = vld [vmem:[%s9883_s3 + $0x78] sm:$0xff]  }
 0x216   : > { %v1119_v54 = vadd.f32 %v6435_v49, %v6413_v10 }
 0x218   : > { %6694 = vmatpush3.bf16.msra.mxu1 %v7752_v51 }
 0x219   : > { %6695 = vmatprep.subr.bf16.mxu1 %v7753_v53 }
 0x21c   : > { %6696 = vmatpush3.bf16.msra.mxu1 %v7754_v55 }
 0x21d   : > { %7041 = vmatprep.subr.bf16.mxu1 %v8017_v30 }
 0x21f   : > { %3237 = vmatmul.mubr.bf16.vlgmr.msra.gmra.mrb[40].mxu1 %v2966_v57 }
 0x220   : > { %7057 = vmatprep.mubr.msk.bf16.mxu1 %vm8018_vm14, %v8017_v30 }
 0x22e   : > { %v6587_v48 = vpop.f32.mrb[8].mxu0 }
 0x22f   : > { %v6588_v58 = vpop.f32.mrb[9].mxu0 }
 0x230   : > { %v9016_v59 = vadd.f32 %v6588_v58, %v6587_v48  ;;  %v6590_v60 = vpop.f32.mrb[10].mxu0 }
 0x231   : > { %v6591_v61 = vpop.f32.mrb[11].mxu0 }
 0x232   : > { %v6455_v62 = vpop.f32.mrb[16].mxu1 }
 0x233   : > { %v6456_v63 = vpop.f32.mrb[17].mxu1 }
 0x234   : > { %v6457_v0 = vadd.f32 %v6456_v63, %v6455_v62  ;;  %v6458_v11 = vpop.f32.mrb[18].mxu1 }
 0x235   : > { %v6459_v1 = vpop.f32.mrb[19].mxu1 }
 0x236   : > { %v1359_v38 = vadd.f32 %v6457_v0, %v1119_v54 }
 0x24f   : > { %v6631_v2 = vpop.f32.mrb[12].mxu0 }
 0x250   : > { %v6632_v3 = vpop.f32.mrb[13].mxu0 }
 0x251   : > { %v9018_v4 = vadd.f32 %v6632_v3, %v6631_v2  ;;  %v6634_v41 = vpop.f32.mrb[14].mxu0  ;;  %v9079_v3 = vld [vmem:[%s9886_s6 + $0x2] ss:$0 sm:$0xff] }
 0x252   : > { %v6635_v5 = vpop.f32.mrb[15].mxu0  ;;  %v6477_v6 = vpop.f32.mrb[20].mxu1 }
 0x253   : > { %v6478_v9 = vpop.f32.mrb[21].mxu1 }
 0x254   : > { %v6479_v10 = vadd.f32 %v6478_v9, %v6477_v6  ;;  %v6480_v13 = vpop.f32.mrb[22].mxu1 }
 0x255   : > { %v6481_v15 = vpop.f32.mrb[23].mxu1 }
 0x256   : > { %v1399_v16 = vadd.f32 %v6479_v10, %v1359_v38  ;;  %v9073_v38 = vld [vmem:[%s9886_s6 + $0x1] ss:$0 sm:$0xff] }
 0x26f   : > { %v6675_v18 = vpop.f32.mrb[16].mxu0 }
 0x270   : > { %v6676_v19 = vpop.f32.mrb[17].mxu0 }
 0x271   : > { %v9020_v20 = vadd.f32 %v6676_v19, %v6675_v18  ;;  %v6678_v21 = vpop.f32.mrb[18].mxu0  ;;  %v3277_v18 = vld [vmem:[#allocation2] sm:$0xe] }
 0x272   : > { %v6679_v12 = vpop.f32.mrb[19].mxu0  ;;  %v6521_v22 = vpop.f32.mrb[24].mxu1  ;;  %v3280_v21 = vld [vmem:[#allocation2 + $0x10] sm:$0x3] }
 0x273   : > { %v6522_v24 = vpop.f32.mrb[25].mxu1 }
 0x274   : > { %v6523_v7 = vadd.f32 %v6522_v24, %v6521_v22  ;;  %v6524_v27 = vpop.f32.mrb[26].mxu1 }
 0x275   : > { %v6525_v17 = vpop.f32.mrb[27].mxu1 }
 0x276   : > { %v1755_v28 = vadd.f32 %v6523_v7, %v8945_v39  ;;  %v7757_v39 = vld [vmem:[%s9883_s3 + $0x50] sm:$0xff]  }
 0x277   : > { %6906 = vmatpush3.bf16.msra.mxu0 %v7757_v39  ;;  %v7766_v39 = vld [vmem:[%s9883_s3 + $0x10] sm:$0xff]  }
 0x278   : > { %v1760_v29 = vadd.f32 %v1755_v28, %v1399_v16  ;;  %6907 = vmatprep.subr.bf16.mxu0 %v8017_v30 }
 0x27b   : > { %6908 = vmatpush3.bf16.msra.mxu0 %v7758_v32  ;;  %v7767_v32 = vld [vmem:[%s9883_s3 + $0x18] sm:$0xff]  }
 0x27c   : > { %6909 = vmatprep.subr.bf16.mxu0 %v8017_v30 }
 0x27f   : > { %6910 = vmatpush3.bf16.msra.mxu0 %v7759_v33  ;;  %v7768_v33 = vld [vmem:[%s9883_s3 + $0x20] sm:$0xff]  }
 0x280   : > { %6911 = vmatprep.subr.bf16.mxu0 %v8017_v30 }
 0x283   : > { %6912 = vmatpush3.bf16.msra.mxu0 %v7760_v35  ;;  %v7771_v35 = vld [vmem:[%s9883_s3 + $0x38] sm:$0xff]  }
 0x284   : > { %6913 = vmatprep.subr.bf16.mxu0 %v8017_v30 }
 0x287   : > { %6914 = vmatpush3.bf16.msra.mxu0 %v7761_v44  ;;  %v7776_v44 = vld [vmem:[%s9883_s3 + $0xa0] sm:$0xff]  }
 0x288   : > { %6915 = vmatprep.subr.bf16.mxu0 %v8017_v30 }
 0x28b   : > { %6916 = vmatpush3.bf16.msra.mxu0 %v7762_v46  ;;  %v7778_v46 = vld [vmem:[%s9883_s3 + $0xb0] sm:$0xff]  }
 0x28c   : > { %6921 = vmatprep.subr.bf16.mxu0 %v8017_v30 }
 0x292   : > { %v6565_v37 = vpop.f32.mrb[28].mxu1 }
 0x293   : > { %v6566_v34 = vpop.f32.mrb[29].mxu1 }
 0x294   : > { %v6567_v36 = vadd.f32 %v6566_v34, %v6565_v37  ;;  %v6568_v26 = vpop.f32.mrb[30].mxu1  ;;  %v7769_v37 = vld [vmem:[%s9883_s3 + $0x28] sm:$0xff]   ;;  %v7770_v34 = vld [vmem:[%s9883_s3 + $0x30] sm:$0xff]  }
 0x295   : > { %v6569_v40 = vpop.f32.mrb[31].mxu1  ;;  %v7773_v26 = vld [vmem:[%s9883_s3 + $0x88] sm:$0xff]  }
 0x296   : > { %v2140_v43 = vadd.f32 %v6567_v36, %v8998_v42  ;;  %v7772_v36 = vld [vmem:[%s9883_s3 + $0x80] sm:$0xff]   ;;  %v7774_v40 = vld [vmem:[%s9883_s3 + $0x90] sm:$0xff]  }
 0x298   : > { %v2145_v45 = vadd.f32 %v2140_v43, %v1760_v29  ;;  %v7764_v29 = vld [vmem:[%s9883_s3] sm:$0xff]   ;;  %v7775_v43 = vld [vmem:[%s9883_s3 + $0x98] sm:$0xff]  }
 0x2b2   : > { %v6609_v47 = vpop.f32.mrb[32].mxu1 }
 0x2b3   : > { %v6610_v42 = vpop.f32.mrb[33].mxu1 }
 0x2b4   : > { %v6611_v25 = vadd.f32 %v6610_v42, %v6609_v47  ;;  %v6612_v49 = vpop.f32.mrb[34].mxu1  ;;  %v7779_v47 = vld [vmem:[%s9883_s3 + $0xb8] sm:$0xff]  }
 0x2b5   : > { %v6613_v50 = vpop.f32.mrb[35].mxu1  ;;  %v7781_v49 = vld [vmem:[%s9883_s3 + $0xc0] sm:$0xff]  }
 0x2b6   : > { %v2497_v51 = vadd.f32 %v6611_v25, %v9016_v59  ;;  %v9068_v59 = vld [vmem:[%s9886_s6] ss:$0 sm:$0xff] }
 0x2b8   : > { %v2502_v52 = vadd.f32 %v2497_v51, %v2145_v45  ;;  %v7777_v45 = vld [vmem:[%s9883_s3 + $0xa8] sm:$0xff]  }
 0x2b9   : > { %v7782_v51 = vld [vmem:[%s9883_s3 + $0xc8] sm:$0xff]  }
 0x2d2   : > { %v6653_v53 = vpop.f32.mrb[36].mxu1 }
 0x2d3   : > { %v6654_v54 = vpop.f32.mrb[37].mxu1 }
 0x2d4   : > { %v6655_v55 = vadd.f32 %v6654_v54, %v6653_v53  ;;  %v6656_v56 = vpop.f32.mrb[38].mxu1  ;;  %v7784_v53 = vld [vmem:[%s9883_s3 + $0xd8] sm:$0xff]   ;;  %v7785_v54 = vld [vmem:[%s9883_s3 + $0xe0] sm:$0xff]  }
 0x2d5   : > { %v6657_v57 = vpop.f32.mrb[39].mxu1  ;;  %v7786_v56 = vld [vmem:[%s9883_s3 + $0xe8] sm:$0xff]  }
 0x2d6   : > { %v2882_v48 = vadd.f32 %v6655_v55, %v9018_v4 }
 0x2d8   : > { %v2887_v58 = vadd.f32 %v2882_v48, %v2502_v52  ;;  %v7783_v52 = vld [vmem:[%s9883_s3 + $0xd0] sm:$0xff]  }
 0x2d9   : > { %v7787_v48 = vld [vmem:[%s9883_s3 + $0xf0] sm:$0xff]  }
 0x2f2   : > { %v6697_v60 = vpop.f32.mrb[40].mxu1 }
 0x2f3   : > { %v6698_v61 = vpop.f32.mrb[41].mxu1 }
 0x2f4   : > { %v6699_v62 = vadd.f32 %v6698_v61, %v6697_v60  ;;  %v6700_v63 = vpop.f32.mrb[42].mxu1  ;;  %v7788_v61 = vld [vmem:[%s9883_s3 + $0xf8] sm:$0xff]  }
 0x2f5   : > { %v6701_v0 = vpop.f32.mrb[43].mxu1 }
 0x2f6   : > { %v3239_v11 = vadd.f32 %v6699_v62, %v9020_v20  ;;  %v7790_v0 = vld [vmem:[%s9883_s3 + $0x100] sm:$0xff]  }
 0x2f8   : > { %v3244_v1 = vadd.f32 %v3239_v11, %v2887_v58 }
 0x2fa   : > { %v3249_v2 = vmul.f32 %v9068_v59, %v3244_v1  ;;  %v7791_v1 = vld [vmem:[%s9883_s3 + $0x108] sm:$0xff]  }
 0x2fc   : > { %v3254_v4 = vadd.f32 %v9073_v38, %v3249_v2  ;;  %v7792_v2 = vld [vmem:[%s9883_s3 + $0x110] sm:$0xff]  }
 0x2fe   : > { %vm3255_vm15 = vcmp.ge.f32.partialorder %v3254_v4, 0.0  ;;  %v3260_v41 = vmul.f32 %v9079_v3, %v3254_v4 }
 0x300   : > { %v3261_v5 = vsel %vm3255_vm15, %v3254_v4, %v3260_v41  ;;  %v7793_v4 = vld [vmem:[%s9883_s3 + $0x118] sm:$0xff]   ;;  %v7794_v41 = vld [vmem:[%s9883_s3 + $0x120] sm:$0xff]  }
 0x301   : > { %v6392_v6 = vpack.c.bf16 %v3261_v5, %v3261_v5  ;;  %v7795_v5 = vld [vmem:[%s9883_s3 + $0x128] sm:$0xff]  }
 0x303   : > { %v3267_v9 = vshrl.u32 %v6392_v6, 16  ;;  %v3270_v10 = vshll.u32 %v6392_v6, 16  ;;  %v7796_v6 = vld [vmem:[%s9883_s3 + $0x130] sm:$0xff]  }
 0x305   : > { %v3269_v13 = vrot.slane %v3267_v9, 6  ;;  %v3272_v15 = vrot.slane %v3270_v10, 7  ;;  %v7797_v9 = vld [vmem:[%s9883_s3 + $0x138] sm:$0xff]  }
 0x307   : > { %v3273_v16 = vor.u32 %v3272_v15, %v3269_v13  ;;  %v7799_v15 = vld [vmem:[%s9883_s3 + $0x140] sm:$0xff]  }
 0x309   : > { %v3274_v19 = vrot.slane %v3273_v16, 4  ;;  %v3278_v20 = vsel %vm8321_vm7, %v3273_v16, %v3277_v18  ;;  %v7800_v18 = vld [vmem:[%s9883_s3 + $0x148] sm:$0xff]  }
 0x30a   : > { %3279 = vst [vmem:[#allocation2] sm:$0xe] %v3278_v20  ;;  %v7802_v20 = vld [vmem:[%s9883_s3 + $0x158] sm:$0xff]  }
 0x30b   : > { %v3281_v12 = vsel %vm8331_vm10, %v3274_v19, %v3280_v21  ;;  %v7801_v19 = vld [vmem:[%s9883_s3 + $0x150] sm:$0xff]   ;;  %v7803_v21 = vld [vmem:[%s9883_s3 + $0x160] sm:$0xff]  }
 0x30c   : > { %3282 = vst [vmem:[#allocation2 + $0x10] sm:$0x3] %v3281_v12 }
 0x311   : > { %v3283_v22 = vld [vmem:[#allocation2] sm:$0xf] }
 0x312   : > { %v9153_v42 = vld [vmem:[#allocation2] sm:$0xe] }
 0x313   : > { %v3300_v24 = vld [vmem:[#allocation2 + $0x10] sm:$0x1]  ;;  %v3735_v10 = vld [vmem:[#allocation2] sm:$0xc] }
 0x314   : > { %v6191_v7 = vcombine.low %v3283_v22, %v3300_v24  ;;  %v6208_v25 = vcombine.low %v9153_v42, %v3300_v24  ;;  %v3617_v55 = vld [vmem:[#allocation2 + $0x10] sm:$0x3] }
 0x315   : > { %v6217_v57 = vcombine.low %v9153_v42, %v3617_v55  ;;  %v6226_v13 = vcombine.low %v3735_v10, %v3617_v55  ;;  %v3846_v12 = vld [vmem:[#allocation2 + $0x10] sm:$0x7] }
 0x316   : > { %v3325_v27 = vshll.u32 %v6191_v7, 16  ;;  %v3323_v17 = vshrl.u32 %v6191_v7, 16  ;;  %v3526_v50 = vrot.slane %v6208_v25, 1  ;;  %v6235_v24 = vcombine.low %v3735_v10, %v3846_v12  ;;  %v7805_v7 = vld [vmem:[%s9883_s3 + $0x170] sm:$0xff]   ;;  %v7820_v25 = vld [vmem:[%s9884_s4 + $0x58] sm:$0xff]  }
 0x317   : > { %v3638_v58 = vshrl.u32 %v6217_v57, 16  ;;  %v3641_v60 = vshll.u32 %v6217_v57, 16  ;;  %v3755_v16 = vrot.slane %v6226_v13, 2 }
 0x318   : > { %v3327_v28 = vrot.slane %v3325_v27, 1  ;;  %v3867_v27 = vshrl.u32 %v6235_v24, 16 }
 0x319   : > { %v3640_v62 = vrot.slane %v3638_v58, 1  ;;  %v3643_v63 = vrot.slane %v3641_v60, 2 }
 0x31a   : > { %v3328_v23 = vor.u32 %v3327_v28, %v3323_v17  ;;  %v3870_v17 = vshll.u32 %v6235_v24, 16  ;;  %v7806_v28 = vld [vmem:[%s9883_s3 + $0x178] sm:$0xff]   ;;  %v7832_v24 = vld [vmem:[%s9884_s4 + $0x30] sm:$0xff]  }
 0x31b   : > { %v3644_v11 = vor.u32 %v3643_v63, %v3640_v62 }
 0x31c   : > { %6918 = vmatmul.mubr.bf16.vlgmr.msra.gmra.mrb[20].mxu0 %v3328_v23  ;;  %v3872_v23 = vrot.slane %v3870_v17, 3  ;;  %v7835_v17 = vld [vmem:[%s9884_s4 + $0x88] sm:$0xff]  }
 0x31d   : > { %6922 = vmatpush3.bf16.msra.mxu0 %v7764_v29  ;;  %6937 = vmatprep.mubr.msk.bf16.mxu0 %vm8018_vm14, %v8017_v30  ;;  %v3869_v29 = vrot.slane %v3867_v27, 2  ;;  %v7834_v27 = vld [vmem:[%s9884_s4 + $0x80] sm:$0xff]  }
 0x31e   : > { %6923 = vmatprep.subr.bf16.mxu0 %v8017_v30 }
 0x321   : > { %6924 = vmatpush3.bf16.msra.mxu0 %v7765_v31  ;;  %v7808_v31 = vld [vmem:[%s9883_s3 + $0x180] sm:$0xff]  }
 0x322   : > { %6925 = vmatprep.subr.bf16.mxu0 %v8017_v30 }
 0x325   : > { %6926 = vmatpush3.bf16.msra.mxu0 %v7766_v39  ;;  %v3873_v39 = vor.u32 %v3872_v23, %v3869_v29  ;;  %v7837_v29 = vld [vmem:[%s9884_s4 + $0x98] sm:$0xff]   ;;  %v7838_v23 = vld [vmem:[%s9884_s4 + $0xa0] sm:$0xff]  }
 0x326   : > { %6927 = vmatprep.subr.bf16.mxu0 %v8017_v30 }
 0x329   : > { %6928 = vmatpush3.bf16.msra.mxu0 %v7767_v32  ;;  %v7809_v32 = vld [vmem:[%s9883_s3 + $0x188] sm:$0xff]  }
 0x32a   : > { %6929 = vmatprep.subr.bf16.mxu0 %v8017_v30 }
 0x32d   : > { %6930 = vmatpush3.bf16.msra.mxu0 %v7768_v33  ;;  %v7810_v33 = vld [vmem:[%s9883_s3 + $0x190] sm:$0xff]  }
 0x32e   : > { %6931 = vmatprep.subr.bf16.mxu0 %v8017_v30 }
 0x331   : > { %6932 = vmatpush3.bf16.msra.mxu0 %v7769_v37  ;;  %v7811_v37 = vld [vmem:[%s9883_s3 + $0x198] sm:$0xff]  }
 0x332   : > { %6933 = vmatprep.subr.bf16.mxu0 %v8017_v30 }
 0x335   : > { %6934 = vmatpush3.bf16.msra.mxu0 %v7770_v34  ;;  %v7812_v34 = vld [vmem:[%s9883_s3 + $0x1a0] sm:$0xff]  }
 0x336   : > { %6935 = vmatprep.subr.bf16.mxu0 %v8017_v30 }
 0x339   : > { %6936 = vmatpush3.bf16.msra.mxu0 %v7771_v35  ;;  %v7813_v35 = vld [vmem:[%s9883_s3 + $0x1a8] sm:$0xff]  }
 0x33a   : > { %6941 = vmatprep.subr.bf16.mxu0 %v8017_v30 }
 0x33c   : > { %6938 = vmatmul.mubr.bf16.vlgmr.msra.gmra.mrb[20].mxu0 %v3283_v22  ;;  %v7804_v22 = vld [vmem:[%s9883_s3 + $0x168] sm:$0xff]  }
 0x33d   : > { %6942 = vmatpush3.bf16.msra.mxu0 %v7772_v36  ;;  %6957 = vmatprep.mubr.msk.bf16.mxu0 %vm8018_vm14, %v8017_v30  ;;  %v7814_v36 = vld [vmem:[%s9883_s3 + $0x1b0] sm:$0xff]  }
 0x33e   : > { %6943 = vmatprep.subr.bf16.mxu0 %v8017_v30 }
 0x341   : > { %6944 = vmatpush3.bf16.msra.mxu0 %v7773_v26  ;;  %v7815_v26 = vld [vmem:[%s9883_s3 + $0x1b8] sm:$0xff]  }
 0x342   : > { %6945 = vmatprep.subr.bf16.mxu0 %v8017_v30 }
 0x345   : > { %6946 = vmatpush3.bf16.msra.mxu0 %v7774_v40  ;;  %v3964_v40 = vld [vmem:[#allocation2] sm:$0x8] }
 0x346   : > { %6947 = vmatprep.subr.bf16.mxu0 %v8017_v30 }
 0x349   : > { %6948 = vmatpush3.bf16.msra.mxu0 %v7775_v43  ;;  %v6244_v43 = vcombine.low %v3964_v40, %v3846_v12  ;;  %v7830_v12 = vld [vmem:[%s9884_s4 + $0x20] sm:$0xff]   ;;  %v7846_v40 = vld [vmem:[%s9884_s4 + $0xd8] sm:$0xff]  }
 0x34a   : > { %6949 = vmatprep.subr.bf16.mxu0 %v8017_v30 }
 0x34d   : > { %6950 = vmatpush3.bf16.msra.mxu0 %v7776_v44  ;;  %v3984_v44 = vrot.slane %v6244_v43, 3  ;;  %v7847_v43 = vld [vmem:[%s9884_s4 + $0xe0] sm:$0xff]  }
 0x34e   : > { %6951 = vmatprep.subr.bf16.mxu0 %v8017_v30 }
 0x351   : > { %6952 = vmatpush3.bf16.msra.mxu0 %v7777_v45  ;;  %v7817_v45 = vld [vmem:[%s9884_s4 + $0x40] sm:$0xff]  }
 0x352   : > { %6953 = vmatprep.subr.bf16.mxu0 %v8017_v30  ;;  %7042 = vmatpush3.bf16.msra.mxu1 %v7817_v45  ;;  %v7848_v45 = vld [vmem:[%s9884_s4 + $0xe8] sm:$0xff]  }
 0x353   : > { %7043 = vmatprep.subr.bf16.mxu1 %v8017_v30 }
 0x355   : > { %6954 = vmatpush3.bf16.msra.mxu0 %v7778_v46  ;;  %v7818_v46 = vld [vmem:[%s9884_s4 + $0x48] sm:$0xff]  }
 0x356   : > { %6955 = vmatprep.subr.bf16.mxu0 %v8017_v30  ;;  %7044 = vmatpush3.bf16.msra.mxu1 %v7818_v46 }
 0x357   : > { %7045 = vmatprep.subr.bf16.mxu1 %v8017_v30 }
 0x359   : > { %6956 = vmatpush3.bf16.msra.mxu0 %v7779_v47  ;;  %v7819_v47 = vld [vmem:[%s9884_s4 + $0x50] sm:$0xff]  }
 0x35a   : > { %6961 = vmatprep.subr.bf16.mxu0 %v8017_v30  ;;  %7046 = vmatpush3.bf16.msra.mxu1 %v7819_v47  ;;  %v7849_v47 = vld [vmem:[%s9884_s4 + $0xf0] sm:$0xff]  }
 0x35b   : > { %7047 = vmatprep.subr.bf16.mxu1 %v8017_v30 }
 0x35c   : > { %6958 = vmatmul.mubr.bf16.vlgmr.msra.gmra.mrb[20].mxu0 %v3526_v50  ;;  %v7822_v50 = vld [vmem:[%s9884_s4 + $0x68] sm:$0xff]  }
 0x35d   : > { %6962 = vmatpush3.bf16.msra.mxu0 %v7781_v49  ;;  %6977 = vmatprep.mubr.msk.bf16.mxu0 %vm8018_vm14, %v8017_v30  ;;  %v7821_v49 = vld [vmem:[%s9884_s4 + $0x60] sm:$0xff]  }
 0x35e   : > { %6963 = vmatprep.subr.bf16.mxu0 %v8017_v30  ;;  %7048 = vmatpush3.bf16.msra.mxu1 %v7820_v25 }
 0x35f   : > { %7049 = vmatprep.subr.bf16.mxu1 %v8017_v30 }
 0x361   : > { %6964 = vmatpush3.bf16.msra.mxu0 %v7782_v51  ;;  %v7823_v51 = vld [vmem:[%s9884_s4 + $0x70] sm:$0xff]  }
 0x362   : > { %6965 = vmatprep.subr.bf16.mxu0 %v8017_v30  ;;  %7050 = vmatpush3.bf16.msra.mxu1 %v7821_v49 }
 0x363   : > { %7051 = vmatprep.subr.bf16.mxu1 %v8017_v30 }
 0x365   : > { %6966 = vmatpush3.bf16.msra.mxu0 %v7783_v52  ;;  %v7824_v52 = vld [vmem:[%s9884_s4 + $0x78] sm:$0xff]  }
 0x366   : > { %6967 = vmatprep.subr.bf16.mxu0 %v8017_v30  ;;  %7052 = vmatpush3.bf16.msra.mxu1 %v7822_v50  ;;  %v7850_v50 = vld [vmem:[%s9884_s4 + $0xf8] sm:$0xff]  }
 0x367   : > { %7053 = vmatprep.subr.bf16.mxu1 %v8017_v30 }
 0x369   : > { %6968 = vmatpush3.bf16.msra.mxu0 %v7784_v53 }
 0x36a   : > { %6969 = vmatprep.subr.bf16.mxu0 %v8017_v30  ;;  %7054 = vmatpush3.bf16.msra.mxu1 %v7823_v51 }
 0x36b   : > { %7055 = vmatprep.subr.bf16.mxu1 %v8017_v30 }
 0x36d   : > { %6970 = vmatpush3.bf16.msra.mxu0 %v7785_v54 }
 0x36e   : > { %6971 = vmatprep.subr.bf16.mxu0 %v8017_v30  ;;  %7056 = vmatpush3.bf16.msra.mxu1 %v7824_v52 }
 0x36f   : > { %7061 = vmatprep.subr.bf16.mxu1 %v8017_v30 }
 0x371   : > { %6972 = vmatpush3.bf16.msra.mxu0 %v7786_v56 }
 0x372   : > { %6973 = vmatprep.subr.bf16.mxu0 %v8017_v30 }
 0x375   : > { %6974 = vmatpush3.bf16.msra.mxu0 %v7787_v48 }
 0x376   : > { %6975 = vmatprep.subr.bf16.mxu0 %v8017_v30 }
 0x379   : > { %6976 = vmatpush3.bf16.msra.mxu0 %v7788_v61 }
 0x37a   : > { %6981 = vmatprep.subr.bf16.mxu0 %v8017_v30 }
 0x37c   : > { %6978 = vmatmul.mubr.bf16.vlgmr.msra.gmra.mrb[20].mxu0 %v3644_v11 }
 0x37d   : > { %6982 = vmatpush3.bf16.msra.mxu0 %v7790_v0  ;;  %6997 = vmatprep.mubr.msk.bf16.mxu0 %vm8018_vm14, %v8017_v30 }
 0x37e   : > { %6983 = vmatprep.subr.bf16.mxu0 %v8017_v30 }
 0x381   : > { %6984 = vmatpush3.bf16.msra.mxu0 %v7791_v1 }
 0x382   : > { %6985 = vmatprep.subr.bf16.mxu0 %v8017_v30 }
 0x385   : > { %6986 = vmatpush3.bf16.msra.mxu0 %v7792_v2 }
 0x386   : > { %6987 = vmatprep.subr.bf16.mxu0 %v8017_v30 }
 0x389   : > { %6988 = vmatpush3.bf16.msra.mxu0 %v7793_v4 }
 0x38a   : > { %6989 = vmatprep.subr.bf16.mxu0 %v8017_v30 }
 0x38d   : > { %6990 = vmatpush3.bf16.msra.mxu0 %v7794_v41  ;;  %v4097_v41 = vld [vmem:[#allocation2 + $0x10] sm:$0x3] }
 0x38e   : > { %6991 = vmatprep.subr.bf16.mxu0 %v8017_v30 }
 0x391   : > { %6992 = vmatpush3.bf16.msra.mxu0 %v7795_v5 }
 0x392   : > { %6993 = vmatprep.subr.bf16.mxu0 %v8017_v30 }
 0x395   : > { %6994 = vmatpush3.bf16.msra.mxu0 %v7796_v6 }
 0x396   : > { %6995 = vmatprep.subr.bf16.mxu0 %v8017_v30 }
 0x399   : > { %6996 = vmatpush3.bf16.msra.mxu0 %v7797_v9 }
 0x39a   : > { %7001 = vmatprep.subr.bf16.mxu0 %v8017_v30 }
 0x39c   : > { %6998 = vmatmul.mubr.bf16.vlgmr.msra.gmra.mrb[20].mxu0 %v3755_v16 }
 0x39d   : > { %7002 = vmatpush3.bf16.msra.mxu0 %v7799_v15  ;;  %7017 = vmatprep.mubr.msk.bf16.mxu0 %vm8018_vm14, %v8017_v30 }
 0x39e   : > { %7003 = vmatprep.subr.bf16.mxu0 %v8017_v30 }
 0x3a1   : > { %7004 = vmatpush3.bf16.msra.mxu0 %v7800_v18  ;;  %v7826_v18 = vld [vmem:[%s9884_s4] sm:$0xff]  }
 0x3a2   : > { %7005 = vmatprep.subr.bf16.mxu0 %v8017_v30 }
 0x3a5   : > { %7006 = vmatpush3.bf16.msra.mxu0 %v7801_v19 }
 0x3a6   : > { %7007 = vmatprep.subr.bf16.mxu0 %v8017_v30 }
 0x3a9   : > { %7008 = vmatpush3.bf16.msra.mxu0 %v7802_v20  ;;  %v7828_v20 = vld [vmem:[%s9884_s4 + $0x10] sm:$0xff]  }
 0x3aa   : > { %7009 = vmatprep.subr.bf16.mxu0 %v8017_v30 }
 0x3ad   : > { %7010 = vmatpush3.bf16.msra.mxu0 %v7803_v21  ;;  %v7829_v21 = vld [vmem:[%s9884_s4 + $0x18] sm:$0xff]  }
 0x3ae   : > { %7011 = vmatprep.subr.bf16.mxu0 %v8017_v30 }
 0x3b1   : > { %7012 = vmatpush3.bf16.msra.mxu0 %v7804_v22  ;;  %v7831_v22 = vld [vmem:[%s9884_s4 + $0x28] sm:$0xff]  }
 0x3b2   : > { %7013 = vmatprep.subr.bf16.mxu0 %v8017_v30 }
 0x3b5   : > { %7014 = vmatpush3.bf16.msra.mxu0 %v7805_v7  ;;  %v7833_v7 = vld [vmem:[%s9884_s4 + $0x38] sm:$0xff]  }
 0x3b6   : > { %7015 = vmatprep.subr.bf16.mxu0 %v8017_v30 }
 0x3b9   : > { %7016 = vmatpush3.bf16.msra.mxu0 %v7806_v28  ;;  %v7836_v28 = vld [vmem:[%s9884_s4 + $0x90] sm:$0xff]  }
 0x3ba   : > { %7021 = vmatprep.subr.bf16.mxu0 %v8017_v30 }
 0x3bc   : > { %7018 = vmatmul.mubr.bf16.vlgmr.msra.gmra.mrb[20].mxu0 %v3873_v39  ;;  %v7840_v39 = vld [vmem:[%s9884_s4 + $0xb0] sm:$0xff]  }
 0x3bd   : > { %7022 = vmatpush3.bf16.msra.mxu0 %v7808_v31  ;;  %7037 = vmatprep.mubr.msk.bf16.mxu0 %vm8018_vm14, %v8017_v30  ;;  %v7839_v31 = vld [vmem:[%s9884_s4 + $0xa8] sm:$0xff]  }
 0x3be   : > { %7023 = vmatprep.subr.bf16.mxu0 %v8017_v30 }
 0x3c1   : > { %7024 = vmatpush3.bf16.msra.mxu0 %v7809_v32  ;;  %v7841_v32 = vld [vmem:[%s9884_s4 + $0xb8] sm:$0xff]  }
 0x3c2   : > { %7025 = vmatprep.subr.bf16.mxu0 %v8017_v30 }
 0x3c5   : > { %7026 = vmatpush3.bf16.msra.mxu0 %v7810_v33 }
 0x3c6   : > { %7027 = vmatprep.subr.bf16.mxu0 %v8017_v30 }
 0x3c9   : > { %7028 = vmatpush3.bf16.msra.mxu0 %v7811_v37 }
 0x3ca   : > { %7029 = vmatprep.subr.bf16.mxu0 %v8017_v30 }
 0x3cd   : > { %7030 = vmatpush3.bf16.msra.mxu0 %v7812_v34  ;;  %v7843_v34 = vld [vmem:[%s9884_s4 + $0xc0] sm:$0xff]  }
 0x3ce   : > { %7031 = vmatprep.subr.bf16.mxu0 %v8017_v30 }
 0x3d1   : > { %7032 = vmatpush3.bf16.msra.mxu0 %v7813_v35 }
 0x3d2   : > { %7033 = vmatprep.subr.bf16.mxu0 %v8017_v30 }
 0x3d5   : > { %7034 = vmatpush3.bf16.msra.mxu0 %v7814_v36  ;;  %v7844_v36 = vld [vmem:[%s9884_s4 + $0xc8] sm:$0xff]  }
 0x3d6   : > { %7035 = vmatprep.subr.bf16.mxu0 %v8017_v30 }
 0x3d9   : > { %7036 = vmatpush3.bf16.msra.mxu0 %v7815_v26  ;;  %v7845_v26 = vld [vmem:[%s9884_s4 + $0xd0] sm:$0xff]  }
 0x3da   : > { %7181 = vmatprep.subr.bf16.mxu0 %v8017_v30 }
 0x3dc   : > { %7038 = vmatmul.mubr.bf16.vlgmr.msra.gmra.mrb[20].mxu0 %v3984_v44 }
 0x3dd   : > { %7197 = vmatprep.mubr.msk.bf16.mxu0 %vm8018_vm14, %v8017_v30 }
 0x4af   : > { %v4068_v53 = vpop.f32.mrb[20].mxu0 }
 0x4b0   : > { %v4075_v54 = vmul.f32 %v9068_v59, %v4068_v53  ;;  %v7039_v55 = vpop.f32.mrb[21].mxu0  ;;  %v7852_v53 = vld [vmem:[%s9884_s4 + $0x100] sm:$0xff]  }
 0x4b1   : > { %v4071_v56 = vpop.f32.mrb[22].mxu0  ;;  %v7853_v55 = vld [vmem:[%s9884_s4 + $0x108] sm:$0xff]  }
 0x4b2   : > { %v4076_v57 = vadd.f32 %v9073_v38, %v4075_v54  ;;  %v7040_v48 = vpop.f32.mrb[23].mxu0  ;;  %v7854_v56 = vld [vmem:[%s9884_s4 + $0x110] sm:$0xff]  }
 0x4b3   : > { %v7856_v48 = vld [vmem:[%s9884_s4 + $0x120] sm:$0xff]  }
 0x4b4   : > { %vm4077_vm0 = vcmp.ge.f32.partialorder %v4076_v57, 0.0  ;;  %v4078_v58 = vmul.f32 %v9079_v3, %v4076_v57 }
 0x4b6   : > { %v4079_v60 = vsel %vm4077_vm0, %v4076_v57, %v4078_v58  ;;  %v7855_v57 = vld [vmem:[%s9884_s4 + $0x118] sm:$0xff]   ;;  %v7857_v58 = vld [vmem:[%s9884_s4 + $0x128] sm:$0xff]  }
 0x4b7   : > { %v6393_v61 = vpack.c.bf16 %v4079_v60, %v4079_v60  ;;  %v7858_v60 = vld [vmem:[%s9884_s4 + $0x130] sm:$0xff]  }
 0x4b9   : > { %v4085_v62 = vshrl.u32 %v6393_v61, 16  ;;  %v4088_v63 = vshll.u32 %v6393_v61, 16  ;;  %v7859_v61 = vld [vmem:[%s9884_s4 + $0x138] sm:$0xff]  }
 0x4bb   : > { %v4087_v0 = vrot.slane %v4085_v62, 6  ;;  %v4090_v11 = vrot.slane %v4088_v63, 7 }
 0x4bd   : > { %v4091_v1 = vor.u32 %v4090_v11, %v4087_v0  ;;  %v7861_v0 = vld [vmem:[%s9884_s4 + $0x140] sm:$0xff]  }
 0x4bf   : > { %v4092_v2 = vrot.slane %v4091_v1, 4  ;;  %v4095_v4 = vsel %vm8321_vm7, %v4091_v1, %v9153_v42  ;;  %v7827_v42 = vld [vmem:[%s9884_s4 + $0x8] sm:$0xff]  }
 0x4c0   : > { %4096 = vst [vmem:[#allocation2] sm:$0xe] %v4095_v4  ;;  %v7862_v1 = vld [vmem:[%s9884_s4 + $0x148] sm:$0xff]   ;;  %v7864_v4 = vld [vmem:[%s9884_s4 + $0x158] sm:$0xff]  }
 0x4c1   : > { %v4098_v5 = vsel %vm8331_vm10, %v4092_v2, %v4097_v41  ;;  %v7863_v2 = vld [vmem:[%s9884_s4 + $0x150] sm:$0xff]   ;;  %v7865_v41 = vld [vmem:[%s9884_s4 + $0x160] sm:$0xff]  }
 0x4c2   : > { %4099 = vst [vmem:[#allocation2 + $0x10] sm:$0x3] %v4098_v5 }
 0x4c7   : > { %v4100_v6 = vld [vmem:[#allocation2] sm:$0xf] }
 0x4c8   : > { %v9403_v33 = vld [vmem:[#allocation2] sm:$0xe] }
 0x4c9   : > { %v4117_v9 = vld [vmem:[#allocation2 + $0x10] sm:$0x1]  ;;  %v4552_v62 = vld [vmem:[#allocation2] sm:$0xc] }
 0x4ca   : > { %v6254_v10 = vcombine.low %v4100_v6, %v4117_v9  ;;  %v6271_v37 = vcombine.low %v9403_v33, %v4117_v9  ;;  %v4434_v44 = vld [vmem:[#allocation2 + $0x10] sm:$0x3] }
 0x4cb   : > { %v6280_v46 = vcombine.low %v9403_v33, %v4434_v44  ;;  %v6289_v63 = vcombine.low %v4552_v62, %v4434_v44  ;;  %v4663_v5 = vld [vmem:[#allocation2 + $0x10] sm:$0x7] }
 0x4cc   : > { %v4142_v13 = vshll.u32 %v6254_v10, 16  ;;  %v4140_v15 = vshrl.u32 %v6254_v10, 16  ;;  %v4343_v35 = vrot.slane %v6271_v37, 1  ;;  %v6298_v9 = vcombine.low %v4552_v62, %v4663_v5  ;;  %v7867_v10 = vld [vmem:[%s9884_s4 + $0x170] sm:$0xff]   ;;  %v7882_v37 = vld [vmem:[%s9885_s5 + $0x58] sm:$0xff]  }
 0x4cd   : > { %v4455_v25 = vshrl.u32 %v6280_v46, 16  ;;  %v4458_v49 = vshll.u32 %v6280_v46, 16  ;;  %v4572_v11 = vrot.slane %v6289_v63, 2  ;;  %v7888_v63 = vld [vmem:[%s9885_s5] sm:$0xff]  }
 0x4ce   : > { %v4144_v16 = vrot.slane %v4142_v13, 1  ;;  %v4684_v13 = vshrl.u32 %v6298_v9, 16 }
 0x4cf   : > { %v4457_v51 = vrot.slane %v4455_v25, 1  ;;  %v4460_v52 = vrot.slane %v4458_v49, 2 }
 0x4d0   : > { %v4145_v19 = vor.u32 %v4144_v16, %v4140_v15  ;;  %v4687_v15 = vshll.u32 %v6298_v9, 16  ;;  %v7868_v16 = vld [vmem:[%s9884_s4 + $0x178] sm:$0xff]  }
 0x4d1   : > { %v4461_v54 = vor.u32 %v4460_v52, %v4457_v51  ;;  %v7899_v9 = vld [vmem:[%s9885_s5 + $0x98] sm:$0xff]  }
 0x4d2   : > { %7058 = vmatmul.mubr.bf16.vlgmr.msra.gmra.mrb[44].mxu1 %v4145_v19  ;;  %v4689_v19 = vrot.slane %v4687_v15, 3  ;;  %v7902_v15 = vld [vmem:[%s9885_s5 + $0xb0] sm:$0xff]  }
 0x4d3   : > { %7062 = vmatpush3.bf16.msra.mxu1 %v7826_v18  ;;  %7077 = vmatprep.mubr.msk.bf16.mxu1 %vm8018_vm14, %v8017_v30  ;;  %v4686_v18 = vrot.slane %v4684_v13, 2  ;;  %v7901_v13 = vld [vmem:[%s9885_s5 + $0xa8] sm:$0xff]  }
 0x4d4   : > { %7063 = vmatprep.subr.bf16.mxu1 %v8017_v30 }
 0x4d7   : > { %7064 = vmatpush3.bf16.msra.mxu1 %v7827_v42  ;;  %v7870_v42 = vld [vmem:[%s9884_s4 + $0x180] sm:$0xff]  }
 0x4d8   : > { %7065 = vmatprep.subr.bf16.mxu1 %v8017_v30 }
 0x4db   : > { %7066 = vmatpush3.bf16.msra.mxu1 %v7828_v20  ;;  %v4690_v20 = vor.u32 %v4689_v19, %v4686_v18 }
 0x4dc   : > { %7067 = vmatprep.subr.bf16.mxu1 %v8017_v30 }
 0x4df   : > { %7068 = vmatpush3.bf16.msra.mxu1 %v7829_v21  ;;  %v7871_v21 = vld [vmem:[%s9884_s4 + $0x188] sm:$0xff]  }
 0x4e0   : > { %7069 = vmatprep.subr.bf16.mxu1 %v8017_v30 }
 0x4e3   : > { %7070 = vmatpush3.bf16.msra.mxu1 %v7830_v12  ;;  %v7872_v12 = vld [vmem:[%s9884_s4 + $0x190] sm:$0xff]  }
 0x4e4   : > { %7071 = vmatprep.subr.bf16.mxu1 %v8017_v30 }
 0x4e7   : > { %7072 = vmatpush3.bf16.msra.mxu1 %v7831_v22  ;;  %v7873_v22 = vld [vmem:[%s9884_s4 + $0x198] sm:$0xff]  }
 0x4e8   : > { %7073 = vmatprep.subr.bf16.mxu1 %v8017_v30 }
 0x4eb   : > { %7074 = vmatpush3.bf16.msra.mxu1 %v7832_v24  ;;  %v7874_v24 = vld [vmem:[%s9884_s4 + $0x1a0] sm:$0xff]  }
 0x4ec   : > { %7075 = vmatprep.subr.bf16.mxu1 %v8017_v30 }
 0x4ef   : > { %7076 = vmatpush3.bf16.msra.mxu1 %v7833_v7  ;;  %v7875_v7 = vld [vmem:[%s9884_s4 + $0x1a8] sm:$0xff]  }
 0x4f0   : > { %7081 = vmatprep.subr.bf16.mxu1 %v8017_v30 }
 0x4f2   : > { %7078 = vmatmul.mubr.bf16.vlgmr.msra.gmra.mrb[44].mxu1 %v4100_v6  ;;  %v7866_v6 = vld [vmem:[%s9884_s4 + $0x168] sm:$0xff]  }
 0x4f3   : > { %7082 = vmatpush3.bf16.msra.mxu1 %v7834_v27  ;;  %7097 = vmatprep.mubr.msk.bf16.mxu1 %vm8018_vm14, %v8017_v30  ;;  %v7876_v27 = vld [vmem:[%s9884_s4 + $0x1b0] sm:$0xff]  }
 0x4f4   : > { %7083 = vmatprep.subr.bf16.mxu1 %v8017_v30 }
 0x4f7   : > { %7084 = vmatpush3.bf16.msra.mxu1 %v7835_v17  ;;  %v7877_v17 = vld [vmem:[%s9884_s4 + $0x1b8] sm:$0xff]  }
 0x4f8   : > { %7085 = vmatprep.subr.bf16.mxu1 %v8017_v30 }
 0x4fb   : > { %7086 = vmatpush3.bf16.msra.mxu1 %v7836_v28  ;;  %v4781_v28 = vld [vmem:[#allocation2] sm:$0x8] }
 0x4fc   : > { %7087 = vmatprep.subr.bf16.mxu1 %v8017_v30 }
 0x4ff   : > { %7088 = vmatpush3.bf16.msra.mxu1 %v7837_v29  ;;  %v6307_v29 = vcombine.low %v4781_v28, %v4663_v5  ;;  %v7897_v5 = vld [vmem:[%s9885_s5 + $0x88] sm:$0xff]  }
 0x500   : > { %7089 = vmatprep.subr.bf16.mxu1 %v8017_v30  ;;  %v7911_v28 = vld [vmem:[%s9885_s5 + $0xe8] sm:$0xff]  }
 0x503   : > { %7090 = vmatpush3.bf16.msra.mxu1 %v7838_v23  ;;  %v4801_v23 = vrot.slane %v6307_v29, 3 }
 0x504   : > { %7091 = vmatprep.subr.bf16.mxu1 %v8017_v30 }
 0x507   : > { %7092 = vmatpush3.bf16.msra.mxu1 %v7839_v31  ;;  %v7879_v31 = vld [vmem:[%s9885_s5 + $0x40] sm:$0xff]  }
 0x508   : > { %7093 = vmatprep.subr.bf16.mxu1 %v8017_v30  ;;  %7182 = vmatpush3.bf16.msra.mxu0 %v7879_v31 }
 0x509   : > { %7183 = vmatprep.subr.bf16.mxu0 %v8017_v30 }
 0x50b   : > { %7094 = vmatpush3.bf16.msra.mxu1 %v7840_v39  ;;  %v7880_v39 = vld [vmem:[%s9885_s5 + $0x48] sm:$0xff]  }
 0x50c   : > { %7095 = vmatprep.subr.bf16.mxu1 %v8017_v30  ;;  %7184 = vmatpush3.bf16.msra.mxu0 %v7880_v39 }
 0x50d   : > { %7185 = vmatprep.subr.bf16.mxu0 %v8017_v30 }
 0x50f   : > { %7096 = vmatpush3.bf16.msra.mxu1 %v7841_v32  ;;  %v7881_v32 = vld [vmem:[%s9885_s5 + $0x50] sm:$0xff]  }
 0x510   : > { %7101 = vmatprep.subr.bf16.mxu1 %v8017_v30  ;;  %7186 = vmatpush3.bf16.msra.mxu0 %v7881_v32  ;;  %v7913_v32 = vld [vmem:[%s9885_s5 + $0xf8] sm:$0xff]  }
 0x511   : > { %7187 = vmatprep.subr.bf16.mxu0 %v8017_v30 }
 0x512   : > { %7098 = vmatmul.mubr.bf16.vlgmr.msra.gmra.mrb[44].mxu1 %v4343_v35  ;;  %v7884_v35 = vld [vmem:[%s9885_s5 + $0x68] sm:$0xff]  }
 0x513   : > { %7102 = vmatpush3.bf16.msra.mxu1 %v7843_v34  ;;  %7117 = vmatprep.mubr.msk.bf16.mxu1 %vm8018_vm14, %v8017_v30  ;;  %v7883_v34 = vld [vmem:[%s9885_s5 + $0x60] sm:$0xff]  }
 0x514   : > { %7103 = vmatprep.subr.bf16.mxu1 %v8017_v30  ;;  %7188 = vmatpush3.bf16.msra.mxu0 %v7882_v37 }
 0x515   : > { %7189 = vmatprep.subr.bf16.mxu0 %v8017_v30 }
 0x517   : > { %7104 = vmatpush3.bf16.msra.mxu1 %v7844_v36  ;;  %v7885_v36 = vld [vmem:[%s9885_s5 + $0x70] sm:$0xff]  }
 0x518   : > { %7105 = vmatprep.subr.bf16.mxu1 %v8017_v30  ;;  %7190 = vmatpush3.bf16.msra.mxu0 %v7883_v34 }
 0x519   : > { %7191 = vmatprep.subr.bf16.mxu0 %v8017_v30 }
 0x51b   : > { %7106 = vmatpush3.bf16.msra.mxu1 %v7845_v26  ;;  %v7886_v26 = vld [vmem:[%s9885_s5 + $0x78] sm:$0xff]  }
 0x51c   : > { %7107 = vmatprep.subr.bf16.mxu1 %v8017_v30  ;;  %7192 = vmatpush3.bf16.msra.mxu0 %v7884_v35  ;;  %v7914_v35 = vld [vmem:[%s9885_s5 + $0x100] sm:$0xff]  }
 0x51d   : > { %7193 = vmatprep.subr.bf16.mxu0 %v8017_v30 }
 0x51f   : > { %7108 = vmatpush3.bf16.msra.mxu1 %v7846_v40 }
 0x520   : > { %7109 = vmatprep.subr.bf16.mxu1 %v8017_v30  ;;  %7194 = vmatpush3.bf16.msra.mxu0 %v7885_v36 }
 0x521   : > { %7195 = vmatprep.subr.bf16.mxu0 %v8017_v30 }
 0x523   : > { %7110 = vmatpush3.bf16.msra.mxu1 %v7847_v43 }
 0x524   : > { %7111 = vmatprep.subr.bf16.mxu1 %v8017_v30  ;;  %7196 = vmatpush3.bf16.msra.mxu0 %v7886_v26  ;;  %v7915_v26 = vld [vmem:[%s9885_s5 + $0x108] sm:$0xff]  }
 0x525   : > { %7201 = vmatprep.subr.bf16.mxu0 %v8017_v30 }
 0x527   : > { %7112 = vmatpush3.bf16.msra.mxu1 %v7848_v45 }
 0x528   : > { %7113 = vmatprep.subr.bf16.mxu1 %v8017_v30 }
 0x52b   : > { %7114 = vmatpush3.bf16.msra.mxu1 %v7849_v47 }
 0x52c   : > { %7115 = vmatprep.subr.bf16.mxu1 %v8017_v30 }
 0x52f   : > { %7116 = vmatpush3.bf16.msra.mxu1 %v7850_v50 }
 0x530   : > { %7121 = vmatprep.subr.bf16.mxu1 %v8017_v30 }
 0x532   : > { %7118 = vmatmul.mubr.bf16.vlgmr.msra.gmra.mrb[44].mxu1 %v4461_v54 }
 0x533   : > { %7122 = vmatpush3.bf16.msra.mxu1 %v7852_v53  ;;  %7137 = vmatprep.mubr.msk.bf16.mxu1 %vm8018_vm14, %v8017_v30 }
 0x534   : > { %7123 = vmatprep.subr.bf16.mxu1 %v8017_v30 }
 0x537   : > { %7124 = vmatpush3.bf16.msra.mxu1 %v7853_v55 }
 0x538   : > { %7125 = vmatprep.subr.bf16.mxu1 %v8017_v30 }
 0x53b   : > { %7126 = vmatpush3.bf16.msra.mxu1 %v7854_v56 }
 0x53c   : > { %7127 = vmatprep.subr.bf16.mxu1 %v8017_v30 }
 0x53f   : > { %7128 = vmatpush3.bf16.msra.mxu1 %v7855_v57  ;;  %v4914_v57 = vld [vmem:[#allocation2 + $0x10] sm:$0x3] }
 0x540   : > { %7129 = vmatprep.subr.bf16.mxu1 %v8017_v30 }
 0x543   : > { %7130 = vmatpush3.bf16.msra.mxu1 %v7856_v48 }
 0x544   : > { %7131 = vmatprep.subr.bf16.mxu1 %v8017_v30 }
 0x547   : > { %7132 = vmatpush3.bf16.msra.mxu1 %v7857_v58 }
 0x548   : > { %7133 = vmatprep.subr.bf16.mxu1 %v8017_v30 }
 0x54b   : > { %7134 = vmatpush3.bf16.msra.mxu1 %v7858_v60 }
 0x54c   : > { %7135 = vmatprep.subr.bf16.mxu1 %v8017_v30 }
 0x54f   : > { %7136 = vmatpush3.bf16.msra.mxu1 %v7859_v61 }
 0x550   : > { %7141 = vmatprep.subr.bf16.mxu1 %v8017_v30 }
 0x552   : > { %7138 = vmatmul.mubr.bf16.vlgmr.msra.gmra.mrb[44].mxu1 %v4572_v11  ;;  %v7892_v11 = vld [vmem:[%s9885_s5 + $0x20] sm:$0xff]  }
 0x553   : > { %7142 = vmatpush3.bf16.msra.mxu1 %v7861_v0  ;;  %7157 = vmatprep.mubr.msk.bf16.mxu1 %vm8018_vm14, %v8017_v30 }
 0x554   : > { %7143 = vmatprep.subr.bf16.mxu1 %v8017_v30 }
 0x557   : > { %7144 = vmatpush3.bf16.msra.mxu1 %v7862_v1  ;;  %v7893_v1 = vld [vmem:[%s9885_s5 + $0x28] sm:$0xff]  }
 0x558   : > { %7145 = vmatprep.subr.bf16.mxu1 %v8017_v30 }
 0x55b   : > { %7146 = vmatpush3.bf16.msra.mxu1 %v7863_v2  ;;  %v7894_v2 = vld [vmem:[%s9885_s5 + $0x30] sm:$0xff]  }
 0x55c   : > { %7147 = vmatprep.subr.bf16.mxu1 %v8017_v30 }
 0x55f   : > { %7148 = vmatpush3.bf16.msra.mxu1 %v7864_v4  ;;  %v7895_v4 = vld [vmem:[%s9885_s5 + $0x38] sm:$0xff]  }
 0x560   : > { %7149 = vmatprep.subr.bf16.mxu1 %v8017_v30 }
 0x563   : > { %7150 = vmatpush3.bf16.msra.mxu1 %v7865_v41  ;;  %v7896_v41 = vld [vmem:[%s9885_s5 + $0x80] sm:$0xff]  }
 0x564   : > { %7151 = vmatprep.subr.bf16.mxu1 %v8017_v30 }
 0x567   : > { %7152 = vmatpush3.bf16.msra.mxu1 %v7866_v6  ;;  %v7898_v6 = vld [vmem:[%s9885_s5 + $0x90] sm:$0xff]  }
 0x568   : > { %7153 = vmatprep.subr.bf16.mxu1 %v8017_v30 }
 0x56b   : > { %7154 = vmatpush3.bf16.msra.mxu1 %v7867_v10  ;;  %v7900_v10 = vld [vmem:[%s9885_s5 + $0xa0] sm:$0xff]  }
 0x56c   : > { %7155 = vmatprep.subr.bf16.mxu1 %v8017_v30 }
 0x56f   : > { %7156 = vmatpush3.bf16.msra.mxu1 %v7868_v16  ;;  %v7903_v16 = vld [vmem:[%s9885_s5 + $0xb8] sm:$0xff]  }
 0x570   : > { %7161 = vmatprep.subr.bf16.mxu1 %v8017_v30 }
 0x572   : > { %7158 = vmatmul.mubr.bf16.vlgmr.msra.gmra.mrb[44].mxu1 %v4690_v20 }
 0x573   : > { %7162 = vmatpush3.bf16.msra.mxu1 %v7870_v42  ;;  %7177 = vmatprep.mubr.msk.bf16.mxu1 %vm8018_vm14, %v8017_v30  ;;  %v7906_v42 = vld [vmem:[%s9885_s5 + $0xc0] sm:$0xff]  }
 0x574   : > { %7163 = vmatprep.subr.bf16.mxu1 %v8017_v30 }
 0x577   : > { %7164 = vmatpush3.bf16.msra.mxu1 %v7871_v21  ;;  %v7941_v21 = vld [vmem:[%s9887_s7] sm:$0xff]  }
 0x578   : > { %7165 = vmatprep.subr.bf16.mxu1 %v8017_v30 }
 0x57b   : > { %7166 = vmatpush3.bf16.msra.mxu1 %v7872_v12  ;;  %v7907_v12 = vld [vmem:[%s9885_s5 + $0xc8] sm:$0xff]  }
 0x57c   : > { %7167 = vmatprep.subr.bf16.mxu1 %v8017_v30 }
 0x57f   : > { %7168 = vmatpush3.bf16.msra.mxu1 %v7873_v22  ;;  %v7942_v22 = vld [vmem:[%s9887_s7 + $0x8] sm:$0xff]  }
 0x580   : > { %7169 = vmatprep.subr.bf16.mxu1 %v8017_v30 }
 0x583   : > { %7170 = vmatpush3.bf16.msra.mxu1 %v7874_v24  ;;  %v7908_v24 = vld [vmem:[%s9885_s5 + $0xd0] sm:$0xff]  }
 0x584   : > { %7171 = vmatprep.subr.bf16.mxu1 %v8017_v30 }
 0x587   : > { %7172 = vmatpush3.bf16.msra.mxu1 %v7875_v7  ;;  %v7909_v7 = vld [vmem:[%s9885_s5 + $0xd8] sm:$0xff]  }
 0x588   : > { %7173 = vmatprep.subr.bf16.mxu1 %v8017_v30 }
 0x58b   : > { %7174 = vmatpush3.bf16.msra.mxu1 %v7876_v27  ;;  %v7910_v27 = vld [vmem:[%s9885_s5 + $0xe0] sm:$0xff]  }
 0x58c   : > { %7175 = vmatprep.subr.bf16.mxu1 %v8017_v30 }
 0x58f   : > { %7176 = vmatpush3.bf16.msra.mxu1 %v7877_v17 }
 0x590   : > { %7321 = vmatprep.subr.bf16.mxu1 %v8017_v30 }
 0x592   : > { %7178 = vmatmul.mubr.bf16.vlgmr.msra.gmra.mrb[44].mxu1 %v4801_v23  ;;  %v7912_v23 = vld [vmem:[%s9885_s5 + $0xf0] sm:$0xff]  }
 0x593   : > { %7337 = vmatprep.mubr.msk.bf16.mxu1 %vm8018_vm14, %v8017_v30  ;;  %7322 = vmatpush3.bf16.msra.mxu1 %v7941_v21 }
 0x594   : > { %7323 = vmatprep.subr.bf16.mxu1 %v8017_v30 }
 0x597   : > { %7324 = vmatpush3.bf16.msra.mxu1 %v7942_v22 }
 0x598   : > { %7325 = vmatprep.subr.bf16.mxu1 %v8017_v30 }
 0x665   : > { %v4885_v40 = vpop.f32.mrb[44].mxu1 }
 0x666   : > { %v4892_v43 = vmul.f32 %v9068_v59, %v4885_v40  ;;  %v7179_v44 = vpop.f32.mrb[45].mxu1  ;;  %v7916_v40 = vld [vmem:[%s9885_s5 + $0x110] sm:$0xff]  }
 0x667   : > { %v4888_v45 = vpop.f32.mrb[46].mxu1  ;;  %v7918_v44 = vld [vmem:[%s9885_s5 + $0x120] sm:$0xff]  }
 0x668   : > { %v4893_v46 = vadd.f32 %v9073_v38, %v4892_v43  ;;  %v7180_v47 = vpop.f32.mrb[47].mxu1  ;;  %v7917_v43 = vld [vmem:[%s9885_s5 + $0x118] sm:$0xff]   ;;  %v7919_v45 = vld [vmem:[%s9885_s5 + $0x128] sm:$0xff]  }
 0x669   : > { %v7921_v47 = vld [vmem:[%s9885_s5 + $0x138] sm:$0xff]  }
 0x66a   : > { %vm4894_vm1 = vcmp.ge.f32.partialorder %v4893_v46, 0.0  ;;  %v4895_v25 = vmul.f32 %v9079_v3, %v4893_v46 }
 0x66c   : > { %v4896_v49 = vsel %vm4894_vm1, %v4893_v46, %v4895_v25  ;;  %v7920_v46 = vld [vmem:[%s9885_s5 + $0x130] sm:$0xff]  }
 0x66d   : > { %v6394_v50 = vpack.c.bf16 %v4896_v49, %v4896_v49 }
 0x66f   : > { %v4902_v51 = vshrl.u32 %v6394_v50, 16  ;;  %v4905_v52 = vshll.u32 %v6394_v50, 16  ;;  %v7924_v50 = vld [vmem:[%s9885_s5 + $0x140] sm:$0xff]  }
 0x671   : > { %v4904_v53 = vrot.slane %v4902_v51, 6  ;;  %v4907_v54 = vrot.slane %v4905_v52, 7  ;;  %v7925_v52 = vld [vmem:[%s9885_s5 + $0x148] sm:$0xff]  }
 0x673   : > { %v4908_v55 = vor.u32 %v4907_v54, %v4904_v53  ;;  %v7926_v53 = vld [vmem:[%s9885_s5 + $0x150] sm:$0xff]   ;;  %v7927_v54 = vld [vmem:[%s9885_s5 + $0x158] sm:$0xff]  }
 0x675   : > { %v4909_v56 = vrot.slane %v4908_v55, 4  ;;  %v4912_v59 = vsel %vm8321_vm7, %v4908_v55, %v9403_v33  ;;  %v7891_v33 = vld [vmem:[%s9885_s5 + $0x18] sm:$0xff]   ;;  %v7928_v55 = vld [vmem:[%s9885_s5 + $0x160] sm:$0xff]  }
 0x676   : > { %4913 = vst [vmem:[#allocation2] sm:$0xe] %v4912_v59  ;;  %v7929_v59 = vld [vmem:[%s9885_s5 + $0x168] sm:$0xff]  }
 0x677   : > { %v4915_v38 = vsel %vm8331_vm10, %v4909_v56, %v4914_v57 }
 0x678   : > { %4916 = vst [vmem:[#allocation2 + $0x10] sm:$0x3] %v4915_v38  ;;  %v7930_v38 = vld [vmem:[%s9885_s5 + $0x170] sm:$0xff]  }
 0x67d   : > { %v4917_v48 = vld [vmem:[#allocation2] sm:$0xf] }
 0x67e   : > { %v5140_v18 = vld [vmem:[#allocation2] sm:$0xe] }
 0x67f   : > { %v4934_v3 = vld [vmem:[#allocation2 + $0x10] sm:$0x1]  ;;  %v5369_v25 = vld [vmem:[#allocation2] sm:$0xc] }
 0x680   : > { %v6317_v58 = vcombine.low %v4917_v48, %v4934_v3  ;;  %v6334_v19 = vcombine.low %v5140_v18, %v4934_v3  ;;  %v5251_v17 = vld [vmem:[#allocation2 + $0x10] sm:$0x3] }
 0x681   : > { %v6343_v29 = vcombine.low %v5140_v18, %v5251_v17  ;;  %v6352_v49 = vcombine.low %v5369_v25, %v5251_v17  ;;  %v5480_v56 = vld [vmem:[#allocation2 + $0x10] sm:$0x7] }
 0x682   : > { %v4959_v60 = vshll.u32 %v6317_v58, 16  ;;  %v4957_v61 = vshrl.u32 %v6317_v58, 16  ;;  %v5160_v20 = vrot.slane %v6334_v19, 1  ;;  %v6361_v57 = vcombine.low %v5369_v25, %v5480_v56  ;;  %v7931_v58 = vld [vmem:[%s9885_s5 + $0x178] sm:$0xff]   ;;  %v7949_v19 = vld [vmem:[%s9886_s6] ss:$0 sm:$0xff] }
 0x683   : > { %v5272_v31 = vshrl.u32 %v6343_v29, 16  ;;  %v5275_v39 = vshll.u32 %v6343_v29, 16  ;;  %v5389_v51 = vrot.slane %v6352_v49, 2 }
 0x684   : > { %v4961_v62 = vrot.slane %v4959_v60, 1  ;;  %v5504_v3 = vshll.u32 %v6361_v57, 16 }
 0x685   : > { %v5274_v37 = vrot.slane %v5272_v31, 1  ;;  %v5277_v34 = vrot.slane %v5275_v39, 2 }
 0x686   : > { %v4962_v0 = vor.u32 %v4961_v62, %v4957_v61  ;;  %v5506_v61 = vrot.slane %v5504_v3, 3  ;;  %v7932_v62 = vld [vmem:[%s9885_s5 + $0x180] sm:$0xff]  }
 0x687   : > { %v5278_v36 = vor.u32 %v5277_v34, %v5274_v37  ;;  %v5738_v34 = vld [vmem:[%s9888_s8] sm:$0x1] }
 0x688   : > { %7198 = vmatmul.mubr.bf16.vlgmr.msra.gmra.mrb[24].mxu0 %v4962_v0  ;;  %v7933_v0 = vld [vmem:[%s9885_s5 + $0x188] sm:$0xff]  }
 0x689   : > { %7202 = vmatpush3.bf16.msra.mxu0 %v7888_v63  ;;  %7217 = vmatprep.mubr.msk.bf16.mxu0 %vm8018_vm14, %v8017_v30 }
 0x68a   : > { %7203 = vmatprep.subr.bf16.mxu0 %v8017_v30 }
 0x68d   : > { %7204 = vmatpush3.bf16.msra.mxu0 %v7889_v8  ;;  %v7934_v8 = vld [vmem:[%s9885_s5 + $0x190] sm:$0xff]  }
 0x68e   : > { %7205 = vmatprep.subr.bf16.mxu0 %v8017_v30 }
 0x691   : > { %7206 = vmatpush3.bf16.msra.mxu0 %v7890_v14  ;;  %v7935_v14 = vld [vmem:[%s9885_s5 + $0x198] sm:$0xff]  }
 0x692   : > { %7207 = vmatprep.subr.bf16.mxu0 %v8017_v30 }
 0x695   : > { %7208 = vmatpush3.bf16.msra.mxu0 %v7891_v33  ;;  %v7936_v33 = vld [vmem:[%s9885_s5 + $0x1a0] sm:$0xff]  }
 0x696   : > { %7209 = vmatprep.subr.bf16.mxu0 %v8017_v30 }
 0x699   : > { %7210 = vmatpush3.bf16.msra.mxu0 %v7892_v11  ;;  %v7937_v11 = vld [vmem:[%s9885_s5 + $0x1a8] sm:$0xff]  }
 0x69a   : > { %7211 = vmatprep.subr.bf16.mxu0 %v8017_v30 }
 0x69d   : > { %7212 = vmatpush3.bf16.msra.mxu0 %v7893_v1  ;;  %v7938_v1 = vld [vmem:[%s9885_s5 + $0x1b0] sm:$0xff]  }
 0x69e   : > { %7213 = vmatprep.subr.bf16.mxu0 %v8017_v30 }
 0x6a1   : > { %7214 = vmatpush3.bf16.msra.mxu0 %v7894_v2  ;;  %v7939_v2 = vld [vmem:[%s9885_s5 + $0x1b8] sm:$0xff]  }
 0x6a2   : > { %7215 = vmatprep.subr.bf16.mxu0 %v8017_v30 }
 0x6a5   : > { %7216 = vmatpush3.bf16.msra.mxu0 %v7895_v4  ;;  %v5598_v4 = vld [vmem:[#allocation2] sm:$0x8] }
 0x6a6   : > { %7221 = vmatprep.subr.bf16.mxu0 %v8017_v30 }
 0x6a8   : > { %7218 = vmatmul.mubr.bf16.vlgmr.msra.gmra.mrb[24].mxu0 %v4917_v48  ;;  %v5501_v48 = vshrl.u32 %v6361_v57, 16 }
 0x6a9   : > { %7222 = vmatpush3.bf16.msra.mxu0 %v7896_v41  ;;  %7237 = vmatprep.mubr.msk.bf16.mxu0 %vm8018_vm14, %v8017_v30  ;;  %v6370_v41 = vcombine.low %v5598_v4, %v5480_v56 }
 0x6aa   : > { %7223 = vmatprep.subr.bf16.mxu0 %v8017_v30  ;;  %v5503_v60 = vrot.slane %v5501_v48, 2 }
 0x6ac   : > { %v5507_v63 = vor.u32 %v5506_v61, %v5503_v60 }
 0x6ad   : > { %7224 = vmatpush3.bf16.msra.mxu0 %v7897_v5  ;;  %v5618_v5 = vrot.slane %v6370_v41, 3 }
 0x6ae   : > { %7225 = vmatprep.subr.bf16.mxu0 %v8017_v30 }
 0x6b1   : > { %7226 = vmatpush3.bf16.msra.mxu0 %v7898_v6  ;;  %v7943_v6 = vld [vmem:[%s9887_s7 + $0x10] sm:$0xff]  }
 0x6b2   : > { %7227 = vmatprep.subr.bf16.mxu0 %v8017_v30  ;;  %7326 = vmatpush3.bf16.msra.mxu1 %v7943_v6 }
 0x6b3   : > { %7327 = vmatprep.subr.bf16.mxu1 %v8017_v30 }
 0x6b5   : > { %7228 = vmatpush3.bf16.msra.mxu0 %v7899_v9  ;;  %v7944_v9 = vld [vmem:[%s9887_s7 + $0x18] sm:$0xff]  }
 0x6b6   : > { %7229 = vmatprep.subr.bf16.mxu0 %v8017_v30  ;;  %7328 = vmatpush3.bf16.msra.mxu1 %v7944_v9 }
 0x6b7   : > { %7329 = vmatprep.subr.bf16.mxu1 %v8017_v30 }
 0x6b9   : > { %7230 = vmatpush3.bf16.msra.mxu0 %v7900_v10  ;;  %v7945_v10 = vld [vmem:[%s9887_s7 + $0x20] sm:$0xff]  }
 0x6ba   : > { %7231 = vmatprep.subr.bf16.mxu0 %v8017_v30  ;;  %7330 = vmatpush3.bf16.msra.mxu1 %v7945_v10 }
 0x6bb   : > { %7331 = vmatprep.subr.bf16.mxu1 %v8017_v30 }
 0x6bd   : > { %7232 = vmatpush3.bf16.msra.mxu0 %v7901_v13  ;;  %v7946_v13 = vld [vmem:[%s9887_s7 + $0x28] sm:$0xff]  }
 0x6be   : > { %7233 = vmatprep.subr.bf16.mxu0 %v8017_v30  ;;  %7332 = vmatpush3.bf16.msra.mxu1 %v7946_v13 }
 0x6bf   : > { %7333 = vmatprep.subr.bf16.mxu1 %v8017_v30 }
 0x6c1   : > { %7234 = vmatpush3.bf16.msra.mxu0 %v7902_v15  ;;  %v7947_v15 = vld [vmem:[%s9887_s7 + $0x30] sm:$0xff]  }
 0x6c2   : > { %7235 = vmatprep.subr.bf16.mxu0 %v8017_v30  ;;  %7334 = vmatpush3.bf16.msra.mxu1 %v7947_v15 }
 0x6c3   : > { %7335 = vmatprep.subr.bf16.mxu1 %v8017_v30 }
 0x6c5   : > { %7236 = vmatpush3.bf16.msra.mxu0 %v7903_v16  ;;  %v7948_v16 = vld [vmem:[%s9887_s7 + $0x38] sm:$0xff]  }
 0x6c6   : > { %7241 = vmatprep.subr.bf16.mxu0 %v8017_v30  ;;  %7336 = vmatpush3.bf16.msra.mxu1 %v7948_v16 }
 0x6c8   : > { %7238 = vmatmul.mubr.bf16.vlgmr.msra.gmra.mrb[24].mxu0 %v5160_v20 }
 0x6c9   : > { %7242 = vmatpush3.bf16.msra.mxu0 %v7906_v42  ;;  %7257 = vmatprep.mubr.msk.bf16.mxu0 %vm8018_vm14, %v8017_v30 }
 0x6ca   : > { %7243 = vmatprep.subr.bf16.mxu0 %v8017_v30 }
 0x6cd   : > { %7244 = vmatpush3.bf16.msra.mxu0 %v7907_v12  ;;  %v7950_v12 = vld [vmem:[%s9886_s6 + $0x1] ss:$0 sm:$0xff] }
 0x6ce   : > { %7245 = vmatprep.subr.bf16.mxu0 %v8017_v30 }
 0x6d1   : > { %7246 = vmatpush3.bf16.msra.mxu0 %v7908_v24 }
 0x6d2   : > { %7247 = vmatprep.subr.bf16.mxu0 %v8017_v30 }
 0x6d5   : > { %7248 = vmatpush3.bf16.msra.mxu0 %v7909_v7 }
 0x6d6   : > { %7249 = vmatprep.subr.bf16.mxu0 %v8017_v30 }
 0x6d9   : > { %7250 = vmatpush3.bf16.msra.mxu0 %v7910_v27 }
 0x6da   : > { %7251 = vmatprep.subr.bf16.mxu0 %v8017_v30 }
 0x6dd   : > { %7252 = vmatpush3.bf16.msra.mxu0 %v7911_v28 }
 0x6de   : > { %7253 = vmatprep.subr.bf16.mxu0 %v8017_v30 }
 0x6e1   : > { %7254 = vmatpush3.bf16.msra.mxu0 %v7912_v23 }
 0x6e2   : > { %7255 = vmatprep.subr.bf16.mxu0 %v8017_v30 }
 0x6e5   : > { %7256 = vmatpush3.bf16.msra.mxu0 %v7913_v32 }
 0x6e6   : > { %7261 = vmatprep.subr.bf16.mxu0 %v8017_v30 }
 0x6e8   : > { %7258 = vmatmul.mubr.bf16.vlgmr.msra.gmra.mrb[24].mxu0 %v5278_v36 }
 0x6e9   : > { %7262 = vmatpush3.bf16.msra.mxu0 %v7914_v35  ;;  %7277 = vmatprep.mubr.msk.bf16.mxu0 %vm8018_vm14, %v8017_v30 }
 0x6ea   : > { %7263 = vmatprep.subr.bf16.mxu0 %v8017_v30 }
 0x6ed   : > { %7264 = vmatpush3.bf16.msra.mxu0 %v7915_v26 }
 0x6ee   : > { %7265 = vmatprep.subr.bf16.mxu0 %v8017_v30 }
 0x6f1   : > { %7266 = vmatpush3.bf16.msra.mxu0 %v7916_v40 }
 0x6f2   : > { %7267 = vmatprep.subr.bf16.mxu0 %v8017_v30 }
 0x6f5   : > { %7268 = vmatpush3.bf16.msra.mxu0 %v7917_v43 }
 0x6f6   : > { %7269 = vmatprep.subr.bf16.mxu0 %v8017_v30 }
 0x6f9   : > { %7270 = vmatpush3.bf16.msra.mxu0 %v7918_v44 }
 0x6fa   : > { %7271 = vmatprep.subr.bf16.mxu0 %v8017_v30 }
 0x6fd   : > { %7272 = vmatpush3.bf16.msra.mxu0 %v7919_v45 }
 0x6fe   : > { %7273 = vmatprep.subr.bf16.mxu0 %v8017_v30 }
 0x701   : > { %7274 = vmatpush3.bf16.msra.mxu0 %v7920_v46 }
 0x702   : > { %7275 = vmatprep.subr.bf16.mxu0 %v8017_v30 }
 0x705   : > { %7276 = vmatpush3.bf16.msra.mxu0 %v7921_v47 }
 0x706   : > { %7281 = vmatprep.subr.bf16.mxu0 %v8017_v30 }
 0x708   : > { %7278 = vmatmul.mubr.bf16.vlgmr.msra.gmra.mrb[24].mxu0 %v5389_v51 }
 0x709   : > { %7282 = vmatpush3.bf16.msra.mxu0 %v7924_v50  ;;  %7297 = vmatprep.mubr.msk.bf16.mxu0 %vm8018_vm14, %v8017_v30 }
 0x70a   : > { %7283 = vmatprep.subr.bf16.mxu0 %v8017_v30 }
 0x70d   : > { %7284 = vmatpush3.bf16.msra.mxu0 %v7925_v52 }
 0x70e   : > { %7285 = vmatprep.subr.bf16.mxu0 %v8017_v30 }
 0x711   : > { %7286 = vmatpush3.bf16.msra.mxu0 %v7926_v53 }
 0x712   : > { %7287 = vmatprep.subr.bf16.mxu0 %v8017_v30 }
 0x715   : > { %7288 = vmatpush3.bf16.msra.mxu0 %v7927_v54 }
 0x716   : > { %7289 = vmatprep.subr.bf16.mxu0 %v8017_v30 }
 0x719   : > { %7290 = vmatpush3.bf16.msra.mxu0 %v7928_v55 }
 0x71a   : > { %7291 = vmatprep.subr.bf16.mxu0 %v8017_v30 }
 0x71d   : > { %7292 = vmatpush3.bf16.msra.mxu0 %v7929_v59 }
 0x71e   : > { %7293 = vmatprep.subr.bf16.mxu0 %v8017_v30 }
 0x721   : > { %7294 = vmatpush3.bf16.msra.mxu0 %v7930_v38 }
 0x722   : > { %7295 = vmatprep.subr.bf16.mxu0 %v8017_v30 }
 0x725   : > { %7296 = vmatpush3.bf16.msra.mxu0 %v7931_v58 }
 0x726   : > { %7301 = vmatprep.subr.bf16.mxu0 %v8017_v30 }
 0x728   : > { %7298 = vmatmul.mubr.bf16.vlgmr.msra.gmra.mrb[24].mxu0 %v5507_v63 }
 0x729   : > { %7302 = vmatpush3.bf16.msra.mxu0 %v7932_v62  ;;  %7317 = vmatprep.mubr.msk.bf16.mxu0 %vm8018_vm14, %v8017_v30 }
 0x72a   : > { %7303 = vmatprep.subr.bf16.mxu0 %v8017_v30 }
 0x72d   : > { %7304 = vmatpush3.bf16.msra.mxu0 %v7933_v0 }
 0x72e   : > { %7305 = vmatprep.subr.bf16.mxu0 %v8017_v30 }
 0x731   : > { %7306 = vmatpush3.bf16.msra.mxu0 %v7934_v8 }
 0x732   : > { %7307 = vmatprep.subr.bf16.mxu0 %v8017_v30 }
 0x735   : > { %7308 = vmatpush3.bf16.msra.mxu0 %v7935_v14 }
 0x736   : > { %7309 = vmatprep.subr.bf16.mxu0 %v8017_v30 }
 0x739   : > { %7310 = vmatpush3.bf16.msra.mxu0 %v7936_v33 }
 0x73a   : > { %7311 = vmatprep.subr.bf16.mxu0 %v8017_v30 }
 0x73d   : > { %7312 = vmatpush3.bf16.msra.mxu0 %v7937_v11 }
 0x73e   : > { %7313 = vmatprep.subr.bf16.mxu0 %v8017_v30 }
 0x741   : > { %7314 = vmatpush3.bf16.msra.mxu0 %v7938_v1 }
 0x742   : > { %7315 = vmatprep.subr.bf16.mxu0 %v8017_v30  ;;  %v7951_v30 = vld [vmem:[%s9886_s6 + $0x2] ss:$0 sm:$0xff] }
 0x745   : > { %7316 = vmatpush3.bf16.msra.mxu0 %v7939_v2 }
 0x748   : > { %7318 = vmatmul.mubr.bf16.vlgmr.msra.gmra.mrb[24].mxu0 %v5618_v5 }
 0x81b   : > { %v5702_v18 = vpop.f32.mrb[24].mxu0 }
 0x81c   : > { %v5709_v42 = vmul.f32 %v7949_v19, %v5702_v18  ;;  %v7319_v20 = vpop.f32.mrb[25].mxu0 }
 0x81d   : > { %v5705_v21 = vpop.f32.mrb[26].mxu0 }
 0x81e   : > { %v5710_v22 = vadd.f32 %v7950_v12, %v5709_v42  ;;  %v7320_v24 = vpop.f32.mrb[27].mxu0 }
 0x820   : > { %vm5711_vm2 = vcmp.ge.f32.partialorder %v5710_v22, 0.0  ;;  %v5712_v7 = vmul.f32 %v7951_v30, %v5710_v22 }
 0x822   : > { %v5713_v27 = vsel %vm5711_vm2, %v5710_v22, %v5712_v7 }
 0x823   : > { %v5714_v17 = vrot.slane %v5713_v27, 4 }
 0x825   : > { %v5715_v28 = vadd.f32 %v5714_v17, %v5713_v27 }
 0x827   : > { %v5716_v29 = vrot.slane %v5715_v28, 2 }
 0x829   : > { %v5717_v23 = vadd.f32 %v5716_v29, %v5715_v28 }
 0x82b   : > { %v5718_v31 = vrot.slane %v5717_v23, 1 }
 0x82d   : > { %v5719_v39 = vadd.f32 %v5718_v31, %v5717_v23 }
 0x82f   : > { %v5720_v32 = vmul.f32 0.125, %v5719_v39 }
 0x831   : > { %v5721_v37 = vpack.c.bf16 %v5720_v32, %v5720_v32 }
 0x833   : > { %7338 = vmatmul.mubr.bf16.vlgmr.msra.gmra.mrb[48].mxu1 %v5721_v37 }
 0x906   : > { %v5821_v35 = vpop.f32.mrb[48].mxu1 }
 0x907   : > { %v5822_v36 = vadd.f32 %v5821_v35, %v5738_v34  ;;  %v7339_v26 = vpop.f32.mrb[49].mxu1 }
 0x908   : > { %v5824_v40 = vpop.f32.mrb[50].mxu1 }
 0x909   : > { %5827 = vst [vmem:[%s322_s16] sm:$0x1] %v5822_v36  ;;  %v7340_v43 = vpop.f32.mrb[51].mxu1 }
 0x90a   : > { %7965 = shalt.err (!%p7962_p3)
}
 0x90b   : > { %s7966_s26 = scalar_lea.hbm %s9838_s24, 16  ;;  %s7970_s16 = scalar_lea.hbm %s9889_s9, 32 }
 0x90c   : > { %p7967_p4 = scmp.ne.s32.totalorder %s9838_s24, %s7966_s26  ;;  %p7971_p9 = scmp.lt.u32.totalorder %s9838_s24, %s9889_s9 }
 0x90d   : > { %p7972_p10 = scmp.lt.u32.totalorder %s7970_s16, %s7966_s26  ;;  %p7974_p12 = scmp.lt.u32.totalorder %s7966_s26, %s9838_s24 }
 0x90e   : > { %p7968_p7 = pnand %p7967_p4, %p8108_p5 }
 0x90f   : > { %p7973_p11 = por %p7972_p10, %p7971_p9 }
 0x910   : > { %p7969_p8 = pneg %p7968_p7 }
 0x911   : > { %p7975_p13 = por %p7974_p12, %p7973_p11 }
 0x913   : > { %p7976_p0 = pnand %p7975_p13, %p7969_p8 }
 0x915   : > { %7979 = shalt.err (!%p7976_p0)
}
 0x916   : > { %7413 = dma.vmem_to_hbm [thread:$0]  (%p8108_p5), %s9840_s17, 16, %s9838_s24, %s5829_s25  }
 0x917 PF: > { %p7419_p1 = scmp.ge.s32.totalorder %s8014_s12, 2  ;;  %s5853_s13 = sand.u32 1, %s8002_s30  }
 0x918   : > { %s5854_s28 = scalar_lea.sflag [#allocation4], %s5853_s13 }
 0x919   : > { %p7416_p2 = pnand %p7419_p1, %p8112_p6 }
 0x91b   : > { %7997 = dma.done.wait (!%p7416_p2), %s5854_s28, 16  }
 0x91c   : > { %7999 = vsyncadd (!%p7416_p2), %s5854_s28, 4294967280  ;;  %p19_p3 = scmp.ge.s32.totalorder %s8095_s15, 4   ;;  %s9900_s30 = smov %s8006_s10 }
 0x91d   : > { %s9901_s10 = smov %s8010_s11  ;;  %s9902_s11 = smov %s8106_s18 }
 0x91e   : > { %s9903_s12 = smov %s8095_s15  ;;  %21 = sbr.rel (!%p19_p3) target bundleno = 3 (0x3), region = 91 }
 0x925   :  { %5858 = vsyncpa [#allocation4], 1 }
 0x926   :  { %5860 = vsyncpa [#allocation4 + $0x1], 1 }

</bundles_post_ra>
